<compile_context>
chip_gen: v6e
topology: v6e:2x2x1
jax: 0.10.0
libtpu: 0.0.40
codegen_flags: <defaults>
</compile_context>

<pallas_src>
import functools

import jax
import jax.numpy as jnp
from jax.experimental import pallas as pl
from jax.experimental.pallas import tpu as pltpu


def _round_up(x, m):
    return ((x + m - 1) // m) * m


# (name, ksize, stride, out_channels, num_i_steps)
_CONV12_CFG = (
    ("conv1", 5, 2, 24, 2),   # M=6076 -> Mp=6080, 2 i-steps, K=75  -> 128
    ("conv2", 5, 2, 36, 2),   # M=1316 -> Mp=1328, 2 i-steps, K=600 -> 640
)
_CONV4_K = 3
_CONV4_OC = 64


# ----------------------------------------------------------------------------
# conv1 / conv2: single-pass fused matmul + bias + ReLU (full K per block)
# ----------------------------------------------------------------------------
def _mm_bias_relu_kernel(x_ref, w_ref, b_ref, o_ref):
    y = jnp.dot(x_ref[...], w_ref[...], preferred_element_type=jnp.float32)
    o_ref[...] = jnp.maximum(y + b_ref[...], 0.0).astype(o_ref.dtype)


def matmul_bias_relu(xp, wp, bp, *, num_i_steps, out_dtype=jnp.bfloat16):
    """relu(xp @ wp + bp) with pre-padded operands, k-grid collapsed."""
    Mp, Kp = xp.shape
    Kp2, Np = wp.shape
    assert Kp == Kp2 and Mp % num_i_steps == 0 and Np % 128 == 0
    tm = Mp // num_i_steps
    assert tm % 8 == 0
    grid = (num_i_steps, Np // 128)

    return pl.pallas_call(
        _mm_bias_relu_kernel,
        out_shape=jax.ShapeDtypeStruct((Mp, Np), out_dtype),
        grid_spec=pltpu.PrefetchScalarGridSpec(
            num_scalar_prefetch=0,
            grid=grid,
            in_specs=[
                pl.BlockSpec((tm, Kp), lambda i, j: (i, 0)),
                pl.BlockSpec((Kp, 128), lambda i, j: (0, j)),
                pl.BlockSpec((1, 128), lambda i, j: (0, j)),
            ],
            out_specs=pl.BlockSpec((tm, 128), lambda i, j: (i, j)),
        ),
        compiler_params=pltpu.CompilerParams(
            dimension_semantics=("parallel", "parallel")
        ),
    )(xp, wp, bp)


def _im2col(x_nhwc, ksize, stride):
    """(N,H,W,C) -> (N,OH,OW,ksize*ksize*C) patch tensor (XLA glue)."""
    N, H, W, C = x_nhwc.shape
    OH = (H - ksize) // stride + 1
    OW = (W - ksize) // stride + 1
    taps = []
    for kh in range(ksize):
        for kw in range(ksize):
            taps.append(
                x_nhwc[:, kh:kh + stride * OH:stride, kw:kw + stride * OW:stride, :]
            )
    return jnp.concatenate(taps, axis=-1), OH, OW


def conv2d_bias_relu(x_nhwc, wp, bp, *, ksize, stride, oc, num_i_steps):
    # TODO(synk): im2col patch extraction for the stride-2 convs stays in XLA
    # glue; a fully in-kernel tap-accumulation conv would avoid materializing
    # the patch matrix in HBM.
    N = x_nhwc.shape[0]
    pat, OH, OW = _im2col(x_nhwc, ksize, stride)
    M = N * OH * OW
    K = pat.shape[-1]
    Kp = wp.shape[0]
    Mp = _round_up(M, 8 * num_i_steps)
    pat = jnp.pad(pat.reshape(M, K).astype(jnp.bfloat16),
                  ((0, Mp - M), (0, Kp - K)))

    y = matmul_bias_relu(pat, wp, bp, num_i_steps=num_i_steps)
    return y[:M, :oc].reshape(N, OH, OW, oc)


# ----------------------------------------------------------------------------
# Fused conv3 + conv4 in one gridless pallas_call.
#   conv3: patch-matrix matmul (patches built in XLA, tiny).
#   conv4: stride-1 3x3 conv done fully in-kernel as 9 shifted matmuls over
#          the conv3 activation kept in VMEM scratch (no conv4 im2col).
# Rows are (n, oh, ow) flattened with a per-batch stride `bs` (mult. of 8);
# pad rows/lanes are zero or discarded so they never pollute valid outputs.
# ----------------------------------------------------------------------------
def _conv34_kernel(p3_ref, w3_ref, b3_ref, w4_ref, b4_ref, o_ref, h3_ref, *,
                   ow3, ksize4, out_rows):
    h3_ref[...] = jnp.maximum(
        jnp.dot(p3_ref[...], w3_ref[...], preferred_element_type=jnp.float32)
        + b3_ref[...], 0.0)

    acc = jnp.zeros((out_rows, w4_ref.shape[2]), jnp.float32)
    for kh in range(ksize4):
        for kw in range(ksize4):
            shift = kh * ow3 + kw
            tap = h3_ref[pl.ds(shift, out_rows), :].astype(jnp.bfloat16)
            acc = acc + jnp.dot(tap, w4_ref[kh * ksize4 + kw],
                                preferred_element_type=jnp.float32)
    o_ref[...] = jnp.maximum(acc + b4_ref[...], 0.0).astype(o_ref.dtype)


def conv34_fc_input(x3_nhwc, prepared):
    """conv3 + conv4 fused; returns (N, 3840) activation in NHWC-flat order."""
    w3p, b3p, w4p, b4p = prepared["conv34"]
    N = x3_nhwc.shape[0]

    pat3, OH3, OW3 = _im2col(x3_nhwc, 5, 2)       # (N, 5, 22, 900)
    K3 = pat3.shape[-1]
    K3p = w3p.shape[0]
    oc4p = w4p.shape[2]                           # 128 (lane-padded)

    OH4 = OH3 - _CONV4_K + 1                      # 3
    OW4 = OW3 - _CONV4_K + 1                      # 20
    bs = _round_up(OH3 * OW3, 8)                  # per-batch row stride (112)
    out_rows = N * bs                             # conv4 rows computed (224)
    max_shift = (_CONV4_K - 1) * OW3 + (_CONV4_K - 1)
    h3_rows = _round_up(out_rows + max_shift, 8)  # conv3 rows held in VMEM

    # Build conv3 patch matrix with per-batch blocks of `bs` rows, zero pad.
    pat3 = pat3.reshape(N, OH3 * OW3, K3).astype(jnp.bfloat16)
    pat3 = jnp.pad(pat3, ((0, 0), (0, bs - OH3 * OW3), (0, 0))).reshape(N * bs, K3)
    pat3 = jnp.pad(pat3, ((0, h3_rows - N * bs), (0, K3p - K3)))

    h4 = pl.pallas_call(
        functools.partial(_conv34_kernel, ow3=OW3, ksize4=_CONV4_K,
                          out_rows=out_rows),
        out_shape=jax.ShapeDtypeStruct((out_rows, oc4p), jnp.bfloat16),
        scratch_shapes=[pltpu.VMEM((h3_rows, w3p.shape[1]), jnp.float32)],
    )(pat3, w3p, b3p, w4p, b4p)

    # Extract valid conv4 outputs; NHWC-flat order (fc1 weight is permuted at
    # prepare time, so no NCHW transpose is needed here).
    h4 = h4.reshape(N, bs, oc4p)[:, :OH4 * OW3, :]
    h4 = h4.reshape(N, OH4, OW3, oc4p)[:, :, :OW4, :_CONV4_OC]
    return h4.reshape(N, OH4 * OW4 * _CONV4_OC)


# ----------------------------------------------------------------------------
# Fused FC stack: fc1..fc4 in a single gridless pallas_call, all in VMEM
# ----------------------------------------------------------------------------
def _fc_stack_kernel(x_ref, w1_ref, b1_ref, w2_ref, b2_ref,
                     w3_ref, b3_ref, w4_ref, b4_ref, o_ref):
    h = jnp.dot(x_ref[...], w1_ref[...], preferred_element_type=jnp.float32)
    h = jnp.maximum(h + b1_ref[...], 0.0).astype(jnp.bfloat16)
    h = jnp.dot(h, w2_ref[...], preferred_element_type=jnp.float32)
    h = jnp.maximum(h + b2_ref[...], 0.0).astype(jnp.bfloat16)
    h = jnp.dot(h, w3_ref[...], preferred_element_type=jnp.float32)
    h = jnp.maximum(h + b3_ref[...], 0.0).astype(jnp.bfloat16)
    h = jnp.dot(h, w4_ref[...], preferred_element_type=jnp.float32)
    o_ref[...] = h + b4_ref[...]


def fc_stack(x_flat, fc_params):
    M, K = x_flat.shape
    assert K == fc_params[0].shape[0]
    Mp = _round_up(max(M, 16), 16)     # bf16 packs 2 rows/sublane: 16-row tiles
    xp = jnp.pad(x_flat.astype(jnp.bfloat16), ((0, Mp - M), (0, 0)))
    out = pl.pallas_call(
        _fc_stack_kernel,
        out_shape=jax.ShapeDtypeStruct((Mp, 128), jnp.float32),
    )(xp, *fc_params)
    return out[:M, :2]


# ----------------------------------------------------------------------------
# Parameters (torch-layout init) + one-time preparation
# ----------------------------------------------------------------------------
def init_params(key):
    def conv_p(key, oc, ic, kh, kw):
        k1, k2 = jax.random.split(key)
        w = 0.05 * jax.random.normal(k1, (oc, ic, kh, kw), jnp.float32)
        b = 0.05 * jax.random.normal(k2, (oc,), jnp.float32)
        return w, b

    def fc_p(key, in_f, out_f):
        k1, k2 = jax.random.split(key)
        w = 0.05 * jax.random.normal(k1, (in_f, out_f), jnp.float32)
        b = 0.05 * jax.random.normal(k2, (out_f,), jnp.float32)
        return w, b

    keys = jax.random.split(key, 8)
    return {
        "conv1": conv_p(keys[0], 24, 3, 5, 5),
        "conv2": conv_p(keys[1], 36, 24, 5, 5),
        "conv3": conv_p(keys[2], 48, 36, 5, 5),
        "conv4": conv_p(keys[3], 64, 48, 3, 3),
        "fc1": fc_p(keys[4], 3840, 100),
        "fc2": fc_p(keys[5], 100, 50),
        "fc3": fc_p(keys[6], 50, 10),
        "fc4": fc_p(keys[7], 10, 2),
    }


def _conv_weight_matrix(w, b):
    """(OC,IC,KH,KW),(OC,) -> padded (Kp,128) bf16, (1,128) f32 (im2col order)."""
    OC, IC, KH, KW = w.shape
    K = KH * KW * IC
    Kp = _round_up(K, 128)
    wm = jnp.transpose(w, (2, 3, 1, 0)).reshape(K, OC)
    wp = jnp.pad(wm, ((0, Kp - K), (0, 128 - OC))).astype(jnp.bfloat16)
    bp = jnp.pad(b, (0, 128 - OC)).reshape(1, 128).astype(jnp.float32)
    return wp, bp


def prepare_params(params):
    """Hoisted out of the forward: transpose, pad, bf16 cast, fc1 permutation."""
    prepared = {}
    for name, _, _, _, _ in _CONV12_CFG:
        prepared[name] = _conv_weight_matrix(*params[name])

    # conv3 as a full patch matmul; conv4 as 9 per-tap (128,128) matrices.
    w3p, b3p = _conv_weight_matrix(*params["conv3"])
    w4, b4 = params["conv4"]                       # (64, 48, 3, 3), (64,)
    OC4, IC4, KH4, KW4 = w4.shape
    taps = []
    for kh in range(KH4):
        for kw in range(KW4):
            t = jnp.transpose(w4[:, :, kh, kw], (1, 0))          # (IC4, OC4)
            taps.append(jnp.pad(t, ((0, 128 - IC4), (0, 128 - OC4))))
    w4p = jnp.stack(taps, axis=0).astype(jnp.bfloat16)           # (9,128,128)
    b4p = jnp.pad(b4, (0, 128 - OC4)).reshape(1, 128).astype(jnp.float32)
    prepared["conv34"] = (w3p, b3p, w4p, b4p)

    # FC weights; fc1 rows permuted from torch NCHW-flatten order
    # (c*60 + oh*20 + ow) to NHWC-flat order ((oh*20 + ow)*64 + c).
    fc = []
    for idx, name in enumerate(("fc1", "fc2", "fc3", "fc4")):
        w, b = params[name]                        # (in_f, out_f)
        if idx == 0:
            w = w.reshape(64, 3, 20, w.shape[1]).transpose(1, 2, 0, 3)
            w = w.reshape(3840, -1)
        Kin, Nout = w.shape
        Kp, Np = _round_up(Kin, 128), _round_up(Nout, 128)
        fc.append(jnp.pad(w, ((0, Kp - Kin), (0, Np - Nout))).astype(jnp.bfloat16))
        fc.append(jnp.pad(b, (0, Np - Nout)).reshape(1, Np).astype(jnp.float32))
    prepared["fc"] = tuple(fc)
    return prepared


# ----------------------------------------------------------------------------
# Full CNNModel forward
# ----------------------------------------------------------------------------
def cnn_model_forward(prepared, x_nchw):
    # NCHW -> NHWC, bf16 for the MXU (f32 accumulation inside the kernels)
    x = jnp.transpose(x_nchw, (0, 2, 3, 1)).astype(jnp.bfloat16)

    for name, ksize, stride, oc, steps in _CONV12_CFG:
        wp, bp = prepared[name]
        x = conv2d_bias_relu(x, wp, bp, ksize=ksize, stride=stride, oc=oc,
                             num_i_steps=steps)
    # (N,31,98,24) -> (N,14,47,36)

    x_flat = conv34_fc_input(x, prepared)          # fused conv3+conv4, (N,3840)
    return fc_stack(x_flat, prepared["fc"])        # (N, 2) f32


if __name__ == "__main__":
    key = jax.random.PRNGKey(0)
    pkey, xkey = jax.random.split(key)
    params = init_params(pkey)
    prepared = prepare_params(params)              # one-time weight prep

    # Input spatial size is fixed by Linear(3840, 100): 3x66x200 -> 64*3*20 = 3840.
    x = jax.random.normal(xkey, (2, 3, 66, 200), jnp.float32)

    fwd = jax.jit(cnn_model_forward)
    out = jax.block_until_ready(fwd(prepared, x))
    assert out.shape == (2, 2), out.shape
    print("KERNEL_OK")
</pallas_src>

<mosaic_0001>
module attributes {stable_mosaic.version = 11 : i64} {
  func.func @_mm_bias_relu_kernel(%arg0: i32, %arg1: i32, %arg2: memref<3040x128xbf16, #tpu.memory_space<vmem>>, %arg3: memref<128x128xbf16, #tpu.memory_space<vmem>>, %arg4: memref<1x128xf32, #tpu.memory_space<vmem>>, %arg5: memref<3040x128xbf16, #tpu.memory_space<vmem>>) attributes {dimension_semantics = [#tpu.dimension_semantics<parallel>, #tpu.dimension_semantics<parallel>], iteration_bounds = array<i64: 2, 1>, scalar_prefetch = 0 : i64, scratch_operands = 0 : i64, tpu.core_type = #tpu.core_type<tc>, window_params = [{transform_indices = @transform_0, window_bounds = array<i64: 3040, 128>}, {transform_indices = @transform_1, window_bounds = array<i64: 128, 128>}, {transform_indices = @transform_2, window_bounds = array<i64: 1, 128>}, {transform_indices = @transform_3, window_bounds = array<i64: 3040, 128>}]} {
    %c0 = arith.constant 0 : index
    %c0_0 = arith.constant 0 : index
    %0 = vector.load %arg2[%c0, %c0_0] : memref<3040x128xbf16, #tpu.memory_space<vmem>>, vector<3040x128xbf16>
    %c0_1 = arith.constant 0 : index
    %c0_2 = arith.constant 0 : index
    %1 = vector.load %arg3[%c0_1, %c0_2] : memref<128x128xbf16, #tpu.memory_space<vmem>>, vector<128x128xbf16>
    %cst = arith.constant dense<0.000000e+00> : vector<3040x128xf32>
    %2 = tpu.matmul %0, %1, %cst {dimension_numbers = #tpu.dot_dimension_numbers<[1], [0], [0], [1], [0, 0, 1, 1], [], []>} : vector<3040x128xbf16>, vector<128x128xbf16>, vector<3040x128xf32> -> vector<3040x128xf32>
    %c0_3 = arith.constant 0 : index
    %c0_4 = arith.constant 0 : index
    %3 = vector.load %arg4[%c0_3, %c0_4] : memref<1x128xf32, #tpu.memory_space<vmem>>, vector<1x128xf32>
    %4 = vector.broadcast %3 : vector<1x128xf32> to vector<3040x128xf32>
    %5 = arith.addf %2, %4 : vector<3040x128xf32>
    %cst_5 = arith.constant 0.000000e+00 : f32
    %6 = vector.broadcast %cst_5 : f32 to vector<3040x128xf32>
    %7 = arith.maximumf %5, %6 : vector<3040x128xf32>
    %8 = arith.truncf %7 : vector<3040x128xf32> to vector<3040x128xbf16>
    %c0_6 = arith.constant 0 : index
    %c0_7 = arith.constant 0 : index
    %9 = vector.load %arg5[%c0_6, %c0_7] : memref<3040x128xbf16, #tpu.memory_space<vmem>>, vector<3040x128xbf16>
    tpu.vector_store %arg5[%c0_6, %c0_7], %8 {strides = array<i32>} : memref<3040x128xbf16, #tpu.memory_space<vmem>>, vector<3040x128xbf16>,
    return
  }
  func.func @transform_0(%arg0: i32, %arg1: i32) -> (i32, i32) {
    %c0_i32 = arith.constant 0 : i32
    %c0_i32_0 = arith.constant 0 : i32
    return %arg0, %c0_i32 : i32, i32
  }
  func.func @transform_1(%arg0: i32, %arg1: i32) -> (i32, i32) {
    %c0_i32 = arith.constant 0 : i32
    %c0_i32_0 = arith.constant 0 : i32
    return %c0_i32, %arg1 : i32, i32
  }
  func.func @transform_2(%arg0: i32, %arg1: i32) -> (i32, i32) {
    %c0_i32 = arith.constant 0 : i32
    %c0_i32_0 = arith.constant 0 : i32
    return %c0_i32, %arg1 : i32, i32
  }
  func.func @transform_3(%arg0: i32, %arg1: i32) -> (i32, i32) {
    %c0_i32 = arith.constant 0 : i32
    return %arg0, %arg1 : i32, i32
  }
}

module attributes {stable_mosaic.version = 11 : i64} {
  func.func @_mm_bias_relu_kernel(%arg0: i32, %arg1: i32, %arg2: memref<664x640xbf16, #tpu.memory_space<vmem>>, %arg3: memref<640x128xbf16, #tpu.memory_space<vmem>>, %arg4: memref<1x128xf32, #tpu.memory_space<vmem>>, %arg5: memref<664x128xbf16, #tpu.memory_space<vmem>>) attributes {dimension_semantics = [#tpu.dimension_semantics<parallel>, #tpu.dimension_semantics<parallel>], iteration_bounds = array<i64: 2, 1>, scalar_prefetch = 0 : i64, scratch_operands = 0 : i64, tpu.core_type = #tpu.core_type<tc>, window_params = [{transform_indices = @transform_0, window_bounds = array<i64: 664, 640>}, {transform_indices = @transform_1, window_bounds = array<i64: 640, 128>}, {transform_indices = @transform_2, window_bounds = array<i64: 1, 128>}, {transform_indices = @transform_3, window_bounds = array<i64: 664, 128>}]} {
    %c0 = arith.constant 0 : index
    %c0_0 = arith.constant 0 : index
    %0 = vector.load %arg2[%c0, %c0_0] : memref<664x640xbf16, #tpu.memory_space<vmem>>, vector<664x640xbf16>
    %c0_1 = arith.constant 0 : index
    %c0_2 = arith.constant 0 : index
    %1 = vector.load %arg3[%c0_1, %c0_2] : memref<640x128xbf16, #tpu.memory_space<vmem>>, vector<640x128xbf16>
    %cst = arith.constant dense<0.000000e+00> : vector<664x128xf32>
    %2 = tpu.matmul %0, %1, %cst {dimension_numbers = #tpu.dot_dimension_numbers<[1], [0], [0], [1], [0, 0, 1, 1], [], []>} : vector<664x640xbf16>, vector<640x128xbf16>, vector<664x128xf32> -> vector<664x128xf32>
    %c0_3 = arith.constant 0 : index
    %c0_4 = arith.constant 0 : index
    %3 = vector.load %arg4[%c0_3, %c0_4] : memref<1x128xf32, #tpu.memory_space<vmem>>, vector<1x128xf32>
    %4 = vector.broadcast %3 : vector<1x128xf32> to vector<664x128xf32>
    %5 = arith.addf %2, %4 : vector<664x128xf32>
    %cst_5 = arith.constant 0.000000e+00 : f32
    %6 = vector.broadcast %cst_5 : f32 to vector<664x128xf32>
    %7 = arith.maximumf %5, %6 : vector<664x128xf32>
    %8 = arith.truncf %7 : vector<664x128xf32> to vector<664x128xbf16>
    %c0_6 = arith.constant 0 : index
    %c0_7 = arith.constant 0 : index
    %9 = vector.load %arg5[%c0_6, %c0_7] : memref<664x128xbf16, #tpu.memory_space<vmem>>, vector<664x128xbf16>
    tpu.vector_store %arg5[%c0_6, %c0_7], %8 {strides = array<i32>} : memref<664x128xbf16, #tpu.memory_space<vmem>>, vector<664x128xbf16>,
    return
  }
  func.func @transform_0(%arg0: i32, %arg1: i32) -> (i32, i32) {
    %c0_i32 = arith.constant 0 : i32
    %c0_i32_0 = arith.constant 0 : i32
    return %arg0, %c0_i32 : i32, i32
  }
  func.func @transform_1(%arg0: i32, %arg1: i32) -> (i32, i32) {
    %c0_i32 = arith.constant 0 : i32
    %c0_i32_0 = arith.constant 0 : i32
    return %c0_i32, %arg1 : i32, i32
  }
  func.func @transform_2(%arg0: i32, %arg1: i32) -> (i32, i32) {
    %c0_i32 = arith.constant 0 : i32
    %c0_i32_0 = arith.constant 0 : i32
    return %c0_i32, %arg1 : i32, i32
  }
  func.func @transform_3(%arg0: i32, %arg1: i32) -> (i32, i32) {
    %c0_i32 = arith.constant 0 : i32
    return %arg0, %arg1 : i32, i32
  }
}

module attributes {stable_mosaic.version = 11 : i64} {
  func.func @_conv34_kernel(%arg0: memref<272x1024xbf16, #tpu.memory_space<vmem>>, %arg1: memref<1024x128xbf16, #tpu.memory_space<vmem>>, %arg2: memref<1x128xf32, #tpu.memory_space<vmem>>, %arg3: memref<9x128x128xbf16, #tpu.memory_space<vmem>>, %arg4: memref<1x128xf32, #tpu.memory_space<vmem>>, %arg5: memref<224x128xbf16, #tpu.memory_space<vmem>>, %arg6: memref<272x128xf32, #tpu.memory_space<vmem>>) attributes {dimension_semantics = [], scalar_prefetch = 0 : i64, scratch_operands = 1 : i64, tpu.core_type = #tpu.core_type<tc>} {
    %c0 = arith.constant 0 : index
    %c0_0 = arith.constant 0 : index
    %0 = vector.load %arg0[%c0, %c0_0] : memref<272x1024xbf16, #tpu.memory_space<vmem>>, vector<272x1024xbf16>
    %c0_1 = arith.constant 0 : index
    %c0_2 = arith.constant 0 : index
    %1 = vector.load %arg1[%c0_1, %c0_2] : memref<1024x128xbf16, #tpu.memory_space<vmem>>, vector<1024x128xbf16>
    %cst = arith.constant dense<0.000000e+00> : vector<272x128xf32>
    %2 = tpu.matmul %0, %1, %cst {dimension_numbers = #tpu.dot_dimension_numbers<[1], [0], [0], [1], [0, 0, 1, 1], [], []>} : vector<272x1024xbf16>, vector<1024x128xbf16>, vector<272x128xf32> -> vector<272x128xf32>
    %c0_3 = arith.constant 0 : index
    %c0_4 = arith.constant 0 : index
    %3 = vector.load %arg2[%c0_3, %c0_4] : memref<1x128xf32, #tpu.memory_space<vmem>>, vector<1x128xf32>
    %4 = vector.broadcast %3 : vector<1x128xf32> to vector<272x128xf32>
    %5 = arith.addf %2, %4 : vector<272x128xf32>
    %cst_5 = arith.constant 0.000000e+00 : f32
    %6 = vector.broadcast %cst_5 : f32 to vector<272x128xf32>
    %7 = arith.maximumf %5, %6 : vector<272x128xf32>
    %c0_6 = arith.constant 0 : index
    %c0_7 = arith.constant 0 : index
    %8 = vector.load %arg6[%c0_6, %c0_7] : memref<272x128xf32, #tpu.memory_space<vmem>>, vector<272x128xf32>
    tpu.vector_store %arg6[%c0_6, %c0_7], %7 {strides = array<i32>} : memref<272x128xf32, #tpu.memory_space<vmem>>, vector<272x128xf32>,
    %cst_8 = arith.constant 0.000000e+00 : f32
    %9 = vector.broadcast %cst_8 : f32 to vector<224x128xf32>
    %c0_9 = arith.constant 0 : index
    %c0_10 = arith.constant 0 : index
    %10 = vector.load %arg6[%c0_9, %c0_10] : memref<272x128xf32, #tpu.memory_space<vmem>>, vector<224x128xf32>
    %11 = arith.truncf %10 : vector<224x128xf32> to vector<224x128xbf16>
    %c0_11 = arith.constant 0 : index
    %c0_12 = arith.constant 0 : index
    %c0_13 = arith.constant 0 : index
    %12 = vector.load %arg3[%c0_11, %c0_12, %c0_13] : memref<9x128x128xbf16, #tpu.memory_space<vmem>>, vector<1x128x128xbf16>
    %13 = vector.shape_cast %12 : vector<1x128x128xbf16> to vector<128x128xbf16>
    %cst_14 = arith.constant dense<0.000000e+00> : vector<224x128xf32>
    %14 = tpu.matmul %11, %13, %cst_14 {dimension_numbers = #tpu.dot_dimension_numbers<[1], [0], [0], [1], [0, 0, 1, 1], [], []>} : vector<224x128xbf16>, vector<128x128xbf16>, vector<224x128xf32> -> vector<224x128xf32>
    %15 = arith.addf %9, %14 : vector<224x128xf32>
    %c1 = arith.constant 1 : index
    %c0_15 = arith.constant 0 : index
    %16 = vector.load %arg6[%c1, %c0_15] : memref<272x128xf32, #tpu.memory_space<vmem>>, vector<224x128xf32>
    %17 = arith.truncf %16 : vector<224x128xf32> to vector<224x128xbf16>
    %c1_16 = arith.constant 1 : index
    %c0_17 = arith.constant 0 : index
    %c0_18 = arith.constant 0 : index
    %18 = vector.load %arg3[%c1_16, %c0_17, %c0_18] : memref<9x128x128xbf16, #tpu.memory_space<vmem>>, vector<1x128x128xbf16>
    %19 = vector.shape_cast %18 : vector<1x128x128xbf16> to vector<128x128xbf16>
    %cst_19 = arith.constant dense<0.000000e+00> : vector<224x128xf32>
    %20 = tpu.matmul %17, %19, %cst_19 {dimension_numbers = #tpu.dot_dimension_numbers<[1], [0], [0], [1], [0, 0, 1, 1], [], []>} : vector<224x128xbf16>, vector<128x128xbf16>, vector<224x128xf32> -> vector<224x128xf32>
    %21 = arith.addf %15, %20 : vector<224x128xf32>
    %c2 = arith.constant 2 : index
    %c0_20 = arith.constant 0 : index
    %22 = vector.load %arg6[%c2, %c0_20] : memref<272x128xf32, #tpu.memory_space<vmem>>, vector<224x128xf32>
    %23 = arith.truncf %22 : vector<224x128xf32> to vector<224x128xbf16>
    %c2_21 = arith.constant 2 : index
    %c0_22 = arith.constant 0 : index
    %c0_23 = arith.constant 0 : index
    %24 = vector.load %arg3[%c2_21, %c0_22, %c0_23] : memref<9x128x128xbf16, #tpu.memory_space<vmem>>, vector<1x128x128xbf16>
    %25 = vector.shape_cast %24 : vector<1x128x128xbf16> to vector<128x128xbf16>
    %cst_24 = arith.constant dense<0.000000e+00> : vector<224x128xf32>
    %26 = tpu.matmul %23, %25, %cst_24 {dimension_numbers = #tpu.dot_dimension_numbers<[1], [0], [0], [1], [0, 0, 1, 1], [], []>} : vector<224x128xbf16>, vector<128x128xbf16>, vector<224x128xf32> -> vector<224x128xf32>
    %27 = arith.addf %21, %26 : vector<224x128xf32>
    %c22 = arith.constant 22 : index
    %c0_25 = arith.constant 0 : index
    %28 = vector.load %arg6[%c22, %c0_25] : memref<272x128xf32, #tpu.memory_space<vmem>>, vector<224x128xf32>
    %29 = arith.truncf %28 : vector<224x128xf32> to vector<224x128xbf16>
    %c3 = arith.constant 3 : index
    %c0_26 = arith.constant 0 : index
    %c0_27 = arith.constant 0 : index
    %30 = vector.load %arg3[%c3, %c0_26, %c0_27] : memref<9x128x128xbf16, #tpu.memory_space<vmem>>, vector<1x128x128xbf16>
    %31 = vector.shape_cast %30 : vector<1x128x128xbf16> to vector<128x128xbf16>
    %cst_28 = arith.constant dense<0.000000e+00> : vector<224x128xf32>
    %32 = tpu.matmul %29, %31, %cst_28 {dimension_numbers = #tpu.dot_dimension_numbers<[1], [0], [0], [1], [0, 0, 1, 1], [], []>} : vector<224x128xbf16>, vector<128x128xbf16>, vector<224x128xf32> -> vector<224x128xf32>
    %33 = arith.addf %27, %32 : vector<224x128xf32>
    %c23 = arith.constant 23 : index
    %c0_29 = arith.constant 0 : index
    %34 = vector.load %arg6[%c23, %c0_29] : memref<272x128xf32, #tpu.memory_space<vmem>>, vector<224x128xf32>
    %35 = arith.truncf %34 : vector<224x128xf32> to vector<224x128xbf16>
    %c4 = arith.constant 4 : index
    %c0_30 = arith.constant 0 : index
    %c0_31 = arith.constant 0 : index
    %36 = vector.load %arg3[%c4, %c0_30, %c0_31] : memref<9x128x128xbf16, #tpu.memory_space<vmem>>, vector<1x128x128xbf16>
    %37 = vector.shape_cast %36 : vector<1x128x128xbf16> to vector<128x128xbf16>
    %cst_32 = arith.constant dense<0.000000e+00> : vector<224x128xf32>
    %38 = tpu.matmul %35, %37, %cst_32 {dimension_numbers = #tpu.dot_dimension_numbers<[1], [0], [0], [1], [0, 0, 1, 1], [], []>} : vector<224x128xbf16>, vector<128x128xbf16>, vector<224x128xf32> -> vector<224x128xf32>
    %39 = arith.addf %33, %38 : vector<224x128xf32>
    %c24 = arith.constant 24 : index
    %c0_33 = arith.constant 0 : index
    %40 = vector.load %arg6[%c24, %c0_33] : memref<272x128xf32, #tpu.memory_space<vmem>>, vector<224x128xf32>
    %41 = arith.truncf %40 : vector<224x128xf32> to vector<224x128xbf16>
    %c5 = arith.constant 5 : index
    %c0_34 = arith.constant 0 : index
    %c0_35 = arith.constant 0 : index
    %42 = vector.load %arg3[%c5, %c0_34, %c0_35] : memref<9x128x128xbf16, #tpu.memory_space<vmem>>, vector<1x128x128xbf16>
    %43 = vector.shape_cast %42 : vector<1x128x128xbf16> to vector<128x128xbf16>
    %cst_36 = arith.constant dense<0.000000e+00> : vector<224x128xf32>
    %44 = tpu.matmul %41, %43, %cst_36 {dimension_numbers = #tpu.dot_dimension_numbers<[1], [0], [0], [1], [0, 0, 1, 1], [], []>} : vector<224x128xbf16>, vector<128x128xbf16>, vector<224x128xf32> -> vector<224x128xf32>
    %45 = arith.addf %39, %44 : vector<224x128xf32>
    %c44 = arith.constant 44 : index
    %c0_37 = arith.constant 0 : index
    %46 = vector.load %arg6[%c44, %c0_37] : memref<272x128xf32, #tpu.memory_space<vmem>>, vector<224x128xf32>
    %47 = arith.truncf %46 : vector<224x128xf32> to vector<224x128xbf16>
    %c6 = arith.constant 6 : index
    %c0_38 = arith.constant 0 : index
    %c0_39 = arith.constant 0 : index
    %48 = vector.load %arg3[%c6, %c0_38, %c0_39] : memref<9x128x128xbf16, #tpu.memory_space<vmem>>, vector<1x128x128xbf16>
    %49 = vector.shape_cast %48 : vector<1x128x128xbf16> to vector<128x128xbf16>
    %cst_40 = arith.constant dense<0.000000e+00> : vector<224x128xf32>
    %50 = tpu.matmul %47, %49, %cst_40 {dimension_numbers = #tpu.dot_dimension_numbers<[1], [0], [0], [1], [0, 0, 1, 1], [], []>} : vector<224x128xbf16>, vector<128x128xbf16>, vector<224x128xf32> -> vector<224x128xf32>
    %51 = arith.addf %45, %50 : vector<224x128xf32>
    %c45 = arith.constant 45 : index
    %c0_41 = arith.constant 0 : index
    %52 = vector.load %arg6[%c45, %c0_41] : memref<272x128xf32, #tpu.memory_space<vmem>>, vector<224x128xf32>
    %53 = arith.truncf %52 : vector<224x128xf32> to vector<224x128xbf16>
    %c7 = arith.constant 7 : index
    %c0_42 = arith.constant 0 : index
    %c0_43 = arith.constant 0 : index
    %54 = vector.load %arg3[%c7, %c0_42, %c0_43] : memref<9x128x128xbf16, #tpu.memory_space<vmem>>, vector<1x128x128xbf16>
    %55 = vector.shape_cast %54 : vector<1x128x128xbf16> to vector<128x128xbf16>
    %cst_44 = arith.constant dense<0.000000e+00> : vector<224x128xf32>
    %56 = tpu.matmul %53, %55, %cst_44 {dimension_numbers = #tpu.dot_dimension_numbers<[1], [0], [0], [1], [0, 0, 1, 1], [], []>} : vector<224x128xbf16>, vector<128x128xbf16>, vector<224x128xf32> -> vector<224x128xf32>
    %57 = arith.addf %51, %56 : vector<224x128xf32>
    %c46 = arith.constant 46 : index
    %c0_45 = arith.constant 0 : index
    %58 = vector.load %arg6[%c46, %c0_45] : memref<272x128xf32, #tpu.memory_space<vmem>>, vector<224x128xf32>
    %59 = arith.truncf %58 : vector<224x128xf32> to vector<224x128xbf16>
    %c8 = arith.constant 8 : index
    %c0_46 = arith.constant 0 : index
    %c0_47 = arith.constant 0 : index
    %60 = vector.load %arg3[%c8, %c0_46, %c0_47] : memref<9x128x128xbf16, #tpu.memory_space<vmem>>, vector<1x128x128xbf16>
    %61 = vector.shape_cast %60 : vector<1x128x128xbf16> to vector<128x128xbf16>
    %cst_48 = arith.constant dense<0.000000e+00> : vector<224x128xf32>
    %62 = tpu.matmul %59, %61, %cst_48 {dimension_numbers = #tpu.dot_dimension_numbers<[1], [0], [0], [1], [0, 0, 1, 1], [], []>} : vector<224x128xbf16>, vector<128x128xbf16>, vector<224x128xf32> -> vector<224x128xf32>
    %63 = arith.addf %57, %62 : vector<224x128xf32>
    %c0_49 = arith.constant 0 : index
    %c0_50 = arith.constant 0 : index
    %64 = vector.load %arg4[%c0_49, %c0_50] : memref<1x128xf32, #tpu.memory_space<vmem>>, vector<1x128xf32>
    %65 = vector.broadcast %64 : vector<1x128xf32> to vector<224x128xf32>
    %66 = arith.addf %63, %65 : vector<224x128xf32>
    %cst_51 = arith.constant 0.000000e+00 : f32
    %67 = vector.broadcast %cst_51 : f32 to vector<224x128xf32>
    %68 = arith.maximumf %66, %67 : vector<224x128xf32>
    %69 = arith.truncf %68 : vector<224x128xf32> to vector<224x128xbf16>
    %c0_52 = arith.constant 0 : index
    %c0_53 = arith.constant 0 : index
    %70 = vector.load %arg5[%c0_52, %c0_53] : memref<224x128xbf16, #tpu.memory_space<vmem>>, vector<224x128xbf16>
    tpu.vector_store %arg5[%c0_52, %c0_53], %69 {strides = array<i32>} : memref<224x128xbf16, #tpu.memory_space<vmem>>, vector<224x128xbf16>,
    return
  }
}

module attributes {stable_mosaic.version = 11 : i64} {
  func.func @_fc_stack_kernel(%arg0: memref<16x3840xbf16, #tpu.memory_space<vmem>>, %arg1: memref<3840x128xbf16, #tpu.memory_space<vmem>>, %arg2: memref<1x128xf32, #tpu.memory_space<vmem>>, %arg3: memref<128x128xbf16, #tpu.memory_space<vmem>>, %arg4: memref<1x128xf32, #tpu.memory_space<vmem>>, %arg5: memref<128x128xbf16, #tpu.memory_space<vmem>>, %arg6: memref<1x128xf32, #tpu.memory_space<vmem>>, %arg7: memref<128x128xbf16, #tpu.memory_space<vmem>>, %arg8: memref<1x128xf32, #tpu.memory_space<vmem>>, %arg9: memref<16x128xf32, #tpu.memory_space<vmem>>) attributes {dimension_semantics = [], scalar_prefetch = 0 : i64, scratch_operands = 0 : i64, tpu.core_type = #tpu.core_type<tc>} {
    %c0 = arith.constant 0 : index
    %c0_0 = arith.constant 0 : index
    %0 = vector.load %arg0[%c0, %c0_0] : memref<16x3840xbf16, #tpu.memory_space<vmem>>, vector<16x3840xbf16>
    %c0_1 = arith.constant 0 : index
    %c0_2 = arith.constant 0 : index
    %1 = vector.load %arg1[%c0_1, %c0_2] : memref<3840x128xbf16, #tpu.memory_space<vmem>>, vector<3840x128xbf16>
    %cst = arith.constant dense<0.000000e+00> : vector<16x128xf32>
    %2 = tpu.matmul %0, %1, %cst {dimension_numbers = #tpu.dot_dimension_numbers<[1], [0], [0], [1], [0, 0, 1, 1], [], []>} : vector<16x3840xbf16>, vector<3840x128xbf16>, vector<16x128xf32> -> vector<16x128xf32>
    %c0_3 = arith.constant 0 : index
    %c0_4 = arith.constant 0 : index
    %3 = vector.load %arg2[%c0_3, %c0_4] : memref<1x128xf32, #tpu.memory_space<vmem>>, vector<1x128xf32>
    %4 = vector.broadcast %3 : vector<1x128xf32> to vector<16x128xf32>
    %5 = arith.addf %2, %4 : vector<16x128xf32>
    %cst_5 = arith.constant 0.000000e+00 : f32
    %6 = vector.broadcast %cst_5 : f32 to vector<16x128xf32>
    %7 = arith.maximumf %5, %6 : vector<16x128xf32>
    %8 = arith.truncf %7 : vector<16x128xf32> to vector<16x128xbf16>
    %c0_6 = arith.constant 0 : index
    %c0_7 = arith.constant 0 : index
    %9 = vector.load %arg3[%c0_6, %c0_7] : memref<128x128xbf16, #tpu.memory_space<vmem>>, vector<128x128xbf16>
    %cst_8 = arith.constant dense<0.000000e+00> : vector<16x128xf32>
    %10 = tpu.matmul %8, %9, %cst_8 {dimension_numbers = #tpu.dot_dimension_numbers<[1], [0], [0], [1], [0, 0, 1, 1], [], []>} : vector<16x128xbf16>, vector<128x128xbf16>, vector<16x128xf32> -> vector<16x128xf32>
    %c0_9 = arith.constant 0 : index
    %c0_10 = arith.constant 0 : index
    %11 = vector.load %arg4[%c0_9, %c0_10] : memref<1x128xf32, #tpu.memory_space<vmem>>, vector<1x128xf32>
    %12 = vector.broadcast %11 : vector<1x128xf32> to vector<16x128xf32>
    %13 = arith.addf %10, %12 : vector<16x128xf32>
    %cst_11 = arith.constant 0.000000e+00 : f32
    %14 = vector.broadcast %cst_11 : f32 to vector<16x128xf32>
    %15 = arith.maximumf %13, %14 : vector<16x128xf32>
    %16 = arith.truncf %15 : vector<16x128xf32> to vector<16x128xbf16>
    %c0_12 = arith.constant 0 : index
    %c0_13 = arith.constant 0 : index
    %17 = vector.load %arg5[%c0_12, %c0_13] : memref<128x128xbf16, #tpu.memory_space<vmem>>, vector<128x128xbf16>
    %cst_14 = arith.constant dense<0.000000e+00> : vector<16x128xf32>
    %18 = tpu.matmul %16, %17, %cst_14 {dimension_numbers = #tpu.dot_dimension_numbers<[1], [0], [0], [1], [0, 0, 1, 1], [], []>} : vector<16x128xbf16>, vector<128x128xbf16>, vector<16x128xf32> -> vector<16x128xf32>
    %c0_15 = arith.constant 0 : index
    %c0_16 = arith.constant 0 : index
    %19 = vector.load %arg6[%c0_15, %c0_16] : memref<1x128xf32, #tpu.memory_space<vmem>>, vector<1x128xf32>
    %20 = vector.broadcast %19 : vector<1x128xf32> to vector<16x128xf32>
    %21 = arith.addf %18, %20 : vector<16x128xf32>
    %cst_17 = arith.constant 0.000000e+00 : f32
    %22 = vector.broadcast %cst_17 : f32 to vector<16x128xf32>
    %23 = arith.maximumf %21, %22 : vector<16x128xf32>
    %24 = arith.truncf %23 : vector<16x128xf32> to vector<16x128xbf16>
    %c0_18 = arith.constant 0 : index
    %c0_19 = arith.constant 0 : index
    %25 = vector.load %arg7[%c0_18, %c0_19] : memref<128x128xbf16, #tpu.memory_space<vmem>>, vector<128x128xbf16>
    %cst_20 = arith.constant dense<0.000000e+00> : vector<16x128xf32>
    %26 = tpu.matmul %24, %25, %cst_20 {dimension_numbers = #tpu.dot_dimension_numbers<[1], [0], [0], [1], [0, 0, 1, 1], [], []>} : vector<16x128xbf16>, vector<128x128xbf16>, vector<16x128xf32> -> vector<16x128xf32>
    %c0_21 = arith.constant 0 : index
    %c0_22 = arith.constant 0 : index
    %27 = vector.load %arg8[%c0_21, %c0_22] : memref<1x128xf32, #tpu.memory_space<vmem>>, vector<1x128xf32>
    %28 = vector.broadcast %27 : vector<1x128xf32> to vector<16x128xf32>
    %29 = arith.addf %26, %28 : vector<16x128xf32>
    %c0_23 = arith.constant 0 : index
    %c0_24 = arith.constant 0 : index
    %30 = vector.load %arg9[%c0_23, %c0_24] : memref<16x128xf32, #tpu.memory_space<vmem>>, vector<16x128xf32>
    tpu.vector_store %arg9[%c0_23, %c0_24], %29 {strides = array<i32>} : memref<16x128xf32, #tpu.memory_space<vmem>>, vector<16x128xf32>,
    return
  }
}

</mosaic_0001>

<bundles_post_ra>
// kernel: cnn_model_forward.4
= control target key start
LH: loop header
LB: loop body
LE: loop exit
PB: predicated region body
PF: predicated region fallthrough
CT: control target
= control target key end

     0   :  { %s8740_s12 = smov 0   ;;  %s8742_s13 = smov 0   ;;  %s9588_s0 = inlined_call_operand.vmem [shape: bf16[6080,128], index: 0, kind: input, shape index: {}]   ;;  %s9589_s1 = inlined_call_operand.vmem [shape: bf16[128,128], index: 1, kind: input, shape index: {}]   ;;  %s9590_s2 = inlined_call_operand.vmem [shape: f32[1,128], index: 2, kind: input, shape index: {}]   ;;  %s9591_s3 = inlined_call_operand.vmem [shape: bf16[6080,128], index: 3, kind: output, shape index: {}]  }
   0x1   :  { %s8744_s14 = smov 0  }
   0x2 LB: > { %s25_s15 = sadd.s32 1, %s8714_s13  ;;  %p5758_p0 = scmp.ge.s32.totalorder %s8718_s14, 1  ;;  %s8718_s14 = sphi %s8744_s14, %s13_s14   ;;  %s8714_s13 = sphi %s8742_s13, %s9593_s13   ;;  %s8710_s12 = sphi %s8740_s12, %s9592_s12  }
   0x3   : > { %p27_p1 = scmp.ge.s32.totalorder %s25_s15, 2  ;;  %p169_p2 = scmp.lt.s32.totalorder %s8718_s14, 3 }
   0x5   : > { %s9595_s15 = smov (%p27_p1, %s25_s15), 0  ;;  %p170_p3 = pnand %p5758_p0, %p169_p2 }
   0x6   : > { %s203_s18 = smul.u32 (!%p170_p3), 380, %s8710_s12 }
   0x7   : > { %173 = sbr.rel (%p170_p3) target bundleno = 627 (0x273), region = 32 }
   0x8   : > { %p204_p4 = scmp.lt.s32.totalorder (!%p170_p3), %s203_s18, 759 }
   0xc   : > { %v8495_v0 = vld [vmem:[%s9589_s1 + $0x38] sm:$0xff]   ;;  %v8496_v1 = vld [vmem:[%s9589_s1 + $0x30] sm:$0xff]   ;;  %v8497_v2 = vld [vmem:[%s9589_s1 + $0x28] sm:$0xff]   ;;  %s9597_s18 = smov (!%p204_p4, %s203_s18), 759 }
   0xd   : > { %8059 = vmatprep.subr.bf16.mxu0 %v8495_v0  ;;  %8455 = vmatprep.subr.bf16.mxu1 %v8495_v0  ;;  %s5759_s23 = sshll.u32 %s9597_s18, 2  ;;  %v8498_v3 = vld [vmem:[%s9589_s1 + $0x20] sm:$0xff]   ;;  %v8499_v6 = vld [vmem:[%s9589_s1 + $0x18] sm:$0xff]   ;;  %v8500_v7 = vld [vmem:[%s9589_s1 + $0x10] sm:$0xff]  }
   0xe   : > { %8060 = vmatpush3.bf16.msra.mxu0 %v8495_v0  ;;  %8463 = vmatpush3.bf16.msra.mxu1 %v8495_v0  ;;  %s8778_s28 = scalar_lea.vmem %s9588_s0, %s5759_s23  ;;  %v8501_v8 = vld [vmem:[%s9589_s1 + $0x8] sm:$0xff]   ;;  %v8502_v9 = vld [vmem:[%s9589_s1] sm:$0xff]   ;;  %s8916_s17 = scalar_lea.vmem %s9591_s3, %s5759_s23 }
   0xf   : > { %8061 = vmatprep.subr.bf16.mxu0 %v8496_v1  ;;  %8456 = vmatprep.subr.bf16.mxu1 %v8496_v1  ;;  %v8503_v4 = vld [vmem:[%s8778_s28] sm:$0xff]   ;;  %v8504_v10 = vld [vmem:[%s8778_s28 + $0x8] sm:$0xff]   ;;  %v8507_v12 = vld [vmem:[%s8778_s28 + $0x10] sm:$0xff]  }
  0x10   : > { %8075 = vmatprep.mubr.bf16.mxu0 %v8503_v4  ;;  %v8505_v5 = vld [vmem:[%s8778_s28 + $0x300] sm:$0xff]   ;;  %v8506_v11 = vld [vmem:[%s8778_s28 + $0x308] sm:$0xff]   ;;  %v8509_v13 = vld [vmem:[%s8778_s28 + $0x310] sm:$0xff]  }
  0x11   : > { %8267 = vmatprep.mubr.bf16.mxu1 %v8505_v5  ;;  %v8508_v14 = vld [vmem:[%s8778_s28 + $0x18] sm:$0xff]   ;;  %v8511_v16 = vld [vmem:[%s8778_s28 + $0x20] sm:$0xff]   ;;  %v8512_v18 = vld [vmem:[%s8778_s28 + $0x28] sm:$0xff]  }
  0x12   : > { %8062 = vmatpush3.bf16.msra.mxu0 %v8496_v1  ;;  %8464 = vmatpush3.bf16.msra.mxu1 %v8496_v1  ;;  %v8510_v15 = vld [vmem:[%s8778_s28 + $0x318] sm:$0xff]   ;;  %v8513_v17 = vld [vmem:[%s8778_s28 + $0x320] sm:$0xff]   ;;  %v8514_v19 = vld [vmem:[%s8778_s28 + $0x328] sm:$0xff]  }
  0x13   : > { %8063 = vmatprep.subr.bf16.mxu0 %v8497_v2  ;;  %8457 = vmatprep.subr.bf16.mxu1 %v8497_v2  ;;  %v8515_v20 = vld [vmem:[%s8778_s28 + $0x30] sm:$0xff]   ;;  %v8516_v22 = vld [vmem:[%s8778_s28 + $0x38] sm:$0xff]   ;;  %v8519_v24 = vld [vmem:[%s8778_s28 + $0x40] sm:$0xff]  }
  0x14   : > { %v8517_v21 = vld [vmem:[%s8778_s28 + $0x330] sm:$0xff]   ;;  %v8518_v23 = vld [vmem:[%s8778_s28 + $0x338] sm:$0xff]   ;;  %v8521_v25 = vld [vmem:[%s8778_s28 + $0x340] sm:$0xff]  }
  0x15   : > { %v8520_v26 = vld [vmem:[%s8778_s28 + $0x48] sm:$0xff]   ;;  %v8523_v28 = vld [vmem:[%s8778_s28 + $0x50] sm:$0xff]   ;;  %v8524_v30 = vld [vmem:[%s8778_s28 + $0x58] sm:$0xff]  }
  0x16   : > { %8064 = vmatpush3.bf16.msra.mxu0 %v8497_v2  ;;  %8465 = vmatpush3.bf16.msra.mxu1 %v8497_v2  ;;  %v8522_v27 = vld [vmem:[%s8778_s28 + $0x348] sm:$0xff]   ;;  %v8525_v29 = vld [vmem:[%s8778_s28 + $0x350] sm:$0xff]   ;;  %v8526_v31 = vld [vmem:[%s8778_s28 + $0x358] sm:$0xff]  }
  0x17   : > { %8065 = vmatprep.subr.bf16.mxu0 %v8498_v3  ;;  %8458 = vmatprep.subr.bf16.mxu1 %v8498_v3  ;;  %v8527_v32 = vld [vmem:[%s8778_s28 + $0x60] sm:$0xff]   ;;  %v8528_v34 = vld [vmem:[%s8778_s28 + $0x68] sm:$0xff]   ;;  %v8531_v36 = vld [vmem:[%s8778_s28 + $0x70] sm:$0xff]  }
  0x18   : > { %v8529_v33 = vld [vmem:[%s8778_s28 + $0x360] sm:$0xff]   ;;  %v8530_v35 = vld [vmem:[%s8778_s28 + $0x368] sm:$0xff]   ;;  %v8533_v37 = vld [vmem:[%s8778_s28 + $0x370] sm:$0xff]  }
  0x19   : > { %v8532_v38 = vld [vmem:[%s8778_s28 + $0x78] sm:$0xff]   ;;  %v8535_v40 = vld [vmem:[%s8778_s28 + $0x80] sm:$0xff]   ;;  %v8536_v42 = vld [vmem:[%s8778_s28 + $0x88] sm:$0xff]  }
  0x1a   : > { %8066 = vmatpush3.bf16.msra.mxu0 %v8498_v3  ;;  %8466 = vmatpush3.bf16.msra.mxu1 %v8498_v3  ;;  %v8534_v39 = vld [vmem:[%s8778_s28 + $0x378] sm:$0xff]   ;;  %v8537_v41 = vld [vmem:[%s8778_s28 + $0x380] sm:$0xff]   ;;  %v8538_v43 = vld [vmem:[%s8778_s28 + $0x388] sm:$0xff]  }
  0x1b   : > { %8067 = vmatprep.subr.bf16.mxu0 %v8499_v6  ;;  %8459 = vmatprep.subr.bf16.mxu1 %v8499_v6  ;;  %v8539_v44 = vld [vmem:[%s8778_s28 + $0x90] sm:$0xff]   ;;  %v8540_v46 = vld [vmem:[%s8778_s28 + $0x98] sm:$0xff]   ;;  %v8543_v48 = vld [vmem:[%s8778_s28 + $0xa0] sm:$0xff]  }
  0x1c   : > { %v8541_v45 = vld [vmem:[%s8778_s28 + $0x390] sm:$0xff]   ;;  %v8542_v47 = vld [vmem:[%s8778_s28 + $0x398] sm:$0xff]   ;;  %v8545_v49 = vld [vmem:[%s8778_s28 + $0x3a0] sm:$0xff]  }
  0x1d   : > { %v8544_v50 = vld [vmem:[%s8778_s28 + $0xa8] sm:$0xff]   ;;  %v8547_v52 = vld [vmem:[%s8778_s28 + $0xb0] sm:$0xff]   ;;  %v8548_v54 = vld [vmem:[%s8778_s28 + $0xb8] sm:$0xff]  }
  0x1e   : > { %8068 = vmatpush3.bf16.msra.mxu0 %v8499_v6  ;;  %8467 = vmatpush3.bf16.msra.mxu1 %v8499_v6  ;;  %v8546_v51 = vld [vmem:[%s8778_s28 + $0x3a8] sm:$0xff]   ;;  %v8549_v53 = vld [vmem:[%s8778_s28 + $0x3b0] sm:$0xff]   ;;  %v8550_v55 = vld [vmem:[%s8778_s28 + $0x3b8] sm:$0xff]  }
  0x1f   : > { %8069 = vmatprep.subr.bf16.mxu0 %v8500_v7  ;;  %8460 = vmatprep.subr.bf16.mxu1 %v8500_v7  ;;  %v8551_v56 = vld [vmem:[%s8778_s28 + $0xc0] sm:$0xff]   ;;  %v8552_v58 = vld [vmem:[%s8778_s28 + $0xc8] sm:$0xff]   ;;  %v8555_v60 = vld [vmem:[%s8778_s28 + $0xd0] sm:$0xff]  }
  0x20   : > { %v8553_v57 = vld [vmem:[%s8778_s28 + $0x3c0] sm:$0xff]   ;;  %v8554_v59 = vld [vmem:[%s8778_s28 + $0x3c8] sm:$0xff]   ;;  %v8557_v61 = vld [vmem:[%s8778_s28 + $0x3d0] sm:$0xff]  }
  0x21   : > { %v8556_v62 = vld [vmem:[%s8778_s28 + $0xd8] sm:$0xff]   ;;  %v8559_v0 = vld [vmem:[%s8778_s28 + $0xe0] sm:$0xff]   ;;  %v8560_v2 = vld [vmem:[%s8778_s28 + $0xe8] sm:$0xff]  }
  0x22   : > { %8070 = vmatpush3.bf16.msra.mxu0 %v8500_v7  ;;  %8468 = vmatpush3.bf16.msra.mxu1 %v8500_v7  ;;  %v8558_v63 = vld [vmem:[%s8778_s28 + $0x3d8] sm:$0xff]   ;;  %v8561_v1 = vld [vmem:[%s8778_s28 + $0x3e0] sm:$0xff]   ;;  %v8562_v3 = vld [vmem:[%s8778_s28 + $0x3e8] sm:$0xff]  }
  0x23   : > { %8071 = vmatprep.subr.bf16.mxu0 %v8501_v8  ;;  %8461 = vmatprep.subr.bf16.mxu1 %v8501_v8  ;;  %v8563_v4 = vld [vmem:[%s8778_s28 + $0xf0] sm:$0xff]   ;;  %v8564_v6 = vld [vmem:[%s8778_s28 + $0xf8] sm:$0xff]  }
  0x24   : > { %v8565_v5 = vld [vmem:[%s8778_s28 + $0x3f0] sm:$0xff]   ;;  %v8566_v7 = vld [vmem:[%s8778_s28 + $0x3f8] sm:$0xff]  }
  0x26   : > { %8072 = vmatpush3.bf16.msra.mxu0 %v8501_v8  ;;  %8469 = vmatpush3.bf16.msra.mxu1 %v8501_v8  ;;  %v8567_v8 = vld [vmem:[%s8778_s28 + $0x100] sm:$0xff]  }
  0x27   : > { %8073 = vmatprep.subr.bf16.mxu0 %v8502_v9  ;;  %8462 = vmatprep.subr.bf16.mxu1 %v8502_v9 }
  0x2a   : > { %8074 = vmatpush3.bf16.msra.mxu0 %v8502_v9  ;;  %8470 = vmatpush3.bf16.msra.mxu1 %v8502_v9  ;;  %v8569_v9 = vld [vmem:[%s8778_s28 + $0x400] sm:$0xff]  }
  0x2d   : > { %8076 = vmatmul.mubr.bf16.vlgmr.msra.gmra.mxu0 %v8504_v10  ;;  %8268 = vmatmul.mubr.bf16.vlgmr.msra.gmra.mxu1 %v8506_v11  ;;  %v8568_v10 = vld [vmem:[%s8778_s28 + $0x108] sm:$0xff]  }
  0x2e   : > { %8079 = vmatprep.mubr.bf16.mxu0 %v8507_v12  ;;  %8271 = vmatprep.mubr.bf16.mxu1 %v8509_v13  ;;  %v8570_v11 = vld [vmem:[%s8778_s28 + $0x408] sm:$0xff]   ;;  %v8571_v12 = vld [vmem:[%s8778_s28 + $0x110] sm:$0xff]  }
  0x2f   : > { %v8573_v13 = vld [vmem:[%s8778_s28 + $0x410] sm:$0xff]  }
  0x35   : > { %8080 = vmatmul.mubr.bf16.gmra.mxu0 %v8508_v14  ;;  %8272 = vmatmul.mubr.bf16.gmra.mxu1 %v8510_v15  ;;  %v8572_v14 = vld [vmem:[%s8778_s28 + $0x118] sm:$0xff]  }
  0x36   : > { %8083 = vmatprep.mubr.bf16.mxu0 %v8511_v16  ;;  %8275 = vmatprep.mubr.bf16.mxu1 %v8513_v17  ;;  %v8574_v15 = vld [vmem:[%s8778_s28 + $0x418] sm:$0xff]   ;;  %v8575_v16 = vld [vmem:[%s8778_s28 + $0x120] sm:$0xff]  }
  0x37   : > { %v8577_v17 = vld [vmem:[%s8778_s28 + $0x420] sm:$0xff]  }
  0x3d   : > { %8084 = vmatmul.mubr.bf16.gmra.mxu0 %v8512_v18  ;;  %8276 = vmatmul.mubr.bf16.gmra.mxu1 %v8514_v19  ;;  %v8576_v18 = vld [vmem:[%s8778_s28 + $0x128] sm:$0xff]  }
  0x3e   : > { %8087 = vmatprep.mubr.bf16.mxu0 %v8515_v20  ;;  %8279 = vmatprep.mubr.bf16.mxu1 %v8517_v21  ;;  %v8578_v19 = vld [vmem:[%s8778_s28 + $0x428] sm:$0xff]   ;;  %v8579_v20 = vld [vmem:[%s8778_s28 + $0x130] sm:$0xff]  }
  0x3f   : > { %v8581_v21 = vld [vmem:[%s8778_s28 + $0x430] sm:$0xff]  }
  0x45   : > { %8088 = vmatmul.mubr.bf16.gmra.mxu0 %v8516_v22  ;;  %8280 = vmatmul.mubr.bf16.gmra.mxu1 %v8518_v23  ;;  %v8580_v22 = vld [vmem:[%s8778_s28 + $0x138] sm:$0xff]  }
  0x46   : > { %8091 = vmatprep.mubr.bf16.mxu0 %v8519_v24  ;;  %8283 = vmatprep.mubr.bf16.mxu1 %v8521_v25  ;;  %v8582_v23 = vld [vmem:[%s8778_s28 + $0x438] sm:$0xff]   ;;  %v8583_v24 = vld [vmem:[%s8778_s28 + $0x140] sm:$0xff]  }
  0x47   : > { %v8585_v25 = vld [vmem:[%s8778_s28 + $0x440] sm:$0xff]  }
  0x4d   : > { %8092 = vmatmul.mubr.bf16.gmra.mxu0 %v8520_v26  ;;  %8284 = vmatmul.mubr.bf16.gmra.mxu1 %v8522_v27  ;;  %v8584_v26 = vld [vmem:[%s8778_s28 + $0x148] sm:$0xff]  }
  0x4e   : > { %8095 = vmatprep.mubr.bf16.mxu0 %v8523_v28  ;;  %8287 = vmatprep.mubr.bf16.mxu1 %v8525_v29  ;;  %v8586_v27 = vld [vmem:[%s8778_s28 + $0x448] sm:$0xff]   ;;  %v8587_v28 = vld [vmem:[%s8778_s28 + $0x150] sm:$0xff]  }
  0x4f   : > { %v8589_v29 = vld [vmem:[%s8778_s28 + $0x450] sm:$0xff]  }
  0x55   : > { %8096 = vmatmul.mubr.bf16.gmra.mxu0 %v8524_v30  ;;  %8288 = vmatmul.mubr.bf16.gmra.mxu1 %v8526_v31  ;;  %v8588_v30 = vld [vmem:[%s8778_s28 + $0x158] sm:$0xff]  }
  0x56   : > { %8099 = vmatprep.mubr.bf16.mxu0 %v8527_v32  ;;  %8291 = vmatprep.mubr.bf16.mxu1 %v8529_v33  ;;  %v8590_v31 = vld [vmem:[%s8778_s28 + $0x458] sm:$0xff]   ;;  %v8591_v32 = vld [vmem:[%s8778_s28 + $0x160] sm:$0xff]  }
  0x57   : > { %v8593_v33 = vld [vmem:[%s8778_s28 + $0x460] sm:$0xff]  }
  0x5d   : > { %8100 = vmatmul.mubr.bf16.gmra.mxu0 %v8528_v34  ;;  %8292 = vmatmul.mubr.bf16.gmra.mxu1 %v8530_v35  ;;  %v8592_v34 = vld [vmem:[%s8778_s28 + $0x168] sm:$0xff]  }
  0x5e   : > { %8103 = vmatprep.mubr.bf16.mxu0 %v8531_v36  ;;  %8295 = vmatprep.mubr.bf16.mxu1 %v8533_v37  ;;  %v8594_v35 = vld [vmem:[%s8778_s28 + $0x468] sm:$0xff]   ;;  %v8595_v36 = vld [vmem:[%s8778_s28 + $0x170] sm:$0xff]  }
  0x5f   : > { %v8597_v37 = vld [vmem:[%s8778_s28 + $0x470] sm:$0xff]  }
  0x65   : > { %8104 = vmatmul.mubr.bf16.gmra.mxu0 %v8532_v38  ;;  %8296 = vmatmul.mubr.bf16.gmra.mxu1 %v8534_v39  ;;  %v8596_v38 = vld [vmem:[%s8778_s28 + $0x178] sm:$0xff]  }
  0x66   : > { %8107 = vmatprep.mubr.bf16.mxu0 %v8535_v40  ;;  %8299 = vmatprep.mubr.bf16.mxu1 %v8537_v41  ;;  %v8598_v39 = vld [vmem:[%s8778_s28 + $0x478] sm:$0xff]   ;;  %v8599_v40 = vld [vmem:[%s8778_s28 + $0x180] sm:$0xff]  }
  0x67   : > { %v8601_v41 = vld [vmem:[%s8778_s28 + $0x480] sm:$0xff]  }
  0x6d   : > { %8108 = vmatmul.mubr.bf16.gmra.mxu0 %v8536_v42  ;;  %8300 = vmatmul.mubr.bf16.gmra.mxu1 %v8538_v43  ;;  %v8600_v42 = vld [vmem:[%s8778_s28 + $0x188] sm:$0xff]  }
  0x6e   : > { %8111 = vmatprep.mubr.bf16.mxu0 %v8539_v44  ;;  %8303 = vmatprep.mubr.bf16.mxu1 %v8541_v45  ;;  %v8602_v43 = vld [vmem:[%s8778_s28 + $0x488] sm:$0xff]   ;;  %v8603_v44 = vld [vmem:[%s8778_s28 + $0x190] sm:$0xff]  }
  0x6f   : > { %v8605_v45 = vld [vmem:[%s8778_s28 + $0x490] sm:$0xff]  }
  0x75   : > { %8112 = vmatmul.mubr.bf16.gmra.mxu0 %v8540_v46  ;;  %8304 = vmatmul.mubr.bf16.gmra.mxu1 %v8542_v47  ;;  %v8897_v46 = vld [vmem:[%s9590_s2] ss:$0 sm:$0xff] }
  0x76   : > { %8115 = vmatprep.mubr.bf16.mxu0 %v8543_v48  ;;  %8307 = vmatprep.mubr.bf16.mxu1 %v8545_v49 }
  0x7d   : > { %8116 = vmatmul.mubr.bf16.gmra.mxu0 %v8544_v50  ;;  %8308 = vmatmul.mubr.bf16.gmra.mxu1 %v8546_v51 }
  0x7e   : > { %8119 = vmatprep.mubr.bf16.mxu0 %v8547_v52  ;;  %8311 = vmatprep.mubr.bf16.mxu1 %v8549_v53 }
  0x85   : > { %8120 = vmatmul.mubr.bf16.gmra.mxu0 %v8548_v54  ;;  %8312 = vmatmul.mubr.bf16.gmra.mxu1 %v8550_v55 }
  0x86   : > { %8123 = vmatprep.mubr.bf16.mxu0 %v8551_v56  ;;  %8315 = vmatprep.mubr.bf16.mxu1 %v8553_v57  ;;  %v8604_v56 = vld [vmem:[%s8778_s28 + $0x198] sm:$0xff]  }
  0x87   : > { %v8606_v57 = vld [vmem:[%s8778_s28 + $0x498] sm:$0xff]  }
  0x8d   : > { %8124 = vmatmul.mubr.bf16.gmra.mxu0 %v8552_v58  ;;  %8316 = vmatmul.mubr.bf16.gmra.mxu1 %v8554_v59 }
  0x8e   : > { %8127 = vmatprep.mubr.bf16.mxu0 %v8555_v60  ;;  %8319 = vmatprep.mubr.bf16.mxu1 %v8557_v61 }
  0x95   : > { %8128 = vmatmul.mubr.bf16.gmra.mxu0 %v8556_v62  ;;  %8320 = vmatmul.mubr.bf16.gmra.mxu1 %v8558_v63  ;;  %v8607_v62 = vld [vmem:[%s8778_s28 + $0x1a0] sm:$0xff]  }
  0x96   : > { %8131 = vmatprep.mubr.bf16.mxu0 %v8559_v0  ;;  %8323 = vmatprep.mubr.bf16.mxu1 %v8561_v1  ;;  %v8609_v63 = vld [vmem:[%s8778_s28 + $0x4a0] sm:$0xff]  }
  0x9d   : > { %8132 = vmatmul.mubr.bf16.gmra.mxu0 %v8560_v2  ;;  %8324 = vmatmul.mubr.bf16.gmra.mxu1 %v8562_v3 }
  0x9e   : > { %8135 = vmatprep.mubr.bf16.mxu0 %v8563_v4  ;;  %8327 = vmatprep.mubr.bf16.mxu1 %v8565_v5 }
  0xa5   : > { %8136 = vmatmul.mubr.bf16.gmra.mxu0 %v8564_v6  ;;  %8328 = vmatmul.mubr.bf16.gmra.mxu1 %v8566_v7 }
  0xa6   : > { %8139 = vmatprep.mubr.bf16.mxu0 %v8567_v8  ;;  %8331 = vmatprep.mubr.bf16.mxu1 %v8569_v9 }
  0xad   : > { %8140 = vmatmul.mubr.bf16.gmra.mxu0 %v8568_v10  ;;  %8332 = vmatmul.mubr.bf16.gmra.mxu1 %v8570_v11 }
  0xae   : > { %8143 = vmatprep.mubr.bf16.mxu0 %v8571_v12  ;;  %8335 = vmatprep.mubr.bf16.mxu1 %v8573_v13 }
  0xb5   : > { %8144 = vmatmul.mubr.bf16.gmra.mxu0 %v8572_v14  ;;  %8336 = vmatmul.mubr.bf16.gmra.mxu1 %v8574_v15 }
  0xb6   : > { %8147 = vmatprep.mubr.bf16.mxu0 %v8575_v16  ;;  %8339 = vmatprep.mubr.bf16.mxu1 %v8577_v17 }
  0xbd   : > { %8148 = vmatmul.mubr.bf16.gmra.mxu0 %v8576_v18  ;;  %8340 = vmatmul.mubr.bf16.gmra.mxu1 %v8578_v19 }
  0xbe   : > { %8151 = vmatprep.mubr.bf16.mxu0 %v8579_v20  ;;  %8343 = vmatprep.mubr.bf16.mxu1 %v8581_v21 }
  0xc5   : > { %8152 = vmatmul.mubr.bf16.gmra.mxu0 %v8580_v22  ;;  %8344 = vmatmul.mubr.bf16.gmra.mxu1 %v8582_v23 }
  0xc6   : > { %8155 = vmatprep.mubr.bf16.mxu0 %v8583_v24  ;;  %8347 = vmatprep.mubr.bf16.mxu1 %v8585_v25  ;;  %v8608_v24 = vld [vmem:[%s8778_s28 + $0x1a8] sm:$0xff]  }
  0xc7   : > { %v8610_v25 = vld [vmem:[%s8778_s28 + $0x4a8] sm:$0xff]  }
  0xcd   : > { %8156 = vmatmul.mubr.bf16.gmra.mxu0 %v8584_v26  ;;  %8348 = vmatmul.mubr.bf16.gmra.mxu1 %v8586_v27 }
  0xce   : > { %8159 = vmatprep.mubr.bf16.mxu0 %v8587_v28  ;;  %8351 = vmatprep.mubr.bf16.mxu1 %v8589_v29 }
  0xd5   : > { %8160 = vmatmul.mubr.bf16.gmra.mxu0 %v8588_v30  ;;  %8352 = vmatmul.mubr.bf16.gmra.mxu1 %v8590_v31  ;;  %v8611_v30 = vld [vmem:[%s8778_s28 + $0x1b0] sm:$0xff]  }
  0xd6   : > { %8163 = vmatprep.mubr.bf16.mxu0 %v8591_v32  ;;  %8355 = vmatprep.mubr.bf16.mxu1 %v8593_v33  ;;  %v8613_v31 = vld [vmem:[%s8778_s28 + $0x4b0] sm:$0xff]  }
  0xdd   : > { %8164 = vmatmul.mubr.bf16.gmra.mxu0 %v8592_v34  ;;  %8356 = vmatmul.mubr.bf16.gmra.mxu1 %v8594_v35 }
  0xde   : > { %8167 = vmatprep.mubr.bf16.mxu0 %v8595_v36  ;;  %8359 = vmatprep.mubr.bf16.mxu1 %v8597_v37 }
  0xe5   : > { %8168 = vmatmul.mubr.bf16.gmra.mxu0 %v8596_v38  ;;  %8360 = vmatmul.mubr.bf16.gmra.mxu1 %v8598_v39 }
  0xe6   : > { %8171 = vmatprep.mubr.bf16.mxu0 %v8599_v40  ;;  %8363 = vmatprep.mubr.bf16.mxu1 %v8601_v41 }
  0xed   : > { %v8077_v47 = vpop.f32.mrf.mxu0  ;;  %8172 = vmatmul.mubr.bf16.gmra.mxu0 %v8600_v42  ;;  %v8269_v48 = vpop.f32.mrf.mxu1  ;;  %8364 = vmatmul.mubr.bf16.gmra.mxu1 %v8602_v43 }
  0xee   : > { %v2628_v49 = vadd.f32 %v8269_v48, %v8897_v46  ;;  %8175 = vmatprep.mubr.bf16.mxu0 %v8603_v44  ;;  %8367 = vmatprep.mubr.bf16.mxu1 %v8605_v45  ;;  %v1860_v50 = vadd.f32 %v8077_v47, %v8897_v46 }
  0xef   : > { %v1851_v51 = vpop.f32.mrf.mxu0  ;;  %v2619_v52 = vpop.f32.mrf.mxu1 }
  0xf0   : > { %v2620_v54 = vadd.f32 %v8897_v46, %v2619_v52  ;;  %v1852_v58 = vadd.f32 %v8897_v46, %v1851_v51  ;;  %v3564_v59 = vmax.f32 %v2628_v49, 0.0  ;;  %v3372_v0 = vmax.f32 %v1860_v50, 0.0 }
  0xf1   : > { %v8078_v53 = vpop.f32.mrf.mxu0  ;;  %v8270_v55 = vpop.f32.mrf.mxu1 }
  0xf2   : > { %v1863_v60 = vadd.f32 %v8078_v53, %v8897_v46  ;;  %v2631_v61 = vadd.f32 %v8270_v55, %v8897_v46  ;;  %v3562_v7 = vmax.f32 %v2620_v54, 0.0  ;;  %v3370_v10 = vmax.f32 %v1852_v58, 0.0  ;;  %v8614_v58 = vld [vmem:[%s8778_s28 + $0x4b8] sm:$0xff]  }
  0xf3   : > { %v1854_v1 = vpop.f32.mrf.mxu0  ;;  %v2622_v2 = vpop.f32.mrf.mxu1 }
  0xf4   : > { %v3373_v3 = vmax.f32 %v1863_v60, 0.0  ;;  %v1855_v4 = vadd.f32 %v8897_v46, %v1854_v1  ;;  %v3565_v5 = vmax.f32 %v2631_v61, 0.0  ;;  %v2623_v6 = vadd.f32 %v8897_v46, %v2622_v2 }
  0xf5   : > { %v8081_v8 = vpop.f32.mrf.mxu0  ;;  %8176 = vmatmul.mubr.bf16.gmra.mxu0 %v8604_v56  ;;  %v8273_v9 = vpop.f32.mrf.mxu1  ;;  %8368 = vmatmul.mubr.bf16.gmra.mxu1 %v8606_v57  ;;  %v8612_v57 = vld [vmem:[%s8778_s28 + $0x1b8] sm:$0xff]  }
  0xf6   : > { %v6730_v11 = vpack.c.bf16 %v3373_v3, %v3372_v0  ;;  %v3371_v12 = vmax.f32 %v1855_v4, 0.0  ;;  %v7210_v13 = vpack.c.bf16 %v3565_v5, %v3564_v59  ;;  %8179 = vmatprep.mubr.bf16.mxu0 %v8607_v62  ;;  %8371 = vmatprep.mubr.bf16.mxu1 %v8609_v63  ;;  %v1876_v14 = vadd.f32 %v8081_v8, %v8897_v46  ;;  %v8615_v63 = vld [vmem:[%s8778_s28 + $0x1c0] sm:$0xff]  }
  0xf7   : > { %v3563_v15 = vmax.f32 %v2623_v6, 0.0  ;;  %v1867_v16 = vpop.f32.mrf.mxu0  ;;  %v2644_v17 = vadd.f32 %v8273_v9, %v8897_v46  ;;  %v2635_v18 = vpop.f32.mrf.mxu1  ;;  %v8617_v0 = vld [vmem:[%s8778_s28 + $0x4c0] sm:$0xff]  }
  0xf8   : > { %7672 = vst [vmem:[%s8916_s17 + $0x8] sm:$0xff] %v6730_v11   ;;  %v6725_v19 = vpack.c.bf16 %v3371_v12, %v3370_v10  ;;  %7768 = vst [vmem:[%s8916_s17 + $0x308] sm:$0xff] %v7210_v13   ;;  %v2636_v22 = vadd.f32 %v8897_v46, %v2635_v18  ;;  %v1868_v26 = vadd.f32 %v8897_v46, %v1867_v16  ;;  %v3376_v32 = vmax.f32 %v1876_v14, 0.0 }
  0xf9   : > { %v7205_v20 = vpack.c.bf16 %v3563_v15, %v3562_v7  ;;  %v8082_v21 = vpop.f32.mrf.mxu0  ;;  %v8274_v23 = vpop.f32.mrf.mxu1  ;;  %v3568_v27 = vmax.f32 %v2644_v17, 0.0 }
  0xfa   : > { %6726 = vst [vmem:[%s8916_s17] sm:$0xff] %v6725_v19   ;;  %v1879_v28 = vadd.f32 %v8082_v21, %v8897_v46  ;;  %v2647_v29 = vadd.f32 %v8274_v23, %v8897_v46  ;;  %v3566_v39 = vmax.f32 %v2636_v22, 0.0  ;;  %v3374_v42 = vmax.f32 %v1868_v26, 0.0  ;;  %v8618_v26 = vld [vmem:[%s8778_s28 + $0x4c8] sm:$0xff]  }
  0xfb   : > { %7767 = vst [vmem:[%s8916_s17 + $0x300] sm:$0xff] %v7205_v20   ;;  %v1870_v33 = vpop.f32.mrf.mxu0  ;;  %v2638_v34 = vpop.f32.mrf.mxu1 }
  0xfc   : > { %v3377_v35 = vmax.f32 %v1879_v28, 0.0  ;;  %v1871_v36 = vadd.f32 %v8897_v46, %v1870_v33  ;;  %v3569_v37 = vmax.f32 %v2647_v29, 0.0  ;;  %v2639_v38 = vadd.f32 %v8897_v46, %v2638_v34 }
  0xfd   : > { %v8085_v40 = vpop.f32.mrf.mxu0  ;;  %8180 = vmatmul.mubr.bf16.gmra.mxu0 %v8608_v24  ;;  %v8277_v41 = vpop.f32.mrf.mxu1  ;;  %8372 = vmatmul.mubr.bf16.gmra.mxu1 %v8610_v25  ;;  %v8616_v25 = vld [vmem:[%s8778_s28 + $0x1c8] sm:$0xff]  }
  0xfe   : > { %v6740_v43 = vpack.c.bf16 %v3377_v35, %v3376_v32  ;;  %v3375_v44 = vmax.f32 %v1871_v36, 0.0  ;;  %v7220_v45 = vpack.c.bf16 %v3569_v37, %v3568_v27  ;;  %8183 = vmatprep.mubr.bf16.mxu0 %v8611_v30  ;;  %8375 = vmatprep.mubr.bf16.mxu1 %v8613_v31  ;;  %v1892_v47 = vadd.f32 %v8085_v40, %v8897_v46  ;;  %v8619_v31 = vld [vmem:[%s8778_s28 + $0x1d0] sm:$0xff]  }
  0xff   : > { %v3567_v48 = vmax.f32 %v2639_v38, 0.0  ;;  %v1883_v49 = vpop.f32.mrf.mxu0  ;;  %v2660_v50 = vadd.f32 %v8277_v41, %v8897_v46  ;;  %v2651_v51 = vpop.f32.mrf.mxu1  ;;  %v8621_v32 = vld [vmem:[%s8778_s28 + $0x4d0] sm:$0xff]  }
 0x100   : > { %7674 = vst [vmem:[%s8916_s17 + $0x18] sm:$0xff] %v6740_v43   ;;  %v6735_v52 = vpack.c.bf16 %v3375_v44, %v3374_v42  ;;  %7770 = vst [vmem:[%s8916_s17 + $0x318] sm:$0xff] %v7220_v45   ;;  %v2652_v55 = vadd.f32 %v8897_v46, %v2651_v51  ;;  %v1884_v59 = vadd.f32 %v8897_v46, %v1883_v49  ;;  %v3380_v1 = vmax.f32 %v1892_v47, 0.0 }
 0x101   : > { %v7215_v53 = vpack.c.bf16 %v3567_v48, %v3566_v39  ;;  %v8086_v54 = vpop.f32.mrf.mxu0  ;;  %v8278_v56 = vpop.f32.mrf.mxu1  ;;  %v3572_v60 = vmax.f32 %v2660_v50, 0.0 }
 0x102   : > { %7673 = vst [vmem:[%s8916_s17 + $0x10] sm:$0xff] %v6735_v52   ;;  %v1895_v61 = vadd.f32 %v8086_v54, %v8897_v46  ;;  %v2663_v62 = vadd.f32 %v8278_v56, %v8897_v46  ;;  %v3570_v8 = vmax.f32 %v2652_v55, 0.0  ;;  %v3378_v11 = vmax.f32 %v1884_v59, 0.0  ;;  %v8622_v59 = vld [vmem:[%s8778_s28 + $0x4d8] sm:$0xff]  }
 0x103   : > { %7769 = vst [vmem:[%s8916_s17 + $0x310] sm:$0xff] %v7215_v53   ;;  %v1886_v2 = vpop.f32.mrf.mxu0  ;;  %v2654_v3 = vpop.f32.mrf.mxu1 }
 0x104   : > { %v3381_v4 = vmax.f32 %v1895_v61, 0.0  ;;  %v1887_v5 = vadd.f32 %v8897_v46, %v1886_v2  ;;  %v3573_v6 = vmax.f32 %v2663_v62, 0.0  ;;  %v2655_v7 = vadd.f32 %v8897_v46, %v2654_v3 }
 0x105   : > { %v8089_v9 = vpop.f32.mrf.mxu0  ;;  %8184 = vmatmul.mubr.bf16.gmra.mxu0 %v8612_v57  ;;  %v8281_v10 = vpop.f32.mrf.mxu1  ;;  %8376 = vmatmul.mubr.bf16.gmra.mxu1 %v8614_v58  ;;  %v8620_v58 = vld [vmem:[%s8778_s28 + $0x1d8] sm:$0xff]  }
 0x106   : > { %v6750_v12 = vpack.c.bf16 %v3381_v4, %v3380_v1  ;;  %v3379_v13 = vmax.f32 %v1887_v5, 0.0  ;;  %v7230_v14 = vpack.c.bf16 %v3573_v6, %v3572_v60  ;;  %8187 = vmatprep.mubr.bf16.mxu0 %v8615_v63  ;;  %8379 = vmatprep.mubr.bf16.mxu1 %v8617_v0  ;;  %v1908_v15 = vadd.f32 %v8089_v9, %v8897_v46  ;;  %v8623_v0 = vld [vmem:[%s8778_s28 + $0x1e0] sm:$0xff]  }
 0x107   : > { %v3571_v16 = vmax.f32 %v2655_v7, 0.0  ;;  %v1899_v17 = vpop.f32.mrf.mxu0  ;;  %v2676_v18 = vadd.f32 %v8281_v10, %v8897_v46  ;;  %v2667_v19 = vpop.f32.mrf.mxu1  ;;  %v8625_v1 = vld [vmem:[%s8778_s28 + $0x4e0] sm:$0xff]  }
 0x108   : > { %7676 = vst [vmem:[%s8916_s17 + $0x28] sm:$0xff] %v6750_v12   ;;  %v6745_v20 = vpack.c.bf16 %v3379_v13, %v3378_v11  ;;  %7772 = vst [vmem:[%s8916_s17 + $0x328] sm:$0xff] %v7230_v14   ;;  %v2668_v23 = vadd.f32 %v8897_v46, %v2667_v19  ;;  %v1900_v27 = vadd.f32 %v8897_v46, %v1899_v17  ;;  %v3384_v33 = vmax.f32 %v1908_v15, 0.0 }
 0x109   : > { %v7225_v21 = vpack.c.bf16 %v3571_v16, %v3570_v8  ;;  %v8090_v22 = vpop.f32.mrf.mxu0  ;;  %v8282_v24 = vpop.f32.mrf.mxu1  ;;  %v3576_v28 = vmax.f32 %v2676_v18, 0.0 }
 0x10a   : > { %7675 = vst [vmem:[%s8916_s17 + $0x20] sm:$0xff] %v6745_v20   ;;  %v1911_v29 = vadd.f32 %v8090_v22, %v8897_v46  ;;  %v2679_v30 = vadd.f32 %v8282_v24, %v8897_v46  ;;  %v3574_v40 = vmax.f32 %v2668_v23, 0.0  ;;  %v3382_v43 = vmax.f32 %v1900_v27, 0.0  ;;  %v8626_v27 = vld [vmem:[%s8778_s28 + $0x4e8] sm:$0xff]  }
 0x10b   : > { %7771 = vst [vmem:[%s8916_s17 + $0x320] sm:$0xff] %v7225_v21   ;;  %v1902_v34 = vpop.f32.mrf.mxu0  ;;  %v2670_v35 = vpop.f32.mrf.mxu1 }
 0x10c   : > { %v3385_v36 = vmax.f32 %v1911_v29, 0.0  ;;  %v1903_v37 = vadd.f32 %v8897_v46, %v1902_v34  ;;  %v3577_v38 = vmax.f32 %v2679_v30, 0.0  ;;  %v2671_v39 = vadd.f32 %v8897_v46, %v2670_v35 }
 0x10d   : > { %v8093_v41 = vpop.f32.mrf.mxu0  ;;  %8188 = vmatmul.mubr.bf16.gmra.mxu0 %v8616_v25  ;;  %v8285_v42 = vpop.f32.mrf.mxu1  ;;  %8380 = vmatmul.mubr.bf16.gmra.mxu1 %v8618_v26  ;;  %v8624_v26 = vld [vmem:[%s8778_s28 + $0x1e8] sm:$0xff]  }
 0x10e   : > { %v6760_v44 = vpack.c.bf16 %v3385_v36, %v3384_v33  ;;  %v3383_v45 = vmax.f32 %v1903_v37, 0.0  ;;  %v7240_v47 = vpack.c.bf16 %v3577_v38, %v3576_v28  ;;  %8191 = vmatprep.mubr.bf16.mxu0 %v8619_v31  ;;  %8383 = vmatprep.mubr.bf16.mxu1 %v8621_v32  ;;  %v1924_v48 = vadd.f32 %v8093_v41, %v8897_v46  ;;  %v8627_v32 = vld [vmem:[%s8778_s28 + $0x1f0] sm:$0xff]  }
 0x10f   : > { %v3575_v49 = vmax.f32 %v2671_v39, 0.0  ;;  %v1915_v50 = vpop.f32.mrf.mxu0  ;;  %v2692_v51 = vadd.f32 %v8285_v42, %v8897_v46  ;;  %v2683_v52 = vpop.f32.mrf.mxu1  ;;  %v8629_v33 = vld [vmem:[%s8778_s28 + $0x4f0] sm:$0xff]  }
 0x110   : > { %7678 = vst [vmem:[%s8916_s17 + $0x38] sm:$0xff] %v6760_v44   ;;  %v6755_v53 = vpack.c.bf16 %v3383_v45, %v3382_v43  ;;  %7774 = vst [vmem:[%s8916_s17 + $0x338] sm:$0xff] %v7240_v47   ;;  %v2684_v56 = vadd.f32 %v8897_v46, %v2683_v52  ;;  %v1916_v60 = vadd.f32 %v8897_v46, %v1915_v50  ;;  %v3388_v2 = vmax.f32 %v1924_v48, 0.0 }
 0x111   : > { %v7235_v54 = vpack.c.bf16 %v3575_v49, %v3574_v40  ;;  %v8094_v55 = vpop.f32.mrf.mxu0  ;;  %v8286_v57 = vpop.f32.mrf.mxu1  ;;  %v3580_v61 = vmax.f32 %v2692_v51, 0.0 }
 0x112   : > { %7677 = vst [vmem:[%s8916_s17 + $0x30] sm:$0xff] %v6755_v53   ;;  %v1927_v62 = vadd.f32 %v8094_v55, %v8897_v46  ;;  %v2695_v63 = vadd.f32 %v8286_v57, %v8897_v46  ;;  %v3578_v9 = vmax.f32 %v2684_v56, 0.0  ;;  %v3386_v12 = vmax.f32 %v1916_v60, 0.0  ;;  %v8630_v60 = vld [vmem:[%s8778_s28 + $0x4f8] sm:$0xff]  }
 0x113   : > { %7773 = vst [vmem:[%s8916_s17 + $0x330] sm:$0xff] %v7235_v54   ;;  %v1918_v3 = vpop.f32.mrf.mxu0  ;;  %v2686_v4 = vpop.f32.mrf.mxu1 }
 0x114   : > { %v3389_v5 = vmax.f32 %v1927_v62, 0.0  ;;  %v1919_v6 = vadd.f32 %v8897_v46, %v1918_v3  ;;  %v3581_v7 = vmax.f32 %v2695_v63, 0.0  ;;  %v2687_v8 = vadd.f32 %v8897_v46, %v2686_v4 }
 0x115   : > { %v8097_v10 = vpop.f32.mrf.mxu0  ;;  %8192 = vmatmul.mubr.bf16.gmra.mxu0 %v8620_v58  ;;  %v8289_v11 = vpop.f32.mrf.mxu1  ;;  %8384 = vmatmul.mubr.bf16.gmra.mxu1 %v8622_v59  ;;  %v8628_v59 = vld [vmem:[%s8778_s28 + $0x1f8] sm:$0xff]  }
 0x116   : > { %v6770_v13 = vpack.c.bf16 %v3389_v5, %v3388_v2  ;;  %v3387_v14 = vmax.f32 %v1919_v6, 0.0  ;;  %v7250_v15 = vpack.c.bf16 %v3581_v7, %v3580_v61  ;;  %8195 = vmatprep.mubr.bf16.mxu0 %v8623_v0  ;;  %8387 = vmatprep.mubr.bf16.mxu1 %v8625_v1  ;;  %v1940_v16 = vadd.f32 %v8097_v10, %v8897_v46  ;;  %v8631_v1 = vld [vmem:[%s8778_s28 + $0x200] sm:$0xff]  }
 0x117   : > { %v3579_v17 = vmax.f32 %v2687_v8, 0.0  ;;  %v1931_v18 = vpop.f32.mrf.mxu0  ;;  %v2708_v19 = vadd.f32 %v8289_v11, %v8897_v46  ;;  %v2699_v20 = vpop.f32.mrf.mxu1  ;;  %v8633_v2 = vld [vmem:[%s8778_s28 + $0x500] sm:$0xff]  }
 0x118   : > { %7680 = vst [vmem:[%s8916_s17 + $0x48] sm:$0xff] %v6770_v13   ;;  %v6765_v21 = vpack.c.bf16 %v3387_v14, %v3386_v12  ;;  %7776 = vst [vmem:[%s8916_s17 + $0x348] sm:$0xff] %v7250_v15   ;;  %v2700_v24 = vadd.f32 %v8897_v46, %v2699_v20  ;;  %v1932_v28 = vadd.f32 %v8897_v46, %v1931_v18  ;;  %v3392_v34 = vmax.f32 %v1940_v16, 0.0 }
 0x119   : > { %v7245_v22 = vpack.c.bf16 %v3579_v17, %v3578_v9  ;;  %v8098_v23 = vpop.f32.mrf.mxu0  ;;  %v8290_v25 = vpop.f32.mrf.mxu1  ;;  %v3584_v29 = vmax.f32 %v2708_v19, 0.0 }
 0x11a   : > { %7679 = vst [vmem:[%s8916_s17 + $0x40] sm:$0xff] %v6765_v21   ;;  %v1943_v30 = vadd.f32 %v8098_v23, %v8897_v46  ;;  %v2711_v31 = vadd.f32 %v8290_v25, %v8897_v46  ;;  %v3582_v41 = vmax.f32 %v2700_v24, 0.0  ;;  %v3390_v44 = vmax.f32 %v1932_v28, 0.0  ;;  %v8634_v28 = vld [vmem:[%s8778_s28 + $0x508] sm:$0xff]  }
 0x11b   : > { %7775 = vst [vmem:[%s8916_s17 + $0x340] sm:$0xff] %v7245_v22   ;;  %v1934_v35 = vpop.f32.mrf.mxu0  ;;  %v2702_v36 = vpop.f32.mrf.mxu1 }
 0x11c   : > { %v3393_v37 = vmax.f32 %v1943_v30, 0.0  ;;  %v1935_v38 = vadd.f32 %v8897_v46, %v1934_v35  ;;  %v3585_v39 = vmax.f32 %v2711_v31, 0.0  ;;  %v2703_v40 = vadd.f32 %v8897_v46, %v2702_v36 }
 0x11d   : > { %v8101_v42 = vpop.f32.mrf.mxu0  ;;  %8196 = vmatmul.mubr.bf16.gmra.mxu0 %v8624_v26  ;;  %v8293_v43 = vpop.f32.mrf.mxu1  ;;  %8388 = vmatmul.mubr.bf16.gmra.mxu1 %v8626_v27  ;;  %v8632_v27 = vld [vmem:[%s8778_s28 + $0x208] sm:$0xff]  }
 0x11e   : > { %v6780_v45 = vpack.c.bf16 %v3393_v37, %v3392_v34  ;;  %v3391_v47 = vmax.f32 %v1935_v38, 0.0  ;;  %v7260_v48 = vpack.c.bf16 %v3585_v39, %v3584_v29  ;;  %8199 = vmatprep.mubr.bf16.mxu0 %v8627_v32  ;;  %8391 = vmatprep.mubr.bf16.mxu1 %v8629_v33  ;;  %v1956_v49 = vadd.f32 %v8101_v42, %v8897_v46  ;;  %v8635_v33 = vld [vmem:[%s8778_s28 + $0x210] sm:$0xff]  }
 0x11f   : > { %v3583_v50 = vmax.f32 %v2703_v40, 0.0  ;;  %v1947_v51 = vpop.f32.mrf.mxu0  ;;  %v2724_v52 = vadd.f32 %v8293_v43, %v8897_v46  ;;  %v2715_v53 = vpop.f32.mrf.mxu1  ;;  %v8637_v34 = vld [vmem:[%s8778_s28 + $0x510] sm:$0xff]  }
 0x120   : > { %7682 = vst [vmem:[%s8916_s17 + $0x58] sm:$0xff] %v6780_v45   ;;  %v6775_v54 = vpack.c.bf16 %v3391_v47, %v3390_v44  ;;  %7778 = vst [vmem:[%s8916_s17 + $0x358] sm:$0xff] %v7260_v48   ;;  %v2716_v57 = vadd.f32 %v8897_v46, %v2715_v53  ;;  %v1948_v61 = vadd.f32 %v8897_v46, %v1947_v51  ;;  %v3396_v3 = vmax.f32 %v1956_v49, 0.0 }
 0x121   : > { %v7255_v55 = vpack.c.bf16 %v3583_v50, %v3582_v41  ;;  %v8102_v56 = vpop.f32.mrf.mxu0  ;;  %v8294_v58 = vpop.f32.mrf.mxu1  ;;  %v3588_v62 = vmax.f32 %v2724_v52, 0.0 }
 0x122   : > { %7681 = vst [vmem:[%s8916_s17 + $0x50] sm:$0xff] %v6775_v54   ;;  %v1959_v63 = vadd.f32 %v8102_v56, %v8897_v46  ;;  %v2727_v0 = vadd.f32 %v8294_v58, %v8897_v46  ;;  %v3586_v10 = vmax.f32 %v2716_v57, 0.0  ;;  %v3394_v13 = vmax.f32 %v1948_v61, 0.0  ;;  %v8638_v61 = vld [vmem:[%s8778_s28 + $0x518] sm:$0xff]  }
 0x123   : > { %7777 = vst [vmem:[%s8916_s17 + $0x350] sm:$0xff] %v7255_v55   ;;  %v1950_v4 = vpop.f32.mrf.mxu0  ;;  %v2718_v5 = vpop.f32.mrf.mxu1 }
 0x124   : > { %v3397_v6 = vmax.f32 %v1959_v63, 0.0  ;;  %v1951_v7 = vadd.f32 %v8897_v46, %v1950_v4  ;;  %v3589_v8 = vmax.f32 %v2727_v0, 0.0  ;;  %v2719_v9 = vadd.f32 %v8897_v46, %v2718_v5 }
 0x125   : > { %v8105_v11 = vpop.f32.mrf.mxu0  ;;  %8200 = vmatmul.mubr.bf16.gmra.mxu0 %v8628_v59  ;;  %v8297_v12 = vpop.f32.mrf.mxu1  ;;  %8392 = vmatmul.mubr.bf16.gmra.mxu1 %v8630_v60  ;;  %v8636_v60 = vld [vmem:[%s8778_s28 + $0x218] sm:$0xff]  }
 0x126   : > { %v6790_v14 = vpack.c.bf16 %v3397_v6, %v3396_v3  ;;  %v3395_v15 = vmax.f32 %v1951_v7, 0.0  ;;  %v7270_v16 = vpack.c.bf16 %v3589_v8, %v3588_v62  ;;  %8203 = vmatprep.mubr.bf16.mxu0 %v8631_v1  ;;  %8395 = vmatprep.mubr.bf16.mxu1 %v8633_v2  ;;  %v1972_v17 = vadd.f32 %v8105_v11, %v8897_v46  ;;  %v8639_v2 = vld [vmem:[%s8778_s28 + $0x220] sm:$0xff]  }
 0x127   : > { %v3587_v18 = vmax.f32 %v2719_v9, 0.0  ;;  %v1963_v19 = vpop.f32.mrf.mxu0  ;;  %v2740_v20 = vadd.f32 %v8297_v12, %v8897_v46  ;;  %v2731_v21 = vpop.f32.mrf.mxu1  ;;  %v8641_v3 = vld [vmem:[%s8778_s28 + $0x520] sm:$0xff]  }
 0x128   : > { %7684 = vst [vmem:[%s8916_s17 + $0x68] sm:$0xff] %v6790_v14   ;;  %v6785_v22 = vpack.c.bf16 %v3395_v15, %v3394_v13  ;;  %7780 = vst [vmem:[%s8916_s17 + $0x368] sm:$0xff] %v7270_v16   ;;  %v2732_v25 = vadd.f32 %v8897_v46, %v2731_v21  ;;  %v1964_v29 = vadd.f32 %v8897_v46, %v1963_v19  ;;  %v3400_v35 = vmax.f32 %v1972_v17, 0.0 }
 0x129   : > { %v7265_v23 = vpack.c.bf16 %v3587_v18, %v3586_v10  ;;  %v8106_v24 = vpop.f32.mrf.mxu0  ;;  %v8298_v26 = vpop.f32.mrf.mxu1  ;;  %v3592_v30 = vmax.f32 %v2740_v20, 0.0 }
 0x12a   : > { %7683 = vst [vmem:[%s8916_s17 + $0x60] sm:$0xff] %v6785_v22   ;;  %v1975_v31 = vadd.f32 %v8106_v24, %v8897_v46  ;;  %v2743_v32 = vadd.f32 %v8298_v26, %v8897_v46  ;;  %v3590_v42 = vmax.f32 %v2732_v25, 0.0  ;;  %v3398_v45 = vmax.f32 %v1964_v29, 0.0  ;;  %v8642_v29 = vld [vmem:[%s8778_s28 + $0x528] sm:$0xff]  }
 0x12b   : > { %7779 = vst [vmem:[%s8916_s17 + $0x360] sm:$0xff] %v7265_v23   ;;  %v1966_v36 = vpop.f32.mrf.mxu0  ;;  %v2734_v37 = vpop.f32.mrf.mxu1 }
 0x12c   : > { %v3401_v38 = vmax.f32 %v1975_v31, 0.0  ;;  %v1967_v39 = vadd.f32 %v8897_v46, %v1966_v36  ;;  %v3593_v40 = vmax.f32 %v2743_v32, 0.0  ;;  %v2735_v41 = vadd.f32 %v8897_v46, %v2734_v37 }
 0x12d   : > { %v8109_v43 = vpop.f32.mrf.mxu0  ;;  %8204 = vmatmul.mubr.bf16.gmra.mxu0 %v8632_v27  ;;  %v8301_v44 = vpop.f32.mrf.mxu1  ;;  %8396 = vmatmul.mubr.bf16.gmra.mxu1 %v8634_v28  ;;  %v8640_v28 = vld [vmem:[%s8778_s28 + $0x228] sm:$0xff]  }
 0x12e   : > { %v6800_v47 = vpack.c.bf16 %v3401_v38, %v3400_v35  ;;  %v3399_v48 = vmax.f32 %v1967_v39, 0.0  ;;  %v7280_v49 = vpack.c.bf16 %v3593_v40, %v3592_v30  ;;  %8207 = vmatprep.mubr.bf16.mxu0 %v8635_v33  ;;  %8399 = vmatprep.mubr.bf16.mxu1 %v8637_v34  ;;  %v1988_v50 = vadd.f32 %v8109_v43, %v8897_v46  ;;  %v8643_v34 = vld [vmem:[%s8778_s28 + $0x230] sm:$0xff]  }
 0x12f   : > { %v3591_v51 = vmax.f32 %v2735_v41, 0.0  ;;  %v1979_v52 = vpop.f32.mrf.mxu0  ;;  %v2756_v53 = vadd.f32 %v8301_v44, %v8897_v46  ;;  %v2747_v54 = vpop.f32.mrf.mxu1  ;;  %v8645_v35 = vld [vmem:[%s8778_s28 + $0x530] sm:$0xff]  }
 0x130   : > { %7686 = vst [vmem:[%s8916_s17 + $0x78] sm:$0xff] %v6800_v47   ;;  %v6795_v55 = vpack.c.bf16 %v3399_v48, %v3398_v45  ;;  %7782 = vst [vmem:[%s8916_s17 + $0x378] sm:$0xff] %v7280_v49   ;;  %v2748_v58 = vadd.f32 %v8897_v46, %v2747_v54  ;;  %v1980_v62 = vadd.f32 %v8897_v46, %v1979_v52  ;;  %v3404_v4 = vmax.f32 %v1988_v50, 0.0 }
 0x131   : > { %v7275_v56 = vpack.c.bf16 %v3591_v51, %v3590_v42  ;;  %v8110_v57 = vpop.f32.mrf.mxu0  ;;  %v8302_v59 = vpop.f32.mrf.mxu1  ;;  %v3596_v63 = vmax.f32 %v2756_v53, 0.0 }
 0x132   : > { %7685 = vst [vmem:[%s8916_s17 + $0x70] sm:$0xff] %v6795_v55   ;;  %v1991_v0 = vadd.f32 %v8110_v57, %v8897_v46  ;;  %v2759_v1 = vadd.f32 %v8302_v59, %v8897_v46  ;;  %v3594_v11 = vmax.f32 %v2748_v58, 0.0  ;;  %v3402_v14 = vmax.f32 %v1980_v62, 0.0  ;;  %v8646_v62 = vld [vmem:[%s8778_s28 + $0x538] sm:$0xff]  }
 0x133   : > { %7781 = vst [vmem:[%s8916_s17 + $0x370] sm:$0xff] %v7275_v56   ;;  %v1982_v5 = vpop.f32.mrf.mxu0  ;;  %v2750_v6 = vpop.f32.mrf.mxu1 }
 0x134   : > { %v3405_v7 = vmax.f32 %v1991_v0, 0.0  ;;  %v1983_v8 = vadd.f32 %v8897_v46, %v1982_v5  ;;  %v3597_v9 = vmax.f32 %v2759_v1, 0.0  ;;  %v2751_v10 = vadd.f32 %v8897_v46, %v2750_v6 }
 0x135   : > { %v8113_v12 = vpop.f32.mrf.mxu0  ;;  %8208 = vmatmul.mubr.bf16.gmra.mxu0 %v8636_v60  ;;  %v8305_v13 = vpop.f32.mrf.mxu1  ;;  %8400 = vmatmul.mubr.bf16.gmra.mxu1 %v8638_v61  ;;  %v8644_v61 = vld [vmem:[%s8778_s28 + $0x238] sm:$0xff]  }
 0x136   : > { %v6810_v15 = vpack.c.bf16 %v3405_v7, %v3404_v4  ;;  %v3403_v16 = vmax.f32 %v1983_v8, 0.0  ;;  %v7290_v17 = vpack.c.bf16 %v3597_v9, %v3596_v63  ;;  %8211 = vmatprep.mubr.bf16.mxu0 %v8639_v2  ;;  %8403 = vmatprep.mubr.bf16.mxu1 %v8641_v3  ;;  %v2004_v18 = vadd.f32 %v8113_v12, %v8897_v46  ;;  %v8647_v3 = vld [vmem:[%s8778_s28 + $0x240] sm:$0xff]  }
 0x137   : > { %v3595_v19 = vmax.f32 %v2751_v10, 0.0  ;;  %v1995_v20 = vpop.f32.mrf.mxu0  ;;  %v2772_v21 = vadd.f32 %v8305_v13, %v8897_v46  ;;  %v2763_v22 = vpop.f32.mrf.mxu1  ;;  %v8649_v4 = vld [vmem:[%s8778_s28 + $0x540] sm:$0xff]  }
 0x138   : > { %7688 = vst [vmem:[%s8916_s17 + $0x88] sm:$0xff] %v6810_v15   ;;  %v6805_v23 = vpack.c.bf16 %v3403_v16, %v3402_v14  ;;  %7784 = vst [vmem:[%s8916_s17 + $0x388] sm:$0xff] %v7290_v17   ;;  %v2764_v26 = vadd.f32 %v8897_v46, %v2763_v22  ;;  %v1996_v30 = vadd.f32 %v8897_v46, %v1995_v20  ;;  %v3408_v36 = vmax.f32 %v2004_v18, 0.0 }
 0x139   : > { %v7285_v24 = vpack.c.bf16 %v3595_v19, %v3594_v11  ;;  %v8114_v25 = vpop.f32.mrf.mxu0  ;;  %v8306_v27 = vpop.f32.mrf.mxu1  ;;  %v3600_v31 = vmax.f32 %v2772_v21, 0.0 }
 0x13a   : > { %7687 = vst [vmem:[%s8916_s17 + $0x80] sm:$0xff] %v6805_v23   ;;  %v2007_v32 = vadd.f32 %v8114_v25, %v8897_v46  ;;  %v2775_v33 = vadd.f32 %v8306_v27, %v8897_v46  ;;  %v3598_v43 = vmax.f32 %v2764_v26, 0.0  ;;  %v3406_v47 = vmax.f32 %v1996_v30, 0.0  ;;  %v8650_v30 = vld [vmem:[%s8778_s28 + $0x548] sm:$0xff]  }
 0x13b   : > { %7783 = vst [vmem:[%s8916_s17 + $0x380] sm:$0xff] %v7285_v24   ;;  %v1998_v37 = vpop.f32.mrf.mxu0  ;;  %v2766_v38 = vpop.f32.mrf.mxu1 }
 0x13c   : > { %v3409_v39 = vmax.f32 %v2007_v32, 0.0  ;;  %v1999_v40 = vadd.f32 %v8897_v46, %v1998_v37  ;;  %v3601_v41 = vmax.f32 %v2775_v33, 0.0  ;;  %v2767_v42 = vadd.f32 %v8897_v46, %v2766_v38 }
 0x13d   : > { %v8117_v44 = vpop.f32.mrf.mxu0  ;;  %8212 = vmatmul.mubr.bf16.gmra.mxu0 %v8640_v28  ;;  %v8309_v45 = vpop.f32.mrf.mxu1  ;;  %8404 = vmatmul.mubr.bf16.gmra.mxu1 %v8642_v29  ;;  %v8648_v29 = vld [vmem:[%s8778_s28 + $0x248] sm:$0xff]  }
 0x13e   : > { %v6820_v48 = vpack.c.bf16 %v3409_v39, %v3408_v36  ;;  %v3407_v49 = vmax.f32 %v1999_v40, 0.0  ;;  %v7300_v50 = vpack.c.bf16 %v3601_v41, %v3600_v31  ;;  %8215 = vmatprep.mubr.bf16.mxu0 %v8643_v34  ;;  %8407 = vmatprep.mubr.bf16.mxu1 %v8645_v35  ;;  %v2020_v51 = vadd.f32 %v8117_v44, %v8897_v46  ;;  %v8651_v35 = vld [vmem:[%s8778_s28 + $0x250] sm:$0xff]  }
 0x13f   : > { %v3599_v52 = vmax.f32 %v2767_v42, 0.0  ;;  %v2011_v53 = vpop.f32.mrf.mxu0  ;;  %v2788_v54 = vadd.f32 %v8309_v45, %v8897_v46  ;;  %v2779_v55 = vpop.f32.mrf.mxu1  ;;  %v8653_v36 = vld [vmem:[%s8778_s28 + $0x550] sm:$0xff]  }
 0x140   : > { %7690 = vst [vmem:[%s8916_s17 + $0x98] sm:$0xff] %v6820_v48   ;;  %v6815_v56 = vpack.c.bf16 %v3407_v49, %v3406_v47  ;;  %7786 = vst [vmem:[%s8916_s17 + $0x398] sm:$0xff] %v7300_v50   ;;  %v2780_v59 = vadd.f32 %v8897_v46, %v2779_v55  ;;  %v2012_v63 = vadd.f32 %v8897_v46, %v2011_v53  ;;  %v3412_v5 = vmax.f32 %v2020_v51, 0.0 }
 0x141   : > { %v7295_v57 = vpack.c.bf16 %v3599_v52, %v3598_v43  ;;  %v8118_v58 = vpop.f32.mrf.mxu0  ;;  %v8310_v60 = vpop.f32.mrf.mxu1  ;;  %v3604_v0 = vmax.f32 %v2788_v54, 0.0 }
 0x142   : > { %7689 = vst [vmem:[%s8916_s17 + $0x90] sm:$0xff] %v6815_v56   ;;  %v2023_v1 = vadd.f32 %v8118_v58, %v8897_v46  ;;  %v2791_v2 = vadd.f32 %v8310_v60, %v8897_v46  ;;  %v3602_v12 = vmax.f32 %v2780_v59, 0.0  ;;  %v3410_v15 = vmax.f32 %v2012_v63, 0.0  ;;  %v8654_v63 = vld [vmem:[%s8778_s28 + $0x558] sm:$0xff]  }
 0x143   : > { %7785 = vst [vmem:[%s8916_s17 + $0x390] sm:$0xff] %v7295_v57   ;;  %v2014_v6 = vpop.f32.mrf.mxu0  ;;  %v2782_v7 = vpop.f32.mrf.mxu1 }
 0x144   : > { %v3413_v8 = vmax.f32 %v2023_v1, 0.0  ;;  %v2015_v9 = vadd.f32 %v8897_v46, %v2014_v6  ;;  %v3605_v10 = vmax.f32 %v2791_v2, 0.0  ;;  %v2783_v11 = vadd.f32 %v8897_v46, %v2782_v7 }
 0x145   : > { %v8121_v13 = vpop.f32.mrf.mxu0  ;;  %8216 = vmatmul.mubr.bf16.gmra.mxu0 %v8644_v61  ;;  %v8313_v14 = vpop.f32.mrf.mxu1  ;;  %8408 = vmatmul.mubr.bf16.gmra.mxu1 %v8646_v62  ;;  %v8652_v62 = vld [vmem:[%s8778_s28 + $0x258] sm:$0xff]  }
 0x146   : > { %v6830_v16 = vpack.c.bf16 %v3413_v8, %v3412_v5  ;;  %v3411_v17 = vmax.f32 %v2015_v9, 0.0  ;;  %v7310_v18 = vpack.c.bf16 %v3605_v10, %v3604_v0  ;;  %8219 = vmatprep.mubr.bf16.mxu0 %v8647_v3  ;;  %8411 = vmatprep.mubr.bf16.mxu1 %v8649_v4  ;;  %v2036_v19 = vadd.f32 %v8121_v13, %v8897_v46  ;;  %v8655_v4 = vld [vmem:[%s8778_s28 + $0x260] sm:$0xff]  }
 0x147   : > { %v3603_v20 = vmax.f32 %v2783_v11, 0.0  ;;  %v2027_v21 = vpop.f32.mrf.mxu0  ;;  %v2804_v22 = vadd.f32 %v8313_v14, %v8897_v46  ;;  %v2795_v23 = vpop.f32.mrf.mxu1  ;;  %v8657_v5 = vld [vmem:[%s8778_s28 + $0x560] sm:$0xff]  }
 0x148   : > { %7692 = vst [vmem:[%s8916_s17 + $0xa8] sm:$0xff] %v6830_v16   ;;  %v6825_v24 = vpack.c.bf16 %v3411_v17, %v3410_v15  ;;  %7788 = vst [vmem:[%s8916_s17 + $0x3a8] sm:$0xff] %v7310_v18   ;;  %v2796_v27 = vadd.f32 %v8897_v46, %v2795_v23  ;;  %v2028_v31 = vadd.f32 %v8897_v46, %v2027_v21  ;;  %v3416_v37 = vmax.f32 %v2036_v19, 0.0 }
 0x149   : > { %v7305_v25 = vpack.c.bf16 %v3603_v20, %v3602_v12  ;;  %v8122_v26 = vpop.f32.mrf.mxu0  ;;  %v8314_v28 = vpop.f32.mrf.mxu1  ;;  %v3608_v32 = vmax.f32 %v2804_v22, 0.0 }
 0x14a   : > { %7691 = vst [vmem:[%s8916_s17 + $0xa0] sm:$0xff] %v6825_v24   ;;  %v2039_v33 = vadd.f32 %v8122_v26, %v8897_v46  ;;  %v2807_v34 = vadd.f32 %v8314_v28, %v8897_v46  ;;  %v3606_v44 = vmax.f32 %v2796_v27, 0.0  ;;  %v3414_v48 = vmax.f32 %v2028_v31, 0.0  ;;  %v8658_v31 = vld [vmem:[%s8778_s28 + $0x568] sm:$0xff]  }
 0x14b   : > { %7787 = vst [vmem:[%s8916_s17 + $0x3a0] sm:$0xff] %v7305_v25   ;;  %v2030_v38 = vpop.f32.mrf.mxu0  ;;  %v2798_v39 = vpop.f32.mrf.mxu1 }
 0x14c   : > { %v3417_v40 = vmax.f32 %v2039_v33, 0.0  ;;  %v2031_v41 = vadd.f32 %v8897_v46, %v2030_v38  ;;  %v3609_v42 = vmax.f32 %v2807_v34, 0.0  ;;  %v2799_v43 = vadd.f32 %v8897_v46, %v2798_v39 }
 0x14d   : > { %v8125_v45 = vpop.f32.mrf.mxu0  ;;  %8220 = vmatmul.mubr.bf16.gmra.mxu0 %v8648_v29  ;;  %v8317_v47 = vpop.f32.mrf.mxu1  ;;  %8412 = vmatmul.mubr.bf16.gmra.mxu1 %v8650_v30  ;;  %v8656_v30 = vld [vmem:[%s8778_s28 + $0x268] sm:$0xff]  }
 0x14e   : > { %v6840_v49 = vpack.c.bf16 %v3417_v40, %v3416_v37  ;;  %v3415_v50 = vmax.f32 %v2031_v41, 0.0  ;;  %v7320_v51 = vpack.c.bf16 %v3609_v42, %v3608_v32  ;;  %8223 = vmatprep.mubr.bf16.mxu0 %v8651_v35  ;;  %8415 = vmatprep.mubr.bf16.mxu1 %v8653_v36  ;;  %v2052_v52 = vadd.f32 %v8125_v45, %v8897_v46  ;;  %v8659_v36 = vld [vmem:[%s8778_s28 + $0x270] sm:$0xff]  }
 0x14f   : > { %v3607_v53 = vmax.f32 %v2799_v43, 0.0  ;;  %v2043_v54 = vpop.f32.mrf.mxu0  ;;  %v2820_v55 = vadd.f32 %v8317_v47, %v8897_v46  ;;  %v2811_v56 = vpop.f32.mrf.mxu1  ;;  %v8661_v37 = vld [vmem:[%s8778_s28 + $0x570] sm:$0xff]  }
 0x150   : > { %7694 = vst [vmem:[%s8916_s17 + $0xb8] sm:$0xff] %v6840_v49   ;;  %v6835_v57 = vpack.c.bf16 %v3415_v50, %v3414_v48  ;;  %7790 = vst [vmem:[%s8916_s17 + $0x3b8] sm:$0xff] %v7320_v51   ;;  %v2812_v60 = vadd.f32 %v8897_v46, %v2811_v56  ;;  %v2044_v0 = vadd.f32 %v8897_v46, %v2043_v54  ;;  %v3420_v6 = vmax.f32 %v2052_v52, 0.0 }
 0x151   : > { %v7315_v58 = vpack.c.bf16 %v3607_v53, %v3606_v44  ;;  %v8126_v59 = vpop.f32.mrf.mxu0  ;;  %v8318_v61 = vpop.f32.mrf.mxu1  ;;  %v3612_v1 = vmax.f32 %v2820_v55, 0.0 }
 0x152   : > { %7693 = vst [vmem:[%s8916_s17 + $0xb0] sm:$0xff] %v6835_v57   ;;  %v2055_v2 = vadd.f32 %v8126_v59, %v8897_v46  ;;  %v2823_v3 = vadd.f32 %v8318_v61, %v8897_v46  ;;  %v3610_v13 = vmax.f32 %v2812_v60, 0.0  ;;  %v3418_v16 = vmax.f32 %v2044_v0, 0.0  ;;  %v8662_v0 = vld [vmem:[%s8778_s28 + $0x578] sm:$0xff]  }
 0x153   : > { %7789 = vst [vmem:[%s8916_s17 + $0x3b0] sm:$0xff] %v7315_v58   ;;  %v2046_v7 = vpop.f32.mrf.mxu0  ;;  %v2814_v8 = vpop.f32.mrf.mxu1 }
 0x154   : > { %v3421_v9 = vmax.f32 %v2055_v2, 0.0  ;;  %v2047_v10 = vadd.f32 %v8897_v46, %v2046_v7  ;;  %v3613_v11 = vmax.f32 %v2823_v3, 0.0  ;;  %v2815_v12 = vadd.f32 %v8897_v46, %v2814_v8  ;;  %v9113_v46 = vld [vmem:[%s9590_s2] ss:$0 sm:$0xff] }
 0x155   : > { %v8129_v14 = vpop.f32.mrf.mxu0  ;;  %8224 = vmatmul.mubr.bf16.gmra.mxu0 %v8652_v62  ;;  %v8321_v15 = vpop.f32.mrf.mxu1  ;;  %8416 = vmatmul.mubr.bf16.gmra.mxu1 %v8654_v63  ;;  %v8660_v63 = vld [vmem:[%s8778_s28 + $0x278] sm:$0xff]  }
 0x156   : > { %v6850_v17 = vpack.c.bf16 %v3421_v9, %v3420_v6  ;;  %v3419_v18 = vmax.f32 %v2047_v10, 0.0  ;;  %v7330_v19 = vpack.c.bf16 %v3613_v11, %v3612_v1  ;;  %8227 = vmatprep.mubr.bf16.mxu0 %v8655_v4  ;;  %8419 = vmatprep.mubr.bf16.mxu1 %v8657_v5  ;;  %v2068_v20 = vadd.f32 %v9113_v46, %v8129_v14  ;;  %v8663_v5 = vld [vmem:[%s8778_s28 + $0x280] sm:$0xff]  }
 0x157   : > { %v3611_v21 = vmax.f32 %v2815_v12, 0.0  ;;  %v2059_v22 = vpop.f32.mrf.mxu0  ;;  %v2836_v23 = vadd.f32 %v9113_v46, %v8321_v15  ;;  %v2827_v24 = vpop.f32.mrf.mxu1  ;;  %v8665_v6 = vld [vmem:[%s8778_s28 + $0x580] sm:$0xff]  }
 0x158   : > { %7696 = vst [vmem:[%s8916_s17 + $0xc8] sm:$0xff] %v6850_v17   ;;  %v6845_v25 = vpack.c.bf16 %v3419_v18, %v3418_v16  ;;  %7792 = vst [vmem:[%s8916_s17 + $0x3c8] sm:$0xff] %v7330_v19   ;;  %v2828_v28 = vadd.f32 %v9113_v46, %v2827_v24  ;;  %v2060_v32 = vadd.f32 %v9113_v46, %v2059_v22  ;;  %v3424_v38 = vmax.f32 %v2068_v20, 0.0 }
 0x159   : > { %v7325_v26 = vpack.c.bf16 %v3611_v21, %v3610_v13  ;;  %v8130_v27 = vpop.f32.mrf.mxu0  ;;  %v8322_v29 = vpop.f32.mrf.mxu1  ;;  %v3616_v33 = vmax.f32 %v2836_v23, 0.0 }
 0x15a   : > { %7695 = vst [vmem:[%s8916_s17 + $0xc0] sm:$0xff] %v6845_v25   ;;  %v2071_v34 = vadd.f32 %v9113_v46, %v8130_v27  ;;  %v2839_v35 = vadd.f32 %v9113_v46, %v8322_v29  ;;  %v3614_v45 = vmax.f32 %v2828_v28, 0.0  ;;  %v3422_v49 = vmax.f32 %v2060_v32, 0.0  ;;  %v8666_v32 = vld [vmem:[%s8778_s28 + $0x588] sm:$0xff]  }
 0x15b   : > { %7791 = vst [vmem:[%s8916_s17 + $0x3c0] sm:$0xff] %v7325_v26   ;;  %v2062_v39 = vpop.f32.mrf.mxu0  ;;  %v2830_v40 = vpop.f32.mrf.mxu1 }
 0x15c   : > { %v3425_v41 = vmax.f32 %v2071_v34, 0.0  ;;  %v2063_v42 = vadd.f32 %v9113_v46, %v2062_v39  ;;  %v3617_v43 = vmax.f32 %v2839_v35, 0.0  ;;  %v2831_v44 = vadd.f32 %v9113_v46, %v2830_v40 }
 0x15d   : > { %v8133_v47 = vpop.f32.mrf.mxu0  ;;  %8228 = vmatmul.mubr.bf16.gmra.mxu0 %v8656_v30  ;;  %v8325_v48 = vpop.f32.mrf.mxu1  ;;  %8420 = vmatmul.mubr.bf16.gmra.mxu1 %v8658_v31  ;;  %v8664_v31 = vld [vmem:[%s8778_s28 + $0x288] sm:$0xff]  }
 0x15e   : > { %v6860_v50 = vpack.c.bf16 %v3425_v41, %v3424_v38  ;;  %v3423_v51 = vmax.f32 %v2063_v42, 0.0  ;;  %v7340_v52 = vpack.c.bf16 %v3617_v43, %v3616_v33  ;;  %8231 = vmatprep.mubr.bf16.mxu0 %v8659_v36  ;;  %8423 = vmatprep.mubr.bf16.mxu1 %v8661_v37  ;;  %v2084_v53 = vadd.f32 %v9113_v46, %v8133_v47  ;;  %v8667_v37 = vld [vmem:[%s8778_s28 + $0x290] sm:$0xff]  }
 0x15f   : > { %v3615_v54 = vmax.f32 %v2831_v44, 0.0  ;;  %v2075_v55 = vpop.f32.mrf.mxu0  ;;  %v2852_v56 = vadd.f32 %v9113_v46, %v8325_v48  ;;  %v2843_v57 = vpop.f32.mrf.mxu1  ;;  %v8669_v38 = vld [vmem:[%s8778_s28 + $0x590] sm:$0xff]  }
 0x160   : > { %7698 = vst [vmem:[%s8916_s17 + $0xd8] sm:$0xff] %v6860_v50   ;;  %v6855_v58 = vpack.c.bf16 %v3423_v51, %v3422_v49  ;;  %7794 = vst [vmem:[%s8916_s17 + $0x3d8] sm:$0xff] %v7340_v52   ;;  %v2844_v61 = vadd.f32 %v9113_v46, %v2843_v57  ;;  %v2076_v1 = vadd.f32 %v9113_v46, %v2075_v55  ;;  %v3428_v7 = vmax.f32 %v2084_v53, 0.0 }
 0x161   : > { %v7335_v59 = vpack.c.bf16 %v3615_v54, %v3614_v45  ;;  %v8134_v60 = vpop.f32.mrf.mxu0  ;;  %v8326_v62 = vpop.f32.mrf.mxu1  ;;  %v3620_v2 = vmax.f32 %v2852_v56, 0.0 }
 0x162   : > { %7697 = vst [vmem:[%s8916_s17 + $0xd0] sm:$0xff] %v6855_v58   ;;  %v2087_v3 = vadd.f32 %v9113_v46, %v8134_v60  ;;  %v2855_v4 = vadd.f32 %v9113_v46, %v8326_v62  ;;  %v3618_v14 = vmax.f32 %v2844_v61, 0.0  ;;  %v3426_v17 = vmax.f32 %v2076_v1, 0.0  ;;  %v8670_v1 = vld [vmem:[%s8778_s28 + $0x598] sm:$0xff]  }
 0x163   : > { %7793 = vst [vmem:[%s8916_s17 + $0x3d0] sm:$0xff] %v7335_v59   ;;  %v2078_v8 = vpop.f32.mrf.mxu0  ;;  %v2846_v9 = vpop.f32.mrf.mxu1 }
 0x164   : > { %v3429_v10 = vmax.f32 %v2087_v3, 0.0  ;;  %v2079_v11 = vadd.f32 %v9113_v46, %v2078_v8  ;;  %v3621_v12 = vmax.f32 %v2855_v4, 0.0  ;;  %v2847_v13 = vadd.f32 %v9113_v46, %v2846_v9 }
 0x165   : > { %v8137_v15 = vpop.f32.mrf.mxu0  ;;  %8232 = vmatmul.mubr.bf16.gmra.mxu0 %v8660_v63  ;;  %v8329_v16 = vpop.f32.mrf.mxu1  ;;  %8424 = vmatmul.mubr.bf16.gmra.mxu1 %v8662_v0  ;;  %v8668_v0 = vld [vmem:[%s8778_s28 + $0x298] sm:$0xff]  }
 0x166   : > { %v6870_v18 = vpack.c.bf16 %v3429_v10, %v3428_v7  ;;  %v3427_v19 = vmax.f32 %v2079_v11, 0.0  ;;  %v7350_v20 = vpack.c.bf16 %v3621_v12, %v3620_v2  ;;  %8235 = vmatprep.mubr.bf16.mxu0 %v8663_v5  ;;  %8427 = vmatprep.mubr.bf16.mxu1 %v8665_v6  ;;  %v2100_v21 = vadd.f32 %v9113_v46, %v8137_v15  ;;  %v8671_v6 = vld [vmem:[%s8778_s28 + $0x2a0] sm:$0xff]  }
 0x167   : > { %v3619_v22 = vmax.f32 %v2847_v13, 0.0  ;;  %v2091_v23 = vpop.f32.mrf.mxu0  ;;  %v2868_v24 = vadd.f32 %v9113_v46, %v8329_v16  ;;  %v2859_v25 = vpop.f32.mrf.mxu1  ;;  %v8673_v7 = vld [vmem:[%s8778_s28 + $0x5a0] sm:$0xff]  }
 0x168   : > { %7700 = vst [vmem:[%s8916_s17 + $0xe8] sm:$0xff] %v6870_v18   ;;  %v6865_v26 = vpack.c.bf16 %v3427_v19, %v3426_v17  ;;  %7796 = vst [vmem:[%s8916_s17 + $0x3e8] sm:$0xff] %v7350_v20   ;;  %v2860_v29 = vadd.f32 %v9113_v46, %v2859_v25  ;;  %v2092_v33 = vadd.f32 %v9113_v46, %v2091_v23  ;;  %v3432_v39 = vmax.f32 %v2100_v21, 0.0 }
 0x169   : > { %v7345_v27 = vpack.c.bf16 %v3619_v22, %v3618_v14  ;;  %v8138_v28 = vpop.f32.mrf.mxu0  ;;  %v8330_v30 = vpop.f32.mrf.mxu1  ;;  %v3624_v34 = vmax.f32 %v2868_v24, 0.0 }
 0x16a   : > { %7699 = vst [vmem:[%s8916_s17 + $0xe0] sm:$0xff] %v6865_v26   ;;  %v2103_v35 = vadd.f32 %v9113_v46, %v8138_v28  ;;  %v2871_v36 = vadd.f32 %v9113_v46, %v8330_v30  ;;  %v3622_v47 = vmax.f32 %v2860_v29, 0.0  ;;  %v3430_v50 = vmax.f32 %v2092_v33, 0.0  ;;  %v8674_v33 = vld [vmem:[%s8778_s28 + $0x5a8] sm:$0xff]  }
 0x16b   : > { %7795 = vst [vmem:[%s8916_s17 + $0x3e0] sm:$0xff] %v7345_v27   ;;  %v2094_v40 = vpop.f32.mrf.mxu0  ;;  %v2862_v41 = vpop.f32.mrf.mxu1 }
 0x16c   : > { %v3433_v42 = vmax.f32 %v2103_v35, 0.0  ;;  %v2095_v43 = vadd.f32 %v9113_v46, %v2094_v40  ;;  %v3625_v44 = vmax.f32 %v2871_v36, 0.0  ;;  %v2863_v45 = vadd.f32 %v9113_v46, %v2862_v41 }
 0x16d   : > { %v8141_v48 = vpop.f32.mrf.mxu0  ;;  %8236 = vmatmul.mubr.bf16.gmra.mxu0 %v8664_v31  ;;  %v8333_v49 = vpop.f32.mrf.mxu1  ;;  %8428 = vmatmul.mubr.bf16.gmra.mxu1 %v8666_v32  ;;  %v8672_v32 = vld [vmem:[%s8778_s28 + $0x2a8] sm:$0xff]  }
 0x16e   : > { %v6880_v51 = vpack.c.bf16 %v3433_v42, %v3432_v39  ;;  %v3431_v52 = vmax.f32 %v2095_v43, 0.0  ;;  %v7360_v53 = vpack.c.bf16 %v3625_v44, %v3624_v34  ;;  %8239 = vmatprep.mubr.bf16.mxu0 %v8667_v37  ;;  %8431 = vmatprep.mubr.bf16.mxu1 %v8669_v38  ;;  %v2116_v54 = vadd.f32 %v9113_v46, %v8141_v48  ;;  %v8675_v38 = vld [vmem:[%s8778_s28 + $0x2b0] sm:$0xff]  }
 0x16f   : > { %v3623_v55 = vmax.f32 %v2863_v45, 0.0  ;;  %v2107_v56 = vpop.f32.mrf.mxu0  ;;  %v2884_v57 = vadd.f32 %v9113_v46, %v8333_v49  ;;  %v2875_v58 = vpop.f32.mrf.mxu1  ;;  %v8677_v39 = vld [vmem:[%s8778_s28 + $0x5b0] sm:$0xff]  }
 0x170   : > { %7702 = vst [vmem:[%s8916_s17 + $0xf8] sm:$0xff] %v6880_v51   ;;  %v6875_v59 = vpack.c.bf16 %v3431_v52, %v3430_v50  ;;  %7798 = vst [vmem:[%s8916_s17 + $0x3f8] sm:$0xff] %v7360_v53   ;;  %v2876_v62 = vadd.f32 %v9113_v46, %v2875_v58  ;;  %v2108_v2 = vadd.f32 %v9113_v46, %v2107_v56  ;;  %v3436_v8 = vmax.f32 %v2116_v54, 0.0 }
 0x171   : > { %v7355_v60 = vpack.c.bf16 %v3623_v55, %v3622_v47  ;;  %v8142_v61 = vpop.f32.mrf.mxu0  ;;  %v8334_v63 = vpop.f32.mrf.mxu1  ;;  %v3628_v3 = vmax.f32 %v2884_v57, 0.0 }
 0x172   : > { %7701 = vst [vmem:[%s8916_s17 + $0xf0] sm:$0xff] %v6875_v59   ;;  %v2119_v4 = vadd.f32 %v9113_v46, %v8142_v61  ;;  %v2887_v5 = vadd.f32 %v9113_v46, %v8334_v63  ;;  %v3626_v15 = vmax.f32 %v2876_v62, 0.0  ;;  %v3434_v18 = vmax.f32 %v2108_v2, 0.0  ;;  %v8678_v2 = vld [vmem:[%s8778_s28 + $0x5b8] sm:$0xff]  }
 0x173   : > { %7797 = vst [vmem:[%s8916_s17 + $0x3f0] sm:$0xff] %v7355_v60   ;;  %v2110_v9 = vpop.f32.mrf.mxu0  ;;  %v2878_v10 = vpop.f32.mrf.mxu1 }
 0x174   : > { %v3437_v11 = vmax.f32 %v2119_v4, 0.0  ;;  %v2111_v12 = vadd.f32 %v9113_v46, %v2110_v9  ;;  %v3629_v13 = vmax.f32 %v2887_v5, 0.0  ;;  %v2879_v14 = vadd.f32 %v9113_v46, %v2878_v10 }
 0x175   : > { %v8145_v16 = vpop.f32.mrf.mxu0  ;;  %8240 = vmatmul.mubr.bf16.gmra.mxu0 %v8668_v0  ;;  %v8337_v17 = vpop.f32.mrf.mxu1  ;;  %8432 = vmatmul.mubr.bf16.gmra.mxu1 %v8670_v1  ;;  %v8676_v1 = vld [vmem:[%s8778_s28 + $0x2b8] sm:$0xff]  }
 0x176   : > { %v6890_v19 = vpack.c.bf16 %v3437_v11, %v3436_v8  ;;  %v3435_v20 = vmax.f32 %v2111_v12, 0.0  ;;  %v7370_v21 = vpack.c.bf16 %v3629_v13, %v3628_v3  ;;  %8243 = vmatprep.mubr.bf16.mxu0 %v8671_v6  ;;  %8435 = vmatprep.mubr.bf16.mxu1 %v8673_v7  ;;  %v2132_v22 = vadd.f32 %v9113_v46, %v8145_v16  ;;  %v8679_v7 = vld [vmem:[%s8778_s28 + $0x2c0] sm:$0xff]  }
 0x177   : > { %v3627_v23 = vmax.f32 %v2879_v14, 0.0  ;;  %v2123_v24 = vpop.f32.mrf.mxu0  ;;  %v2900_v25 = vadd.f32 %v9113_v46, %v8337_v17  ;;  %v2891_v26 = vpop.f32.mrf.mxu1  ;;  %v8681_v8 = vld [vmem:[%s8778_s28 + $0x5c0] sm:$0xff]  }
 0x178   : > { %7704 = vst [vmem:[%s8916_s17 + $0x108] sm:$0xff] %v6890_v19   ;;  %v6885_v27 = vpack.c.bf16 %v3435_v20, %v3434_v18  ;;  %7800 = vst [vmem:[%s8916_s17 + $0x408] sm:$0xff] %v7370_v21   ;;  %v2892_v30 = vadd.f32 %v9113_v46, %v2891_v26  ;;  %v2124_v34 = vadd.f32 %v9113_v46, %v2123_v24  ;;  %v3440_v40 = vmax.f32 %v2132_v22, 0.0 }
 0x179   : > { %v7365_v28 = vpack.c.bf16 %v3627_v23, %v3626_v15  ;;  %v8146_v29 = vpop.f32.mrf.mxu0  ;;  %v8338_v31 = vpop.f32.mrf.mxu1  ;;  %v3632_v35 = vmax.f32 %v2900_v25, 0.0 }
 0x17a   : > { %7703 = vst [vmem:[%s8916_s17 + $0x100] sm:$0xff] %v6885_v27   ;;  %v2135_v36 = vadd.f32 %v9113_v46, %v8146_v29  ;;  %v2903_v37 = vadd.f32 %v9113_v46, %v8338_v31  ;;  %v3630_v48 = vmax.f32 %v2892_v30, 0.0  ;;  %v3438_v51 = vmax.f32 %v2124_v34, 0.0  ;;  %v8682_v34 = vld [vmem:[%s8778_s28 + $0x5c8] sm:$0xff]  }
 0x17b   : > { %7799 = vst [vmem:[%s8916_s17 + $0x400] sm:$0xff] %v7365_v28   ;;  %v2126_v41 = vpop.f32.mrf.mxu0  ;;  %v2894_v42 = vpop.f32.mrf.mxu1 }
 0x17c   : > { %v3441_v43 = vmax.f32 %v2135_v36, 0.0  ;;  %v2127_v44 = vadd.f32 %v9113_v46, %v2126_v41  ;;  %v3633_v45 = vmax.f32 %v2903_v37, 0.0  ;;  %v2895_v47 = vadd.f32 %v9113_v46, %v2894_v42 }
 0x17d   : > { %v8149_v49 = vpop.f32.mrf.mxu0  ;;  %8244 = vmatmul.mubr.bf16.gmra.mxu0 %v8672_v32  ;;  %v8341_v50 = vpop.f32.mrf.mxu1  ;;  %8436 = vmatmul.mubr.bf16.gmra.mxu1 %v8674_v33  ;;  %v8680_v33 = vld [vmem:[%s8778_s28 + $0x2c8] sm:$0xff]  }
 0x17e   : > { %v6900_v52 = vpack.c.bf16 %v3441_v43, %v3440_v40  ;;  %v3439_v53 = vmax.f32 %v2127_v44, 0.0  ;;  %v7380_v54 = vpack.c.bf16 %v3633_v45, %v3632_v35  ;;  %8247 = vmatprep.mubr.bf16.mxu0 %v8675_v38  ;;  %8439 = vmatprep.mubr.bf16.mxu1 %v8677_v39  ;;  %v2148_v55 = vadd.f32 %v9113_v46, %v8149_v49  ;;  %v8683_v39 = vld [vmem:[%s8778_s28 + $0x2d0] sm:$0xff]  }
 0x17f   : > { %v3631_v56 = vmax.f32 %v2895_v47, 0.0  ;;  %v2139_v57 = vpop.f32.mrf.mxu0  ;;  %v2916_v58 = vadd.f32 %v9113_v46, %v8341_v50  ;;  %v2907_v59 = vpop.f32.mrf.mxu1  ;;  %v8685_v40 = vld [vmem:[%s8778_s28 + $0x5d0] sm:$0xff]  }
 0x180   : > { %7706 = vst [vmem:[%s8916_s17 + $0x118] sm:$0xff] %v6900_v52   ;;  %v6895_v60 = vpack.c.bf16 %v3439_v53, %v3438_v51  ;;  %7802 = vst [vmem:[%s8916_s17 + $0x418] sm:$0xff] %v7380_v54   ;;  %v2908_v63 = vadd.f32 %v9113_v46, %v2907_v59  ;;  %v2140_v3 = vadd.f32 %v9113_v46, %v2139_v57  ;;  %v3444_v9 = vmax.f32 %v2148_v55, 0.0 }
 0x181   : > { %v7375_v61 = vpack.c.bf16 %v3631_v56, %v3630_v48  ;;  %v8150_v62 = vpop.f32.mrf.mxu0  ;;  %v8342_v0 = vpop.f32.mrf.mxu1  ;;  %v3636_v4 = vmax.f32 %v2916_v58, 0.0 }
 0x182   : > { %7705 = vst [vmem:[%s8916_s17 + $0x110] sm:$0xff] %v6895_v60   ;;  %v2151_v5 = vadd.f32 %v9113_v46, %v8150_v62  ;;  %v2919_v6 = vadd.f32 %v9113_v46, %v8342_v0  ;;  %v3634_v16 = vmax.f32 %v2908_v63, 0.0  ;;  %v3442_v19 = vmax.f32 %v2140_v3, 0.0  ;;  %v8686_v3 = vld [vmem:[%s8778_s28 + $0x5d8] sm:$0xff]  }
 0x183   : > { %7801 = vst [vmem:[%s8916_s17 + $0x410] sm:$0xff] %v7375_v61   ;;  %v2142_v10 = vpop.f32.mrf.mxu0  ;;  %v2910_v11 = vpop.f32.mrf.mxu1 }
 0x184   : > { %v3445_v12 = vmax.f32 %v2151_v5, 0.0  ;;  %v2143_v13 = vadd.f32 %v9113_v46, %v2142_v10  ;;  %v3637_v14 = vmax.f32 %v2919_v6, 0.0  ;;  %v2911_v15 = vadd.f32 %v9113_v46, %v2910_v11 }
 0x185   : > { %v8153_v17 = vpop.f32.mrf.mxu0  ;;  %8248 = vmatmul.mubr.bf16.gmra.mxu0 %v8676_v1  ;;  %v8345_v18 = vpop.f32.mrf.mxu1  ;;  %8440 = vmatmul.mubr.bf16.gmra.mxu1 %v8678_v2  ;;  %v8684_v2 = vld [vmem:[%s8778_s28 + $0x2d8] sm:$0xff]  }
 0x186   : > { %v6910_v20 = vpack.c.bf16 %v3445_v12, %v3444_v9  ;;  %v3443_v21 = vmax.f32 %v2143_v13, 0.0  ;;  %v7390_v22 = vpack.c.bf16 %v3637_v14, %v3636_v4  ;;  %8251 = vmatprep.mubr.bf16.mxu0 %v8679_v7  ;;  %8443 = vmatprep.mubr.bf16.mxu1 %v8681_v8  ;;  %v2164_v23 = vadd.f32 %v9113_v46, %v8153_v17  ;;  %v8687_v8 = vld [vmem:[%s8778_s28 + $0x2e0] sm:$0xff]  }
 0x187   : > { %v3635_v24 = vmax.f32 %v2911_v15, 0.0  ;;  %v2155_v25 = vpop.f32.mrf.mxu0  ;;  %v2932_v26 = vadd.f32 %v9113_v46, %v8345_v18  ;;  %v2923_v27 = vpop.f32.mrf.mxu1  ;;  %v8689_v9 = vld [vmem:[%s8778_s28 + $0x5e0] sm:$0xff]  }
 0x188   : > { %7708 = vst [vmem:[%s8916_s17 + $0x128] sm:$0xff] %v6910_v20   ;;  %v6905_v28 = vpack.c.bf16 %v3443_v21, %v3442_v19  ;;  %7804 = vst [vmem:[%s8916_s17 + $0x428] sm:$0xff] %v7390_v22   ;;  %v2924_v31 = vadd.f32 %v9113_v46, %v2923_v27  ;;  %v2156_v35 = vadd.f32 %v9113_v46, %v2155_v25  ;;  %v3448_v41 = vmax.f32 %v2164_v23, 0.0 }
 0x189   : > { %v7385_v29 = vpack.c.bf16 %v3635_v24, %v3634_v16  ;;  %v8154_v30 = vpop.f32.mrf.mxu0  ;;  %v8346_v32 = vpop.f32.mrf.mxu1  ;;  %v3640_v36 = vmax.f32 %v2932_v26, 0.0 }
 0x18a   : > { %7707 = vst [vmem:[%s8916_s17 + $0x120] sm:$0xff] %v6905_v28   ;;  %v2167_v37 = vadd.f32 %v9113_v46, %v8154_v30  ;;  %v2935_v38 = vadd.f32 %v9113_v46, %v8346_v32  ;;  %v3638_v49 = vmax.f32 %v2924_v31, 0.0  ;;  %v3446_v52 = vmax.f32 %v2156_v35, 0.0  ;;  %v8690_v35 = vld [vmem:[%s8778_s28 + $0x5e8] sm:$0xff]  }
 0x18b   : > { %7803 = vst [vmem:[%s8916_s17 + $0x420] sm:$0xff] %v7385_v29   ;;  %v2158_v42 = vpop.f32.mrf.mxu0  ;;  %v2926_v43 = vpop.f32.mrf.mxu1 }
 0x18c   : > { %v3449_v44 = vmax.f32 %v2167_v37, 0.0  ;;  %v2159_v45 = vadd.f32 %v9113_v46, %v2158_v42  ;;  %v3641_v47 = vmax.f32 %v2935_v38, 0.0  ;;  %v2927_v48 = vadd.f32 %v9113_v46, %v2926_v43 }
 0x18d   : > { %v8157_v50 = vpop.f32.mrf.mxu0  ;;  %8252 = vmatmul.mubr.bf16.gmra.mxu0 %v8680_v33  ;;  %v8349_v51 = vpop.f32.mrf.mxu1  ;;  %8444 = vmatmul.mubr.bf16.gmra.mxu1 %v8682_v34  ;;  %v8688_v34 = vld [vmem:[%s8778_s28 + $0x2e8] sm:$0xff]  }
 0x18e   : > { %v6920_v53 = vpack.c.bf16 %v3449_v44, %v3448_v41  ;;  %v3447_v54 = vmax.f32 %v2159_v45, 0.0  ;;  %v7400_v55 = vpack.c.bf16 %v3641_v47, %v3640_v36  ;;  %8255 = vmatprep.mubr.bf16.mxu0 %v8683_v39  ;;  %8447 = vmatprep.mubr.bf16.mxu1 %v8685_v40  ;;  %v2180_v56 = vadd.f32 %v9113_v46, %v8157_v50  ;;  %v8691_v40 = vld [vmem:[%s8778_s28 + $0x2f0] sm:$0xff]  }
 0x18f   : > { %v3639_v57 = vmax.f32 %v2927_v48, 0.0  ;;  %v2171_v58 = vpop.f32.mrf.mxu0  ;;  %v2948_v59 = vadd.f32 %v9113_v46, %v8349_v51  ;;  %v2939_v60 = vpop.f32.mrf.mxu1 }
 0x190   : > { %7710 = vst [vmem:[%s8916_s17 + $0x138] sm:$0xff] %v6920_v53   ;;  %v6915_v61 = vpack.c.bf16 %v3447_v54, %v3446_v52  ;;  %7806 = vst [vmem:[%s8916_s17 + $0x438] sm:$0xff] %v7400_v55   ;;  %v2940_v0 = vadd.f32 %v9113_v46, %v2939_v60  ;;  %v2172_v4 = vadd.f32 %v9113_v46, %v2171_v58  ;;  %v3452_v10 = vmax.f32 %v2180_v56, 0.0 }
 0x191   : > { %v7395_v62 = vpack.c.bf16 %v3639_v57, %v3638_v49  ;;  %v8158_v63 = vpop.f32.mrf.mxu0  ;;  %v8350_v1 = vpop.f32.mrf.mxu1  ;;  %v3644_v5 = vmax.f32 %v2948_v59, 0.0 }
 0x192   : > { %7709 = vst [vmem:[%s8916_s17 + $0x130] sm:$0xff] %v6915_v61   ;;  %v2183_v6 = vadd.f32 %v9113_v46, %v8158_v63  ;;  %v2951_v7 = vadd.f32 %v9113_v46, %v8350_v1  ;;  %v3642_v17 = vmax.f32 %v2940_v0, 0.0  ;;  %v3450_v20 = vmax.f32 %v2172_v4, 0.0 }
 0x193   : > { %7805 = vst [vmem:[%s8916_s17 + $0x430] sm:$0xff] %v7395_v62   ;;  %v2174_v11 = vpop.f32.mrf.mxu0  ;;  %v2942_v12 = vpop.f32.mrf.mxu1 }
 0x194   : > { %v3453_v13 = vmax.f32 %v2183_v6, 0.0  ;;  %v2175_v14 = vadd.f32 %v9113_v46, %v2174_v11  ;;  %v3645_v15 = vmax.f32 %v2951_v7, 0.0  ;;  %v2943_v16 = vadd.f32 %v9113_v46, %v2942_v12 }
 0x195   : > { %v8161_v18 = vpop.f32.mrf.mxu0  ;;  %8256 = vmatmul.mubr.bf16.gmra.mxu0 %v8684_v2  ;;  %v8353_v19 = vpop.f32.mrf.mxu1  ;;  %8448 = vmatmul.mubr.bf16.gmra.mxu1 %v8686_v3  ;;  %v8692_v2 = vld [vmem:[%s8778_s28 + $0x2f8] sm:$0xff]  }
 0x196   : > { %v6930_v21 = vpack.c.bf16 %v3453_v13, %v3452_v10  ;;  %v3451_v22 = vmax.f32 %v2175_v14, 0.0  ;;  %v7410_v23 = vpack.c.bf16 %v3645_v15, %v3644_v5  ;;  %8259 = vmatprep.mubr.bf16.mxu0 %v8687_v8  ;;  %8451 = vmatprep.mubr.bf16.mxu1 %v8689_v9  ;;  %v2196_v24 = vadd.f32 %v9113_v46, %v8161_v18 }
 0x197   : > { %v3643_v25 = vmax.f32 %v2943_v16, 0.0  ;;  %v2187_v26 = vpop.f32.mrf.mxu0  ;;  %v2964_v27 = vadd.f32 %v9113_v46, %v8353_v19  ;;  %v2955_v28 = vpop.f32.mrf.mxu1 }
 0x198   : > { %7712 = vst [vmem:[%s8916_s17 + $0x148] sm:$0xff] %v6930_v21   ;;  %v6925_v29 = vpack.c.bf16 %v3451_v22, %v3450_v20  ;;  %7808 = vst [vmem:[%s8916_s17 + $0x448] sm:$0xff] %v7410_v23   ;;  %v2956_v32 = vadd.f32 %v9113_v46, %v2955_v28  ;;  %v2188_v36 = vadd.f32 %v9113_v46, %v2187_v26  ;;  %v3456_v41 = vmax.f32 %v2196_v24, 0.0 }
 0x199   : > { %v7405_v30 = vpack.c.bf16 %v3643_v25, %v3642_v17  ;;  %v8162_v31 = vpop.f32.mrf.mxu0  ;;  %v8354_v33 = vpop.f32.mrf.mxu1  ;;  %v3648_v37 = vmax.f32 %v2964_v27, 0.0 }
 0x19a   : > { %7711 = vst [vmem:[%s8916_s17 + $0x140] sm:$0xff] %v6925_v29   ;;  %v2199_v38 = vadd.f32 %v9113_v46, %v8162_v31  ;;  %v2967_v39 = vadd.f32 %v9113_v46, %v8354_v33  ;;  %v3646_v49 = vmax.f32 %v2956_v32, 0.0  ;;  %v3454_v52 = vmax.f32 %v2188_v36, 0.0 }
 0x19b   : > { %7807 = vst [vmem:[%s8916_s17 + $0x440] sm:$0xff] %v7405_v30   ;;  %v2190_v42 = vpop.f32.mrf.mxu0  ;;  %v2958_v43 = vpop.f32.mrf.mxu1 }
 0x19c   : > { %v3457_v44 = vmax.f32 %v2199_v38, 0.0  ;;  %v2191_v45 = vadd.f32 %v9113_v46, %v2190_v42  ;;  %v3649_v47 = vmax.f32 %v2967_v39, 0.0  ;;  %v2959_v48 = vadd.f32 %v9113_v46, %v2958_v43 }
 0x19d   : > { %v8165_v50 = vpop.f32.mrf.mxu0  ;;  %8260 = vmatmul.mubr.bf16.gmra.mxu0 %v8688_v34  ;;  %v8357_v51 = vpop.f32.mrf.mxu1  ;;  %8452 = vmatmul.mubr.bf16.gmra.mxu1 %v8690_v35 }
 0x19e   : > { %v6940_v53 = vpack.c.bf16 %v3457_v44, %v3456_v41  ;;  %v3455_v54 = vmax.f32 %v2191_v45, 0.0  ;;  %v7420_v55 = vpack.c.bf16 %v3649_v47, %v3648_v37  ;;  %8263 = vmatprep.mubr.bf16.mxu0 %v8691_v40  ;;  %v2212_v56 = vadd.f32 %v9113_v46, %v8165_v50 }
 0x19f   : > { %v3647_v57 = vmax.f32 %v2959_v48, 0.0  ;;  %v2203_v58 = vpop.f32.mrf.mxu0  ;;  %v2980_v59 = vadd.f32 %v9113_v46, %v8357_v51  ;;  %v2971_v60 = vpop.f32.mrf.mxu1 }
 0x1a0   : > { %7714 = vst [vmem:[%s8916_s17 + $0x158] sm:$0xff] %v6940_v53   ;;  %v6935_v61 = vpack.c.bf16 %v3455_v54, %v3454_v52  ;;  %7810 = vst [vmem:[%s8916_s17 + $0x458] sm:$0xff] %v7420_v55   ;;  %v2972_v0 = vadd.f32 %v9113_v46, %v2971_v60  ;;  %v2204_v3 = vadd.f32 %v9113_v46, %v2203_v58  ;;  %v3460_v7 = vmax.f32 %v2212_v56, 0.0 }
 0x1a1   : > { %v7415_v62 = vpack.c.bf16 %v3647_v57, %v3646_v49  ;;  %v8166_v63 = vpop.f32.mrf.mxu0  ;;  %v8358_v1 = vpop.f32.mrf.mxu1  ;;  %v3652_v4 = vmax.f32 %v2980_v59, 0.0 }
 0x1a2   : > { %7713 = vst [vmem:[%s8916_s17 + $0x150] sm:$0xff] %v6935_v61   ;;  %v2215_v5 = vadd.f32 %v9113_v46, %v8166_v63  ;;  %v2983_v6 = vadd.f32 %v9113_v46, %v8358_v1  ;;  %v3650_v14 = vmax.f32 %v2972_v0, 0.0  ;;  %v3458_v17 = vmax.f32 %v2204_v3, 0.0 }
 0x1a3   : > { %7809 = vst [vmem:[%s8916_s17 + $0x450] sm:$0xff] %v7415_v62   ;;  %v2206_v8 = vpop.f32.mrf.mxu0  ;;  %v2974_v9 = vpop.f32.mrf.mxu1 }
 0x1a4   : > { %v3461_v10 = vmax.f32 %v2215_v5, 0.0  ;;  %v2207_v11 = vadd.f32 %v9113_v46, %v2206_v8  ;;  %v3653_v12 = vmax.f32 %v2983_v6, 0.0  ;;  %v2975_v13 = vadd.f32 %v9113_v46, %v2974_v9 }
 0x1a5   : > { %v8169_v15 = vpop.f32.mrf.mxu0  ;;  %8264 = vmatmul.mubr.bf16.gmra.mxu0 %v8692_v2  ;;  %v8361_v16 = vpop.f32.mrf.mxu1 }
 0x1a6   : > { %v6950_v18 = vpack.c.bf16 %v3461_v10, %v3460_v7  ;;  %v3459_v19 = vmax.f32 %v2207_v11, 0.0  ;;  %v7430_v20 = vpack.c.bf16 %v3653_v12, %v3652_v4  ;;  %v2228_v21 = vadd.f32 %v9113_v46, %v8169_v15 }
 0x1a7   : > { %v3651_v22 = vmax.f32 %v2975_v13, 0.0  ;;  %v2219_v23 = vpop.f32.mrf.mxu0  ;;  %v2996_v24 = vadd.f32 %v9113_v46, %v8361_v16  ;;  %v2987_v25 = vpop.f32.mrf.mxu1 }
 0x1a8   : > { %7716 = vst [vmem:[%s8916_s17 + $0x168] sm:$0xff] %v6950_v18   ;;  %v6945_v26 = vpack.c.bf16 %v3459_v19, %v3458_v17  ;;  %7812 = vst [vmem:[%s8916_s17 + $0x468] sm:$0xff] %v7430_v20   ;;  %v2988_v29 = vadd.f32 %v9113_v46, %v2987_v25  ;;  %v2220_v31 = vadd.f32 %v9113_v46, %v2219_v23  ;;  %v3464_v35 = vmax.f32 %v2228_v21, 0.0 }
 0x1a9   : > { %v7425_v27 = vpack.c.bf16 %v3651_v22, %v3650_v14  ;;  %v8170_v28 = vpop.f32.mrf.mxu0  ;;  %v8362_v30 = vpop.f32.mrf.mxu1  ;;  %v3656_v32 = vmax.f32 %v2996_v24, 0.0 }
 0x1aa   : > { %7715 = vst [vmem:[%s8916_s17 + $0x160] sm:$0xff] %v6945_v26   ;;  %v2231_v33 = vadd.f32 %v9113_v46, %v8170_v28  ;;  %v2999_v34 = vadd.f32 %v9113_v46, %v8362_v30  ;;  %v3654_v42 = vmax.f32 %v2988_v29, 0.0  ;;  %v3462_v45 = vmax.f32 %v2220_v31, 0.0 }
 0x1ab   : > { %7811 = vst [vmem:[%s8916_s17 + $0x460] sm:$0xff] %v7425_v27   ;;  %v2222_v36 = vpop.f32.mrf.mxu0  ;;  %v2990_v37 = vpop.f32.mrf.mxu1 }
 0x1ac   : > { %v3465_v38 = vmax.f32 %v2231_v33, 0.0  ;;  %v2223_v39 = vadd.f32 %v9113_v46, %v2222_v36  ;;  %v3657_v40 = vmax.f32 %v2999_v34, 0.0  ;;  %v2991_v41 = vadd.f32 %v9113_v46, %v2990_v37 }
 0x1ad   : > { %v8173_v43 = vpop.f32.mrf.mxu0  ;;  %v8365_v44 = vpop.f32.mrf.mxu1 }
 0x1ae   : > { %v6960_v47 = vpack.c.bf16 %v3465_v38, %v3464_v35  ;;  %v3463_v48 = vmax.f32 %v2223_v39, 0.0  ;;  %v7440_v49 = vpack.c.bf16 %v3657_v40, %v3656_v32  ;;  %v2244_v50 = vadd.f32 %v9113_v46, %v8173_v43 }
 0x1af   : > { %v3655_v51 = vmax.f32 %v2991_v41, 0.0  ;;  %v2235_v52 = vpop.f32.mrf.mxu0  ;;  %v3012_v53 = vadd.f32 %v9113_v46, %v8365_v44  ;;  %v3003_v54 = vpop.f32.mrf.mxu1 }
 0x1b0   : > { %7718 = vst [vmem:[%s8916_s17 + $0x178] sm:$0xff] %v6960_v47   ;;  %v6955_v55 = vpack.c.bf16 %v3463_v48, %v3462_v45  ;;  %7814 = vst [vmem:[%s8916_s17 + $0x478] sm:$0xff] %v7440_v49   ;;  %v3004_v58 = vadd.f32 %v9113_v46, %v3003_v54  ;;  %v2236_v60 = vadd.f32 %v9113_v46, %v2235_v52  ;;  %v3468_v0 = vmax.f32 %v2244_v50, 0.0 }
 0x1b1   : > { %v7435_v56 = vpack.c.bf16 %v3655_v51, %v3654_v42  ;;  %v8174_v57 = vpop.f32.mrf.mxu0  ;;  %v8366_v59 = vpop.f32.mrf.mxu1  ;;  %v3660_v61 = vmax.f32 %v3012_v53, 0.0 }
 0x1b2   : > { %7717 = vst [vmem:[%s8916_s17 + $0x170] sm:$0xff] %v6955_v55   ;;  %v2247_v62 = vadd.f32 %v9113_v46, %v8174_v57  ;;  %v3015_v63 = vadd.f32 %v9113_v46, %v8366_v59  ;;  %v3658_v7 = vmax.f32 %v3004_v58, 0.0  ;;  %v3466_v10 = vmax.f32 %v2236_v60, 0.0 }
 0x1b3   : > { %7813 = vst [vmem:[%s8916_s17 + $0x470] sm:$0xff] %v7435_v56   ;;  %v2238_v1 = vpop.f32.mrf.mxu0  ;;  %v3006_v2 = vpop.f32.mrf.mxu1 }
 0x1b4   : > { %v3469_v3 = vmax.f32 %v2247_v62, 0.0  ;;  %v2239_v4 = vadd.f32 %v9113_v46, %v2238_v1  ;;  %v3661_v5 = vmax.f32 %v3015_v63, 0.0  ;;  %v3007_v6 = vadd.f32 %v9113_v46, %v3006_v2  ;;  %v9321_v63 = vld [vmem:[%s9590_s2] ss:$0 sm:$0xff] }
 0x1b5   : > { %v8177_v8 = vpop.f32.mrf.mxu0  ;;  %v8369_v9 = vpop.f32.mrf.mxu1 }
 0x1b6   : > { %v6970_v11 = vpack.c.bf16 %v3469_v3, %v3468_v0  ;;  %v3467_v12 = vmax.f32 %v2239_v4, 0.0  ;;  %v7450_v13 = vpack.c.bf16 %v3661_v5, %v3660_v61  ;;  %v2260_v14 = vadd.f32 %v9113_v46, %v8177_v8 }
 0x1b7   : > { %v3659_v15 = vmax.f32 %v3007_v6, 0.0  ;;  %v2251_v16 = vpop.f32.mrf.mxu0  ;;  %v3028_v17 = vadd.f32 %v9113_v46, %v8369_v9  ;;  %v3019_v18 = vpop.f32.mrf.mxu1 }
 0x1b8   : > { %7720 = vst [vmem:[%s8916_s17 + $0x188] sm:$0xff] %v6970_v11   ;;  %v6965_v19 = vpack.c.bf16 %v3467_v12, %v3466_v10  ;;  %7816 = vst [vmem:[%s8916_s17 + $0x488] sm:$0xff] %v7450_v13   ;;  %v3020_v22 = vadd.f32 %v9113_v46, %v3019_v18  ;;  %v2252_v24 = vadd.f32 %v9113_v46, %v2251_v16  ;;  %v3472_v28 = vmax.f32 %v2260_v14, 0.0 }
 0x1b9   : > { %v7445_v20 = vpack.c.bf16 %v3659_v15, %v3658_v7  ;;  %v8178_v21 = vpop.f32.mrf.mxu0  ;;  %v8370_v23 = vpop.f32.mrf.mxu1  ;;  %v3664_v25 = vmax.f32 %v3028_v17, 0.0 }
 0x1ba   : > { %7719 = vst [vmem:[%s8916_s17 + $0x180] sm:$0xff] %v6965_v19   ;;  %v2263_v26 = vadd.f32 %v9113_v46, %v8178_v21  ;;  %v3031_v27 = vadd.f32 %v9113_v46, %v8370_v23  ;;  %v3662_v35 = vmax.f32 %v3020_v22, 0.0  ;;  %v3470_v38 = vmax.f32 %v2252_v24, 0.0 }
 0x1bb   : > { %7815 = vst [vmem:[%s8916_s17 + $0x480] sm:$0xff] %v7445_v20   ;;  %v2254_v29 = vpop.f32.mrf.mxu0  ;;  %v3022_v30 = vpop.f32.mrf.mxu1 }
 0x1bc   : > { %v3473_v31 = vmax.f32 %v2263_v26, 0.0  ;;  %v2255_v32 = vadd.f32 %v9113_v46, %v2254_v29  ;;  %v3665_v33 = vmax.f32 %v3031_v27, 0.0  ;;  %v3023_v34 = vadd.f32 %v9113_v46, %v3022_v30 }
 0x1bd   : > { %v8181_v36 = vpop.f32.mrf.mxu0  ;;  %v8373_v37 = vpop.f32.mrf.mxu1 }
 0x1be   : > { %v6980_v39 = vpack.c.bf16 %v3473_v31, %v3472_v28  ;;  %v3471_v40 = vmax.f32 %v2255_v32, 0.0  ;;  %v7460_v41 = vpack.c.bf16 %v3665_v33, %v3664_v25  ;;  %v2276_v42 = vadd.f32 %v9113_v46, %v8181_v36 }
 0x1bf   : > { %v3663_v43 = vmax.f32 %v3023_v34, 0.0  ;;  %v2267_v44 = vpop.f32.mrf.mxu0  ;;  %v3044_v45 = vadd.f32 %v9113_v46, %v8373_v37  ;;  %v3035_v47 = vpop.f32.mrf.mxu1 }
 0x1c0   : > { %7722 = vst [vmem:[%s8916_s17 + $0x198] sm:$0xff] %v6980_v39   ;;  %v6975_v48 = vpack.c.bf16 %v3471_v40, %v3470_v38  ;;  %7818 = vst [vmem:[%s8916_s17 + $0x498] sm:$0xff] %v7460_v41   ;;  %v3036_v51 = vadd.f32 %v9113_v46, %v3035_v47  ;;  %v2268_v53 = vadd.f32 %v9113_v46, %v2267_v44  ;;  %v3476_v57 = vmax.f32 %v2276_v42, 0.0 }
 0x1c1   : > { %v7455_v49 = vpack.c.bf16 %v3663_v43, %v3662_v35  ;;  %v8182_v50 = vpop.f32.mrf.mxu0  ;;  %v8374_v52 = vpop.f32.mrf.mxu1  ;;  %v3668_v54 = vmax.f32 %v3044_v45, 0.0 }
 0x1c2   : > { %7721 = vst [vmem:[%s8916_s17 + $0x190] sm:$0xff] %v6975_v48   ;;  %v2279_v55 = vadd.f32 %v9113_v46, %v8182_v50  ;;  %v3047_v56 = vadd.f32 %v9113_v46, %v8374_v52  ;;  %v3666_v1 = vmax.f32 %v3036_v51, 0.0  ;;  %v3474_v4 = vmax.f32 %v2268_v53, 0.0 }
 0x1c3   : > { %7817 = vst [vmem:[%s8916_s17 + $0x490] sm:$0xff] %v7455_v49   ;;  %v2270_v58 = vpop.f32.mrf.mxu0  ;;  %v3038_v59 = vpop.f32.mrf.mxu1 }
 0x1c4   : > { %v3477_v60 = vmax.f32 %v2279_v55, 0.0  ;;  %v2271_v61 = vadd.f32 %v9113_v46, %v2270_v58  ;;  %v3669_v62 = vmax.f32 %v3047_v56, 0.0  ;;  %v3039_v0 = vadd.f32 %v9321_v63, %v3038_v59 }
 0x1c5   : > { %v8185_v2 = vpop.f32.mrf.mxu0  ;;  %v8377_v3 = vpop.f32.mrf.mxu1 }
 0x1c6   : > { %v6990_v5 = vpack.c.bf16 %v3477_v60, %v3476_v57  ;;  %v3475_v6 = vmax.f32 %v2271_v61, 0.0  ;;  %v7470_v7 = vpack.c.bf16 %v3669_v62, %v3668_v54  ;;  %v2292_v46 = vadd.f32 %v9321_v63, %v8185_v2 }
 0x1c7   : > { %v3667_v8 = vmax.f32 %v3039_v0, 0.0  ;;  %v2283_v9 = vpop.f32.mrf.mxu0  ;;  %v3060_v10 = vadd.f32 %v9321_v63, %v8377_v3  ;;  %v3051_v11 = vpop.f32.mrf.mxu1 }
 0x1c8   : > { %7724 = vst [vmem:[%s8916_s17 + $0x1a8] sm:$0xff] %v6990_v5   ;;  %v6985_v12 = vpack.c.bf16 %v3475_v6, %v3474_v4  ;;  %7820 = vst [vmem:[%s8916_s17 + $0x4a8] sm:$0xff] %v7470_v7   ;;  %v3052_v15 = vadd.f32 %v9321_v63, %v3051_v11  ;;  %v2284_v17 = vadd.f32 %v9321_v63, %v2283_v9  ;;  %v3480_v21 = vmax.f32 %v2292_v46, 0.0 }
 0x1c9   : > { %v7465_v13 = vpack.c.bf16 %v3667_v8, %v3666_v1  ;;  %v8186_v14 = vpop.f32.mrf.mxu0  ;;  %v8378_v16 = vpop.f32.mrf.mxu1  ;;  %v3672_v18 = vmax.f32 %v3060_v10, 0.0 }
 0x1ca   : > { %7723 = vst [vmem:[%s8916_s17 + $0x1a0] sm:$0xff] %v6985_v12   ;;  %v2295_v19 = vadd.f32 %v9321_v63, %v8186_v14  ;;  %v3063_v20 = vadd.f32 %v9321_v63, %v8378_v16  ;;  %v3670_v28 = vmax.f32 %v3052_v15, 0.0  ;;  %v3478_v31 = vmax.f32 %v2284_v17, 0.0 }
 0x1cb   : > { %7819 = vst [vmem:[%s8916_s17 + $0x4a0] sm:$0xff] %v7465_v13   ;;  %v2286_v22 = vpop.f32.mrf.mxu0  ;;  %v3054_v23 = vpop.f32.mrf.mxu1 }
 0x1cc   : > { %v3481_v24 = vmax.f32 %v2295_v19, 0.0  ;;  %v2287_v25 = vadd.f32 %v9321_v63, %v2286_v22  ;;  %v3673_v26 = vmax.f32 %v3063_v20, 0.0  ;;  %v3055_v27 = vadd.f32 %v9321_v63, %v3054_v23 }
 0x1cd   : > { %v8189_v29 = vpop.f32.mrf.mxu0  ;;  %v8381_v30 = vpop.f32.mrf.mxu1 }
 0x1ce   : > { %v7000_v32 = vpack.c.bf16 %v3481_v24, %v3480_v21  ;;  %v3479_v33 = vmax.f32 %v2287_v25, 0.0  ;;  %v7480_v34 = vpack.c.bf16 %v3673_v26, %v3672_v18  ;;  %v2308_v35 = vadd.f32 %v9321_v63, %v8189_v29 }
 0x1cf   : > { %v3671_v36 = vmax.f32 %v3055_v27, 0.0  ;;  %v2299_v37 = vpop.f32.mrf.mxu0  ;;  %v3076_v38 = vadd.f32 %v9321_v63, %v8381_v30  ;;  %v3067_v39 = vpop.f32.mrf.mxu1 }
 0x1d0   : > { %7726 = vst [vmem:[%s8916_s17 + $0x1b8] sm:$0xff] %v7000_v32   ;;  %v6995_v40 = vpack.c.bf16 %v3479_v33, %v3478_v31  ;;  %7822 = vst [vmem:[%s8916_s17 + $0x4b8] sm:$0xff] %v7480_v34   ;;  %v3068_v43 = vadd.f32 %v9321_v63, %v3067_v39  ;;  %v2300_v45 = vadd.f32 %v9321_v63, %v2299_v37  ;;  %v3484_v50 = vmax.f32 %v2308_v35, 0.0 }
 0x1d1   : > { %v7475_v41 = vpack.c.bf16 %v3671_v36, %v3670_v28  ;;  %v8190_v42 = vpop.f32.mrf.mxu0  ;;  %v8382_v44 = vpop.f32.mrf.mxu1  ;;  %v3676_v47 = vmax.f32 %v3076_v38, 0.0 }
 0x1d2   : > { %7725 = vst [vmem:[%s8916_s17 + $0x1b0] sm:$0xff] %v6995_v40   ;;  %v2311_v48 = vadd.f32 %v9321_v63, %v8190_v42  ;;  %v3079_v49 = vadd.f32 %v9321_v63, %v8382_v44  ;;  %v3674_v57 = vmax.f32 %v3068_v43, 0.0  ;;  %v3482_v60 = vmax.f32 %v2300_v45, 0.0 }
 0x1d3   : > { %7821 = vst [vmem:[%s8916_s17 + $0x4b0] sm:$0xff] %v7475_v41   ;;  %v2302_v51 = vpop.f32.mrf.mxu0  ;;  %v3070_v52 = vpop.f32.mrf.mxu1 }
 0x1d4   : > { %v3485_v53 = vmax.f32 %v2311_v48, 0.0  ;;  %v2303_v54 = vadd.f32 %v9321_v63, %v2302_v51  ;;  %v3677_v55 = vmax.f32 %v3079_v49, 0.0  ;;  %v3071_v56 = vadd.f32 %v9321_v63, %v3070_v52 }
 0x1d5   : > { %v8193_v58 = vpop.f32.mrf.mxu0  ;;  %v8385_v59 = vpop.f32.mrf.mxu1 }
 0x1d6   : > { %v7010_v61 = vpack.c.bf16 %v3485_v53, %v3484_v50  ;;  %v3483_v62 = vmax.f32 %v2303_v54, 0.0  ;;  %v7490_v0 = vpack.c.bf16 %v3677_v55, %v3676_v47  ;;  %v2324_v1 = vadd.f32 %v9321_v63, %v8193_v58 }
 0x1d7   : > { %v3675_v2 = vmax.f32 %v3071_v56, 0.0  ;;  %v2315_v3 = vpop.f32.mrf.mxu0  ;;  %v3092_v4 = vadd.f32 %v9321_v63, %v8385_v59  ;;  %v3083_v5 = vpop.f32.mrf.mxu1 }
 0x1d8   : > { %7728 = vst [vmem:[%s8916_s17 + $0x1c8] sm:$0xff] %v7010_v61   ;;  %v7005_v6 = vpack.c.bf16 %v3483_v62, %v3482_v60  ;;  %7824 = vst [vmem:[%s8916_s17 + $0x4c8] sm:$0xff] %v7490_v0   ;;  %v3084_v8 = vadd.f32 %v9321_v63, %v3083_v5  ;;  %v2316_v10 = vadd.f32 %v9321_v63, %v2315_v3  ;;  %v3488_v14 = vmax.f32 %v2324_v1, 0.0 }
 0x1d9   : > { %v7485_v7 = vpack.c.bf16 %v3675_v2, %v3674_v57  ;;  %v8194_v46 = vpop.f32.mrf.mxu0  ;;  %v8386_v9 = vpop.f32.mrf.mxu1  ;;  %v3680_v11 = vmax.f32 %v3092_v4, 0.0 }
 0x1da   : > { %7727 = vst [vmem:[%s8916_s17 + $0x1c0] sm:$0xff] %v7005_v6   ;;  %v2327_v12 = vadd.f32 %v9321_v63, %v8194_v46  ;;  %v3095_v13 = vadd.f32 %v9321_v63, %v8386_v9  ;;  %v3678_v21 = vmax.f32 %v3084_v8, 0.0  ;;  %v3486_v24 = vmax.f32 %v2316_v10, 0.0 }
 0x1db   : > { %7823 = vst [vmem:[%s8916_s17 + $0x4c0] sm:$0xff] %v7485_v7   ;;  %v2318_v15 = vpop.f32.mrf.mxu0  ;;  %v3086_v16 = vpop.f32.mrf.mxu1 }
 0x1dc   : > { %v3489_v17 = vmax.f32 %v2327_v12, 0.0  ;;  %v2319_v18 = vadd.f32 %v9321_v63, %v2318_v15  ;;  %v3681_v19 = vmax.f32 %v3095_v13, 0.0  ;;  %v3087_v20 = vadd.f32 %v9321_v63, %v3086_v16 }
 0x1dd   : > { %v8197_v22 = vpop.f32.mrf.mxu0  ;;  %v8389_v23 = vpop.f32.mrf.mxu1 }
 0x1de   : > { %v7020_v25 = vpack.c.bf16 %v3489_v17, %v3488_v14  ;;  %v3487_v26 = vmax.f32 %v2319_v18, 0.0  ;;  %v7500_v27 = vpack.c.bf16 %v3681_v19, %v3680_v11  ;;  %v2340_v28 = vadd.f32 %v9321_v63, %v8197_v22 }
 0x1df   : > { %v3679_v29 = vmax.f32 %v3087_v20, 0.0  ;;  %v2331_v30 = vpop.f32.mrf.mxu0  ;;  %v3108_v31 = vadd.f32 %v9321_v63, %v8389_v23  ;;  %v3099_v32 = vpop.f32.mrf.mxu1 }
 0x1e0   : > { %7730 = vst [vmem:[%s8916_s17 + $0x1d8] sm:$0xff] %v7020_v25   ;;  %v7015_v33 = vpack.c.bf16 %v3487_v26, %v3486_v24  ;;  %7826 = vst [vmem:[%s8916_s17 + $0x4d8] sm:$0xff] %v7500_v27   ;;  %v3100_v36 = vadd.f32 %v9321_v63, %v3099_v32  ;;  %v2332_v38 = vadd.f32 %v9321_v63, %v2331_v30  ;;  %v3492_v42 = vmax.f32 %v2340_v28, 0.0 }
 0x1e1   : > { %v7495_v34 = vpack.c.bf16 %v3679_v29, %v3678_v21  ;;  %v8198_v35 = vpop.f32.mrf.mxu0  ;;  %v8390_v37 = vpop.f32.mrf.mxu1  ;;  %v3684_v39 = vmax.f32 %v3108_v31, 0.0 }
 0x1e2   : > { %7729 = vst [vmem:[%s8916_s17 + $0x1d0] sm:$0xff] %v7015_v33   ;;  %v2343_v40 = vadd.f32 %v9321_v63, %v8198_v35  ;;  %v3111_v41 = vadd.f32 %v9321_v63, %v8390_v37  ;;  %v3682_v50 = vmax.f32 %v3100_v36, 0.0  ;;  %v3490_v53 = vmax.f32 %v2332_v38, 0.0 }
 0x1e3   : > { %7825 = vst [vmem:[%s8916_s17 + $0x4d0] sm:$0xff] %v7495_v34   ;;  %v2334_v43 = vpop.f32.mrf.mxu0  ;;  %v3102_v44 = vpop.f32.mrf.mxu1 }
 0x1e4   : > { %v3493_v45 = vmax.f32 %v2343_v40, 0.0  ;;  %v2335_v47 = vadd.f32 %v9321_v63, %v2334_v43  ;;  %v3685_v48 = vmax.f32 %v3111_v41, 0.0  ;;  %v3103_v49 = vadd.f32 %v9321_v63, %v3102_v44 }
 0x1e5   : > { %v8201_v51 = vpop.f32.mrf.mxu0  ;;  %v8393_v52 = vpop.f32.mrf.mxu1 }
 0x1e6   : > { %v7030_v54 = vpack.c.bf16 %v3493_v45, %v3492_v42  ;;  %v3491_v55 = vmax.f32 %v2335_v47, 0.0  ;;  %v7510_v56 = vpack.c.bf16 %v3685_v48, %v3684_v39  ;;  %v2356_v57 = vadd.f32 %v9321_v63, %v8201_v51 }
 0x1e7   : > { %v3683_v58 = vmax.f32 %v3103_v49, 0.0  ;;  %v2347_v59 = vpop.f32.mrf.mxu0  ;;  %v3124_v60 = vadd.f32 %v9321_v63, %v8393_v52  ;;  %v3115_v61 = vpop.f32.mrf.mxu1 }
 0x1e8   : > { %7732 = vst [vmem:[%s8916_s17 + $0x1e8] sm:$0xff] %v7030_v54   ;;  %v7025_v62 = vpack.c.bf16 %v3491_v55, %v3490_v53  ;;  %7828 = vst [vmem:[%s8916_s17 + $0x4e8] sm:$0xff] %v7510_v56   ;;  %v3116_v2 = vadd.f32 %v9321_v63, %v3115_v61  ;;  %v2348_v4 = vadd.f32 %v9321_v63, %v2347_v59  ;;  %v3496_v46 = vmax.f32 %v2356_v57, 0.0 }
 0x1e9   : > { %v7505_v0 = vpack.c.bf16 %v3683_v58, %v3682_v50  ;;  %v8202_v1 = vpop.f32.mrf.mxu0  ;;  %v8394_v3 = vpop.f32.mrf.mxu1  ;;  %v3688_v5 = vmax.f32 %v3124_v60, 0.0 }
 0x1ea   : > { %7731 = vst [vmem:[%s8916_s17 + $0x1e0] sm:$0xff] %v7025_v62   ;;  %v2359_v6 = vadd.f32 %v9321_v63, %v8202_v1  ;;  %v3127_v7 = vadd.f32 %v9321_v63, %v8394_v3  ;;  %v3686_v14 = vmax.f32 %v3116_v2, 0.0  ;;  %v3494_v17 = vmax.f32 %v2348_v4, 0.0 }
 0x1eb   : > { %7827 = vst [vmem:[%s8916_s17 + $0x4e0] sm:$0xff] %v7505_v0   ;;  %v2350_v8 = vpop.f32.mrf.mxu0  ;;  %v3118_v9 = vpop.f32.mrf.mxu1 }
 0x1ec   : > { %v3497_v10 = vmax.f32 %v2359_v6, 0.0  ;;  %v2351_v11 = vadd.f32 %v9321_v63, %v2350_v8  ;;  %v3689_v12 = vmax.f32 %v3127_v7, 0.0  ;;  %v3119_v13 = vadd.f32 %v9321_v63, %v3118_v9 }
 0x1ed   : > { %v8205_v15 = vpop.f32.mrf.mxu0  ;;  %v8397_v16 = vpop.f32.mrf.mxu1 }
 0x1ee   : > { %v7040_v18 = vpack.c.bf16 %v3497_v10, %v3496_v46  ;;  %v3495_v19 = vmax.f32 %v2351_v11, 0.0  ;;  %v7520_v20 = vpack.c.bf16 %v3689_v12, %v3688_v5  ;;  %v2372_v21 = vadd.f32 %v9321_v63, %v8205_v15 }
 0x1ef   : > { %v3687_v22 = vmax.f32 %v3119_v13, 0.0  ;;  %v2363_v23 = vpop.f32.mrf.mxu0  ;;  %v3140_v24 = vadd.f32 %v9321_v63, %v8397_v16  ;;  %v3131_v25 = vpop.f32.mrf.mxu1 }
 0x1f0   : > { %7734 = vst [vmem:[%s8916_s17 + $0x1f8] sm:$0xff] %v7040_v18   ;;  %v7035_v26 = vpack.c.bf16 %v3495_v19, %v3494_v17  ;;  %7830 = vst [vmem:[%s8916_s17 + $0x4f8] sm:$0xff] %v7520_v20   ;;  %v3132_v29 = vadd.f32 %v9321_v63, %v3131_v25  ;;  %v2364_v31 = vadd.f32 %v9321_v63, %v2363_v23  ;;  %v3500_v35 = vmax.f32 %v2372_v21, 0.0 }
 0x1f1   : > { %v7515_v27 = vpack.c.bf16 %v3687_v22, %v3686_v14  ;;  %v8206_v28 = vpop.f32.mrf.mxu0  ;;  %v8398_v30 = vpop.f32.mrf.mxu1  ;;  %v3692_v32 = vmax.f32 %v3140_v24, 0.0 }
 0x1f2   : > { %7733 = vst [vmem:[%s8916_s17 + $0x1f0] sm:$0xff] %v7035_v26   ;;  %v2375_v33 = vadd.f32 %v9321_v63, %v8206_v28  ;;  %v3143_v34 = vadd.f32 %v9321_v63, %v8398_v30  ;;  %v3690_v42 = vmax.f32 %v3132_v29, 0.0  ;;  %v3498_v45 = vmax.f32 %v2364_v31, 0.0 }
 0x1f3   : > { %7829 = vst [vmem:[%s8916_s17 + $0x4f0] sm:$0xff] %v7515_v27   ;;  %v2366_v36 = vpop.f32.mrf.mxu0  ;;  %v3134_v37 = vpop.f32.mrf.mxu1 }
 0x1f4   : > { %v3501_v38 = vmax.f32 %v2375_v33, 0.0  ;;  %v2367_v39 = vadd.f32 %v9321_v63, %v2366_v36  ;;  %v3693_v40 = vmax.f32 %v3143_v34, 0.0  ;;  %v3135_v41 = vadd.f32 %v9321_v63, %v3134_v37 }
 0x1f5   : > { %v8209_v43 = vpop.f32.mrf.mxu0  ;;  %v8401_v44 = vpop.f32.mrf.mxu1 }
 0x1f6   : > { %v7050_v47 = vpack.c.bf16 %v3501_v38, %v3500_v35  ;;  %v3499_v48 = vmax.f32 %v2367_v39, 0.0  ;;  %v7530_v49 = vpack.c.bf16 %v3693_v40, %v3692_v32  ;;  %v2388_v50 = vadd.f32 %v9321_v63, %v8209_v43 }
 0x1f7   : > { %v3691_v51 = vmax.f32 %v3135_v41, 0.0  ;;  %v2379_v52 = vpop.f32.mrf.mxu0  ;;  %v3156_v53 = vadd.f32 %v9321_v63, %v8401_v44  ;;  %v3147_v54 = vpop.f32.mrf.mxu1 }
 0x1f8   : > { %7736 = vst [vmem:[%s8916_s17 + $0x208] sm:$0xff] %v7050_v47   ;;  %v7045_v55 = vpack.c.bf16 %v3499_v48, %v3498_v45  ;;  %7832 = vst [vmem:[%s8916_s17 + $0x508] sm:$0xff] %v7530_v49   ;;  %v3148_v58 = vadd.f32 %v9321_v63, %v3147_v54  ;;  %v2380_v60 = vadd.f32 %v9321_v63, %v2379_v52  ;;  %v3504_v1 = vmax.f32 %v2388_v50, 0.0 }
 0x1f9   : > { %v7525_v56 = vpack.c.bf16 %v3691_v51, %v3690_v42  ;;  %v8210_v57 = vpop.f32.mrf.mxu0  ;;  %v8402_v59 = vpop.f32.mrf.mxu1  ;;  %v3696_v61 = vmax.f32 %v3156_v53, 0.0 }
 0x1fa   : > { %7735 = vst [vmem:[%s8916_s17 + $0x200] sm:$0xff] %v7045_v55   ;;  %v2391_v62 = vadd.f32 %v9321_v63, %v8210_v57  ;;  %v3159_v0 = vadd.f32 %v9321_v63, %v8402_v59  ;;  %v3694_v46 = vmax.f32 %v3148_v58, 0.0  ;;  %v3502_v10 = vmax.f32 %v2380_v60, 0.0 }
 0x1fb   : > { %7831 = vst [vmem:[%s8916_s17 + $0x500] sm:$0xff] %v7525_v56   ;;  %v2382_v2 = vpop.f32.mrf.mxu0  ;;  %v3150_v3 = vpop.f32.mrf.mxu1 }
 0x1fc   : > { %v3505_v4 = vmax.f32 %v2391_v62, 0.0  ;;  %v2383_v5 = vadd.f32 %v9321_v63, %v2382_v2  ;;  %v3697_v6 = vmax.f32 %v3159_v0, 0.0  ;;  %v3151_v7 = vadd.f32 %v9321_v63, %v3150_v3 }
 0x1fd   : > { %v8213_v8 = vpop.f32.mrf.mxu0  ;;  %v8405_v9 = vpop.f32.mrf.mxu1 }
 0x1fe   : > { %v7060_v11 = vpack.c.bf16 %v3505_v4, %v3504_v1  ;;  %v3503_v12 = vmax.f32 %v2383_v5, 0.0  ;;  %v7540_v13 = vpack.c.bf16 %v3697_v6, %v3696_v61  ;;  %v2404_v14 = vadd.f32 %v9321_v63, %v8213_v8 }
 0x1ff   : > { %v3695_v15 = vmax.f32 %v3151_v7, 0.0  ;;  %v2395_v16 = vpop.f32.mrf.mxu0  ;;  %v3172_v17 = vadd.f32 %v9321_v63, %v8405_v9  ;;  %v3163_v18 = vpop.f32.mrf.mxu1 }
 0x200   : > { %7738 = vst [vmem:[%s8916_s17 + $0x218] sm:$0xff] %v7060_v11   ;;  %v7055_v19 = vpack.c.bf16 %v3503_v12, %v3502_v10  ;;  %7834 = vst [vmem:[%s8916_s17 + $0x518] sm:$0xff] %v7540_v13   ;;  %v3164_v22 = vadd.f32 %v9321_v63, %v3163_v18  ;;  %v2396_v24 = vadd.f32 %v9321_v63, %v2395_v16  ;;  %v3508_v28 = vmax.f32 %v2404_v14, 0.0 }
 0x201   : > { %v7535_v20 = vpack.c.bf16 %v3695_v15, %v3694_v46  ;;  %v8214_v21 = vpop.f32.mrf.mxu0  ;;  %v8406_v23 = vpop.f32.mrf.mxu1  ;;  %v3700_v25 = vmax.f32 %v3172_v17, 0.0 }
 0x202   : > { %7737 = vst [vmem:[%s8916_s17 + $0x210] sm:$0xff] %v7055_v19   ;;  %v2407_v26 = vadd.f32 %v9321_v63, %v8214_v21  ;;  %v3175_v27 = vadd.f32 %v9321_v63, %v8406_v23  ;;  %v3698_v35 = vmax.f32 %v3164_v22, 0.0  ;;  %v3506_v38 = vmax.f32 %v2396_v24, 0.0 }
 0x203   : > { %7833 = vst [vmem:[%s8916_s17 + $0x510] sm:$0xff] %v7535_v20   ;;  %v2398_v29 = vpop.f32.mrf.mxu0  ;;  %v3166_v30 = vpop.f32.mrf.mxu1 }
 0x204   : > { %v3509_v31 = vmax.f32 %v2407_v26, 0.0  ;;  %v2399_v32 = vadd.f32 %v9321_v63, %v2398_v29  ;;  %v3701_v33 = vmax.f32 %v3175_v27, 0.0  ;;  %v3167_v34 = vadd.f32 %v9321_v63, %v3166_v30 }
 0x205   : > { %v8217_v36 = vpop.f32.mrf.mxu0  ;;  %v8409_v37 = vpop.f32.mrf.mxu1 }
 0x206   : > { %v7070_v39 = vpack.c.bf16 %v3509_v31, %v3508_v28  ;;  %v3507_v40 = vmax.f32 %v2399_v32, 0.0  ;;  %v7550_v41 = vpack.c.bf16 %v3701_v33, %v3700_v25  ;;  %v2420_v42 = vadd.f32 %v9321_v63, %v8217_v36 }
 0x207   : > { %v3699_v43 = vmax.f32 %v3167_v34, 0.0  ;;  %v2411_v44 = vpop.f32.mrf.mxu0  ;;  %v3188_v45 = vadd.f32 %v9321_v63, %v8409_v37  ;;  %v3179_v47 = vpop.f32.mrf.mxu1 }
 0x208   : > { %7740 = vst [vmem:[%s8916_s17 + $0x228] sm:$0xff] %v7070_v39   ;;  %v7065_v48 = vpack.c.bf16 %v3507_v40, %v3506_v38  ;;  %7836 = vst [vmem:[%s8916_s17 + $0x528] sm:$0xff] %v7550_v41   ;;  %v3180_v51 = vadd.f32 %v9321_v63, %v3179_v47  ;;  %v2412_v53 = vadd.f32 %v9321_v63, %v2411_v44  ;;  %v3512_v57 = vmax.f32 %v2420_v42, 0.0 }
 0x209   : > { %v7545_v49 = vpack.c.bf16 %v3699_v43, %v3698_v35  ;;  %v8218_v50 = vpop.f32.mrf.mxu0  ;;  %v8410_v52 = vpop.f32.mrf.mxu1  ;;  %v3704_v54 = vmax.f32 %v3188_v45, 0.0 }
 0x20a   : > { %7739 = vst [vmem:[%s8916_s17 + $0x220] sm:$0xff] %v7065_v48   ;;  %v2423_v55 = vadd.f32 %v9321_v63, %v8218_v50  ;;  %v3191_v56 = vadd.f32 %v9321_v63, %v8410_v52  ;;  %v3702_v1 = vmax.f32 %v3180_v51, 0.0  ;;  %v3510_v4 = vmax.f32 %v2412_v53, 0.0 }
 0x20b   : > { %7835 = vst [vmem:[%s8916_s17 + $0x520] sm:$0xff] %v7545_v49   ;;  %v2414_v58 = vpop.f32.mrf.mxu0  ;;  %v3182_v59 = vpop.f32.mrf.mxu1 }
 0x20c   : > { %v3513_v60 = vmax.f32 %v2423_v55, 0.0  ;;  %v2415_v61 = vadd.f32 %v9321_v63, %v2414_v58  ;;  %v3705_v62 = vmax.f32 %v3191_v56, 0.0  ;;  %v3183_v0 = vadd.f32 %v9321_v63, %v3182_v59 }
 0x20d   : > { %v8221_v2 = vpop.f32.mrf.mxu0  ;;  %v8413_v3 = vpop.f32.mrf.mxu1 }
 0x20e   : > { %v7080_v5 = vpack.c.bf16 %v3513_v60, %v3512_v57  ;;  %v3511_v6 = vmax.f32 %v2415_v61, 0.0  ;;  %v7560_v7 = vpack.c.bf16 %v3705_v62, %v3704_v54  ;;  %v2436_v46 = vadd.f32 %v9321_v63, %v8221_v2 }
 0x20f   : > { %v3703_v8 = vmax.f32 %v3183_v0, 0.0  ;;  %v2427_v9 = vpop.f32.mrf.mxu0  ;;  %v3204_v10 = vadd.f32 %v9321_v63, %v8413_v3  ;;  %v3195_v11 = vpop.f32.mrf.mxu1 }
 0x210   : > { %7742 = vst [vmem:[%s8916_s17 + $0x238] sm:$0xff] %v7080_v5   ;;  %v7075_v12 = vpack.c.bf16 %v3511_v6, %v3510_v4  ;;  %7838 = vst [vmem:[%s8916_s17 + $0x538] sm:$0xff] %v7560_v7   ;;  %v3196_v15 = vadd.f32 %v9321_v63, %v3195_v11  ;;  %v2428_v17 = vadd.f32 %v9321_v63, %v2427_v9  ;;  %v3516_v21 = vmax.f32 %v2436_v46, 0.0 }
 0x211   : > { %v7555_v13 = vpack.c.bf16 %v3703_v8, %v3702_v1  ;;  %v8222_v14 = vpop.f32.mrf.mxu0  ;;  %v8414_v16 = vpop.f32.mrf.mxu1  ;;  %v3708_v18 = vmax.f32 %v3204_v10, 0.0 }
 0x212   : > { %7741 = vst [vmem:[%s8916_s17 + $0x230] sm:$0xff] %v7075_v12   ;;  %v2439_v19 = vadd.f32 %v9321_v63, %v8222_v14  ;;  %v3207_v20 = vadd.f32 %v9321_v63, %v8414_v16  ;;  %v3706_v28 = vmax.f32 %v3196_v15, 0.0  ;;  %v3514_v31 = vmax.f32 %v2428_v17, 0.0 }
 0x213   : > { %7837 = vst [vmem:[%s8916_s17 + $0x530] sm:$0xff] %v7555_v13   ;;  %v2430_v22 = vpop.f32.mrf.mxu0  ;;  %v3198_v23 = vpop.f32.mrf.mxu1 }
 0x214   : > { %v3517_v24 = vmax.f32 %v2439_v19, 0.0  ;;  %v2431_v25 = vadd.f32 %v9321_v63, %v2430_v22  ;;  %v3709_v26 = vmax.f32 %v3207_v20, 0.0  ;;  %v3199_v27 = vadd.f32 %v9321_v63, %v3198_v23 }
 0x215   : > { %v8225_v29 = vpop.f32.mrf.mxu0  ;;  %v8417_v30 = vpop.f32.mrf.mxu1 }
 0x216   : > { %v7090_v32 = vpack.c.bf16 %v3517_v24, %v3516_v21  ;;  %v3515_v33 = vmax.f32 %v2431_v25, 0.0  ;;  %v7570_v34 = vpack.c.bf16 %v3709_v26, %v3708_v18  ;;  %v2452_v35 = vadd.f32 %v9321_v63, %v8225_v29 }
 0x217   : > { %v3707_v36 = vmax.f32 %v3199_v27, 0.0  ;;  %v2443_v37 = vpop.f32.mrf.mxu0  ;;  %v3220_v38 = vadd.f32 %v9321_v63, %v8417_v30  ;;  %v3211_v39 = vpop.f32.mrf.mxu1 }
 0x218   : > { %7744 = vst [vmem:[%s8916_s17 + $0x248] sm:$0xff] %v7090_v32   ;;  %v7085_v40 = vpack.c.bf16 %v3515_v33, %v3514_v31  ;;  %7840 = vst [vmem:[%s8916_s17 + $0x548] sm:$0xff] %v7570_v34   ;;  %v3212_v43 = vadd.f32 %v9321_v63, %v3211_v39  ;;  %v2444_v45 = vadd.f32 %v9321_v63, %v2443_v37  ;;  %v3520_v50 = vmax.f32 %v2452_v35, 0.0 }
 0x219   : > { %v7565_v41 = vpack.c.bf16 %v3707_v36, %v3706_v28  ;;  %v8226_v42 = vpop.f32.mrf.mxu0  ;;  %v8418_v44 = vpop.f32.mrf.mxu1  ;;  %v3712_v47 = vmax.f32 %v3220_v38, 0.0 }
 0x21a   : > { %7743 = vst [vmem:[%s8916_s17 + $0x240] sm:$0xff] %v7085_v40   ;;  %v2455_v48 = vadd.f32 %v9321_v63, %v8226_v42  ;;  %v3223_v49 = vadd.f32 %v9321_v63, %v8418_v44  ;;  %v3710_v57 = vmax.f32 %v3212_v43, 0.0  ;;  %v3518_v60 = vmax.f32 %v2444_v45, 0.0 }
 0x21b   : > { %7839 = vst [vmem:[%s8916_s17 + $0x540] sm:$0xff] %v7565_v41   ;;  %v2446_v51 = vpop.f32.mrf.mxu0  ;;  %v3214_v52 = vpop.f32.mrf.mxu1 }
 0x21c   : > { %v3521_v53 = vmax.f32 %v2455_v48, 0.0  ;;  %v2447_v54 = vadd.f32 %v9321_v63, %v2446_v51  ;;  %v3713_v55 = vmax.f32 %v3223_v49, 0.0  ;;  %v3215_v56 = vadd.f32 %v9321_v63, %v3214_v52 }
 0x21d   : > { %v8229_v58 = vpop.f32.mrf.mxu0  ;;  %v8421_v59 = vpop.f32.mrf.mxu1 }
 0x21e   : > { %v7100_v61 = vpack.c.bf16 %v3521_v53, %v3520_v50  ;;  %v3519_v62 = vmax.f32 %v2447_v54, 0.0  ;;  %v7580_v0 = vpack.c.bf16 %v3713_v55, %v3712_v47  ;;  %v2468_v1 = vadd.f32 %v9321_v63, %v8229_v58 }
 0x21f   : > { %v3711_v2 = vmax.f32 %v3215_v56, 0.0  ;;  %v2459_v3 = vpop.f32.mrf.mxu0  ;;  %v3236_v4 = vadd.f32 %v9321_v63, %v8421_v59  ;;  %v3227_v5 = vpop.f32.mrf.mxu1 }
 0x220   : > { %7746 = vst [vmem:[%s8916_s17 + $0x258] sm:$0xff] %v7100_v61   ;;  %v7095_v6 = vpack.c.bf16 %v3519_v62, %v3518_v60  ;;  %7842 = vst [vmem:[%s8916_s17 + $0x558] sm:$0xff] %v7580_v0   ;;  %v3228_v8 = vadd.f32 %v9321_v63, %v3227_v5  ;;  %v2460_v10 = vadd.f32 %v9321_v63, %v2459_v3  ;;  %v3524_v14 = vmax.f32 %v2468_v1, 0.0 }
 0x221   : > { %v7575_v7 = vpack.c.bf16 %v3711_v2, %v3710_v57  ;;  %v8230_v46 = vpop.f32.mrf.mxu0  ;;  %v8422_v9 = vpop.f32.mrf.mxu1  ;;  %v3716_v11 = vmax.f32 %v3236_v4, 0.0 }
 0x222   : > { %7745 = vst [vmem:[%s8916_s17 + $0x250] sm:$0xff] %v7095_v6   ;;  %v2471_v12 = vadd.f32 %v9321_v63, %v8230_v46  ;;  %v3239_v13 = vadd.f32 %v9321_v63, %v8422_v9  ;;  %v3714_v21 = vmax.f32 %v3228_v8, 0.0  ;;  %v3522_v24 = vmax.f32 %v2460_v10, 0.0 }
 0x223   : > { %7841 = vst [vmem:[%s8916_s17 + $0x550] sm:$0xff] %v7575_v7   ;;  %v2462_v15 = vpop.f32.mrf.mxu0  ;;  %v3230_v16 = vpop.f32.mrf.mxu1 }
 0x224   : > { %v3525_v17 = vmax.f32 %v2471_v12, 0.0  ;;  %v2463_v18 = vadd.f32 %v9321_v63, %v2462_v15  ;;  %v3717_v19 = vmax.f32 %v3239_v13, 0.0  ;;  %v3231_v20 = vadd.f32 %v9321_v63, %v3230_v16 }
 0x225   : > { %v8233_v22 = vpop.f32.mrf.mxu0  ;;  %v8425_v23 = vpop.f32.mrf.mxu1 }
 0x226   : > { %v7110_v25 = vpack.c.bf16 %v3525_v17, %v3524_v14  ;;  %v3523_v26 = vmax.f32 %v2463_v18, 0.0  ;;  %v7590_v27 = vpack.c.bf16 %v3717_v19, %v3716_v11  ;;  %v2484_v28 = vadd.f32 %v9321_v63, %v8233_v22 }
 0x227   : > { %v3715_v29 = vmax.f32 %v3231_v20, 0.0  ;;  %v2475_v30 = vpop.f32.mrf.mxu0  ;;  %v3252_v31 = vadd.f32 %v9321_v63, %v8425_v23  ;;  %v3243_v32 = vpop.f32.mrf.mxu1 }
 0x228   : > { %7748 = vst [vmem:[%s8916_s17 + $0x268] sm:$0xff] %v7110_v25   ;;  %v7105_v33 = vpack.c.bf16 %v3523_v26, %v3522_v24  ;;  %7844 = vst [vmem:[%s8916_s17 + $0x568] sm:$0xff] %v7590_v27   ;;  %v3244_v36 = vadd.f32 %v9321_v63, %v3243_v32  ;;  %v2476_v38 = vadd.f32 %v9321_v63, %v2475_v30  ;;  %v3528_v42 = vmax.f32 %v2484_v28, 0.0 }
 0x229   : > { %v7585_v34 = vpack.c.bf16 %v3715_v29, %v3714_v21  ;;  %v8234_v35 = vpop.f32.mrf.mxu0  ;;  %v8426_v37 = vpop.f32.mrf.mxu1  ;;  %v3720_v39 = vmax.f32 %v3252_v31, 0.0 }
 0x22a   : > { %7747 = vst [vmem:[%s8916_s17 + $0x260] sm:$0xff] %v7105_v33   ;;  %v2487_v40 = vadd.f32 %v9321_v63, %v8234_v35  ;;  %v3255_v41 = vadd.f32 %v9321_v63, %v8426_v37  ;;  %v3718_v50 = vmax.f32 %v3244_v36, 0.0  ;;  %v3526_v53 = vmax.f32 %v2476_v38, 0.0 }
 0x22b   : > { %7843 = vst [vmem:[%s8916_s17 + $0x560] sm:$0xff] %v7585_v34   ;;  %v2478_v43 = vpop.f32.mrf.mxu0  ;;  %v3246_v44 = vpop.f32.mrf.mxu1 }
 0x22c   : > { %v3529_v45 = vmax.f32 %v2487_v40, 0.0  ;;  %v2479_v47 = vadd.f32 %v9321_v63, %v2478_v43  ;;  %v3721_v48 = vmax.f32 %v3255_v41, 0.0  ;;  %v3247_v49 = vadd.f32 %v9321_v63, %v3246_v44 }
 0x22d   : > { %v8237_v51 = vpop.f32.mrf.mxu0  ;;  %v8429_v52 = vpop.f32.mrf.mxu1 }
 0x22e   : > { %v7120_v54 = vpack.c.bf16 %v3529_v45, %v3528_v42  ;;  %v3527_v55 = vmax.f32 %v2479_v47, 0.0  ;;  %v7600_v56 = vpack.c.bf16 %v3721_v48, %v3720_v39  ;;  %v2500_v57 = vadd.f32 %v9321_v63, %v8237_v51 }
 0x22f   : > { %v3719_v58 = vmax.f32 %v3247_v49, 0.0  ;;  %v2491_v59 = vpop.f32.mrf.mxu0  ;;  %v3268_v60 = vadd.f32 %v9321_v63, %v8429_v52  ;;  %v3259_v61 = vpop.f32.mrf.mxu1 }
 0x230   : > { %7750 = vst [vmem:[%s8916_s17 + $0x278] sm:$0xff] %v7120_v54   ;;  %v7115_v62 = vpack.c.bf16 %v3527_v55, %v3526_v53  ;;  %7846 = vst [vmem:[%s8916_s17 + $0x578] sm:$0xff] %v7600_v56   ;;  %v3260_v2 = vadd.f32 %v9321_v63, %v3259_v61  ;;  %v2492_v4 = vadd.f32 %v9321_v63, %v2491_v59  ;;  %v3532_v46 = vmax.f32 %v2500_v57, 0.0 }
 0x231   : > { %v7595_v0 = vpack.c.bf16 %v3719_v58, %v3718_v50  ;;  %v8238_v1 = vpop.f32.mrf.mxu0  ;;  %v8430_v3 = vpop.f32.mrf.mxu1  ;;  %v3724_v5 = vmax.f32 %v3268_v60, 0.0 }
 0x232   : > { %7749 = vst [vmem:[%s8916_s17 + $0x270] sm:$0xff] %v7115_v62   ;;  %v2503_v6 = vadd.f32 %v9321_v63, %v8238_v1  ;;  %v3271_v7 = vadd.f32 %v9321_v63, %v8430_v3  ;;  %v3722_v14 = vmax.f32 %v3260_v2, 0.0  ;;  %v3530_v17 = vmax.f32 %v2492_v4, 0.0 }
 0x233   : > { %7845 = vst [vmem:[%s8916_s17 + $0x570] sm:$0xff] %v7595_v0   ;;  %v2494_v8 = vpop.f32.mrf.mxu0  ;;  %v3262_v9 = vpop.f32.mrf.mxu1 }
 0x234   : > { %v3533_v10 = vmax.f32 %v2503_v6, 0.0  ;;  %v2495_v11 = vadd.f32 %v9321_v63, %v2494_v8  ;;  %v3725_v12 = vmax.f32 %v3271_v7, 0.0  ;;  %v3263_v13 = vadd.f32 %v9321_v63, %v3262_v9  ;;  %v9518_v7 = vld [vmem:[%s9590_s2] ss:$0 sm:$0xff] }
 0x235   : > { %v8241_v15 = vpop.f32.mrf.mxu0  ;;  %v8433_v16 = vpop.f32.mrf.mxu1 }
 0x236   : > { %v7130_v18 = vpack.c.bf16 %v3533_v10, %v3532_v46  ;;  %v3531_v19 = vmax.f32 %v2495_v11, 0.0  ;;  %v7610_v20 = vpack.c.bf16 %v3725_v12, %v3724_v5  ;;  %v2516_v21 = vadd.f32 %v9321_v63, %v8241_v15 }
 0x237   : > { %v3723_v22 = vmax.f32 %v3263_v13, 0.0  ;;  %v2507_v23 = vpop.f32.mrf.mxu0  ;;  %v3284_v24 = vadd.f32 %v9321_v63, %v8433_v16  ;;  %v3275_v25 = vpop.f32.mrf.mxu1 }
 0x238   : > { %7752 = vst [vmem:[%s8916_s17 + $0x288] sm:$0xff] %v7130_v18   ;;  %v7125_v26 = vpack.c.bf16 %v3531_v19, %v3530_v17  ;;  %7848 = vst [vmem:[%s8916_s17 + $0x588] sm:$0xff] %v7610_v20   ;;  %v3276_v29 = vadd.f32 %v9321_v63, %v3275_v25  ;;  %v2508_v31 = vadd.f32 %v9321_v63, %v2507_v23  ;;  %v3536_v35 = vmax.f32 %v2516_v21, 0.0 }
 0x239   : > { %v7605_v27 = vpack.c.bf16 %v3723_v22, %v3722_v14  ;;  %v8242_v28 = vpop.f32.mrf.mxu0  ;;  %v8434_v30 = vpop.f32.mrf.mxu1  ;;  %v3728_v32 = vmax.f32 %v3284_v24, 0.0 }
 0x23a   : > { %7751 = vst [vmem:[%s8916_s17 + $0x280] sm:$0xff] %v7125_v26   ;;  %v2519_v33 = vadd.f32 %v9321_v63, %v8242_v28  ;;  %v3287_v34 = vadd.f32 %v9321_v63, %v8434_v30  ;;  %v3726_v42 = vmax.f32 %v3276_v29, 0.0  ;;  %v3534_v45 = vmax.f32 %v2508_v31, 0.0 }
 0x23b   : > { %7847 = vst [vmem:[%s8916_s17 + $0x580] sm:$0xff] %v7605_v27   ;;  %v2510_v36 = vpop.f32.mrf.mxu0  ;;  %v3278_v37 = vpop.f32.mrf.mxu1 }
 0x23c   : > { %v3537_v38 = vmax.f32 %v2519_v33, 0.0  ;;  %v2511_v39 = vadd.f32 %v9321_v63, %v2510_v36  ;;  %v3729_v40 = vmax.f32 %v3287_v34, 0.0  ;;  %v3279_v41 = vadd.f32 %v9321_v63, %v3278_v37 }
 0x23d   : > { %v8245_v43 = vpop.f32.mrf.mxu0  ;;  %v8437_v44 = vpop.f32.mrf.mxu1 }
 0x23e   : > { %v7140_v47 = vpack.c.bf16 %v3537_v38, %v3536_v35  ;;  %v3535_v48 = vmax.f32 %v2511_v39, 0.0  ;;  %v7620_v49 = vpack.c.bf16 %v3729_v40, %v3728_v32  ;;  %v2532_v50 = vadd.f32 %v9321_v63, %v8245_v43 }
 0x23f   : > { %v3727_v51 = vmax.f32 %v3279_v41, 0.0  ;;  %v2523_v52 = vpop.f32.mrf.mxu0  ;;  %v3300_v53 = vadd.f32 %v9321_v63, %v8437_v44  ;;  %v3291_v54 = vpop.f32.mrf.mxu1 }
 0x240   : > { %7754 = vst [vmem:[%s8916_s17 + $0x298] sm:$0xff] %v7140_v47   ;;  %v7135_v55 = vpack.c.bf16 %v3535_v48, %v3534_v45  ;;  %7850 = vst [vmem:[%s8916_s17 + $0x598] sm:$0xff] %v7620_v49   ;;  %v3292_v58 = vadd.f32 %v9321_v63, %v3291_v54  ;;  %v2524_v60 = vadd.f32 %v9321_v63, %v2523_v52  ;;  %v3540_v1 = vmax.f32 %v2532_v50, 0.0 }
 0x241   : > { %v7615_v56 = vpack.c.bf16 %v3727_v51, %v3726_v42  ;;  %v8246_v57 = vpop.f32.mrf.mxu0  ;;  %v8438_v59 = vpop.f32.mrf.mxu1  ;;  %v3732_v61 = vmax.f32 %v3300_v53, 0.0 }
 0x242   : > { %7753 = vst [vmem:[%s8916_s17 + $0x290] sm:$0xff] %v7135_v55   ;;  %v2535_v62 = vadd.f32 %v9321_v63, %v8246_v57  ;;  %v3303_v0 = vadd.f32 %v9321_v63, %v8438_v59  ;;  %v3730_v8 = vmax.f32 %v3292_v58, 0.0  ;;  %v3538_v11 = vmax.f32 %v2524_v60, 0.0 }
 0x243   : > { %7849 = vst [vmem:[%s8916_s17 + $0x590] sm:$0xff] %v7615_v56   ;;  %v2526_v2 = vpop.f32.mrf.mxu0  ;;  %v3294_v3 = vpop.f32.mrf.mxu1 }
 0x244   : > { %v3541_v4 = vmax.f32 %v2535_v62, 0.0  ;;  %v2527_v5 = vadd.f32 %v9321_v63, %v2526_v2  ;;  %v3733_v6 = vmax.f32 %v3303_v0, 0.0  ;;  %v3295_v46 = vadd.f32 %v9518_v7, %v3294_v3 }
 0x245   : > { %v8249_v9 = vpop.f32.mrf.mxu0  ;;  %v8441_v10 = vpop.f32.mrf.mxu1 }
 0x246   : > { %v7150_v12 = vpack.c.bf16 %v3541_v4, %v3540_v1  ;;  %v3539_v13 = vmax.f32 %v2527_v5, 0.0  ;;  %v7630_v14 = vpack.c.bf16 %v3733_v6, %v3732_v61  ;;  %v2548_v63 = vadd.f32 %v9518_v7, %v8249_v9 }
 0x247   : > { %v3731_v15 = vmax.f32 %v3295_v46, 0.0  ;;  %v2539_v16 = vpop.f32.mrf.mxu0  ;;  %v3316_v17 = vadd.f32 %v9518_v7, %v8441_v10  ;;  %v3307_v18 = vpop.f32.mrf.mxu1 }
 0x248   : > { %7756 = vst [vmem:[%s8916_s17 + $0x2a8] sm:$0xff] %v7150_v12   ;;  %v7145_v19 = vpack.c.bf16 %v3539_v13, %v3538_v11  ;;  %7852 = vst [vmem:[%s8916_s17 + $0x5a8] sm:$0xff] %v7630_v14   ;;  %v3308_v22 = vadd.f32 %v9518_v7, %v3307_v18  ;;  %v2540_v24 = vadd.f32 %v9518_v7, %v2539_v16  ;;  %v3544_v28 = vmax.f32 %v2548_v63, 0.0 }
 0x249   : > { %v7625_v20 = vpack.c.bf16 %v3731_v15, %v3730_v8  ;;  %v8250_v21 = vpop.f32.mrf.mxu0  ;;  %v8442_v23 = vpop.f32.mrf.mxu1  ;;  %v3736_v25 = vmax.f32 %v3316_v17, 0.0 }
 0x24a   : > { %7755 = vst [vmem:[%s8916_s17 + $0x2a0] sm:$0xff] %v7145_v19   ;;  %v2551_v26 = vadd.f32 %v9518_v7, %v8250_v21  ;;  %v3319_v27 = vadd.f32 %v9518_v7, %v8442_v23  ;;  %v3734_v35 = vmax.f32 %v3308_v22, 0.0  ;;  %v3542_v38 = vmax.f32 %v2540_v24, 0.0 }
 0x24b   : > { %7851 = vst [vmem:[%s8916_s17 + $0x5a0] sm:$0xff] %v7625_v20   ;;  %v2542_v29 = vpop.f32.mrf.mxu0  ;;  %v3310_v30 = vpop.f32.mrf.mxu1 }
 0x24c   : > { %v3545_v31 = vmax.f32 %v2551_v26, 0.0  ;;  %v2543_v32 = vadd.f32 %v9518_v7, %v2542_v29  ;;  %v3737_v33 = vmax.f32 %v3319_v27, 0.0  ;;  %v3311_v34 = vadd.f32 %v9518_v7, %v3310_v30 }
 0x24d   : > { %v8253_v36 = vpop.f32.mrf.mxu0  ;;  %v8445_v37 = vpop.f32.mrf.mxu1 }
 0x24e   : > { %v7160_v39 = vpack.c.bf16 %v3545_v31, %v3544_v28  ;;  %v3543_v40 = vmax.f32 %v2543_v32, 0.0  ;;  %v7640_v41 = vpack.c.bf16 %v3737_v33, %v3736_v25  ;;  %v2564_v42 = vadd.f32 %v9518_v7, %v8253_v36 }
 0x24f   : > { %v3735_v43 = vmax.f32 %v3311_v34, 0.0  ;;  %v2555_v44 = vpop.f32.mrf.mxu0  ;;  %v3332_v45 = vadd.f32 %v9518_v7, %v8445_v37  ;;  %v3323_v47 = vpop.f32.mrf.mxu1 }
 0x250   : > { %7758 = vst [vmem:[%s8916_s17 + $0x2b8] sm:$0xff] %v7160_v39   ;;  %v7155_v48 = vpack.c.bf16 %v3543_v40, %v3542_v38  ;;  %7854 = vst [vmem:[%s8916_s17 + $0x5b8] sm:$0xff] %v7640_v41   ;;  %v3324_v51 = vadd.f32 %v9518_v7, %v3323_v47  ;;  %v2556_v53 = vadd.f32 %v9518_v7, %v2555_v44  ;;  %v3548_v57 = vmax.f32 %v2564_v42, 0.0 }
 0x251   : > { %v7635_v49 = vpack.c.bf16 %v3735_v43, %v3734_v35  ;;  %v8254_v50 = vpop.f32.mrf.mxu0  ;;  %v8446_v52 = vpop.f32.mrf.mxu1  ;;  %v3740_v54 = vmax.f32 %v3332_v45, 0.0 }
 0x252   : > { %7757 = vst [vmem:[%s8916_s17 + $0x2b0] sm:$0xff] %v7155_v48   ;;  %v2567_v55 = vadd.f32 %v9518_v7, %v8254_v50  ;;  %v3335_v56 = vadd.f32 %v9518_v7, %v8446_v52  ;;  %v3738_v1 = vmax.f32 %v3324_v51, 0.0  ;;  %v3546_v4 = vmax.f32 %v2556_v53, 0.0 }
 0x253   : > { %7853 = vst [vmem:[%s8916_s17 + $0x5b0] sm:$0xff] %v7635_v49   ;;  %v2558_v58 = vpop.f32.mrf.mxu0  ;;  %v3326_v59 = vpop.f32.mrf.mxu1 }
 0x254   : > { %v3549_v60 = vmax.f32 %v2567_v55, 0.0  ;;  %v2559_v61 = vadd.f32 %v9518_v7, %v2558_v58  ;;  %v3741_v62 = vmax.f32 %v3335_v56, 0.0  ;;  %v3327_v0 = vadd.f32 %v9518_v7, %v3326_v59 }
 0x255   : > { %v8257_v2 = vpop.f32.mrf.mxu0  ;;  %v8449_v3 = vpop.f32.mrf.mxu1 }
 0x256   : > { %v7170_v5 = vpack.c.bf16 %v3549_v60, %v3548_v57  ;;  %v3547_v6 = vmax.f32 %v2559_v61, 0.0  ;;  %v7650_v46 = vpack.c.bf16 %v3741_v62, %v3740_v54  ;;  %v2580_v8 = vadd.f32 %v9518_v7, %v8257_v2 }
 0x257   : > { %v3739_v9 = vmax.f32 %v3327_v0, 0.0  ;;  %v2571_v10 = vpop.f32.mrf.mxu0  ;;  %v3348_v11 = vadd.f32 %v9518_v7, %v8449_v3  ;;  %v3339_v12 = vpop.f32.mrf.mxu1 }
 0x258   : > { %7760 = vst [vmem:[%s8916_s17 + $0x2c8] sm:$0xff] %v7170_v5   ;;  %v7165_v13 = vpack.c.bf16 %v3547_v6, %v3546_v4  ;;  %7856 = vst [vmem:[%s8916_s17 + $0x5c8] sm:$0xff] %v7650_v46   ;;  %v3340_v15 = vadd.f32 %v9518_v7, %v3339_v12  ;;  %v2572_v17 = vadd.f32 %v9518_v7, %v2571_v10  ;;  %v3552_v21 = vmax.f32 %v2580_v8, 0.0 }
 0x259   : > { %v7645_v14 = vpack.c.bf16 %v3739_v9, %v3738_v1  ;;  %v8258_v63 = vpop.f32.mrf.mxu0  ;;  %v8450_v16 = vpop.f32.mrf.mxu1  ;;  %v3744_v18 = vmax.f32 %v3348_v11, 0.0 }
 0x25a   : > { %7759 = vst [vmem:[%s8916_s17 + $0x2c0] sm:$0xff] %v7165_v13   ;;  %v2583_v19 = vadd.f32 %v9518_v7, %v8258_v63  ;;  %v3351_v20 = vadd.f32 %v9518_v7, %v8450_v16  ;;  %v3742_v28 = vmax.f32 %v3340_v15, 0.0  ;;  %v3550_v31 = vmax.f32 %v2572_v17, 0.0 }
 0x25b   : > { %7855 = vst [vmem:[%s8916_s17 + $0x5c0] sm:$0xff] %v7645_v14   ;;  %v2574_v22 = vpop.f32.mrf.mxu0  ;;  %v3342_v23 = vpop.f32.mrf.mxu1 }
 0x25c   : > { %v3553_v24 = vmax.f32 %v2583_v19, 0.0  ;;  %v2575_v25 = vadd.f32 %v9518_v7, %v2574_v22  ;;  %v3745_v26 = vmax.f32 %v3351_v20, 0.0  ;;  %v3343_v27 = vadd.f32 %v9518_v7, %v3342_v23 }
 0x25d   : > { %v8261_v29 = vpop.f32.mrf.mxu0  ;;  %v8453_v30 = vpop.f32.mrf.mxu1 }
 0x25e   : > { %v7180_v32 = vpack.c.bf16 %v3553_v24, %v3552_v21  ;;  %v3551_v33 = vmax.f32 %v2575_v25, 0.0  ;;  %v7660_v34 = vpack.c.bf16 %v3745_v26, %v3744_v18  ;;  %v2596_v35 = vadd.f32 %v9518_v7, %v8261_v29 }
 0x25f   : > { %v3743_v36 = vmax.f32 %v3343_v27, 0.0  ;;  %v2587_v37 = vpop.f32.mrf.mxu0  ;;  %v3364_v38 = vadd.f32 %v9518_v7, %v8453_v30  ;;  %v3355_v39 = vpop.f32.mrf.mxu1 }
 0x260   : > { %7762 = vst [vmem:[%s8916_s17 + $0x2d8] sm:$0xff] %v7180_v32   ;;  %v7175_v40 = vpack.c.bf16 %v3551_v33, %v3550_v31  ;;  %7858 = vst [vmem:[%s8916_s17 + $0x5d8] sm:$0xff] %v7660_v34   ;;  %v3356_v43 = vadd.f32 %v9518_v7, %v3355_v39  ;;  %v2588_v45 = vadd.f32 %v9518_v7, %v2587_v37  ;;  %v3556_v50 = vmax.f32 %v2596_v35, 0.0 }
 0x261   : > { %v7655_v41 = vpack.c.bf16 %v3743_v36, %v3742_v28  ;;  %v8262_v42 = vpop.f32.mrf.mxu0  ;;  %v8454_v44 = vpop.f32.mrf.mxu1  ;;  %v3748_v47 = vmax.f32 %v3364_v38, 0.0 }
 0x262   : > { %7761 = vst [vmem:[%s8916_s17 + $0x2d0] sm:$0xff] %v7175_v40   ;;  %v2599_v48 = vadd.f32 %v9518_v7, %v8262_v42  ;;  %v3367_v49 = vadd.f32 %v9518_v7, %v8454_v44  ;;  %v3746_v57 = vmax.f32 %v3356_v43, 0.0  ;;  %v3554_v59 = vmax.f32 %v2588_v45, 0.0 }
 0x263   : > { %7857 = vst [vmem:[%s8916_s17 + $0x5d0] sm:$0xff] %v7655_v41   ;;  %v2590_v51 = vpop.f32.mrf.mxu0  ;;  %v3358_v52 = vpop.f32.mrf.mxu1 }
 0x264   : > { %v3557_v53 = vmax.f32 %v2599_v48, 0.0  ;;  %v2591_v54 = vadd.f32 %v9518_v7, %v2590_v51  ;;  %v3749_v55 = vmax.f32 %v3367_v49, 0.0  ;;  %v3359_v56 = vadd.f32 %v9518_v7, %v3358_v52 }
 0x265   : > { %v8265_v58 = vpop.f32.mrf.mxu0 }
 0x266   : > { %v7190_v60 = vpack.c.bf16 %v3557_v53, %v3556_v50  ;;  %v3555_v61 = vmax.f32 %v2591_v54, 0.0  ;;  %v7670_v62 = vpack.c.bf16 %v3749_v55, %v3748_v47  ;;  %v3747_v0 = vmax.f32 %v3359_v56, 0.0 }
 0x267   : > { %v2603_v1 = vpop.f32.mrf.mxu0  ;;  %v2612_v3 = vadd.f32 %v9518_v7, %v8265_v58 }
 0x268   : > { %7764 = vst [vmem:[%s8916_s17 + $0x2e8] sm:$0xff] %v7190_v60   ;;  %v7185_v2 = vpack.c.bf16 %v3555_v61, %v3554_v59  ;;  %7860 = vst [vmem:[%s8916_s17 + $0x5e8] sm:$0xff] %v7670_v62   ;;  %v7665_v4 = vpack.c.bf16 %v3747_v0, %v3746_v57  ;;  %v2604_v6 = vadd.f32 %v9518_v7, %v2603_v1 }
 0x269   : > { %v8266_v5 = vpop.f32.mrf.mxu0  ;;  %v3560_v9 = vmax.f32 %v2612_v3, 0.0 }
 0x26a   : > { %7763 = vst [vmem:[%s8916_s17 + $0x2e0] sm:$0xff] %v7185_v2   ;;  %v2615_v46 = vadd.f32 %v9518_v7, %v8266_v5  ;;  %7859 = vst [vmem:[%s8916_s17 + $0x5e0] sm:$0xff] %v7665_v4   ;;  %v3558_v12 = vmax.f32 %v2604_v6, 0.0 }
 0x26b   : > { %v2606_v8 = vpop.f32.mrf.mxu0 }
 0x26c   : > { %v3561_v10 = vmax.f32 %v2615_v46, 0.0  ;;  %v2607_v11 = vadd.f32 %v9518_v7, %v2606_v8 }
 0x26e   : > { %v7200_v13 = vpack.c.bf16 %v3561_v10, %v3560_v9  ;;  %v3559_v14 = vmax.f32 %v2607_v11, 0.0 }
 0x270   : > { %7766 = vst [vmem:[%s8916_s17 + $0x2f8] sm:$0xff] %v7200_v13   ;;  %v7195_v63 = vpack.c.bf16 %v3559_v14, %v3558_v12 }
 0x272   : > { %7765 = vst [vmem:[%s8916_s17 + $0x2f0] sm:$0xff] %v7195_v63  }
 0x273 PF: > { %s13_s14 = sadd.s32 1, %s8718_s14   ;;  %s9592_s12 = smov %s8714_s13 }
 0x274   : > { %p10_p5 = scmp.ge.s32.totalorder %s13_s14, 4   ;;  %s9593_s13 = smov %s9595_s15 }
 0x276   :  { %12 = sbr.rel (!%p10_p5) target bundleno = 2 (0x2), region = 68 }

// kernel: cnn_model_forward.5
= control target key start
LH: loop header
LB: loop body
LE: loop exit
PB: predicated region body
PF: predicated region fallthrough
CT: control target
= control target key end

     0   :  { %s4853_s12 = smov 0   ;;  %s4855_s13 = smov 0   ;;  %s5891_s0 = inlined_call_operand.vmem [shape: bf16[1328,640], index: 0, kind: input, shape index: {}]   ;;  %s5892_s1 = inlined_call_operand.vmem [shape: bf16[640,128], index: 1, kind: input, shape index: {}]   ;;  %s5893_s2 = inlined_call_operand.vmem [shape: f32[1,128], index: 2, kind: input, shape index: {}]   ;;  %s5894_s3 = inlined_call_operand.vmem [shape: bf16[1328,128], index: 3, kind: output, shape index: {}]  }
   0x1   :  { %s4857_s14 = smov 0  }
   0x2 LB: > { %s25_s15 = sadd.s32 1, %s4826_s13  ;;  %p3600_p0 = scmp.ge.s32.totalorder %s4830_s14, 1  ;;  %s4830_s14 = sphi %s4857_s14, %s13_s14   ;;  %s4826_s13 = sphi %s4855_s13, %s5966_s13   ;;  %s4822_s12 = sphi %s4853_s12, %s5965_s12  }
   0x3   : > { %p27_p1 = scmp.ge.s32.totalorder %s25_s15, 2  ;;  %p170_p2 = scmp.lt.s32.totalorder %s4830_s14, 3 }
   0x5   : > { %s5968_s15 = smov (%p27_p1, %s25_s15), 0  ;;  %p171_p3 = pnand %p3600_p0, %p170_p2 }
   0x7   : > { %174 = sbr.rel (%p171_p3) target bundleno = 699 (0x2bb), region = 32 }
   0xc   : > { %v4475_v0 = vld [vmem:[%s5892_s1 + $0x38] sm:$0xff]   ;;  %v4832_v1 = vmov 0   ;;  %s205_s18 = smul.u32 83, %s4822_s12  ;;  %v4476_v2 = vld [vmem:[%s5892_s1 + $0x30] sm:$0xff]   ;;  %v4477_v3 = vld [vmem:[%s5892_s1 + $0x28] sm:$0xff]  }
   0xd   : > { %1889 = vmatprep.subr.bf16.mxu0 %v4832_v1  ;;  %4417 = vmatprep.subr.bf16.mxu1 %v4832_v1  ;;  %v4478_v4 = vld [vmem:[%s5892_s1 + $0x20] sm:$0xff]   ;;  %v4479_v5 = vld [vmem:[%s5892_s1 + $0x18] sm:$0xff]   ;;  %v4480_v7 = vld [vmem:[%s5892_s1 + $0x10] sm:$0xff]  }
   0xe   : > { %1890 = vmatpush1.bf16.msra.mxu0 %v4475_v0  ;;  %4433 = vmatpush1.bf16.msra.mxu1 %v4475_v0  ;;  %p206_p4 = scmp.lt.s32.totalorder %s205_s18, 165  ;;  %v4481_v9 = vld [vmem:[%s5892_s1 + $0x8] sm:$0xff]   ;;  %v4482_v10 = vld [vmem:[%s5892_s1] sm:$0xff]   ;;  %v4483_v11 = vld [vmem:[%s5892_s1 + $0x78] sm:$0xff]  }
   0xf   : > { %1891 = vmatprep.subr.bf16.mxu0 %v4832_v1  ;;  %4418 = vmatprep.subr.bf16.mxu1 %v4832_v1  ;;  %v4484_v12 = vld [vmem:[%s5892_s1 + $0x70] sm:$0xff]   ;;  %v4485_v13 = vld [vmem:[%s5892_s1 + $0x68] sm:$0xff]   ;;  %v4486_v14 = vld [vmem:[%s5892_s1 + $0x60] sm:$0xff]  }
  0x10   : > { %s5970_s18 = smov (!%p206_p4, %s205_s18), 165  ;;  %v4487_v15 = vld [vmem:[%s5892_s1 + $0x58] sm:$0xff]   ;;  %v4488_v16 = vld [vmem:[%s5892_s1 + $0x50] sm:$0xff]   ;;  %v4489_v17 = vld [vmem:[%s5892_s1 + $0x48] sm:$0xff]  }
  0x11   : > { %s4449_s25 = smul.u32 20, %s5970_s18  ;;  %v4490_v18 = vld [vmem:[%s5892_s1 + $0x40] sm:$0xff]   ;;  %v4497_v19 = vld [vmem:[%s5892_s1 + $0x138] sm:$0xff]   ;;  %v4526_v25 = vld [vmem:[%s5892_s1 + $0x130] sm:$0xff]  }
  0x12   : > { %1892 = vmatpush1.bf16.msra.mxu0 %v4476_v2  ;;  %4434 = vmatpush1.bf16.msra.mxu1 %v4476_v2  ;;  %v4504_v24 = vld [vmem:[%s5892_s1 + $0xb8] sm:$0xff]   ;;  %v4511_v26 = vld [vmem:[%s5892_s1 + $0xb0] sm:$0xff]   ;;  %v4559_v27 = vld [vmem:[%s5892_s1 + $0x128] sm:$0xff]  }
  0x13   : > { %1893 = vmatprep.subr.bf16.mxu0 %v4832_v1  ;;  %4419 = vmatprep.subr.bf16.mxu1 %v4832_v1  ;;  %s4900_s30 = scalar_lea.vmem %s5891_s0, %s4449_s25  ;;  %v4516_v32 = vld [vmem:[%s5892_s1 + $0xa8] sm:$0xff]   ;;  %v4587_v33 = vld [vmem:[%s5892_s1 + $0x120] sm:$0xff]   ;;  %v4527_v39 = vld [vmem:[%s5892_s1 + $0x98] sm:$0xff]  }
  0x14   : > { %v4493_v6 = vld [vmem:[%s4900_s30 + $0x4] ss:$20 sps:$4 sm:$0xff]   ;;  %v4491_v20 = vld [vmem:[%s4900_s30] ss:$20 sps:$4 sm:$0xff]   ;;  %v4502_v28 = vld [vmem:[%s4900_s30 + $0x28] ss:$20 sps:$4 sm:$0xff]  }
  0x15   : > { %v4496_v8 = vld [vmem:[%s4900_s30 + $0x504] ss:$20 sps:$4 sm:$0xff]   ;;  %1921 = vmatprep.mubr.bf16.mxu0 %v4493_v6  ;;  %v4494_v21 = vld [vmem:[%s4900_s30 + $0x500] ss:$20 sps:$4 sm:$0xff]   ;;  %v4503_v29 = vld [vmem:[%s4900_s30 + $0x528] ss:$20 sps:$4 sm:$0xff]  }
  0x16   : > { %1894 = vmatpush1.bf16.msra.mxu0 %v4477_v3  ;;  %4435 = vmatpush1.bf16.msra.mxu1 %v4477_v3  ;;  %v4498_v22 = vld [vmem:[%s4900_s30 + $0x2c] ss:$20 sps:$4 sm:$0xff]   ;;  %v4505_v30 = vld [vmem:[%s4900_s30 + $0x54] ss:$20 sps:$4 sm:$0xff]   ;;  %v4509_v35 = vld [vmem:[%s4900_s30 + $0x50] ss:$20 sps:$4 sm:$0xff]  }
  0x17   : > { %1895 = vmatprep.subr.bf16.mxu0 %v4832_v1  ;;  %4420 = vmatprep.subr.bf16.mxu1 %v4832_v1  ;;  %v4500_v23 = vld [vmem:[%s4900_s30 + $0x52c] ss:$20 sps:$4 sm:$0xff]   ;;  %v4507_v31 = vld [vmem:[%s4900_s30 + $0x554] ss:$20 sps:$4 sm:$0xff]   ;;  %v4510_v36 = vld [vmem:[%s4900_s30 + $0x550] ss:$20 sps:$4 sm:$0xff]  }
  0x18   : > { %2177 = vmatprep.mubr.bf16.mxu1 %v4496_v8  ;;  %v4519_v34 = vld [vmem:[%s5892_s1 + $0xa0] sm:$0xff]   ;;  %v4512_v37 = vld [vmem:[%s4900_s30 + $0x7c] ss:$20 sps:$4 sm:$0xff]   ;;  %v4517_v42 = vld [vmem:[%s4900_s30 + $0x78] ss:$20 sps:$4 sm:$0xff]  }
  0x19   : > { %v4514_v38 = vld [vmem:[%s4900_s30 + $0x57c] ss:$20 sps:$4 sm:$0xff]   ;;  %v4518_v43 = vld [vmem:[%s4900_s30 + $0x578] ss:$20 sps:$4 sm:$0xff]   ;;  %v4524_v47 = vld [vmem:[%s4900_s30 + $0xa0] ss:$20 sps:$4 sm:$0xff]  }
  0x1a   : > { %1896 = vmatpush1.bf16.msra.mxu0 %v4478_v4  ;;  %4436 = vmatpush1.bf16.msra.mxu1 %v4478_v4  ;;  %v4612_v40 = vld [vmem:[%s5892_s1 + $0x118] sm:$0xff]   ;;  %v4528_v41 = vld [vmem:[%s5892_s1 + $0x90] sm:$0xff]   ;;  %v4535_v46 = vld [vmem:[%s5892_s1 + $0x88] sm:$0xff]  }
  0x1b   : > { %1897 = vmatprep.subr.bf16.mxu0 %v4832_v1  ;;  %4421 = vmatprep.subr.bf16.mxu1 %v4832_v1  ;;  %v4520_v44 = vld [vmem:[%s4900_s30 + $0xa4] ss:$20 sps:$4 sm:$0xff]   ;;  %v4525_v48 = vld [vmem:[%s4900_s30 + $0x5a0] ss:$20 sps:$4 sm:$0xff]   ;;  %v4533_v55 = vld [vmem:[%s4900_s30 + $0xc8] ss:$20 sps:$4 sm:$0xff]  }
  0x1c   : > { %v4522_v45 = vld [vmem:[%s4900_s30 + $0x5a4] ss:$20 sps:$4 sm:$0xff]   ;;  %v4529_v50 = vld [vmem:[%s4900_s30 + $0xcc] ss:$20 sps:$4 sm:$0xff]   ;;  %v4637_v53 = vld [vmem:[%s5892_s1 + $0x110] sm:$0xff]  }
  0x1d   : > { %v4536_v49 = vld [vmem:[%s5892_s1 + $0x80] sm:$0xff]   ;;  %v4543_v52 = vld [vmem:[%s5892_s1 + $0xf8] sm:$0xff]   ;;  %v4544_v54 = vld [vmem:[%s5892_s1 + $0xf0] sm:$0xff]  }
  0x1e   : > { %1898 = vmatpush1.bf16.msra.mxu0 %v4479_v5  ;;  %4437 = vmatpush1.bf16.msra.mxu1 %v4479_v5  ;;  %v4531_v51 = vld [vmem:[%s4900_s30 + $0x5cc] ss:$20 sps:$4 sm:$0xff]   ;;  %v4534_v56 = vld [vmem:[%s4900_s30 + $0x5c8] ss:$20 sps:$4 sm:$0xff]   ;;  %v4541_v61 = vld [vmem:[%s4900_s30 + $0xf0] ss:$20 sps:$4 sm:$0xff]  }
  0x1f   : > { %1899 = vmatprep.subr.bf16.mxu0 %v4832_v1  ;;  %4422 = vmatprep.subr.bf16.mxu1 %v4832_v1  ;;  %v4537_v57 = vld [vmem:[%s4900_s30 + $0xf4] ss:$20 sps:$4 sm:$0xff]   ;;  %v4552_v60 = vld [vmem:[%s5892_s1 + $0xe0] sm:$0xff]   ;;  %v4545_v63 = vld [vmem:[%s4900_s30 + $0x11c] ss:$20 sps:$4 sm:$0xff]  }
  0x20   : > { %v4539_v58 = vld [vmem:[%s4900_s30 + $0x5f4] ss:$20 sps:$4 sm:$0xff]   ;;  %v4542_v62 = vld [vmem:[%s4900_s30 + $0x5f0] ss:$20 sps:$4 sm:$0xff]   ;;  %v4560_v2 = vld [vmem:[%s5892_s1 + $0xd8] sm:$0xff]  }
  0x21   : > { %v4551_v59 = vld [vmem:[%s5892_s1 + $0xe8] sm:$0xff]   ;;  %v4547_v0 = vld [vmem:[%s4900_s30 + $0x61c] ss:$20 sps:$4 sm:$0xff]   ;;  %v4553_v6 = vld [vmem:[%s4900_s30 + $0x144] ss:$20 sps:$4 sm:$0xff]  }
  0x22   : > { %1900 = vmatpush1.bf16.msra.mxu0 %v4480_v7  ;;  %4438 = vmatpush1.bf16.msra.mxu1 %v4480_v7  ;;  %v4561_v3 = vld [vmem:[%s5892_s1 + $0xd0] sm:$0xff]   ;;  %v4549_v4 = vld [vmem:[%s4900_s30 + $0x118] ss:$20 sps:$4 sm:$0xff]  }
  0x23   : > { %1901 = vmatprep.subr.bf16.mxu0 %v4832_v1  ;;  %4423 = vmatprep.subr.bf16.mxu1 %v4832_v1  ;;  %v4550_v5 = vld [vmem:[%s4900_s30 + $0x618] ss:$20 sps:$4 sm:$0xff]  }
  0x24   : > { %v4555_v7 = vld [vmem:[%s4900_s30 + $0x644] ss:$20 sps:$4 sm:$0xff]   ;;  %v4567_v8 = vld [vmem:[%s5892_s1 + $0xc8] sm:$0xff]  }
  0x26   : > { %1902 = vmatpush1.bf16.msra.mxu0 %v4481_v9  ;;  %4439 = vmatpush1.bf16.msra.mxu1 %v4481_v9  ;;  %v475_v9 = vld [vmem:[%s4900_s30 + $0x668] sm:$0xff] }
  0x27   : > { %1903 = vmatprep.subr.bf16.mxu0 %v4832_v1  ;;  %4424 = vmatprep.subr.bf16.mxu1 %v4832_v1 }
  0x2a   : > { %1904 = vmatpush1.bf16.msra.mxu0 %v4482_v10  ;;  %4440 = vmatpush1.bf16.msra.mxu1 %v4482_v10  ;;  %v4568_v10 = vld [vmem:[%s5892_s1 + $0xc0] sm:$0xff]  }
  0x2b   : > { %1905 = vmatprep.subr.bf16.mxu0 %v4832_v1  ;;  %4425 = vmatprep.subr.bf16.mxu1 %v4832_v1 }
  0x2e   : > { %1906 = vmatpush2.bf16.msra.mxu0 %v4483_v11  ;;  %4441 = vmatpush2.bf16.msra.mxu1 %v4483_v11  ;;  %v4557_v11 = vld [vmem:[%s4900_s30 + $0x140] ss:$20 sps:$4 sm:$0xff]  }
  0x2f   : > { %1907 = vmatprep.subr.bf16.mxu0 %v4832_v1  ;;  %4426 = vmatprep.subr.bf16.mxu1 %v4832_v1 }
  0x32   : > { %1908 = vmatpush2.bf16.msra.mxu0 %v4484_v12  ;;  %4442 = vmatpush2.bf16.msra.mxu1 %v4484_v12  ;;  %v4558_v12 = vld [vmem:[%s4900_s30 + $0x640] ss:$20 sps:$4 sm:$0xff]  }
  0x33   : > { %1909 = vmatprep.subr.bf16.mxu0 %v4832_v1  ;;  %4427 = vmatprep.subr.bf16.mxu1 %v4832_v1 }
  0x36   : > { %1910 = vmatpush2.bf16.msra.mxu0 %v4485_v13  ;;  %4443 = vmatpush2.bf16.msra.mxu1 %v4485_v13  ;;  %v4562_v13 = vld [vmem:[%s4900_s30 + $0x16c] ss:$20 sps:$4 sm:$0xff]  }
  0x37   : > { %1911 = vmatprep.subr.bf16.mxu0 %v4832_v1  ;;  %4428 = vmatprep.subr.bf16.mxu1 %v4832_v1 }
  0x3a   : > { %1912 = vmatpush2.bf16.msra.mxu0 %v4486_v14  ;;  %4444 = vmatpush2.bf16.msra.mxu1 %v4486_v14  ;;  %v3810_v14 = vcombine.high %v475_v9, %v475_v9 }
  0x3b   : > { %1913 = vmatprep.subr.bf16.mxu0 %v4832_v1  ;;  %4429 = vmatprep.subr.bf16.mxu1 %v4832_v1 }
  0x3e   : > { %1914 = vmatpush2.bf16.msra.mxu0 %v4487_v15  ;;  %4445 = vmatpush2.bf16.msra.mxu1 %v4487_v15  ;;  %v4662_v15 = vld [vmem:[%s5892_s1 + $0x108] sm:$0xff]  }
  0x3f   : > { %1915 = vmatprep.subr.bf16.mxu0 %v4832_v1  ;;  %4430 = vmatprep.subr.bf16.mxu1 %v4832_v1 }
  0x42   : > { %1916 = vmatpush2.bf16.msra.mxu0 %v4488_v16  ;;  %4446 = vmatpush2.bf16.msra.mxu1 %v4488_v16  ;;  %v4565_v16 = vld [vmem:[%s4900_s30 + $0x168] ss:$20 sps:$4 sm:$0xff]  }
  0x43   : > { %1917 = vmatprep.subr.bf16.mxu0 %v4832_v1  ;;  %4431 = vmatprep.subr.bf16.mxu1 %v4832_v1 }
  0x46   : > { %1918 = vmatpush2.bf16.msra.mxu0 %v4489_v17  ;;  %4447 = vmatpush2.bf16.msra.mxu1 %v4489_v17  ;;  %v3809_v17 = vcombine.low %v475_v9, %v475_v9  ;;  %v4654_v9 = vld [vmem:[%s4900_s30 + $0x398] ss:$20 sps:$4 sm:$0xff]  }
  0x47   : > { %1919 = vmatprep.subr.bf16.mxu0 %v4832_v1  ;;  %4432 = vmatprep.subr.bf16.mxu1 %v4832_v1 }
  0x4a   : > { %1920 = vmatpush2.bf16.msra.mxu0 %v4490_v18  ;;  %4448 = vmatpush2.bf16.msra.mxu1 %v4490_v18  ;;  %v4573_v18 = vld [vmem:[%s4900_s30 + $0xc] ss:$20 sps:$4 sm:$0xff]  }
  0x4b   : > { %4317 = vmatprep.subr.bf16.mxu0 %v4497_v19  ;;  %2257 = vmatprep.subr.bf16.mxu1 %v4832_v1 }
  0x4d   : > { %1922 = vmatmul.mubr.bf16.vlgmr.msra.gmra.mxu0 %v4491_v20  ;;  %2178 = vmatmul.mubr.bf16.vlgmr.msra.gmra.mxu1 %v4494_v21  ;;  %v4574_v20 = vld [vmem:[%s4900_s30 + $0x190] ss:$20 sps:$4 sm:$0xff]  }
  0x4e   : > { %4318 = vmatpush3.bf16.msra.mxu0 %v4497_v19  ;;  %1929 = vmatprep.mubr.bf16.mxu0 %v4498_v22  ;;  %v4571_v19 = vld [vmem:[%s4900_s30 + $0x8] ss:$20 sps:$4 sm:$0xff]  }
  0x4f   : > { %2185 = vmatprep.mubr.bf16.mxu1 %v4500_v23  ;;  %2258 = vmatpush1.bf16.msra.mxu1 %v4504_v24  ;;  %v4575_v21 = vld [vmem:[%s4900_s30 + $0x1bc] ss:$20 sps:$4 sm:$0xff]   ;;  %v4577_v22 = vld [vmem:[%s4900_s30 + $0x34] ss:$20 sps:$4 sm:$0xff]   ;;  %v4579_v23 = vld [vmem:[%s4900_s30 + $0x1b8] ss:$20 sps:$4 sm:$0xff]  }
  0x50   : > { %2259 = vmatprep.subr.bf16.mxu1 %v4832_v1  ;;  %4319 = vmatprep.subr.bf16.mxu0 %v4526_v25  ;;  %v4580_v24 = vld [vmem:[%s4900_s30 + $0x30] ss:$20 sps:$4 sm:$0xff]  }
  0x52   : > { %4320 = vmatpush3.bf16.msra.mxu0 %v4526_v25  ;;  %v4581_v25 = vld [vmem:[%s4900_s30 + $0x1e4] ss:$20 sps:$4 sm:$0xff]  }
  0x53   : > { %2260 = vmatpush1.bf16.msra.mxu1 %v4511_v26  ;;  %4321 = vmatprep.subr.bf16.mxu0 %v4559_v27  ;;  %v4583_v26 = vld [vmem:[%s4900_s30 + $0x5c] ss:$20 sps:$4 sm:$0xff]  }
  0x54   : > { %2261 = vmatprep.subr.bf16.mxu1 %v4832_v1 }
  0x55   : > { %1930 = vmatmul.mubr.bf16.gmra.mxu0 %v4502_v28  ;;  %2186 = vmatmul.mubr.bf16.gmra.mxu1 %v4503_v29  ;;  %v4586_v28 = vld [vmem:[%s4900_s30 + $0x58] ss:$20 sps:$4 sm:$0xff]  }
  0x56   : > { %1937 = vmatprep.mubr.bf16.mxu0 %v4505_v30  ;;  %2193 = vmatprep.mubr.bf16.mxu1 %v4507_v31  ;;  %v4588_v29 = vld [vmem:[%s4900_s30 + $0x20c] ss:$20 sps:$4 sm:$0xff]   ;;  %v4590_v30 = vld [vmem:[%s4900_s30 + $0x84] ss:$20 sps:$4 sm:$0xff]  }
  0x57   : > { %2262 = vmatpush1.bf16.msra.mxu1 %v4516_v32  ;;  %4322 = vmatpush3.bf16.msra.mxu0 %v4559_v27  ;;  %v4585_v27 = vld [vmem:[%s4900_s30 + $0x1e0] ss:$20 sps:$4 sm:$0xff]   ;;  %v4592_v32 = vld [vmem:[%s4900_s30 + $0x208] ss:$20 sps:$4 sm:$0xff]  }
  0x58   : > { %2263 = vmatprep.subr.bf16.mxu1 %v4832_v1  ;;  %4323 = vmatprep.subr.bf16.mxu0 %v4587_v33  ;;  %v4687_v31 = vld [vmem:[%s5892_s1 + $0x100] sm:$0xff]  }
  0x5b   : > { %2264 = vmatpush1.bf16.msra.mxu1 %v4519_v34  ;;  %4324 = vmatpush3.bf16.msra.mxu0 %v4587_v33  ;;  %v4593_v33 = vld [vmem:[%s4900_s30 + $0x80] ss:$20 sps:$4 sm:$0xff]  }
  0x5c   : > { %2265 = vmatprep.subr.bf16.mxu1 %v4832_v1  ;;  %4325 = vmatprep.subr.bf16.mxu0 %v4612_v40  ;;  %v4594_v34 = vld [vmem:[%s4900_s30 + $0x234] ss:$20 sps:$4 sm:$0xff]  }
  0x5d   : > { %1938 = vmatmul.mubr.bf16.gmra.mxu0 %v4509_v35  ;;  %2194 = vmatmul.mubr.bf16.gmra.mxu1 %v4510_v36  ;;  %v4596_v35 = vld [vmem:[%s4900_s30 + $0xac] ss:$20 sps:$4 sm:$0xff]   ;;  %v4598_v36 = vld [vmem:[%s4900_s30 + $0x230] ss:$20 sps:$4 sm:$0xff]  }
  0x5e   : > { %1945 = vmatprep.mubr.bf16.mxu0 %v4512_v37  ;;  %2201 = vmatprep.mubr.bf16.mxu1 %v4514_v38  ;;  %v4599_v37 = vld [vmem:[%s4900_s30 + $0xa8] ss:$20 sps:$4 sm:$0xff]  }
  0x5f   : > { %2266 = vmatpush1.bf16.msra.mxu1 %v4527_v39  ;;  %4326 = vmatpush3.bf16.msra.mxu0 %v4612_v40  ;;  %v4600_v38 = vld [vmem:[%s4900_s30 + $0x25c] ss:$20 sps:$4 sm:$0xff]   ;;  %v4602_v39 = vld [vmem:[%s4900_s30 + $0xd4] ss:$20 sps:$4 sm:$0xff]   ;;  %v4604_v40 = vld [vmem:[%s4900_s30 + $0x258] ss:$20 sps:$4 sm:$0xff]  }
  0x60   : > { %2267 = vmatprep.subr.bf16.mxu1 %v4832_v1  ;;  %4327 = vmatprep.subr.bf16.mxu0 %v4637_v53 }
  0x63   : > { %2268 = vmatpush1.bf16.msra.mxu1 %v4528_v41  ;;  %4328 = vmatpush3.bf16.msra.mxu0 %v4637_v53  ;;  %v4605_v41 = vld [vmem:[%s4900_s30 + $0xd0] ss:$20 sps:$4 sm:$0xff]   ;;  %v4624_v53 = vld [vmem:[%s4900_s30 + $0x148] ss:$20 sps:$4 sm:$0xff]  }
  0x64   : > { %2269 = vmatprep.subr.bf16.mxu1 %v4832_v1  ;;  %4329 = vmatprep.subr.bf16.mxu0 %v4662_v15 }
  0x65   : > { %1946 = vmatmul.mubr.bf16.gmra.mxu0 %v4517_v42  ;;  %2202 = vmatmul.mubr.bf16.gmra.mxu1 %v4518_v43  ;;  %v4606_v42 = vld [vmem:[%s4900_s30 + $0x284] ss:$20 sps:$4 sm:$0xff]   ;;  %v4608_v43 = vld [vmem:[%s4900_s30 + $0xfc] ss:$20 sps:$4 sm:$0xff]  }
  0x66   : > { %1953 = vmatprep.mubr.bf16.mxu0 %v4520_v44  ;;  %2209 = vmatprep.mubr.bf16.mxu1 %v4522_v45  ;;  %v4610_v44 = vld [vmem:[%s4900_s30 + $0x280] ss:$20 sps:$4 sm:$0xff]   ;;  %v4611_v45 = vld [vmem:[%s4900_s30 + $0xf8] ss:$20 sps:$4 sm:$0xff]  }
  0x67   : > { %2270 = vmatpush1.bf16.msra.mxu1 %v4535_v46  ;;  %4330 = vmatpush3.bf16.msra.mxu0 %v4662_v15  ;;  %v4613_v46 = vld [vmem:[%s4900_s30 + $0x2ac] ss:$20 sps:$4 sm:$0xff]  }
  0x68   : > { %2271 = vmatprep.subr.bf16.mxu1 %v4832_v1  ;;  %4331 = vmatprep.subr.bf16.mxu0 %v4687_v31  ;;  %v4663_v15 = vld [vmem:[%s4900_s30 + $0x3ec] ss:$20 sps:$4 sm:$0xff]  }
  0x6b   : > { %2272 = vmatpush1.bf16.msra.mxu1 %v4536_v49  ;;  %4332 = vmatpush3.bf16.msra.mxu0 %v4687_v31  ;;  %v4618_v49 = vld [vmem:[%s4900_s30 + $0x120] ss:$20 sps:$4 sm:$0xff]  }
  0x6c   : > { %2273 = vmatprep.subr.bf16.mxu1 %v4832_v1 }
  0x6d   : > { %1954 = vmatmul.mubr.bf16.gmra.mxu0 %v4524_v47  ;;  %2210 = vmatmul.mubr.bf16.gmra.mxu1 %v4525_v48  ;;  %v4615_v47 = vld [vmem:[%s4900_s30 + $0x124] ss:$20 sps:$4 sm:$0xff]   ;;  %v4617_v48 = vld [vmem:[%s4900_s30 + $0x2a8] ss:$20 sps:$4 sm:$0xff]  }
  0x6e   : > { %1961 = vmatprep.mubr.bf16.mxu0 %v4529_v50  ;;  %2217 = vmatprep.mubr.bf16.mxu1 %v4531_v51  ;;  %v4619_v50 = vld [vmem:[%s4900_s30 + $0x2d4] ss:$20 sps:$4 sm:$0xff]   ;;  %v4621_v51 = vld [vmem:[%s4900_s30 + $0x14c] ss:$20 sps:$4 sm:$0xff]  }
  0x6f   : > { %2274 = vmatpush2.bf16.msra.mxu1 %v4543_v52  ;;  %v4623_v52 = vld [vmem:[%s4900_s30 + $0x2d0] ss:$20 sps:$4 sm:$0xff]  }
  0x70   : > { %2275 = vmatprep.subr.bf16.mxu1 %v4832_v1 }
  0x73   : > { %2276 = vmatpush2.bf16.msra.mxu1 %v4544_v54  ;;  %v4625_v54 = vld [vmem:[%s4900_s30 + $0x2fc] ss:$20 sps:$4 sm:$0xff]  }
  0x74   : > { %2277 = vmatprep.subr.bf16.mxu1 %v4832_v1 }
  0x75   : > { %1962 = vmatmul.mubr.bf16.gmra.mxu0 %v4533_v55  ;;  %2218 = vmatmul.mubr.bf16.gmra.mxu1 %v4534_v56  ;;  %v4627_v55 = vld [vmem:[%s4900_s30 + $0x174] ss:$20 sps:$4 sm:$0xff]   ;;  %v4629_v56 = vld [vmem:[%s4900_s30 + $0x2f8] ss:$20 sps:$4 sm:$0xff]  }
  0x76   : > { %1969 = vmatprep.mubr.bf16.mxu0 %v4537_v57  ;;  %2225 = vmatprep.mubr.bf16.mxu1 %v4539_v58  ;;  %v4630_v57 = vld [vmem:[%s4900_s30 + $0x170] ss:$20 sps:$4 sm:$0xff]  }
  0x77   : > { %2278 = vmatpush2.bf16.msra.mxu1 %v4551_v59  ;;  %v4631_v58 = vld [vmem:[%s4900_s30 + $0x324] ss:$20 sps:$4 sm:$0xff]   ;;  %v4633_v59 = vld [vmem:[%s4900_s30 + $0x19c] ss:$20 sps:$4 sm:$0xff]  }
  0x78   : > { %2279 = vmatprep.subr.bf16.mxu1 %v4832_v1 }
  0x7b   : > { %2280 = vmatpush2.bf16.msra.mxu1 %v4552_v60  ;;  %v4635_v60 = vld [vmem:[%s4900_s30 + $0x320] ss:$20 sps:$4 sm:$0xff]  }
  0x7c   : > { %2281 = vmatprep.subr.bf16.mxu1 %v4832_v1 }
  0x7d   : > { %1970 = vmatmul.mubr.bf16.gmra.mxu0 %v4541_v61  ;;  %2226 = vmatmul.mubr.bf16.gmra.mxu1 %v4542_v62  ;;  %v4636_v61 = vld [vmem:[%s4900_s30 + $0x198] ss:$20 sps:$4 sm:$0xff]  }
  0x7e   : > { %1977 = vmatprep.mubr.bf16.mxu0 %v4545_v63  ;;  %2233 = vmatprep.mubr.bf16.mxu1 %v4547_v0  ;;  %v4638_v62 = vld [vmem:[%s4900_s30 + $0x34c] ss:$20 sps:$4 sm:$0xff]   ;;  %v4640_v63 = vld [vmem:[%s4900_s30 + $0x1c4] ss:$20 sps:$4 sm:$0xff]   ;;  %v4642_v0 = vld [vmem:[%s4900_s30 + $0x348] ss:$20 sps:$4 sm:$0xff]  }
  0x7f   : > { %2282 = vmatpush2.bf16.msra.mxu1 %v4560_v2  ;;  %v4643_v2 = vld [vmem:[%s4900_s30 + $0x1c0] ss:$20 sps:$4 sm:$0xff]  }
  0x80   : > { %2283 = vmatprep.subr.bf16.mxu1 %v4832_v1 }
  0x83   : > { %2284 = vmatpush2.bf16.msra.mxu1 %v4561_v3  ;;  %v4644_v3 = vld [vmem:[%s4900_s30 + $0x374] ss:$20 sps:$4 sm:$0xff]  }
  0x84   : > { %2285 = vmatprep.subr.bf16.mxu1 %v4832_v1 }
  0x85   : > { %1978 = vmatmul.mubr.bf16.gmra.mxu0 %v4549_v4  ;;  %2234 = vmatmul.mubr.bf16.gmra.mxu1 %v4550_v5  ;;  %v4646_v4 = vld [vmem:[%s4900_s30 + $0x1ec] ss:$20 sps:$4 sm:$0xff]   ;;  %v4648_v5 = vld [vmem:[%s4900_s30 + $0x370] ss:$20 sps:$4 sm:$0xff]  }
  0x86   : > { %1985 = vmatprep.mubr.bf16.mxu0 %v4553_v6  ;;  %2241 = vmatprep.mubr.bf16.mxu1 %v4555_v7  ;;  %v4649_v6 = vld [vmem:[%s4900_s30 + $0x1e8] ss:$20 sps:$4 sm:$0xff]  }
  0x87   : > { %2286 = vmatpush2.bf16.msra.mxu1 %v4567_v8  ;;  %v4650_v7 = vld [vmem:[%s4900_s30 + $0x39c] ss:$20 sps:$4 sm:$0xff]   ;;  %v4652_v8 = vld [vmem:[%s4900_s30 + $0x214] ss:$20 sps:$4 sm:$0xff]  }
  0x88   : > { %2287 = vmatprep.subr.bf16.mxu1 %v4832_v1  ;;  %v4569_v1 = vld [vmem:[%s4900_s30 + $0x194] ss:$20 sps:$4 sm:$0xff]  }
  0x8b   : > { %2288 = vmatpush2.bf16.msra.mxu1 %v4568_v10  ;;  %v4655_v10 = vld [vmem:[%s4900_s30 + $0x210] ss:$20 sps:$4 sm:$0xff]  }
  0x8d   : > { %1986 = vmatmul.mubr.bf16.gmra.mxu0 %v4557_v11  ;;  %2242 = vmatmul.mubr.bf16.gmra.mxu1 %v4558_v12  ;;  %v4656_v11 = vld [vmem:[%s4900_s30 + $0x3c4] ss:$20 sps:$4 sm:$0xff]   ;;  %v4658_v12 = vld [vmem:[%s4900_s30 + $0x23c] ss:$20 sps:$4 sm:$0xff]  }
  0x8e   : > { %1993 = vmatprep.mubr.bf16.mxu0 %v4562_v13  ;;  %2249 = vmatprep.mubr.bf16.mxu1 %v3810_v14  ;;  %v4660_v13 = vld [vmem:[%s4900_s30 + $0x3c0] ss:$20 sps:$4 sm:$0xff]   ;;  %v4661_v14 = vld [vmem:[%s4900_s30 + $0x238] ss:$20 sps:$4 sm:$0xff]  }
  0x95   : > { %1994 = vmatmul.mubr.bf16.gmra.mxu0 %v4565_v16  ;;  %2250 = vmatmul.mubr.bf16.gmra.mxu1 %v3809_v17  ;;  %v4665_v16 = vld [vmem:[%s4900_s30 + $0x264] ss:$20 sps:$4 sm:$0xff]  }
  0x96   : > { %2001 = vmatprep.mubr.bf16.mxu0 %v4569_v1  ;;  %2289 = vmatprep.mubr.bf16.mxu1 %v4573_v18 }
  0x9d   : > { %2002 = vmatmul.mubr.bf16.gmra.mxu0 %v4574_v20  ;;  %2290 = vmatmul.mubr.bf16.vlgmr.msra.gmra.mxu1 %v4571_v19 }
  0x9e   : > { %2009 = vmatprep.mubr.bf16.mxu0 %v4575_v21  ;;  %2297 = vmatprep.mubr.bf16.mxu1 %v4577_v22  ;;  %v4667_v22 = vld [vmem:[%s4900_s30 + $0x3e8] ss:$20 sps:$4 sm:$0xff]  }
  0xa5   : > { %2010 = vmatmul.mubr.bf16.gmra.mxu0 %v4579_v23  ;;  %2298 = vmatmul.mubr.bf16.gmra.mxu1 %v4580_v24  ;;  %v4668_v23 = vld [vmem:[%s4900_s30 + $0x260] ss:$20 sps:$4 sm:$0xff]  }
  0xa6   : > { %2017 = vmatprep.mubr.bf16.mxu0 %v4581_v25  ;;  %2305 = vmatprep.mubr.bf16.mxu1 %v4583_v26  ;;  %v4669_v24 = vld [vmem:[%s4900_s30 + $0x414] ss:$20 sps:$4 sm:$0xff]   ;;  %v4671_v25 = vld [vmem:[%s4900_s30 + $0x28c] ss:$20 sps:$4 sm:$0xff]  }
  0xad   : > { %2018 = vmatmul.mubr.bf16.gmra.mxu0 %v4585_v27  ;;  %2306 = vmatmul.mubr.bf16.gmra.mxu1 %v4586_v28 }
  0xae   : > { %2025 = vmatprep.mubr.bf16.mxu0 %v4588_v29  ;;  %2313 = vmatprep.mubr.bf16.mxu1 %v4590_v30 }
  0xb5   : > { %2026 = vmatmul.mubr.bf16.gmra.mxu0 %v4592_v32  ;;  %2314 = vmatmul.mubr.bf16.gmra.mxu1 %v4593_v33 }
  0xb6   : > { %2033 = vmatprep.mubr.bf16.mxu0 %v4594_v34  ;;  %2321 = vmatprep.mubr.bf16.mxu1 %v4596_v35  ;;  %v4673_v34 = vld [vmem:[%s4900_s30 + $0x410] ss:$20 sps:$4 sm:$0xff]   ;;  %v4674_v35 = vld [vmem:[%s4900_s30 + $0x288] ss:$20 sps:$4 sm:$0xff]  }
  0xbd   : > { %2034 = vmatmul.mubr.bf16.gmra.mxu0 %v4598_v36  ;;  %2322 = vmatmul.mubr.bf16.gmra.mxu1 %v4599_v37  ;;  %v4675_v36 = vld [vmem:[%s4900_s30 + $0x43c] ss:$20 sps:$4 sm:$0xff]   ;;  %v4677_v37 = vld [vmem:[%s4900_s30 + $0x2b4] ss:$20 sps:$4 sm:$0xff]  }
  0xbe   : > { %2041 = vmatprep.mubr.bf16.mxu0 %v4600_v38  ;;  %2329 = vmatprep.mubr.bf16.mxu1 %v4602_v39 }
  0xc5   : > { %2042 = vmatmul.mubr.bf16.gmra.mxu0 %v4604_v40  ;;  %2330 = vmatmul.mubr.bf16.gmra.mxu1 %v4605_v41 }
  0xc6   : > { %2049 = vmatprep.mubr.bf16.mxu0 %v4606_v42  ;;  %2337 = vmatprep.mubr.bf16.mxu1 %v4608_v43 }
  0xcd   : > { %2050 = vmatmul.mubr.bf16.gmra.mxu0 %v4610_v44  ;;  %2338 = vmatmul.mubr.bf16.gmra.mxu1 %v4611_v45 }
  0xce   : > { %2057 = vmatprep.mubr.bf16.mxu0 %v4613_v46  ;;  %2345 = vmatprep.mubr.bf16.mxu1 %v4615_v47  ;;  %v4679_v46 = vld [vmem:[%s4900_s30 + $0x438] ss:$20 sps:$4 sm:$0xff]   ;;  %v4680_v47 = vld [vmem:[%s4900_s30 + $0x2b0] ss:$20 sps:$4 sm:$0xff]  }
  0xd5   : > { %2058 = vmatmul.mubr.bf16.gmra.mxu0 %v4617_v48  ;;  %2346 = vmatmul.mubr.bf16.gmra.mxu1 %v4618_v49  ;;  %v4683_v48 = vld [vmem:[%s4900_s30 + $0x464] ss:$20 sps:$4 sm:$0xff]   ;;  %v4686_v49 = vld [vmem:[%s4900_s30 + $0x2dc] ss:$20 sps:$4 sm:$0xff]  }
  0xd6   : > { %2065 = vmatprep.mubr.bf16.mxu0 %v4619_v50  ;;  %2353 = vmatprep.mubr.bf16.mxu1 %v4621_v51 }
  0xdd   : > { %2066 = vmatmul.mubr.bf16.gmra.mxu0 %v4623_v52  ;;  %2354 = vmatmul.mubr.bf16.gmra.mxu1 %v4624_v53 }
  0xde   : > { %2073 = vmatprep.mubr.bf16.mxu0 %v4625_v54  ;;  %2361 = vmatprep.mubr.bf16.mxu1 %v4627_v55 }
  0xe5   : > { %2074 = vmatmul.mubr.bf16.gmra.mxu0 %v4629_v56  ;;  %2362 = vmatmul.mubr.bf16.gmra.mxu1 %v4630_v57 }
  0xe6   : > { %2081 = vmatprep.mubr.bf16.mxu0 %v4631_v58  ;;  %2369 = vmatprep.mubr.bf16.mxu1 %v4633_v59  ;;  %v4681_v58 = vld [vmem:[%s4900_s30 + $0x460] ss:$20 sps:$4 sm:$0xff]   ;;  %v4684_v59 = vld [vmem:[%s4900_s30 + $0x2d8] ss:$20 sps:$4 sm:$0xff]  }
  0xed   : > { %2082 = vmatmul.mubr.bf16.gmra.mxu0 %v4635_v60  ;;  %2370 = vmatmul.mubr.bf16.gmra.mxu1 %v4636_v61  ;;  %v4690_v60 = vld [vmem:[%s4900_s30 + $0x48c] ss:$20 sps:$4 sm:$0xff]   ;;  %v4693_v61 = vld [vmem:[%s4900_s30 + $0x304] ss:$20 sps:$4 sm:$0xff]  }
  0xee   : > { %2089 = vmatprep.mubr.bf16.mxu0 %v4638_v62  ;;  %2377 = vmatprep.mubr.bf16.mxu1 %v4640_v63 }
  0xf5   : > { %2090 = vmatmul.mubr.bf16.gmra.mxu0 %v4642_v0  ;;  %2378 = vmatmul.mubr.bf16.gmra.mxu1 %v4643_v2 }
  0xf6   : > { %2097 = vmatprep.mubr.bf16.mxu0 %v4644_v3  ;;  %2385 = vmatprep.mubr.bf16.mxu1 %v4646_v4 }
  0xfd   : > { %2098 = vmatmul.mubr.bf16.gmra.mxu0 %v4648_v5  ;;  %2386 = vmatmul.mubr.bf16.gmra.mxu1 %v4649_v6 }
  0xfe   : > { %2105 = vmatprep.mubr.bf16.mxu0 %v4650_v7  ;;  %2393 = vmatprep.mubr.bf16.mxu1 %v4652_v8  ;;  %v4688_v7 = vld [vmem:[%s4900_s30 + $0x488] ss:$20 sps:$4 sm:$0xff]   ;;  %v4691_v8 = vld [vmem:[%s4900_s30 + $0x300] ss:$20 sps:$4 sm:$0xff]  }
 0x105   : > { %2106 = vmatmul.mubr.bf16.gmra.mxu0 %v4654_v9  ;;  %2394 = vmatmul.mubr.bf16.gmra.mxu1 %v4655_v10  ;;  %v4696_v9 = vld [vmem:[%s4900_s30 + $0x4b4] ss:$20 sps:$4 sm:$0xff]   ;;  %v4699_v10 = vld [vmem:[%s4900_s30 + $0x32c] ss:$20 sps:$4 sm:$0xff]  }
 0x106   : > { %2113 = vmatprep.mubr.bf16.mxu0 %v4656_v11  ;;  %2401 = vmatprep.mubr.bf16.mxu1 %v4658_v12 }
 0x10d   : > { %v5148_v17 = vpop.f32.mrf.mxu0  ;;  %2114 = vmatmul.mubr.bf16.gmra.mxu0 %v4660_v13  ;;  %v5150_v1 = vpop.f32.mrf.mxu1  ;;  %2402 = vmatmul.mubr.bf16.gmra.mxu1 %v4661_v14 }
 0x10e   : > { %5895 = vst [vmem:[#allocation2_spill] sm:$0xff] %v5150_v1  ;;  %2121 = vmatprep.mubr.bf16.mxu0 %v4663_v15  ;;  %2409 = vmatprep.mubr.bf16.mxu1 %v4665_v16  ;;  %v4793_v1 = vld [vmem:[%s4900_s30 + $0x624] ss:$20 sps:$4 sm:$0xff]  }
 0x10f   : > { %v1925_v18 = vpop.f32.mrf.mxu0  ;;  %v2181_v19 = vpop.f32.mrf.mxu1 }
 0x111   : > { %v5152_v20 = vpop.f32.mrf.mxu0  ;;  %v5154_v21 = vpop.f32.mrf.mxu1 }
 0x112   : > { %5896 = vst [vmem:[#allocation3_spill] sm:$0xff] %v5154_v21  ;;  %v4788_v21 = vld [vmem:[%s4900_s30 + $0x5fc] ss:$20 sps:$4 sm:$0xff]  }
 0x113   : > { %v1928_v26 = vpop.f32.mrf.mxu0  ;;  %v2184_v27 = vpop.f32.mrf.mxu1 }
 0x115   : > { %v5160_v28 = vpop.f32.mrf.mxu0  ;;  %2122 = vmatmul.mubr.bf16.gmra.mxu0 %v4667_v22  ;;  %v5162_v29 = vpop.f32.mrf.mxu1  ;;  %2410 = vmatmul.mubr.bf16.gmra.mxu1 %v4668_v23  ;;  %v4694_v22 = vld [vmem:[%s4900_s30 + $0x4b0] ss:$20 sps:$4 sm:$0xff]   ;;  %v4697_v23 = vld [vmem:[%s4900_s30 + $0x328] ss:$20 sps:$4 sm:$0xff]  }
 0x116   : > { %5897 = vst [vmem:[#allocation4_spill] sm:$0xff] %v5162_v29  ;;  %2129 = vmatprep.mubr.bf16.mxu0 %v4669_v24  ;;  %2417 = vmatprep.mubr.bf16.mxu1 %v4671_v25  ;;  %v4702_v24 = vld [vmem:[%s4900_s30 + $0x4dc] ss:$20 sps:$4 sm:$0xff]   ;;  %v4705_v25 = vld [vmem:[%s4900_s30 + $0x354] ss:$20 sps:$4 sm:$0xff]  }
 0x117   : > { %v1933_v30 = vpop.f32.mrf.mxu0  ;;  %v2189_v31 = vpop.f32.mrf.mxu1  ;;  %v4794_v29 = vld [vmem:[%s4900_s30 + $0x560] ss:$20 sps:$4 sm:$0xff]  }
 0x119   : > { %v5164_v32 = vpop.f32.mrf.mxu0  ;;  %v5166_v33 = vpop.f32.mrf.mxu1 }
 0x11a   : > { %5898 = vst [vmem:[#allocation5_spill] sm:$0xff] %v5166_v33  ;;  %v4789_v33 = vld [vmem:[%s4900_s30 + $0x510] ss:$20 sps:$4 sm:$0xff]  }
 0x11b   : > { %v1936_v38 = vpop.f32.mrf.mxu0  ;;  %v2192_v39 = vpop.f32.mrf.mxu1 }
 0x11c   : > { %v4700_v38 = vld [vmem:[%s4900_s30 + $0x4d8] ss:$20 sps:$4 sm:$0xff]   ;;  %v4703_v39 = vld [vmem:[%s4900_s30 + $0x350] ss:$20 sps:$4 sm:$0xff]  }
 0x11d   : > { %v5172_v40 = vpop.f32.mrf.mxu0  ;;  %2130 = vmatmul.mubr.bf16.gmra.mxu0 %v4673_v34  ;;  %v5174_v41 = vpop.f32.mrf.mxu1  ;;  %2418 = vmatmul.mubr.bf16.gmra.mxu1 %v4674_v35 }
 0x11e   : > { %5899 = vst [vmem:[#allocation6_spill] sm:$0xff] %v5174_v41  ;;  %2137 = vmatprep.mubr.bf16.mxu0 %v4675_v36  ;;  %2425 = vmatprep.mubr.bf16.mxu1 %v4677_v37  ;;  %v4783_v41 = vld [vmem:[%s4900_s30 + $0x5d4] ss:$20 sps:$4 sm:$0xff]  }
 0x11f   : > { %v1941_v42 = vpop.f32.mrf.mxu0  ;;  %v2197_v43 = vpop.f32.mrf.mxu1 }
 0x120   : > { %v4708_v42 = vld [vmem:[%s4900_s30 + $0x37c] ss:$20 sps:$4 sm:$0xff]  }
 0x121   : > { %v5176_v44 = vpop.f32.mrf.mxu0  ;;  %v5178_v45 = vpop.f32.mrf.mxu1  ;;  %v4709_v43 = vld [vmem:[%s4900_s30 + $0x10] ss:$20 sps:$4 sm:$0xff]  }
 0x122   : > { %5900 = vst [vmem:[#allocation7_spill] sm:$0xff] %v5178_v45  ;;  %v4778_v45 = vld [vmem:[%s4900_s30 + $0x5ac] ss:$20 sps:$4 sm:$0xff]  }
 0x123   : > { %v1944_v50 = vpop.f32.mrf.mxu0  ;;  %v2200_v51 = vpop.f32.mrf.mxu1 }
 0x125   : > { %v5184_v52 = vpop.f32.mrf.mxu0  ;;  %2138 = vmatmul.mubr.bf16.gmra.mxu0 %v4679_v46  ;;  %v5186_v53 = vpop.f32.mrf.mxu1  ;;  %2426 = vmatmul.mubr.bf16.gmra.mxu1 %v4680_v47 }
 0x126   : > { %5901 = vst [vmem:[#allocation8_spill] sm:$0xff] %v5186_v53  ;;  %2145 = vmatprep.mubr.bf16.mxu0 %v4683_v48  ;;  %2433 = vmatprep.mubr.bf16.mxu1 %v4686_v49  ;;  %v4784_v53 = vld [vmem:[%s4900_s30 + $0x4c0] ss:$20 sps:$4 sm:$0xff]  }
 0x127   : > { %v1949_v54 = vpop.f32.mrf.mxu0  ;;  %v2205_v55 = vpop.f32.mrf.mxu1 }
 0x129   : > { %v5188_v56 = vpop.f32.mrf.mxu0  ;;  %v5190_v57 = vpop.f32.mrf.mxu1 }
 0x12a   : > { %5902 = vst [vmem:[#allocation9_spill] sm:$0xff] %v5190_v57  ;;  %v4779_v57 = vld [vmem:[%s4900_s30 + $0x470] ss:$20 sps:$4 sm:$0xff]  }
 0x12b   : > { %v1952_v62 = vpop.f32.mrf.mxu0  ;;  %v2208_v63 = vpop.f32.mrf.mxu1 }
 0x12d   : > { %v5196_v0 = vpop.f32.mrf.mxu0  ;;  %2146 = vmatmul.mubr.bf16.gmra.mxu0 %v4681_v58  ;;  %v5198_v2 = vpop.f32.mrf.mxu1  ;;  %2434 = vmatmul.mubr.bf16.gmra.mxu1 %v4684_v59  ;;  %v4706_v58 = vld [vmem:[%s4900_s30 + $0x378] ss:$20 sps:$4 sm:$0xff]  }
 0x12e   : > { %5903 = vst [vmem:[#allocation10_spill] sm:$0xff] %v5198_v2  ;;  %2153 = vmatprep.mubr.bf16.mxu0 %v4690_v60  ;;  %2441 = vmatprep.mubr.bf16.mxu1 %v4693_v61  ;;  %v4710_v59 = vld [vmem:[%s4900_s30 + $0x38] ss:$20 sps:$4 sm:$0xff]   ;;  %v4714_v61 = vld [vmem:[%s4900_s30 + $0x60] ss:$20 sps:$4 sm:$0xff]  }
 0x12f   : > { %v1957_v3 = vpop.f32.mrf.mxu0  ;;  %v2213_v4 = vpop.f32.mrf.mxu1  ;;  %v4713_v60 = vld [vmem:[%s4900_s30 + $0x3a4] ss:$20 sps:$4 sm:$0xff]  }
 0x130   : > { %v4773_v2 = vld [vmem:[%s4900_s30 + $0x584] ss:$20 sps:$4 sm:$0xff]  }
 0x131   : > { %v5200_v5 = vpop.f32.mrf.mxu0  ;;  %v5202_v6 = vpop.f32.mrf.mxu1 }
 0x132   : > { %5904 = vst [vmem:[#allocation11_spill] sm:$0xff] %v5202_v6  ;;  %v4768_v6 = vld [vmem:[%s4900_s30 + $0x55c] ss:$20 sps:$4 sm:$0xff]  }
 0x133   : > { %v1960_v11 = vpop.f32.mrf.mxu0  ;;  %v2216_v12 = vpop.f32.mrf.mxu1 }
 0x134   : > { %v4711_v11 = vld [vmem:[%s4900_s30 + $0x3a0] ss:$20 sps:$4 sm:$0xff]   ;;  %v4715_v12 = vld [vmem:[%s4900_s30 + $0x88] ss:$20 sps:$4 sm:$0xff]  }
 0x135   : > { %v5208_v13 = vpop.f32.mrf.mxu0  ;;  %2154 = vmatmul.mubr.bf16.gmra.mxu0 %v4688_v7  ;;  %v5210_v14 = vpop.f32.mrf.mxu1  ;;  %2442 = vmatmul.mubr.bf16.gmra.mxu1 %v4691_v8 }
 0x136   : > { %5905 = vst [vmem:[#allocation12_spill] sm:$0xff] %v5210_v14  ;;  %2161 = vmatprep.mubr.bf16.mxu0 %v4696_v9  ;;  %2449 = vmatprep.mubr.bf16.mxu1 %v4699_v10  ;;  %v4774_v14 = vld [vmem:[%s4900_s30 + $0x420] ss:$20 sps:$4 sm:$0xff]  }
 0x137   : > { %v1965_v15 = vpop.f32.mrf.mxu0  ;;  %v2221_v16 = vpop.f32.mrf.mxu1 }
 0x138   : > { %v4718_v15 = vld [vmem:[%s4900_s30 + $0x3cc] ss:$20 sps:$4 sm:$0xff]   ;;  %v4719_v16 = vld [vmem:[%s4900_s30 + $0xb0] ss:$20 sps:$4 sm:$0xff]  }
 0x139   : > { %v5212_v18 = vpop.f32.mrf.mxu0  ;;  %v5214_v19 = vpop.f32.mrf.mxu1 }
 0x13a   : > { %5906 = vst [vmem:[#allocation13_spill] sm:$0xff] %v5214_v19  ;;  %v4769_v19 = vld [vmem:[%s4900_s30 + $0x3d0] ss:$20 sps:$4 sm:$0xff]  }
 0x13b   : > { %v1968_v26 = vpop.f32.mrf.mxu0  ;;  %v2224_v27 = vpop.f32.mrf.mxu1 }
 0x13d   : > { %v5220_v30 = vpop.f32.mrf.mxu0  ;;  %2162 = vmatmul.mubr.bf16.gmra.mxu0 %v4694_v22  ;;  %v5222_v31 = vpop.f32.mrf.mxu1  ;;  %2450 = vmatmul.mubr.bf16.gmra.mxu1 %v4697_v23 }
 0x13e   : > { %5907 = vst [vmem:[#allocation14_spill] sm:$0xff] %v5222_v31  ;;  %2169 = vmatprep.mubr.bf16.mxu0 %v4702_v24  ;;  %2457 = vmatprep.mubr.bf16.mxu1 %v4705_v25  ;;  %v4763_v31 = vld [vmem:[%s4900_s30 + $0x534] ss:$20 sps:$4 sm:$0xff]  }
 0x13f   : > { %v1973_v34 = vpop.f32.mrf.mxu0  ;;  %v2229_v35 = vpop.f32.mrf.mxu1 }
 0x140   : > { %v5263_v34 = vld [vmem:[%s5893_s2] ss:$0 sm:$0xff] }
 0x141   : > { %v5224_v36 = vpop.f32.mrf.mxu0  ;;  %v5226_v37 = vpop.f32.mrf.mxu1 }
 0x142   : > { %5908 = vst [vmem:[#allocation15_spill] sm:$0xff] %v5226_v37  ;;  %v4758_v37 = vld [vmem:[%s4900_s30 + $0x50c] ss:$20 sps:$4 sm:$0xff]  }
 0x143   : > { %v1976_v46 = vpop.f32.mrf.mxu0  ;;  %v2232_v47 = vpop.f32.mrf.mxu1 }
 0x144   : > { %v4724_v46 = vld [vmem:[%s4900_s30 + $0x100] ss:$20 sps:$4 sm:$0xff]  }
 0x145   : > { %v5232_v48 = vpop.f32.mrf.mxu0  ;;  %2170 = vmatmul.mubr.bf16.gmra.mxu0 %v4700_v38  ;;  %v5234_v49 = vpop.f32.mrf.mxu1  ;;  %2458 = vmatmul.mubr.bf16.gmra.mxu1 %v4703_v39  ;;  %v4716_v39 = vld [vmem:[%s4900_s30 + $0x3c8] ss:$20 sps:$4 sm:$0xff]  }
 0x146   : > { %5909 = vst [vmem:[#allocation16_spill] sm:$0xff] %v5234_v49  ;;  %2465 = vmatprep.mubr.bf16.mxu1 %v4708_v42  ;;  %4333 = vmatprep.mubr.bf16.mxu0 %v4709_v43  ;;  %v4720_v42 = vld [vmem:[%s4900_s30 + $0xd8] ss:$20 sps:$4 sm:$0xff]   ;;  %v4723_v43 = vld [vmem:[%s4900_s30 + $0x3f4] ss:$20 sps:$4 sm:$0xff]  }
 0x147   : > { %v1981_v50 = vpop.f32.mrf.mxu0  ;;  %v2237_v51 = vpop.f32.mrf.mxu1  ;;  %v4764_v49 = vld [vmem:[%s4900_s30 + $0x380] ss:$20 sps:$4 sm:$0xff]  }
 0x148   : > { %v1924_v51 = vadd.f32 %v5263_v34, %v5148_v17  ;;  %v4721_v17 = vld [vmem:[%s4900_s30 + $0x3f0] ss:$20 sps:$4 sm:$0xff]  }
 0x149   : > { %v5236_v54 = vpop.f32.mrf.mxu0  ;;  %v5238_v55 = vpop.f32.mrf.mxu1 }
 0x14a   : > { %5910 = vst [vmem:[#allocation17_spill] sm:$0xff] %v5238_v55  ;;  %v4759_v55 = vld [vmem:[%s4900_s30 + $0x330] ss:$20 sps:$4 sm:$0xff]  }
 0x14b   : > { %v1984_v62 = vpop.f32.mrf.mxu0  ;;  %v2240_v63 = vpop.f32.mrf.mxu1 }
 0x14c   : > { %v1927_v63 = vadd.f32 %v5263_v34, %v5152_v20 }
 0x14d   : > { %v5244_v3 = vpop.f32.mrf.mxu0  ;;  %v5246_v4 = vpop.f32.mrf.mxu1  ;;  %2466 = vmatmul.mubr.bf16.gmra.mxu1 %v4706_v58  ;;  %4334 = vmatmul.mubr.bf16.vlgmr.msra.gmra.mxu0 %v4710_v59 }
 0x14e   : > { %5911 = vst [vmem:[#allocation18_spill] sm:$0xff] %v5246_v4  ;;  %2473 = vmatprep.mubr.bf16.mxu1 %v4713_v60  ;;  %4337 = vmatprep.mubr.bf16.mxu0 %v4714_v61  ;;  %v4753_v4 = vld [vmem:[%s4900_s30 + $0x4e4] ss:$20 sps:$4 sm:$0xff]  }
 0x14f   : > { %v1989_v7 = vpop.f32.mrf.mxu0  ;;  %v2245_v8 = vpop.f32.mrf.mxu1 }
 0x151   : > { %v5248_v9 = vpop.f32.mrf.mxu0  ;;  %v5250_v10 = vpop.f32.mrf.mxu1 }
 0x152   : > { %5912 = vst [vmem:[#allocation19_spill] sm:$0xff] %v5250_v10  ;;  %v4749_v10 = vld [vmem:[%s4900_s30 + $0x290] ss:$20 sps:$4 sm:$0xff]  }
 0x153   : > { %v1992_v22 = vpop.f32.mrf.mxu0  ;;  %v2248_v23 = vpop.f32.mrf.mxu1 }
 0x155   : > { %v5256_v24 = vpop.f32.mrf.mxu0  ;;  %v5258_v25 = vpop.f32.mrf.mxu1  ;;  %2474 = vmatmul.mubr.bf16.gmra.mxu1 %v4711_v11  ;;  %4338 = vmatmul.mubr.bf16.gmra.mxu0 %v4715_v12  ;;  %v4725_v11 = vld [vmem:[%s4900_s30 + $0x128] ss:$20 sps:$4 sm:$0xff]  }
 0x156   : > { %5913 = vst [vmem:[#allocation20_spill] sm:$0xff] %v5258_v25  ;;  %2481 = vmatprep.mubr.bf16.mxu1 %v4718_v15  ;;  %4341 = vmatprep.mubr.bf16.mxu0 %v4719_v16  ;;  %v4728_v15 = vld [vmem:[%s4900_s30 + $0x41c] ss:$20 sps:$4 sm:$0xff]   ;;  %v4754_v25 = vld [vmem:[%s4900_s30 + $0x2e0] ss:$20 sps:$4 sm:$0xff]  }
 0x157   : > { %v1997_v26 = vpop.f32.mrf.mxu0  ;;  %v2253_v27 = vpop.f32.mrf.mxu1  ;;  %v4729_v16 = vld [vmem:[%s4900_s30 + $0x150] ss:$20 sps:$4 sm:$0xff]  }
 0x158   : > { %v1932_v26 = vadd.f32 %v5263_v34, %v5160_v28  ;;  %v4726_v28 = vld [vmem:[%s4900_s30 + $0x418] ss:$20 sps:$4 sm:$0xff]  }
 0x159   : > { %v5265_v35 = vpop.f32.mrf.mxu0  ;;  %v2254_v38 = vpop.f32.mrf.mxu1 }
 0x15b   : > { %v2000_v47 = vpop.f32.mrf.mxu0  ;;  %v2255_v50 = vpop.f32.mrf.mxu1 }
 0x15c   : > { %v4730_v50 = vld [vmem:[%s4900_s30 + $0x178] ss:$20 sps:$4 sm:$0xff]  }
 0x15d   : > { %v5273_v58 = vpop.f32.mrf.mxu0  ;;  %v2291_v59 = vpop.f32.mrf.mxu1  ;;  %2482 = vmatmul.mubr.bf16.gmra.mxu1 %v4716_v39  ;;  %4342 = vmatmul.mubr.bf16.gmra.mxu0 %v4720_v42 }
 0x15e   : > { %v5275_v60 = vadd.f32 %v2291_v59, %v1924_v51  ;;  %2489 = vmatprep.mubr.bf16.mxu1 %v4723_v43  ;;  %4345 = vmatprep.mubr.bf16.mxu0 %v4724_v46  ;;  %v1935_v43 = vadd.f32 %v5263_v34, %v5164_v32  ;;  %v4733_v59 = vld [vmem:[%s4900_s30 + $0x444] ss:$20 sps:$4 sm:$0xff]  }
 0x15f   : > { %v2005_v61 = vpop.f32.mrf.mxu0  ;;  %v2293_v62 = vpop.f32.mrf.mxu1 }
 0x160   : > { %v4734_v61 = vld [vmem:[%s4900_s30 + $0x1a0] ss:$20 sps:$4 sm:$0xff]  }
 0x161   : > { %v5279_v7 = vpop.f32.mrf.mxu0  ;;  %v2294_v8 = vpop.f32.mrf.mxu1 }
 0x162   : > { %v5283_v12 = vadd.f32 %v2294_v8, %v1927_v63  ;;  %v1940_v8 = vadd.f32 %v5263_v34, %v5172_v40  ;;  %v4731_v40 = vld [vmem:[%s4900_s30 + $0x440] ss:$20 sps:$4 sm:$0xff]  }
 0x163   : > { %v2008_v22 = vpop.f32.mrf.mxu0  ;;  %v2296_v23 = vpop.f32.mrf.mxu1 }
 0x164   : > { %v1943_v22 = vadd.f32 %v5263_v34, %v5176_v44 }
 0x165   : > { %v5289_v27 = vpop.f32.mrf.mxu0  ;;  %v2299_v20 = vpop.f32.mrf.mxu1  ;;  %2490 = vmatmul.mubr.bf16.gmra.mxu1 %v4721_v17  ;;  %4346 = vmatmul.mubr.bf16.gmra.mxu0 %v4725_v11 }
 0x166   : > { %v5291_v38 = vadd.f32 %v2299_v20, %v1932_v26  ;;  %2497 = vmatprep.mubr.bf16.mxu1 %v4728_v15  ;;  %4349 = vmatprep.mubr.bf16.mxu0 %v4729_v16  ;;  %v4735_v20 = vld [vmem:[%s4900_s30 + $0x1c8] ss:$20 sps:$4 sm:$0xff]  }
 0x167   : > { %v2013_v39 = vpop.f32.mrf.mxu0  ;;  %v2301_v42 = vpop.f32.mrf.mxu1 }
 0x168   : > { %v4738_v42 = vld [vmem:[%s4900_s30 + $0x46c] ss:$20 sps:$4 sm:$0xff]  }
 0x169   : > { %v5295_v46 = vpop.f32.mrf.mxu0  ;;  %v2302_v47 = vpop.f32.mrf.mxu1 }
 0x16a   : > { %v5299_v51 = vadd.f32 %v2302_v47, %v1935_v43  ;;  %v4739_v43 = vld [vmem:[%s4900_s30 + $0x1f0] ss:$20 sps:$4 sm:$0xff]  }
 0x16b   : > { %v2016_v62 = vpop.f32.mrf.mxu0  ;;  %v2304_v63 = vpop.f32.mrf.mxu1 }
 0x16d   : > { %v5305_v17 = vpop.f32.mrf.mxu0  ;;  %v2307_v32 = vpop.f32.mrf.mxu1  ;;  %2498 = vmatmul.mubr.bf16.gmra.mxu1 %v4726_v28  ;;  %4350 = vmatmul.mubr.bf16.gmra.mxu0 %v4730_v50  ;;  %v1948_v50 = vadd.f32 %v5263_v34, %v5184_v52  ;;  %v4736_v52 = vld [vmem:[%s4900_s30 + $0x468] ss:$20 sps:$4 sm:$0xff]  }
 0x16e   : > { %v5307_v11 = vadd.f32 %v2307_v32, %v1940_v8  ;;  %2505 = vmatprep.mubr.bf16.mxu1 %v4733_v59  ;;  %4353 = vmatprep.mubr.bf16.mxu0 %v4734_v61  ;;  %v1951_v8 = vadd.f32 %v5263_v34, %v5188_v56 }
 0x16f   : > { %v2021_v15 = vpop.f32.mrf.mxu0  ;;  %v2309_v16 = vpop.f32.mrf.mxu1 }
 0x170   : > { %v4740_v16 = vld [vmem:[%s4900_s30 + $0x218] ss:$20 sps:$4 sm:$0xff]  }
 0x171   : > { %v5311_v23 = vpop.f32.mrf.mxu0  ;;  %v2310_v26 = vpop.f32.mrf.mxu1 }
 0x172   : > { %v5315_v39 = vadd.f32 %v2310_v26, %v1943_v22  ;;  %v4743_v26 = vld [vmem:[%s4900_s30 + $0x494] ss:$20 sps:$4 sm:$0xff]  }
 0x173   : > { %v2024_v47 = vpop.f32.mrf.mxu0  ;;  %v2312_v28 = vpop.f32.mrf.mxu1 }
 0x174   : > { %v4744_v47 = vld [vmem:[%s4900_s30 + $0x240] ss:$20 sps:$4 sm:$0xff]  }
 0x175   : > { %v5321_v59 = vpop.f32.mrf.mxu0  ;;  %v2315_v44 = vpop.f32.mrf.mxu1  ;;  %2506 = vmatmul.mubr.bf16.gmra.mxu1 %v4731_v40  ;;  %4354 = vmatmul.mubr.bf16.gmra.mxu0 %v4735_v20 }
 0x176   : > { %v5323_v61 = vadd.f32 %v2315_v44, %v1948_v50  ;;  %2513 = vmatprep.mubr.bf16.mxu1 %v4738_v42  ;;  %4357 = vmatprep.mubr.bf16.mxu0 %v4739_v43  ;;  %v1956_v42 = vadd.f32 %v5263_v34, %v5196_v0  ;;  %v4741_v0 = vld [vmem:[%s4900_s30 + $0x490] ss:$20 sps:$4 sm:$0xff]  }
 0x177   : > { %v2029_v62 = vpop.f32.mrf.mxu0  ;;  %v2317_v63 = vpop.f32.mrf.mxu1 }
 0x178   : > { %v1959_v62 = vadd.f32 %v5263_v34, %v5200_v5 }
 0x179   : > { %v5327_v32 = vpop.f32.mrf.mxu0  ;;  %v2318_v15 = vpop.f32.mrf.mxu1 }
 0x17a   : > { %v5331_v22 = vadd.f32 %v2318_v15, %v1951_v8  ;;  %v4745_v15 = vld [vmem:[%s4900_s30 + $0x268] ss:$20 sps:$4 sm:$0xff]  }
 0x17b   : > { %v2032_v40 = vpop.f32.mrf.mxu0  ;;  %v2320_v20 = vpop.f32.mrf.mxu1 }
 0x17c   : > { %v4748_v20 = vld [vmem:[%s4900_s30 + $0x4bc] ss:$20 sps:$4 sm:$0xff]  }
 0x17d   : > { %v5337_v43 = vpop.f32.mrf.mxu0  ;;  %v2323_v56 = vpop.f32.mrf.mxu1  ;;  %2514 = vmatmul.mubr.bf16.gmra.mxu1 %v4736_v52  ;;  %4358 = vmatmul.mubr.bf16.gmra.mxu0 %v4740_v16 }
 0x17e   : > { %v5339_v28 = vadd.f32 %v2323_v56, %v1956_v42  ;;  %2521 = vmatprep.mubr.bf16.mxu1 %v4743_v26  ;;  %4361 = vmatprep.mubr.bf16.mxu0 %v4744_v47  ;;  %v1964_v26 = vadd.f32 %v5263_v34, %v5208_v13  ;;  %v4746_v13 = vld [vmem:[%s4900_s30 + $0x4b8] ss:$20 sps:$4 sm:$0xff]  }
 0x17f   : > { %v2037_v50 = vpop.f32.mrf.mxu0  ;;  %v2325_v44 = vpop.f32.mrf.mxu1 }
 0x180   : > { %v1967_v44 = vadd.f32 %v5263_v34, %v5212_v18 }
 0x181   : > { %v5343_v63 = vpop.f32.mrf.mxu0  ;;  %v2326_v8 = vpop.f32.mrf.mxu1 }
 0x182   : > { %v5347_v40 = vadd.f32 %v2326_v8, %v1959_v62 }
 0x183   : > { %v2040_v52 = vpop.f32.mrf.mxu0  ;;  %v2328_v16 = vpop.f32.mrf.mxu1 }
 0x184   : > { %v4750_v52 = vld [vmem:[%s4900_s30 + $0x2b8] ss:$20 sps:$4 sm:$0xff]  }
 0x185   : > { %v5353_v47 = vpop.f32.mrf.mxu0  ;;  %v2331_v5 = vpop.f32.mrf.mxu1  ;;  %2522 = vmatmul.mubr.bf16.gmra.mxu1 %v4741_v0  ;;  %4362 = vmatmul.mubr.bf16.gmra.mxu0 %v4745_v15 }
 0x186   : > { %v5355_v42 = vadd.f32 %v2331_v5, %v1964_v26  ;;  %2529 = vmatprep.mubr.bf16.mxu1 %v4748_v20  ;;  %4365 = vmatprep.mubr.bf16.mxu0 %v4749_v10  ;;  %v1972_v10 = vadd.f32 %v5263_v34, %v5220_v30  ;;  %v4751_v30 = vld [vmem:[%s4900_s30 + $0x4e0] ss:$20 sps:$4 sm:$0xff]  }
 0x187   : > { %v2045_v56 = vpop.f32.mrf.mxu0  ;;  %v2333_v50 = vpop.f32.mrf.mxu1 }
 0x188   : > { %v1975_v50 = vadd.f32 %v5263_v34, %v5224_v36 }
 0x189   : > { %v5359_v62 = vpop.f32.mrf.mxu0  ;;  %v2334_v8 = vpop.f32.mrf.mxu1 }
 0x18a   : > { %v5363_v16 = vadd.f32 %v2334_v8, %v1967_v44 }
 0x18b   : > { %v2048_v0 = vpop.f32.mrf.mxu0  ;;  %v2336_v15 = vpop.f32.mrf.mxu1 }
 0x18c   : > { %v4755_v0 = vld [vmem:[%s4900_s30 + $0x308] ss:$20 sps:$4 sm:$0xff]  }
 0x18d   : > { %v5369_v20 = vpop.f32.mrf.mxu0  ;;  %v2339_v18 = vpop.f32.mrf.mxu1  ;;  %2530 = vmatmul.mubr.bf16.gmra.mxu1 %v4746_v13  ;;  %4366 = vmatmul.mubr.bf16.gmra.mxu0 %v4750_v52 }
 0x18e   : > { %v5371_v26 = vadd.f32 %v2339_v18, %v1972_v10  ;;  %2537 = vmatprep.mubr.bf16.mxu1 %v4753_v4  ;;  %4369 = vmatprep.mubr.bf16.mxu0 %v4754_v25  ;;  %v1980_v4 = vadd.f32 %v5263_v34, %v5232_v48  ;;  %v4756_v48 = vld [vmem:[%s4900_s30 + $0x508] ss:$20 sps:$4 sm:$0xff]  }
 0x18f   : > { %v2053_v5 = vpop.f32.mrf.mxu0  ;;  %v2341_v56 = vpop.f32.mrf.mxu1 }
 0x190   : > { %v1983_v56 = vadd.f32 %v5263_v34, %v5236_v54 }
 0x191   : > { %v5375_v44 = vpop.f32.mrf.mxu0  ;;  %v2342_v8 = vpop.f32.mrf.mxu1 }
 0x192   : > { %v5379_v15 = vadd.f32 %v2342_v8, %v1975_v50 }
 0x193   : > { %v2056_v13 = vpop.f32.mrf.mxu0  ;;  %v2344_v52 = vpop.f32.mrf.mxu1 }
 0x194   : > { %v4760_v13 = vld [vmem:[%s4900_s30 + $0x358] ss:$20 sps:$4 sm:$0xff]  }
 0x195   : > { %v5385_v25 = vpop.f32.mrf.mxu0  ;;  %v2347_v36 = vpop.f32.mrf.mxu1  ;;  %2538 = vmatmul.mubr.bf16.gmra.mxu1 %v4751_v30  ;;  %4370 = vmatmul.mubr.bf16.gmra.mxu0 %v4755_v0 }
 0x196   : > { %v5387_v10 = vadd.f32 %v2347_v36, %v1980_v4  ;;  %2545 = vmatprep.mubr.bf16.mxu1 %v4758_v37  ;;  %4373 = vmatprep.mubr.bf16.mxu0 %v4759_v55  ;;  %v1988_v37 = vadd.f32 %v5263_v34, %v5244_v3  ;;  %v4761_v3 = vld [vmem:[%s4900_s30 + $0x530] ss:$20 sps:$4 sm:$0xff]  }
 0x197   : > { %v2061_v18 = vpop.f32.mrf.mxu0  ;;  %v2349_v5 = vpop.f32.mrf.mxu1 }
 0x198   : > { %v1991_v5 = vadd.f32 %v5263_v34, %v5248_v9 }
 0x199   : > { %v5391_v50 = vpop.f32.mrf.mxu0  ;;  %v2350_v8 = vpop.f32.mrf.mxu1 }
 0x19a   : > { %v5395_v52 = vadd.f32 %v2350_v8, %v1983_v56 }
 0x19b   : > { %v2064_v30 = vpop.f32.mrf.mxu0  ;;  %v2352_v0 = vpop.f32.mrf.mxu1 }
 0x19c   : > { %v4765_v30 = vld [vmem:[%s4900_s30 + $0x3a8] ss:$20 sps:$4 sm:$0xff]  }
 0x19d   : > { %v5401_v55 = vpop.f32.mrf.mxu0  ;;  %v2355_v54 = vpop.f32.mrf.mxu1  ;;  %2546 = vmatmul.mubr.bf16.gmra.mxu1 %v4756_v48  ;;  %4374 = vmatmul.mubr.bf16.gmra.mxu0 %v4760_v13 }
 0x19e   : > { %v5403_v4 = vadd.f32 %v2355_v54, %v1988_v37  ;;  %2553 = vmatprep.mubr.bf16.mxu1 %v4763_v31  ;;  %4377 = vmatprep.mubr.bf16.mxu0 %v4764_v49  ;;  %v1996_v31 = vadd.f32 %v5263_v34, %v5256_v24  ;;  %v4766_v24 = vld [vmem:[%s4900_s30 + $0x558] ss:$20 sps:$4 sm:$0xff]  }
 0x19f   : > { %v2069_v36 = vpop.f32.mrf.mxu0  ;;  %v2357_v18 = vpop.f32.mrf.mxu1 }
 0x1a0   : > { %v1999_v18 = vadd.f32 %v5263_v34, %v5265_v35 }
 0x1a1   : > { %v5407_v56 = vpop.f32.mrf.mxu0  ;;  %v2358_v8 = vpop.f32.mrf.mxu1 }
 0x1a2   : > { %v5411_v0 = vadd.f32 %v2358_v8, %v1991_v5 }
 0x1a3   : > { %v2072_v48 = vpop.f32.mrf.mxu0  ;;  %v2360_v13 = vpop.f32.mrf.mxu1 }
 0x1a4   : > { %v4770_v48 = vld [vmem:[%s4900_s30 + $0x3f8] ss:$20 sps:$4 sm:$0xff]  }
 0x1a5   : > { %v5417_v49 = vpop.f32.mrf.mxu0  ;;  %v2363_v9 = vpop.f32.mrf.mxu1  ;;  %2554 = vmatmul.mubr.bf16.gmra.mxu1 %v4761_v3  ;;  %4378 = vmatmul.mubr.bf16.gmra.mxu0 %v4765_v30 }
 0x1a6   : > { %v5419_v37 = vadd.f32 %v2363_v9, %v1996_v31  ;;  %2561 = vmatprep.mubr.bf16.mxu1 %v4768_v6  ;;  %4381 = vmatprep.mubr.bf16.mxu0 %v4769_v19  ;;  %v2004_v6 = vadd.f32 %v5263_v34, %v5273_v58  ;;  %v4771_v58 = vld [vmem:[%s4900_s30 + $0x580] ss:$20 sps:$4 sm:$0xff]  }
 0x1a7   : > { %v2077_v54 = vpop.f32.mrf.mxu0  ;;  %v2365_v36 = vpop.f32.mrf.mxu1 }
 0x1a8   : > { %v2007_v36 = vadd.f32 %v5263_v34, %v5279_v7 }
 0x1a9   : > { %v5423_v5 = vpop.f32.mrf.mxu0  ;;  %v2366_v8 = vpop.f32.mrf.mxu1 }
 0x1aa   : > { %v5427_v13 = vadd.f32 %v2366_v8, %v1999_v18 }
 0x1ab   : > { %v2080_v3 = vpop.f32.mrf.mxu0  ;;  %v2368_v30 = vpop.f32.mrf.mxu1 }
 0x1ac   : > { %v4775_v3 = vld [vmem:[%s4900_s30 + $0x448] ss:$20 sps:$4 sm:$0xff]  }
 0x1ad   : > { %v5433_v19 = vpop.f32.mrf.mxu0  ;;  %v2371_v35 = vpop.f32.mrf.mxu1  ;;  %2562 = vmatmul.mubr.bf16.gmra.mxu1 %v4766_v24  ;;  %4382 = vmatmul.mubr.bf16.gmra.mxu0 %v4770_v48 }
 0x1ae   : > { %v5435_v31 = vadd.f32 %v2371_v35, %v2004_v6  ;;  %2569 = vmatprep.mubr.bf16.mxu1 %v4773_v2  ;;  %4385 = vmatprep.mubr.bf16.mxu0 %v4774_v14  ;;  %v2012_v2 = vadd.f32 %v5263_v34, %v5289_v27  ;;  %v4776_v27 = vld [vmem:[%s4900_s30 + $0x5a8] ss:$20 sps:$4 sm:$0xff]  }
 0x1af   : > { %v2085_v9 = vpop.f32.mrf.mxu0  ;;  %v2373_v54 = vpop.f32.mrf.mxu1 }
 0x1b0   : > { %v2015_v54 = vadd.f32 %v5263_v34, %v5295_v46 }
 0x1b1   : > { %v5439_v18 = vpop.f32.mrf.mxu0  ;;  %v2374_v8 = vpop.f32.mrf.mxu1 }
 0x1b2   : > { %v5443_v30 = vadd.f32 %v2374_v8, %v2007_v36 }
 0x1b3   : > { %v2088_v24 = vpop.f32.mrf.mxu0  ;;  %v2376_v48 = vpop.f32.mrf.mxu1 }
 0x1b4   : > { %v4780_v24 = vld [vmem:[%s4900_s30 + $0x498] ss:$20 sps:$4 sm:$0xff]  }
 0x1b5   : > { %v5449_v14 = vpop.f32.mrf.mxu0  ;;  %v2379_v7 = vpop.f32.mrf.mxu1  ;;  %2570 = vmatmul.mubr.bf16.gmra.mxu1 %v4771_v58  ;;  %4386 = vmatmul.mubr.bf16.gmra.mxu0 %v4775_v3 }
 0x1b6   : > { %v5451_v6 = vadd.f32 %v2379_v7, %v2012_v2  ;;  %2577 = vmatprep.mubr.bf16.mxu1 %v4778_v45  ;;  %4389 = vmatprep.mubr.bf16.mxu0 %v4779_v57  ;;  %v2020_v45 = vadd.f32 %v5263_v34, %v5305_v17  ;;  %v4781_v17 = vld [vmem:[%s4900_s30 + $0x5d0] ss:$20 sps:$4 sm:$0xff]  }
 0x1b7   : > { %v2093_v35 = vpop.f32.mrf.mxu0  ;;  %v2381_v9 = vpop.f32.mrf.mxu1 }
 0x1b8   : > { %v2023_v9 = vadd.f32 %v5263_v34, %v5311_v23 }
 0x1b9   : > { %v5455_v36 = vpop.f32.mrf.mxu0  ;;  %v2382_v8 = vpop.f32.mrf.mxu1 }
 0x1ba   : > { %v5459_v48 = vadd.f32 %v2382_v8, %v2015_v54 }
 0x1bb   : > { %v2096_v58 = vpop.f32.mrf.mxu0  ;;  %v2384_v3 = vpop.f32.mrf.mxu1 }
 0x1bc   : > { %v4785_v58 = vld [vmem:[%s4900_s30 + $0x4e8] ss:$20 sps:$4 sm:$0xff]  }
 0x1bd   : > { %v5465_v57 = vpop.f32.mrf.mxu0  ;;  %v2387_v46 = vpop.f32.mrf.mxu1  ;;  %2578 = vmatmul.mubr.bf16.gmra.mxu1 %v4776_v27  ;;  %4390 = vmatmul.mubr.bf16.gmra.mxu0 %v4780_v24 }
 0x1be   : > { %v5467_v2 = vadd.f32 %v2387_v46, %v2020_v45  ;;  %2585 = vmatprep.mubr.bf16.mxu1 %v4783_v41  ;;  %4393 = vmatprep.mubr.bf16.mxu0 %v4784_v53  ;;  %v2028_v41 = vadd.f32 %v5263_v34, %v5321_v59  ;;  %v4786_v59 = vld [vmem:[%s4900_s30 + $0x5f8] ss:$20 sps:$4 sm:$0xff]  }
 0x1bf   : > { %v2101_v7 = vpop.f32.mrf.mxu0  ;;  %v2389_v35 = vpop.f32.mrf.mxu1 }
 0x1c0   : > { %v2031_v35 = vadd.f32 %v5263_v34, %v5327_v32 }
 0x1c1   : > { %v5471_v54 = vpop.f32.mrf.mxu0  ;;  %v2390_v8 = vpop.f32.mrf.mxu1 }
 0x1c2   : > { %v5475_v3 = vadd.f32 %v2390_v8, %v2023_v9 }
 0x1c3   : > { %v2104_v27 = vpop.f32.mrf.mxu0  ;;  %v2392_v24 = vpop.f32.mrf.mxu1 }
 0x1c4   : > { %5914 = vst [vmem:[#allocation21_spill] sm:$0xff] %v5475_v3  ;;  %v4790_v27 = vld [vmem:[%s4900_s30 + $0x538] ss:$20 sps:$4 sm:$0xff]  }
 0x1c5   : > { %v5481_v53 = vpop.f32.mrf.mxu0  ;;  %v2395_v23 = vpop.f32.mrf.mxu1  ;;  %2586 = vmatmul.mubr.bf16.gmra.mxu1 %v4781_v17  ;;  %4394 = vmatmul.mubr.bf16.gmra.mxu0 %v4785_v58  ;;  %v4798_v3 = vld [vmem:[%s4900_s30 + $0x64c] ss:$20 sps:$4 sm:$0xff]  }
 0x1c6   : > { %v5483_v45 = vadd.f32 %v2395_v23, %v2028_v41  ;;  %2593 = vmatprep.mubr.bf16.mxu1 %v4788_v21  ;;  %4397 = vmatprep.mubr.bf16.mxu0 %v4789_v33  ;;  %v2036_v21 = vadd.f32 %v5263_v34, %v5337_v43  ;;  %v4791_v43 = vld [vmem:[%s4900_s30 + $0x620] ss:$20 sps:$4 sm:$0xff]  }
 0x1c7   : > { %v2109_v46 = vpop.f32.mrf.mxu0  ;;  %v2397_v7 = vpop.f32.mrf.mxu1 }
 0x1c8   : > { %v2039_v7 = vadd.f32 %v5263_v34, %v5343_v63 }
 0x1c9   : > { %v5487_v9 = vpop.f32.mrf.mxu0  ;;  %v2398_v8 = vpop.f32.mrf.mxu1 }
 0x1ca   : > { %v5491_v24 = vadd.f32 %v2398_v8, %v2031_v35 }
 0x1cb   : > { %v2112_v17 = vpop.f32.mrf.mxu0  ;;  %v2400_v58 = vpop.f32.mrf.mxu1 }
 0x1cc   : > { %5915 = vst [vmem:[#allocation22_spill] sm:$0xff] %v5491_v24  ;;  %v4795_v17 = vld [vmem:[%s4900_s30 + $0x588] ss:$20 sps:$4 sm:$0xff]  }
 0x1cd   : > { %v5497_v33 = vpop.f32.mrf.mxu0  ;;  %v2403_v32 = vpop.f32.mrf.mxu1  ;;  %2594 = vmatmul.mubr.bf16.gmra.mxu1 %v4786_v59  ;;  %4398 = vmatmul.mubr.bf16.gmra.mxu0 %v4790_v27  ;;  %v4799_v59 = vld [vmem:[%s4900_s30 + $0x5b0] ss:$20 sps:$4 sm:$0xff]  }
 0x1ce   : > { %v5499_v41 = vadd.f32 %v2403_v32, %v2036_v21  ;;  %2601 = vmatprep.mubr.bf16.mxu1 %v4793_v1  ;;  %4401 = vmatprep.mubr.bf16.mxu0 %v4794_v29  ;;  %v2044_v1 = vadd.f32 %v5263_v34, %v5353_v47  ;;  %v4796_v47 = vld [vmem:[%s4900_s30 + $0x648] ss:$20 sps:$4 sm:$0xff]  }
 0x1cf   : > { %v2117_v23 = vpop.f32.mrf.mxu0  ;;  %v2405_v46 = vpop.f32.mrf.mxu1 }
 0x1d0   : > { %5916 = vst [vmem:[#allocation23_spill] sm:$0xff] %v5499_v41 }
 0x1d1   : > { %v5503_v35 = vpop.f32.mrf.mxu0  ;;  %v2406_v8 = vpop.f32.mrf.mxu1 }
 0x1d2   : > { %v5507_v58 = vadd.f32 %v2406_v8, %v2039_v7  ;;  %v476_v7 = vld [vmem:[%s4900_s30 + $0x670] sm:$0xff]  ;;  %v2047_v8 = vadd.f32 %v5263_v34, %v5359_v62 }
 0x1d3   : > { %v2120_v27 = vpop.f32.mrf.mxu0  ;;  %v2408_v21 = vpop.f32.mrf.mxu1  ;;  %v3812_v24 = vcombine.high %v476_v7, %v476_v7 }
 0x1d4   : > { %5917 = vst [vmem:[#allocation24_spill] sm:$0xff] %v5507_v58  ;;  %v4800_v58 = vld [vmem:[%s4900_s30 + $0x5d8] ss:$20 sps:$4 sm:$0xff]  }
 0x1d5   : > { %v5513_v29 = vpop.f32.mrf.mxu0  ;;  %v2411_v63 = vpop.f32.mrf.mxu1  ;;  %2602 = vmatmul.mubr.bf16.gmra.mxu1 %v4791_v43  ;;  %4402 = vmatmul.mubr.bf16.gmra.mxu0 %v4795_v17  ;;  %v4803_v43 = vld [vmem:[%s4900_s30 + $0x600] ss:$20 sps:$4 sm:$0xff]  }
 0x1d6   : > { %v5515_v32 = vadd.f32 %v2411_v63, %v2044_v1  ;;  %2609 = vmatprep.mubr.bf16.mxu1 %v4798_v3  ;;  %4405 = vmatprep.mubr.bf16.mxu0 %v4799_v59  ;;  %v2052_v3 = vadd.f32 %v5263_v34, %v5369_v20  ;;  %v4804_v20 = vld [vmem:[%s4900_s30 + $0x628] ss:$20 sps:$4 sm:$0xff]  }
 0x1d7   : > { %v2125_v23 = vpop.f32.mrf.mxu0  ;;  %v2413_v46 = vpop.f32.mrf.mxu1 }
 0x1d8   : > { %5918 = vst [vmem:[#allocation25_spill] sm:$0xff] %v5515_v32  ;;  %v4805_v32 = vld [vmem:[%s4900_s30 + $0x650] ss:$20 sps:$4 sm:$0xff]  }
 0x1d9   : > { %v5520_v27 = vpop.f32.mrf.mxu0  ;;  %v2414_v21 = vpop.f32.mrf.mxu1 }
 0x1da   : > { %v5524_v41 = vadd.f32 %v2414_v21, %v2047_v8  ;;  %v2055_v8 = vadd.f32 %v5263_v34, %v5375_v44 }
 0x1db   : > { %v2128_v17 = vpop.f32.mrf.mxu0  ;;  %v2416_v1 = vpop.f32.mrf.mxu1 }
 0x1dc   : > { %5919 = vst [vmem:[#allocation26_spill] sm:$0xff] %v5524_v41  ;;  %v3811_v1 = vcombine.low %v476_v7, %v476_v7 }
 0x1dd   : > { %v5529_v59 = vpop.f32.mrf.mxu0  ;;  %v2419_v63 = vpop.f32.mrf.mxu1  ;;  %2610 = vmatmul.mubr.bf16.gmra.mxu1 %v4796_v47  ;;  %4406 = vmatmul.mubr.bf16.gmra.mxu0 %v4800_v58 }
 0x1de   : > { %v5531_v62 = vadd.f32 %v2419_v63, %v2052_v3  ;;  %2617 = vmatprep.mubr.bf16.mxu1 %v3812_v24  ;;  %4409 = vmatprep.mubr.bf16.mxu0 %v4803_v43  ;;  %v2060_v24 = vadd.f32 %v5263_v34, %v5385_v25 }
 0x1df   : > { %v2133_v23 = vpop.f32.mrf.mxu0  ;;  %v2421_v46 = vpop.f32.mrf.mxu1 }
 0x1e0   : > { %v2063_v23 = vadd.f32 %v5263_v34, %v5391_v50  ;;  %v2071_v50 = vadd.f32 %v5263_v34, %v5407_v56  ;;  %v2079_v56 = vadd.f32 %v5263_v34, %v5423_v5  ;;  %v2087_v5 = vadd.f32 %v5263_v34, %v5439_v18 }
 0x1e1   : > { %v5535_v21 = vpop.f32.mrf.mxu0  ;;  %v2422_v17 = vpop.f32.mrf.mxu1  ;;  %v2095_v18 = vadd.f32 %v5263_v34, %v5455_v36  ;;  %v2103_v36 = vadd.f32 %v5263_v34, %v5471_v54 }
 0x1e2   : > { %v5538_v41 = vadd.f32 %v2422_v17, %v2055_v8  ;;  %v4806_v17 = vld [vmem:[%s4900_s30 + $0x678] ss:$0 sps:$4 sm:$0xff]   ;;  %s3602_s30 = sshll.u32 %s5970_s18, 2 }
 0x1e3   : > { %v2136_v47 = vpop.f32.mrf.mxu0  ;;  %v2424_v58 = vpop.f32.mrf.mxu1  ;;  %s5620_s12 = scalar_lea.vmem %s5894_s3, %s3602_s30 }
 0x1e5   : > { %v5543_v43 = vpop.f32.mrf.mxu0  ;;  %v2427_v3 = vpop.f32.mrf.mxu1  ;;  %2618 = vmatmul.mubr.bf16.gmra.mxu1 %v3811_v1  ;;  %4410 = vmatmul.mubr.bf16.gmra.mxu0 %v4804_v20  ;;  %v2068_v1 = vadd.f32 %v5263_v34, %v5401_v55  ;;  %v2076_v55 = vadd.f32 %v5263_v34, %v5417_v49  ;;  %v2084_v49 = vadd.f32 %v5263_v34, %v5433_v19 }
 0x1e6   : > { %v5545_v44 = vadd.f32 %v2427_v3, %v2060_v24  ;;  %4413 = vmatprep.mubr.bf16.mxu0 %v4805_v32  ;;  %v2092_v19 = vadd.f32 %v5263_v34, %v5449_v14  ;;  %v2100_v14 = vadd.f32 %v5263_v34, %v5465_v57 }
 0x1e7   : > { %v2141_v63 = vpop.f32.mrf.mxu0  ;;  %v2429_v7 = vpop.f32.mrf.mxu1 }
 0x1e9   : > { %v5549_v46 = vpop.f32.mrf.mxu0  ;;  %v2430_v8 = vpop.f32.mrf.mxu1 }
 0x1ea   : > { %5920 = vst [vmem:[#allocation27_spill] sm:$0xff] %v5549_v46  ;;  %v5552_v47 = vadd.f32 %v2430_v8, %v2063_v23 }
 0x1eb   : > { %v2144_v25 = vpop.f32.mrf.mxu0  ;;  %v2432_v58 = vpop.f32.mrf.mxu1 }
 0x1ed   : > { %v5556_v20 = vpop.f32.mrf.mxu0  ;;  %v2435_v24 = vpop.f32.mrf.mxu1  ;;  %4414 = vmatmul.mubr.bf16.gmra.mxu0 %v4806_v17 }
 0x1ee   : > { %v5558_v32 = vadd.f32 %v2435_v24, %v2068_v1 }
 0x1ef   : > { %v2149_v3 = vpop.f32.mrf.mxu0  ;;  %v2437_v63 = vpop.f32.mrf.mxu1 }
 0x1f0   : > { %5921 = vst [vmem:[#allocation28_spill] sm:$0xff] %v5558_v32 }
 0x1f1   : > { %v5562_v7 = vpop.f32.mrf.mxu0  ;;  %v2438_v23 = vpop.f32.mrf.mxu1 }
 0x1f2   : > { %v5564_v8 = vadd.f32 %v2438_v23, %v2071_v50 }
 0x1f3   : > { %v2152_v25 = vpop.f32.mrf.mxu0  ;;  %v2440_v58 = vpop.f32.mrf.mxu1 }
 0x1f5   : > { %v5568_v46 = vpop.f32.mrf.mxu0  ;;  %v2443_v17 = vpop.f32.mrf.mxu1 }
 0x1f6   : > { %5922 = vst [vmem:[#allocation29_spill] sm:$0xff] %v5568_v46  ;;  %v5570_v1 = vadd.f32 %v2443_v17, %v2076_v55 }
 0x1f7   : > { %v2157_v24 = vpop.f32.mrf.mxu0  ;;  %v2445_v3 = vpop.f32.mrf.mxu1 }
 0x1f9   : > { %v5574_v63 = vpop.f32.mrf.mxu0  ;;  %v2446_v32 = vpop.f32.mrf.mxu1 }
 0x1fa   : > { %5923 = vst [vmem:[#allocation30_spill] sm:$0xff] %v5574_v63  ;;  %v5576_v50 = vadd.f32 %v2446_v32, %v2079_v56 }
 0x1fb   : > { %v2160_v23 = vpop.f32.mrf.mxu0  ;;  %v2448_v25 = vpop.f32.mrf.mxu1 }
 0x1fd   : > { %v5580_v58 = vpop.f32.mrf.mxu0  ;;  %v2451_v46 = vpop.f32.mrf.mxu1 }
 0x1fe   : > { %5924 = vst [vmem:[#allocation31_spill] sm:$0xff] %v5580_v58  ;;  %v5582_v55 = vadd.f32 %v2451_v46, %v2084_v49 }
 0x1ff   : > { %v2165_v17 = vpop.f32.mrf.mxu0  ;;  %v2453_v24 = vpop.f32.mrf.mxu1 }
 0x201   : > { %v5586_v3 = vpop.f32.mrf.mxu0  ;;  %v2454_v63 = vpop.f32.mrf.mxu1 }
 0x202   : > { %5925 = vst [vmem:[#allocation32_spill] sm:$0xff] %v5586_v3  ;;  %v5588_v32 = vadd.f32 %v2454_v63, %v2087_v5 }
 0x203   : > { %v2168_v56 = vpop.f32.mrf.mxu0  ;;  %v2456_v23 = vpop.f32.mrf.mxu1 }
 0x204   : > { %5926 = vst [vmem:[#allocation33_spill] sm:$0xff] %v5588_v32 }
 0x205   : > { %v5592_v25 = vpop.f32.mrf.mxu0  ;;  %v2459_v58 = vpop.f32.mrf.mxu1 }
 0x206   : > { %5927 = vst [vmem:[#allocation34_spill] sm:$0xff] %v5592_v25  ;;  %v5594_v46 = vadd.f32 %v2459_v58, %v2092_v19 }
 0x207   : > { %v2173_v49 = vpop.f32.mrf.mxu0  ;;  %v2461_v17 = vpop.f32.mrf.mxu1 }
 0x209   : > { %v5598_v24 = vpop.f32.mrf.mxu0  ;;  %v2462_v3 = vpop.f32.mrf.mxu1 }
 0x20a   : > { %5928 = vst [vmem:[#allocation35_spill] sm:$0xff] %v5598_v24  ;;  %v5600_v63 = vadd.f32 %v2462_v3, %v2095_v18 }
 0x20b   : > { %v2176_v5 = vpop.f32.mrf.mxu0  ;;  %v2464_v56 = vpop.f32.mrf.mxu1 }
 0x20d   : > { %v2467_v23 = vpop.f32.mrf.mxu1  ;;  %v4335_v25 = vpop.f32.mrf.mxu0 }
 0x20e   : > { %v5604_v58 = vadd.f32 %v2467_v23, %v2100_v14  ;;  %v2668_v17 = vadd.f32 %v4335_v25, %v5291_v38  ;;  %v2108_v14 = vadd.f32 %v5263_v34, %v5481_v53 }
 0x20f   : > { %v2469_v19 = vpop.f32.mrf.mxu1  ;;  %v2659_v49 = vpop.f32.mrf.mxu0 }
 0x210   : > { %v2660_v3 = vadd.f32 %v2659_v49, %v5275_v60  ;;  %v2995_v23 = vmax.f32 %v2668_v17, 0.0 }
 0x211   : > { %v2470_v24 = vpop.f32.mrf.mxu1  ;;  %v4336_v32 = vpop.f32.mrf.mxu0 }
 0x212   : > { %v5610_v18 = vadd.f32 %v2470_v24, %v2103_v36  ;;  %v2671_v57 = vadd.f32 %v4336_v32, %v5299_v51  ;;  %v2993_v25 = vmax.f32 %v2660_v3, 0.0  ;;  %v2111_v36 = vadd.f32 %v5263_v34, %v5487_v9 }
 0x213   : > { %v2472_v5 = vpop.f32.mrf.mxu1  ;;  %v2662_v56 = vpop.f32.mrf.mxu0 }
 0x214   : > { %5929 = vst [vmem:[#allocation36_spill] sm:$0xff] %v5610_v18  ;;  %v2996_v19 = vmax.f32 %v2671_v57, 0.0  ;;  %v2663_v54 = vadd.f32 %v2662_v56, %v5283_v12 }
 0x215   : > { %v2475_v60 = vpop.f32.mrf.mxu1  ;;  %v4339_v38 = vpop.f32.mrf.mxu0 }
 0x216   : > { %v4030_v51 = vpack.c.bf16 %v2996_v19, %v2995_v23  ;;  %v2994_v32 = vmax.f32 %v2663_v54, 0.0  ;;  %v5622_v24 = vadd.f32 %v2475_v60, %v2108_v14  ;;  %v2684_v17 = vadd.f32 %v4339_v38, %v5323_v61 }
 0x217   : > { %v2477_v49 = vpop.f32.mrf.mxu1  ;;  %v2675_v53 = vpop.f32.mrf.mxu0  ;;  %v2116_v19 = vadd.f32 %v5263_v34, %v5497_v33 }
 0x218   : > { %4227 = vst [vmem:[%s5620_s12 + $0x8] sm:$0xff] %v4030_v51   ;;  %v4025_v12 = vpack.c.bf16 %v2994_v32, %v2993_v25  ;;  %v2676_v56 = vadd.f32 %v2675_v53, %v5307_v11  ;;  %v2999_v9 = vmax.f32 %v2684_v17, 0.0  ;;  %v2119_v53 = vadd.f32 %v5263_v34, %v5503_v35 }
 0x219   : > { %v2478_v57 = vpop.f32.mrf.mxu1  ;;  %v4340_v5 = vpop.f32.mrf.mxu0 }
 0x21a   : > { %4026 = vst [vmem:[%s5620_s12] sm:$0xff] %v4025_v12   ;;  %v5630_v18 = vadd.f32 %v2478_v57, %v2111_v36  ;;  %v2687_v3 = vadd.f32 %v4340_v5, %v5331_v22  ;;  %v2997_v25 = vmax.f32 %v2676_v56, 0.0 }
 0x21b   : > { %v2480_v14 = vpop.f32.mrf.mxu1  ;;  %v2678_v23 = vpop.f32.mrf.mxu0 }
 0x21c   : > { %v3000_v54 = vmax.f32 %v2687_v3, 0.0  ;;  %v2679_v61 = vadd.f32 %v2678_v23, %v5315_v39  ;;  %v2124_v14 = vadd.f32 %v5263_v34, %v5513_v29 }
 0x21d   : > { %v2483_v60 = vpop.f32.mrf.mxu1  ;;  %v4343_v38 = vpop.f32.mrf.mxu0 }
 0x21e   : > { %v4040_v51 = vpack.c.bf16 %v3000_v54, %v2999_v9  ;;  %v2998_v11 = vmax.f32 %v2679_v61, 0.0  ;;  %v5636_v32 = vadd.f32 %v2483_v60, %v2116_v19  ;;  %v2700_v33 = vadd.f32 %v4343_v38, %v5355_v42 }
 0x21f   : > { %v2485_v49 = vpop.f32.mrf.mxu1  ;;  %v2691_v22 = vpop.f32.mrf.mxu0 }
 0x220   : > { %4229 = vst [vmem:[%s5620_s12 + $0x18] sm:$0xff] %v4040_v51   ;;  %v4035_v36 = vpack.c.bf16 %v2998_v11, %v2997_v25  ;;  %v2692_v39 = vadd.f32 %v2691_v22, %v5339_v28  ;;  %v3003_v35 = vmax.f32 %v2700_v33, 0.0  ;;  %v2127_v25 = vadd.f32 %v5263_v34, %v5520_v27 }
 0x221   : > { %v2486_v12 = vpop.f32.mrf.mxu1  ;;  %v4344_v17 = vpop.f32.mrf.mxu0 }
 0x222   : > { %4228 = vst [vmem:[%s5620_s12 + $0x10] sm:$0xff] %v4035_v36   ;;  %v5644_v57 = vadd.f32 %v2486_v12, %v2119_v53  ;;  %v2703_v5 = vadd.f32 %v4344_v17, %v5363_v16  ;;  %v3001_v54 = vmax.f32 %v2692_v39, 0.0  ;;  %v2132_v12 = vadd.f32 %v5263_v34, %v5529_v59 }
 0x223   : > { %v2488_v56 = vpop.f32.mrf.mxu1  ;;  %v2694_v3 = vpop.f32.mrf.mxu0 }
 0x224   : > { %v3004_v23 = vmax.f32 %v2703_v5, 0.0  ;;  %v2695_v42 = vadd.f32 %v2694_v3, %v5347_v40 }
 0x225   : > { %v2491_v19 = vpop.f32.mrf.mxu1  ;;  %v4347_v9 = vpop.f32.mrf.mxu0 }
 0x226   : > { %v4050_v61 = vpack.c.bf16 %v3004_v23, %v3003_v35  ;;  %v3002_v28 = vmax.f32 %v2695_v42, 0.0  ;;  %v5650_v60 = vadd.f32 %v2491_v19, %v2124_v14  ;;  %v2716_v29 = vadd.f32 %v4347_v9, %v5387_v10  ;;  %v5669_v23 = vld [vmem:[%s5893_s2] ss:$0 sm:$0xff] }
 0x227   : > { %v2493_v38 = vpop.f32.mrf.mxu1  ;;  %v2707_v16 = vpop.f32.mrf.mxu0  ;;  %v2135_v34 = vadd.f32 %v5669_v23, %v5535_v21 }
 0x228   : > { %4231 = vst [vmem:[%s5620_s12 + $0x28] sm:$0xff] %v4050_v61   ;;  %v4045_v51 = vpack.c.bf16 %v3002_v28, %v3001_v54  ;;  %v2708_v40 = vadd.f32 %v2707_v16, %v5371_v26  ;;  %v3007_v27 = vmax.f32 %v2716_v29, 0.0  ;;  %v2140_v16 = vadd.f32 %v5669_v23, %v5543_v43 }
 0x229   : > { %v2494_v11 = vpop.f32.mrf.mxu1  ;;  %v4348_v49 = vpop.f32.mrf.mxu0 }
 0x22a   : > { %4230 = vst [vmem:[%s5620_s12 + $0x20] sm:$0xff] %v4045_v51   ;;  %v5658_v22 = vadd.f32 %v2494_v11, %v2127_v25  ;;  %v2719_v53 = vadd.f32 %v4348_v49, %v5395_v52  ;;  %v3005_v56 = vmax.f32 %v2708_v40, 0.0 }
 0x22b   : > { %v2496_v36 = vpop.f32.mrf.mxu1  ;;  %v2710_v33 = vpop.f32.mrf.mxu0 }
 0x22c   : > { %v3008_v17 = vmax.f32 %v2719_v53, 0.0  ;;  %v2711_v39 = vadd.f32 %v2710_v33, %v5379_v15 }
 0x22d   : > { %v2499_v10 = vpop.f32.mrf.mxu1  ;;  %v4351_v5 = vpop.f32.mrf.mxu0 }
 0x22e   : > { %v4060_v3 = vpack.c.bf16 %v3008_v17, %v3007_v27  ;;  %v3006_v26 = vmax.f32 %v2711_v39, 0.0  ;;  %v5664_v14 = vadd.f32 %v2499_v10, %v2132_v12  ;;  %v2732_v59 = vadd.f32 %v4351_v5, %v5419_v37 }
 0x22f   : > { %v2501_v35 = vpop.f32.mrf.mxu1  ;;  %v2723_v52 = vpop.f32.mrf.mxu0  ;;  %v2148_v10 = vadd.f32 %v5669_v23, %v5556_v20 }
 0x230   : > { %4233 = vst [vmem:[%s5620_s12 + $0x38] sm:$0xff] %v4060_v3   ;;  %v4055_v15 = vpack.c.bf16 %v3006_v26, %v3005_v56  ;;  %v2724_v9 = vadd.f32 %v2723_v52, %v5403_v4  ;;  %v3011_v21 = vmax.f32 %v2732_v59, 0.0  ;;  %v2151_v59 = vadd.f32 %v5669_v23, %v5562_v7  ;;  %v5931_v7 = vld [vmem:[#allocation21_spill] sm:$0xff] }
 0x231   : > { %v2502_v42 = vpop.f32.mrf.mxu1  ;;  %v4352_v19 = vpop.f32.mrf.mxu0 }
 0x232   : > { %4232 = vst [vmem:[%s5620_s12 + $0x30] sm:$0xff] %v4055_v15   ;;  %v5677_v54 = vadd.f32 %v2502_v42, %v2135_v34  ;;  %v2735_v61 = vadd.f32 %v4352_v19, %v5427_v13  ;;  %v3009_v11 = vmax.f32 %v2724_v9, 0.0 }
 0x233   : > { %v2504_v28 = vpop.f32.mrf.mxu1  ;;  %v2726_v38 = vpop.f32.mrf.mxu0 }
 0x234   : > { %v3012_v25 = vmax.f32 %v2735_v61, 0.0  ;;  %v2727_v37 = vadd.f32 %v2726_v38, %v5411_v0  ;;  %v5930_v28 = vld [vmem:[#allocation22_spill] sm:$0xff] }
 0x235   : > { %v2507_v51 = vpop.f32.mrf.mxu1  ;;  %v4355_v29 = vpop.f32.mrf.mxu0 }
 0x236   : > { %v4070_v49 = vpack.c.bf16 %v3012_v25, %v3011_v21  ;;  %v3010_v4 = vmax.f32 %v2727_v37, 0.0  ;;  %v5683_v40 = vadd.f32 %v2507_v51, %v2140_v16  ;;  %v2748_v33 = vadd.f32 %v4355_v29, %v5451_v6 }
 0x237   : > { %v2509_v53 = vpop.f32.mrf.mxu1  ;;  %v2739_v36 = vpop.f32.mrf.mxu0 }
 0x238   : > { %4235 = vst [vmem:[%s5620_s12 + $0x48] sm:$0xff] %v4070_v49   ;;  %v4065_v13 = vpack.c.bf16 %v3010_v4, %v3009_v11  ;;  %v2740_v27 = vadd.f32 %v2739_v36, %v5435_v31  ;;  %v3015_v5 = vmax.f32 %v2748_v33, 0.0 }
 0x239   : > { %v5687_v12 = vpop.f32.mrf.mxu1  ;;  %v4356_v43 = vpop.f32.mrf.mxu0 }
 0x23a   : > { %4234 = vst [vmem:[%s5620_s12 + $0x40] sm:$0xff] %v4065_v13   ;;  %v2751_v0 = vadd.f32 %v4356_v43, %v5459_v48  ;;  %v3013_v35 = vmax.f32 %v2740_v27, 0.0  ;;  %v5932_v13 = vld [vmem:[#allocation25_spill] sm:$0xff] }
 0x23b   : > { %v2512_v17 = vpop.f32.mrf.mxu1  ;;  %v2742_v39 = vpop.f32.mrf.mxu0 }
 0x23c   : > { %v3016_v56 = vmax.f32 %v2751_v0, 0.0  ;;  %v2743_v3 = vadd.f32 %v2742_v39, %v5443_v30  ;;  %v5933_v0 = vld [vmem:[#allocation23_spill] sm:$0xff]  ;;  %v5934_v39 = vld [vmem:[#allocation26_spill] sm:$0xff] }
 0x23d   : > { %v2515_v6 = vpop.f32.mrf.mxu1  ;;  %v4359_v26 = vpop.f32.mrf.mxu0 }
 0x23e   : > { %v4080_v52 = vpack.c.bf16 %v3016_v56, %v3015_v5  ;;  %v3014_v34 = vmax.f32 %v2743_v3, 0.0  ;;  %v5695_v15 = vadd.f32 %v2515_v6, %v2148_v10  ;;  %v2764_v20 = vadd.f32 %v4359_v26, %v5483_v45  ;;  %v5935_v26 = vld [vmem:[#allocation24_spill] sm:$0xff] }
 0x23f   : > { %v2517_v31 = vpop.f32.mrf.mxu1  ;;  %v2755_v48 = vpop.f32.mrf.mxu0 }
 0x240   : > { %4237 = vst [vmem:[%s5620_s12 + $0x58] sm:$0xff] %v4080_v52   ;;  %v4075_v42 = vpack.c.bf16 %v3014_v34, %v3013_v35  ;;  %v2756_v30 = vadd.f32 %v2755_v48, %v5467_v2  ;;  %v3019_v25 = vmax.f32 %v2764_v20, 0.0 }
 0x241   : > { %v2518_v19 = vpop.f32.mrf.mxu1  ;;  %v4360_v9 = vpop.f32.mrf.mxu0 }
 0x242   : > { %4236 = vst [vmem:[%s5620_s12 + $0x50] sm:$0xff] %v4075_v42   ;;  %v5703_v61 = vadd.f32 %v2518_v19, %v2151_v59  ;;  %v2767_v38 = vadd.f32 %v4360_v9, %v5930_v28  ;;  %v3017_v11 = vmax.f32 %v2756_v30, 0.0 }
 0x243   : > { %v2520_v16 = vpop.f32.mrf.mxu1  ;;  %v2758_v21 = vpop.f32.mrf.mxu0 }
 0x244   : > { %v3020_v37 = vmax.f32 %v2767_v38, 0.0  ;;  %v2759_v51 = vadd.f32 %v2758_v21, %v5931_v7 }
 0x245   : > { %v5707_v29 = vpop.f32.mrf.mxu1  ;;  %v4363_v45 = vpop.f32.mrf.mxu0 }
 0x246   : > { %v4090_v49 = vpack.c.bf16 %v3020_v37, %v3019_v25  ;;  %v3018_v4 = vmax.f32 %v2759_v51, 0.0  ;;  %v2780_v33 = vadd.f32 %v4363_v45, %v5932_v13 }
 0x247   : > { %v2525_v53 = vpop.f32.mrf.mxu1  ;;  %v2771_v36 = vpop.f32.mrf.mxu0 }
 0x248   : > { %4239 = vst [vmem:[%s5620_s12 + $0x68] sm:$0xff] %v4090_v49   ;;  %v4085_v2 = vpack.c.bf16 %v3018_v4, %v3017_v11  ;;  %v2772_v17 = vadd.f32 %v2771_v36, %v5933_v0  ;;  %v3023_v3 = vmax.f32 %v2780_v33, 0.0  ;;  %v5936_v33 = vld [vmem:[#allocation28_spill] sm:$0xff] }
 0x249   : > { %v5711_v43 = vpop.f32.mrf.mxu1  ;;  %v4364_v27 = vpop.f32.mrf.mxu0 }
 0x24a   : > { %4238 = vst [vmem:[%s5620_s12 + $0x60] sm:$0xff] %v4085_v2   ;;  %v2783_v10 = vadd.f32 %v4364_v27, %v5934_v39  ;;  %v3021_v31 = vmax.f32 %v2772_v17, 0.0 }
 0x24b   : > { %v2528_v5 = vpop.f32.mrf.mxu1  ;;  %v2774_v56 = vpop.f32.mrf.mxu0 }
 0x24c   : > { %v3024_v6 = vmax.f32 %v2783_v10, 0.0  ;;  %v2775_v35 = vadd.f32 %v2774_v56, %v5935_v26 }
 0x24d   : > { %v5717_v52 = vpop.f32.mrf.mxu1  ;;  %v4367_v34 = vpop.f32.mrf.mxu0 }
 0x24e   : > { %v4100_v48 = vpack.c.bf16 %v3024_v6, %v3023_v3  ;;  %v3022_v59 = vmax.f32 %v2775_v35, 0.0  ;;  %v2796_v9 = vadd.f32 %v4367_v34, %v5545_v44 }
 0x24f   : > { %v2533_v42 = vpop.f32.mrf.mxu1  ;;  %v2787_v20 = vpop.f32.mrf.mxu0 }
 0x250   : > { %4241 = vst [vmem:[%s5620_s12 + $0x78] sm:$0xff] %v4100_v48   ;;  %v4095_v19 = vpack.c.bf16 %v3022_v59, %v3021_v31  ;;  %v2788_v38 = vadd.f32 %v2787_v20, %v5531_v62  ;;  %v3027_v37 = vmax.f32 %v2796_v9, 0.0 }
 0x251   : > { %v5721_v30 = vpop.f32.mrf.mxu1  ;;  %v4368_v28 = vpop.f32.mrf.mxu0 }
 0x252   : > { %4240 = vst [vmem:[%s5620_s12 + $0x70] sm:$0xff] %v4095_v19   ;;  %v2799_v16 = vadd.f32 %v4368_v28, %v5552_v47  ;;  %v3025_v44 = vmax.f32 %v2788_v38, 0.0  ;;  %v5937_v38 = vld [vmem:[#allocation33_spill] sm:$0xff] }
 0x253   : > { %v2536_v21 = vpop.f32.mrf.mxu1  ;;  %v2790_v25 = vpop.f32.mrf.mxu0 }
 0x254   : > { %v3028_v7 = vmax.f32 %v2799_v16, 0.0  ;;  %v2791_v51 = vadd.f32 %v2790_v25, %v5538_v41 }
 0x255   : > { %v5727_v45 = vpop.f32.mrf.mxu1  ;;  %v4371_v11 = vpop.f32.mrf.mxu0 }
 0x256   : > { %v4110_v49 = vpack.c.bf16 %v3028_v7, %v3027_v37  ;;  %v3026_v4 = vmax.f32 %v2791_v51, 0.0  ;;  %v2812_v62 = vadd.f32 %v4371_v11, %v5570_v1 }
 0x257   : > { %v2541_v53 = vpop.f32.mrf.mxu1  ;;  %v2803_v36 = vpop.f32.mrf.mxu0 }
 0x258   : > { %4243 = vst [vmem:[%s5620_s12 + $0x88] sm:$0xff] %v4110_v49   ;;  %v4105_v2 = vpack.c.bf16 %v3026_v4, %v3025_v44  ;;  %v2804_v27 = vadd.f32 %v2803_v36, %v5936_v33  ;;  %v3031_v39 = vmax.f32 %v2812_v62, 0.0  ;;  %v5938_v33 = vld [vmem:[#allocation36_spill] sm:$0xff] }
 0x259   : > { %v5731_v47 = vpop.f32.mrf.mxu1  ;;  %v4372_v13 = vpop.f32.mrf.mxu0 }
 0x25a   : > { %4242 = vst [vmem:[%s5620_s12 + $0x80] sm:$0xff] %v4105_v2   ;;  %v2815_v41 = vadd.f32 %v4372_v13, %v5576_v50  ;;  %v3029_v1 = vmax.f32 %v2804_v27, 0.0 }
 0x25b   : > { %v2544_v0 = vpop.f32.mrf.mxu1  ;;  %v2806_v17 = vpop.f32.mrf.mxu0 }
 0x25c   : > { %v3032_v10 = vmax.f32 %v2815_v41, 0.0  ;;  %v2807_v5 = vadd.f32 %v2806_v17, %v5564_v8 }
 0x25d   : > { %v5737_v56 = vpop.f32.mrf.mxu1  ;;  %v4375_v3 = vpop.f32.mrf.mxu0 }
 0x25e   : > { %v4120_v6 = vpack.c.bf16 %v3032_v10, %v3031_v39  ;;  %v3030_v26 = vmax.f32 %v2807_v5, 0.0  ;;  %v2828_v48 = vadd.f32 %v4375_v3, %v5594_v46 }
 0x25f   : > { %v2549_v35 = vpop.f32.mrf.mxu1  ;;  %v2819_v34 = vpop.f32.mrf.mxu0 }
 0x260   : > { %4245 = vst [vmem:[%s5620_s12 + $0x98] sm:$0xff] %v4120_v6   ;;  %v4115_v31 = vpack.c.bf16 %v3030_v26, %v3029_v1  ;;  %v2820_v42 = vadd.f32 %v2819_v34, %v5582_v55  ;;  %v3035_v9 = vmax.f32 %v2828_v48, 0.0 }
 0x261   : > { %v5741_v50 = vpop.f32.mrf.mxu1  ;;  %v4376_v59 = vpop.f32.mrf.mxu0 }
 0x262   : > { %4244 = vst [vmem:[%s5620_s12 + $0x90] sm:$0xff] %v4115_v31   ;;  %v2831_v8 = vadd.f32 %v4376_v59, %v5600_v63  ;;  %v3033_v46 = vmax.f32 %v2820_v42, 0.0 }
 0x263   : > { %v2552_v20 = vpop.f32.mrf.mxu1  ;;  %v2822_v19 = vpop.f32.mrf.mxu0 }
 0x264   : > { %v3036_v28 = vmax.f32 %v2831_v8, 0.0  ;;  %v2823_v16 = vadd.f32 %v2822_v19, %v5937_v38 }
 0x265   : > { %v5747_v21 = vpop.f32.mrf.mxu1  ;;  %v4379_v25 = vpop.f32.mrf.mxu0 }
 0x266   : > { %v4130_v37 = vpack.c.bf16 %v3036_v28, %v3035_v9  ;;  %v3034_v7 = vmax.f32 %v2823_v16, 0.0  ;;  %v2844_v55 = vadd.f32 %v4379_v25, %v5622_v24 }
 0x267   : > { %v2557_v51 = vpop.f32.mrf.mxu1  ;;  %v2835_v11 = vpop.f32.mrf.mxu0 }
 0x268   : > { %4247 = vst [vmem:[%s5620_s12 + $0xa8] sm:$0xff] %v4130_v37   ;;  %v4125_v44 = vpack.c.bf16 %v3034_v7, %v3033_v46  ;;  %v2836_v4 = vadd.f32 %v2835_v11, %v5604_v58  ;;  %v3039_v62 = vmax.f32 %v2844_v55, 0.0 }
 0x269   : > { %v5751_v63 = vpop.f32.mrf.mxu1  ;;  %v4380_v49 = vpop.f32.mrf.mxu0 }
 0x26a   : > { %4246 = vst [vmem:[%s5620_s12 + $0xa0] sm:$0xff] %v4125_v44   ;;  %v2847_v53 = vadd.f32 %v4380_v49, %v5630_v18  ;;  %v3037_v24 = vmax.f32 %v2836_v4, 0.0  ;;  %v5940_v44 = vld [vmem:[#allocation29_spill] sm:$0xff] }
 0x26b   : > { %v2560_v36 = vpop.f32.mrf.mxu1  ;;  %v2838_v2 = vpop.f32.mrf.mxu0  ;;  %v2156_v55 = vadd.f32 %v5669_v23, %v5940_v44 }
 0x26c   : > { %v3040_v13 = vmax.f32 %v2847_v53, 0.0  ;;  %v2839_v27 = vadd.f32 %v2838_v2, %v5938_v33  ;;  %v5941_v53 = vld [vmem:[#allocation30_spill] sm:$0xff] }
 0x26d   : > { %v5757_v41 = vpop.f32.mrf.mxu1  ;;  %v4383_v0 = vpop.f32.mrf.mxu0 }
 0x26e   : > { %v4140_v17 = vpack.c.bf16 %v3040_v13, %v3039_v62  ;;  %v3038_v39 = vmax.f32 %v2839_v27, 0.0  ;;  %v2860_v58 = vadd.f32 %v4383_v0, %v5650_v60  ;;  %v5939_v60 = vld [vmem:[#allocation27_spill] sm:$0xff] }
 0x26f   : > { %v2565_v10 = vpop.f32.mrf.mxu1  ;;  %v2851_v5 = vpop.f32.mrf.mxu0  ;;  %v2143_v20 = vadd.f32 %v5669_v23, %v5939_v60 }
 0x270   : > { %4249 = vst [vmem:[%s5620_s12 + $0xb8] sm:$0xff] %v4140_v17   ;;  %v4135_v3 = vpack.c.bf16 %v3038_v39, %v3037_v24  ;;  %v2852_v6 = vadd.f32 %v2851_v5, %v5636_v32  ;;  %v3043_v31 = vmax.f32 %v2860_v58, 0.0 }
 0x271   : > { %v5761_v18 = vpop.f32.mrf.mxu1  ;;  %v4384_v1 = vpop.f32.mrf.mxu0 }
 0x272   : > { %4248 = vst [vmem:[%s5620_s12 + $0xb0] sm:$0xff] %v4135_v3   ;;  %v2863_v26 = vadd.f32 %v4384_v1, %v5658_v22  ;;  %v3041_v19 = vmax.f32 %v2852_v6, 0.0  ;;  %v2511_v22 = vadd.f32 %v5687_v12, %v2143_v20 }
 0x273   : > { %v2568_v35 = vpop.f32.mrf.mxu1  ;;  %v2854_v34 = vpop.f32.mrf.mxu0 }
 0x274   : > { %v3044_v48 = vmax.f32 %v2863_v26, 0.0  ;;  %v2855_v59 = vadd.f32 %v2854_v34, %v5644_v57  ;;  %v5943_v34 = vld [vmem:[#allocation31_spill] sm:$0xff] }
 0x275   : > { %v5767_v42 = vpop.f32.mrf.mxu1  ;;  %v4387_v8 = vpop.f32.mrf.mxu0 }
 0x276   : > { %v4150_v9 = vpack.c.bf16 %v3044_v48, %v3043_v31  ;;  %v3042_v28 = vmax.f32 %v2855_v59, 0.0  ;;  %v2876_v25 = vadd.f32 %v4387_v8, %v5683_v40  ;;  %v2159_v40 = vadd.f32 %v5669_v23, %v5941_v53  ;;  %v5944_v48 = vld [vmem:[#allocation35_spill] sm:$0xff]  ;;  %v5947_v53 = vld [vmem:[#allocation2_spill] sm:$0xff] }
 0x277   : > { %v2573_v32 = vpop.f32.mrf.mxu1  ;;  %v2867_v38 = vpop.f32.mrf.mxu0  ;;  %v2164_v31 = vadd.f32 %v5669_v23, %v5943_v34  ;;  %v2175_v59 = vadd.f32 %v5669_v23, %v5944_v48 }
 0x278   : > { %4251 = vst [vmem:[%s5620_s12 + $0xc8] sm:$0xff] %v4150_v9   ;;  %v4145_v16 = vpack.c.bf16 %v3042_v28, %v3041_v19  ;;  %v2868_v37 = vadd.f32 %v2867_v38, %v5664_v14  ;;  %v3047_v49 = vmax.f32 %v2876_v25, 0.0  ;;  %v2524_v14 = vadd.f32 %v5707_v29, %v2156_v55  ;;  %v5942_v29 = vld [vmem:[#allocation34_spill] sm:$0xff]  ;;  %v5945_v28 = vld [vmem:[#allocation32_spill] sm:$0xff] }
 0x279   : > { %v5774_v46 = vpop.f32.mrf.mxu1  ;;  %v4388_v57 = vpop.f32.mrf.mxu0  ;;  %v2527_v24 = vadd.f32 %v5711_v43, %v2159_v40  ;;  %v2172_v6 = vadd.f32 %v5669_v23, %v5942_v29  ;;  %v2167_v32 = vadd.f32 %v5669_v23, %v5945_v28  ;;  %v2180_v40 = vadd.f32 %v5669_v23, %v5947_v53 }
 0x27a   : > { %4250 = vst [vmem:[%s5620_s12 + $0xc0] sm:$0xff] %v4145_v16   ;;  %v2879_v7 = vadd.f32 %v4388_v57, %v2511_v22  ;;  %v3045_v62 = vmax.f32 %v2868_v37, 0.0  ;;  %v2532_v22 = vadd.f32 %v5717_v52, %v2164_v31  ;;  %v2543_v16 = vadd.f32 %v5731_v47, %v2175_v59  ;;  %v5950_v31 = vld [vmem:[#allocation8_spill] sm:$0xff] }
 0x27b   : > { %v2576_v51 = vpop.f32.mrf.mxu1  ;;  %v2870_v11 = vpop.f32.mrf.mxu0  ;;  %v2540_v60 = vadd.f32 %v5727_v45, %v2172_v6  ;;  %v2535_v45 = vadd.f32 %v5721_v30, %v2167_v32  ;;  %v2204_v48 = vadd.f32 %v5669_v23, %v5950_v31 }
 0x27c   : > { %v3048_v4 = vmax.f32 %v2879_v7, 0.0  ;;  %v2871_v12 = vadd.f32 %v2870_v11, %v5677_v54 }
 0x27d   : > { %v5783_v36 = vpop.f32.mrf.mxu1  ;;  %v4391_v2 = vpop.f32.mrf.mxu0  ;;  %v2572_v28 = vadd.f32 %v5767_v42, %v2204_v48 }
 0x27e   : > { %v4160_v13 = vpack.c.bf16 %v3048_v4, %v3047_v49  ;;  %v3046_v33 = vmax.f32 %v2871_v12, 0.0  ;;  %v2892_v39 = vadd.f32 %v4391_v2, %v2524_v14  ;;  %v5946_v49 = vld [vmem:[#allocation4_spill] sm:$0xff]  ;;  %v5948_v2 = vld [vmem:[#allocation5_spill] sm:$0xff] }
 0x27f   : > { %v2581_v27 = vpop.f32.mrf.mxu1  ;;  %v2883_v0 = vpop.f32.mrf.mxu0  ;;  %v2188_v4 = vadd.f32 %v5669_v23, %v5946_v49  ;;  %v2191_v14 = vadd.f32 %v5669_v23, %v5948_v2 }
 0x280   : > { %4253 = vst [vmem:[%s5620_s12 + $0xd8] sm:$0xff] %v4160_v13   ;;  %v4155_v17 = vpack.c.bf16 %v3046_v33, %v3045_v62  ;;  %v2884_v5 = vadd.f32 %v2883_v0, %v5695_v15  ;;  %v3051_v26 = vmax.f32 %v2892_v39, 0.0 }
 0x281   : > { %v5788_v54 = vpop.f32.mrf.mxu1  ;;  %v4392_v10 = vpop.f32.mrf.mxu0  ;;  %v2556_v13 = vadd.f32 %v5747_v21, %v2188_v4 }
 0x282   : > { %4252 = vst [vmem:[%s5620_s12 + $0xd0] sm:$0xff] %v4155_v17   ;;  %v2895_v3 = vadd.f32 %v4392_v10, %v2527_v24  ;;  %v3049_v20 = vmax.f32 %v2884_v5, 0.0  ;;  %v5949_v24 = vld [vmem:[#allocation3_spill] sm:$0xff]  ;;  %v2548_v5 = vadd.f32 %v5737_v56, %v2180_v40 }
 0x283   : > { %v2584_v58 = vpop.f32.mrf.mxu1  ;;  %v2886_v1 = vpop.f32.mrf.mxu0  ;;  %v2183_v17 = vadd.f32 %v5669_v23, %v5949_v24 }
 0x284   : > { %v3052_v35 = vmax.f32 %v2895_v3, 0.0  ;;  %v2887_v43 = vadd.f32 %v2886_v1, %v5703_v61  ;;  %v2559_v3 = vadd.f32 %v5751_v63, %v2191_v14 }
 0x285   : > { %v5799_v8 = vpop.f32.mrf.mxu1  ;;  %v4395_v15 = vpop.f32.mrf.mxu0  ;;  %v2551_v21 = vadd.f32 %v5741_v50, %v2183_v17 }
 0x286   : > { %v4170_v19 = vpack.c.bf16 %v3052_v35, %v3051_v26  ;;  %v3050_v9 = vmax.f32 %v2887_v43, 0.0  ;;  %v2908_v57 = vadd.f32 %v4395_v15, %v2540_v60  ;;  %v5951_v15 = vld [vmem:[#allocation6_spill] sm:$0xff] }
 0x287   : > { %v2589_v38 = vpop.f32.mrf.mxu1  ;;  %v2899_v61 = vpop.f32.mrf.mxu0  ;;  %v2196_v60 = vadd.f32 %v5669_v23, %v5951_v15 }
 0x288   : > { %4255 = vst [vmem:[%s5620_s12 + $0xe8] sm:$0xff] %v4170_v19   ;;  %v4165_v25 = vpack.c.bf16 %v3050_v9, %v3049_v20  ;;  %v2900_v51 = vadd.f32 %v2899_v61, %v2532_v22  ;;  %v3055_v12 = vmax.f32 %v2908_v57, 0.0  ;;  %v5952_v20 = vld [vmem:[#allocation9_spill] sm:$0xff]  ;;  %v5953_v22 = vld [vmem:[#allocation7_spill] sm:$0xff] }
 0x289   : > { %v5807_v37 = vpop.f32.mrf.mxu1  ;;  %v4396_v7 = vpop.f32.mrf.mxu0  ;;  %v2207_v19 = vadd.f32 %v5669_v23, %v5952_v20  ;;  %v5960_v20 = vld [vmem:[#allocation17_spill] sm:$0xff] }
 0x28a   : > { %4254 = vst [vmem:[%s5620_s12 + $0xe0] sm:$0xff] %v4165_v25   ;;  %v2911_v11 = vadd.f32 %v4396_v7, %v2543_v16  ;;  %v3053_v33 = vmax.f32 %v2900_v51, 0.0  ;;  %v2199_v16 = vadd.f32 %v5669_v23, %v5953_v22  ;;  %v2564_v7 = vadd.f32 %v5757_v41, %v2196_v60  ;;  %v5961_v22 = vld [vmem:[#allocation15_spill] sm:$0xff] }
 0x28b   : > { %v2592_v44 = vpop.f32.mrf.mxu1  ;;  %v2902_v55 = vpop.f32.mrf.mxu0 }
 0x28c   : > { %v3056_v52 = vmax.f32 %v2911_v11, 0.0  ;;  %v2903_v47 = vadd.f32 %v2902_v55, %v2535_v45  ;;  %v2575_v45 = vadd.f32 %v5774_v46, %v2207_v19  ;;  %v2567_v49 = vadd.f32 %v5761_v18, %v2199_v16  ;;  %v5955_v46 = vld [vmem:[#allocation10_spill] sm:$0xff] }
 0x28d   : > { %v5817_v62 = vpop.f32.mrf.mxu1  ;;  %v4399_v30 = vpop.f32.mrf.mxu0  ;;  %v2212_v14 = vadd.f32 %v5669_v23, %v5955_v46  ;;  %v2239_v19 = vadd.f32 %v5669_v23, %v5960_v20  ;;  %v2231_v16 = vadd.f32 %v5669_v23, %v5961_v22 }
 0x28e   : > { %v4180_v27 = vpack.c.bf16 %v3056_v52, %v3055_v12  ;;  %v3054_v0 = vmax.f32 %v2903_v47, 0.0  ;;  %v2924_v1 = vadd.f32 %v4399_v30, %v2556_v13  ;;  %v5954_v47 = vld [vmem:[#allocation12_spill] sm:$0xff]  ;;  %v5956_v30 = vld [vmem:[#allocation13_spill] sm:$0xff] }
 0x28f   : > { %v2597_v39 = vpop.f32.mrf.mxu1  ;;  %v2915_v10 = vpop.f32.mrf.mxu0  ;;  %v2220_v53 = vadd.f32 %v5669_v23, %v5954_v47  ;;  %v2223_v13 = vadd.f32 %v5669_v23, %v5956_v30 }
 0x290   : > { %4257 = vst [vmem:[%s5620_s12 + $0xf8] sm:$0xff] %v4180_v27   ;;  %v4175_v58 = vpack.c.bf16 %v3054_v0, %v3053_v33  ;;  %v2916_v26 = vadd.f32 %v2915_v10, %v2548_v5  ;;  %v3059_v59 = vmax.f32 %v2924_v1, 0.0  ;;  %v5957_v39 = vld [vmem:[#allocation11_spill] sm:$0xff] }
 0x291   : > { %v5825_v29 = vpop.f32.mrf.mxu1  ;;  %v4400_v6 = vpop.f32.mrf.mxu0  ;;  %v2588_v27 = vadd.f32 %v5799_v8, %v2220_v53  ;;  %v2215_v10 = vadd.f32 %v5669_v23, %v5957_v39  ;;  %v2591_v1 = vadd.f32 %v5807_v37, %v2223_v13  ;;  %v5959_v37 = vld [vmem:[#allocation14_spill] sm:$0xff] }
 0x292   : > { %4256 = vst [vmem:[%s5620_s12 + $0xf0] sm:$0xff] %v4175_v58   ;;  %v2927_v35 = vadd.f32 %v4400_v6, %v2559_v3  ;;  %v3057_v32 = vmax.f32 %v2916_v26, 0.0  ;;  %v2580_v58 = vadd.f32 %v5783_v36, %v2212_v14  ;;  %v2228_v60 = vadd.f32 %v5669_v23, %v5959_v37 }
 0x293   : > { %v2600_v43 = vpop.f32.mrf.mxu1  ;;  %v2918_v34 = vpop.f32.mrf.mxu0 }
 0x294   : > { %v3060_v56 = vmax.f32 %v2927_v35, 0.0  ;;  %v2919_v63 = vadd.f32 %v2918_v34, %v2551_v21  ;;  %v2583_v43 = vadd.f32 %v5788_v54, %v2215_v10 }
 0x295   : > { %v2603_v9 = vpop.f32.mrf.mxu1  ;;  %v4403_v50 = vpop.f32.mrf.mxu0 }
 0x296   : > { %v4190_v38 = vpack.c.bf16 %v3060_v56, %v3059_v59  ;;  %v3058_v61 = vmax.f32 %v2919_v63, 0.0  ;;  %v2940_v11 = vadd.f32 %v4403_v50, %v2572_v28  ;;  %v5958_v59 = vld [vmem:[#allocation16_spill] sm:$0xff] }
 0x297   : > { %v2605_v25 = vpop.f32.mrf.mxu1  ;;  %v2931_v57 = vpop.f32.mrf.mxu0  ;;  %v2236_v56 = vadd.f32 %v5669_v23, %v5958_v59 }
 0x298   : > { %4259 = vst [vmem:[%s5620_s12 + $0x108] sm:$0xff] %v4190_v38   ;;  %v4185_v51 = vpack.c.bf16 %v3058_v61, %v3057_v32  ;;  %v2932_v42 = vadd.f32 %v2931_v57, %v2564_v7  ;;  %v3063_v40 = vmax.f32 %v2940_v11, 0.0  ;;  %v2596_v7 = vadd.f32 %v5817_v62, %v2228_v60 }
 0x299   : > { %v2606_v44 = vpop.f32.mrf.mxu1  ;;  %v4404_v55 = vpop.f32.mrf.mxu0  ;;  %v2604_v28 = vadd.f32 %v2603_v9, %v2236_v56 }
 0x29a   : > { %4258 = vst [vmem:[%s5620_s12 + $0x100] sm:$0xff] %v4185_v51   ;;  %v2943_v4 = vadd.f32 %v4404_v55, %v2575_v45  ;;  %v3061_v0 = vmax.f32 %v2932_v42, 0.0  ;;  %v2607_v45 = vadd.f32 %v2606_v44, %v2239_v19  ;;  %v5962_v42 = vld [vmem:[#allocation20_spill] sm:$0xff] }
 0x29b   : > { %v2608_v12 = vpop.f32.mrf.mxu1  ;;  %v2934_v52 = vpop.f32.mrf.mxu0  ;;  %v2252_v9 = vadd.f32 %v5669_v23, %v5962_v42 }
 0x29c   : > { %v3064_v41 = vmax.f32 %v2943_v4, 0.0  ;;  %v2935_v2 = vadd.f32 %v2934_v52, %v2567_v49  ;;  %v2599_v4 = vadd.f32 %v5825_v29, %v2231_v16 }
 0x29d   : > { %v5849_v33 = vpop.f32.mrf.mxu1  ;;  %v4407_v18 = vpop.f32.mrf.mxu0 }
 0x29e   : > { %v4200_v24 = vpack.c.bf16 %v3064_v41, %v3063_v40  ;;  %v3062_v17 = vmax.f32 %v2935_v2, 0.0  ;;  %v2956_v21 = vadd.f32 %v4407_v18, %v2588_v27  ;;  %v5963_v2 = vld [vmem:[#allocation18_spill] sm:$0xff] }
 0x29f   : > { %v2613_v5 = vpop.f32.mrf.mxu1  ;;  %v2947_v3 = vpop.f32.mrf.mxu0  ;;  %v2244_v46 = vadd.f32 %v5669_v23, %v5963_v2 }
 0x2a0   : > { %4261 = vst [vmem:[%s5620_s12 + $0x118] sm:$0xff] %v4200_v24   ;;  %v4195_v6 = vpack.c.bf16 %v3062_v17, %v3061_v0  ;;  %v2948_v8 = vadd.f32 %v2947_v3, %v2580_v58  ;;  %v3067_v63 = vmax.f32 %v2956_v21, 0.0  ;;  %v5964_v0 = vld [vmem:[#allocation19_spill] sm:$0xff] }
 0x2a1   : > { %v2614_v26 = vpop.f32.mrf.mxu1  ;;  %v4408_v35 = vpop.f32.mrf.mxu0  ;;  %v2247_v24 = vadd.f32 %v5669_v23, %v5964_v0  ;;  %v2612_v17 = vadd.f32 %v5849_v33, %v2244_v46 }
 0x2a2   : > { %4260 = vst [vmem:[%s5620_s12 + $0x110] sm:$0xff] %v4195_v6   ;;  %v2959_v34 = vadd.f32 %v4408_v35, %v2591_v1  ;;  %v3065_v32 = vmax.f32 %v2948_v8, 0.0 }
 0x2a3   : > { %v2616_v31 = vpop.f32.mrf.mxu1  ;;  %v2950_v48 = vpop.f32.mrf.mxu0  ;;  %v2615_v3 = vadd.f32 %v2614_v26, %v2247_v24 }
 0x2a4   : > { %v3068_v36 = vmax.f32 %v2959_v34, 0.0  ;;  %v2951_v15 = vadd.f32 %v2950_v48, %v2583_v43 }
 0x2a5   : > { %v2619_v50 = vpop.f32.mrf.mxu1  ;;  %v4411_v54 = vpop.f32.mrf.mxu0 }
 0x2a6   : > { %v4210_v38 = vpack.c.bf16 %v3068_v36, %v3067_v63  ;;  %v3066_v61 = vmax.f32 %v2951_v15, 0.0  ;;  %v2972_v11 = vadd.f32 %v4411_v54, %v2604_v28  ;;  %v2620_v40 = vadd.f32 %v2619_v50, %v2252_v9 }
 0x2a7   : > { %v2963_v25 = vpop.f32.mrf.mxu0  ;;  %v2621_v57 = vpop.f32.mrf.mxu1 }
 0x2a8   : > { %4263 = vst [vmem:[%s5620_s12 + $0x128] sm:$0xff] %v4210_v38   ;;  %v4205_v51 = vpack.c.bf16 %v3066_v61, %v3065_v32  ;;  %v2964_v12 = vadd.f32 %v2963_v25, %v2596_v7  ;;  %v3071_v41 = vmax.f32 %v2972_v11, 0.0 }
 0x2a9   : > { %v4412_v55 = vpop.f32.mrf.mxu0  ;;  %v2622_v49 = vpop.f32.mrf.mxu1 }
 0x2aa   : > { %4262 = vst [vmem:[%s5620_s12 + $0x120] sm:$0xff] %v4205_v51   ;;  %v2975_v52 = vadd.f32 %v4412_v55, %v2607_v45  ;;  %v3069_v30 = vmax.f32 %v2964_v12, 0.0 }
 0x2ab   : > { %v2966_v47 = vpop.f32.mrf.mxu0  ;;  %v2623_v53 = vpop.f32.mrf.mxu1 }
 0x2ac   : > { %v3072_v62 = vmax.f32 %v2975_v52, 0.0  ;;  %v2967_v44 = vadd.f32 %v2966_v47, %v2599_v4 }
 0x2ad   : > { %v4415_v14 = vpop.f32.mrf.mxu0 }
 0x2ae   : > { %v4220_v13 = vpack.c.bf16 %v3072_v62, %v3071_v41  ;;  %v3070_v18 = vmax.f32 %v2967_v44, 0.0  ;;  %v2988_v29 = vadd.f32 %v4415_v14, %v2620_v40 }
 0x2af   : > { %v2979_v27 = vpop.f32.mrf.mxu0 }
 0x2b0   : > { %4265 = vst [vmem:[%s5620_s12 + $0x138] sm:$0xff] %v4220_v13   ;;  %v4215_v39 = vpack.c.bf16 %v3070_v18, %v3069_v30  ;;  %v3075_v10 = vmax.f32 %v2988_v29, 0.0  ;;  %v2980_v1 = vadd.f32 %v2979_v27, %v2612_v17 }
 0x2b1   : > { %v4416_v5 = vpop.f32.mrf.mxu0 }
 0x2b2   : > { %4264 = vst [vmem:[%s5620_s12 + $0x130] sm:$0xff] %v4215_v39   ;;  %v4021_v58 = vpack.c.bf16 %v3075_v10, %v3075_v10  ;;  %v3073_v35 = vmax.f32 %v2980_v1, 0.0 }
 0x2b3   : > { %v2982_v6 = vpop.f32.mrf.mxu0 }
 0x2b4   : > { %3491 = vst [vmem:[%s5620_s12 + $0x148] sm:$0xf] %v4021_v58  ;;  %v2983_v21 = vadd.f32 %v2982_v6, %v2615_v3 }
 0x2b6   : > { %v3074_v43 = vmax.f32 %v2983_v21, 0.0 }
 0x2b8   : > { %v4225_v8 = vpack.c.bf16 %v3074_v43, %v3073_v35 }
 0x2ba   : > { %4266 = vst [vmem:[%s5620_s12 + $0x140] sm:$0xff] %v4225_v8  }
 0x2bb PF: > { %s13_s14 = sadd.s32 1, %s4830_s14   ;;  %s5965_s12 = smov %s4826_s13 }
 0x2bc   : > { %p10_p5 = scmp.ge.s32.totalorder %s13_s14, 4   ;;  %s5966_s13 = smov %s5968_s15 }
 0x2be   :  { %12 = sbr.rel (!%p10_p5) target bundleno = 2 (0x2), region = 68 }

// kernel: cnn_model_forward.6
= control target key start
LH: loop header
LB: loop body
LE: loop exit
PB: predicated region body
PF: predicated region fallthrough
CT: control target
= control target key end

     0   :  { %v6058_v0 = vmov 0   ;;  %s8005_s1 = inlined_call_operand.vmem [shape: bf16[1024,128], index: 1, kind: input, shape index: {}]   ;;  %s8006_s0 = inlined_call_operand.vmem [shape: bf16[272,1024], index: 0, kind: input, shape index: {}]   ;;  %s8007_s3 = inlined_call_operand.vmem [shape: bf16[9,128,128], index: 3, kind: input, shape index: {}]   ;;  %s8008_s2 = inlined_call_operand.vmem [shape: f32[1,128], index: 2, kind: input, shape index: {}]   ;;  %s8009_s4 = inlined_call_operand.vmem [shape: f32[1,128], index: 4, kind: input, shape index: {}]   ;;  %s8010_s5 = inlined_call_operand.vmem [shape: bf16[224,128], index: 5, kind: output, shape index: {}]  }
   0x1   :  { %1356 = vmatprep.subr.bf16.mxu0 %v6058_v0  ;;  %1525 = vmatprep.subr.bf16.mxu1 %v6058_v0  ;;  %v5922_v1 = vld [vmem:[%s8005_s1 + $0x38] sm:$0xff]   ;;  %v5924_v3 = vld [vmem:[%s8005_s1 + $0x30] sm:$0xff]   ;;  %v5926_v5 = vld [vmem:[%s8005_s1 + $0x28] sm:$0xff]  }
   0x2   :  { %v5923_v2 = vld [vmem:[%s8005_s1 + $0xb8] sm:$0xff]   ;;  %1357 = vmatpush1.bf16.msra.mxu0 %v5922_v1  ;;  %v5925_v4 = vld [vmem:[%s8005_s1 + $0xb0] sm:$0xff]   ;;  %v5927_v6 = vld [vmem:[%s8005_s1 + $0xa8] sm:$0xff]  }
   0x3   :  { %1526 = vmatpush1.bf16.msra.mxu1 %v5923_v2  ;;  %1358 = vmatprep.subr.bf16.mxu0 %v6058_v0  ;;  %v5928_v7 = vld [vmem:[%s8005_s1 + $0x20] sm:$0xff]   ;;  %v5930_v9 = vld [vmem:[%s8005_s1 + $0x18] sm:$0xff]   ;;  %v5932_v11 = vld [vmem:[%s8005_s1 + $0x10] sm:$0xff]  }
   0x4   :  { %1527 = vmatprep.subr.bf16.mxu1 %v6058_v0  ;;  %v5929_v8 = vld [vmem:[%s8005_s1 + $0xa0] sm:$0xff]   ;;  %v5931_v10 = vld [vmem:[%s8005_s1 + $0x98] sm:$0xff]   ;;  %v5933_v12 = vld [vmem:[%s8005_s1 + $0x90] sm:$0xff]  }
   0x5   :  { %v5934_v13 = vld [vmem:[%s8005_s1 + $0x8] sm:$0xff]   ;;  %v5936_v15 = vld [vmem:[%s8005_s1] sm:$0xff]   ;;  %v5938_v17 = vld [vmem:[%s8005_s1 + $0x78] sm:$0xff]  }
   0x6   :  { %1359 = vmatpush1.bf16.msra.mxu0 %v5924_v3  ;;  %v5935_v14 = vld [vmem:[%s8005_s1 + $0x88] sm:$0xff]   ;;  %v5937_v16 = vld [vmem:[%s8005_s1 + $0x80] sm:$0xff]   ;;  %v5939_v18 = vld [vmem:[%s8005_s1 + $0xf8] sm:$0xff]  }
   0x7   :  { %1528 = vmatpush1.bf16.msra.mxu1 %v5925_v4  ;;  %1360 = vmatprep.subr.bf16.mxu0 %v6058_v0  ;;  %v6164_v19 = vld [vmem:[%s8006_s0] sm:$0xff]  ;;  %v6174_v21 = vld [vmem:[%s8006_s0 + $0x8] sm:$0xff]  ;;  %v5940_v24 = vld [vmem:[%s8005_s1 + $0x70] sm:$0xff]  }
   0x8   :  { %1529 = vmatprep.subr.bf16.mxu1 %v6058_v0  ;;  %v6169_v20 = vld [vmem:[%s8006_s0 + $0x20] sm:$0xff]  ;;  %v26_v23 = vld [vmem:[%s8006_s0 + $0x28] sm:$0xff]  ;;  %v5941_v26 = vld [vmem:[%s8005_s1 + $0xf0] sm:$0xff]  }
   0x9   :  { %v4772_v22 = vcombine.high %v6164_v19, %v6169_v20  ;;  %v4774_v25 = vcombine.high %v6174_v21, %v26_v23  ;;  %v5942_v27 = vld [vmem:[%s8005_s1 + $0x68] sm:$0xff]   ;;  %v5944_v29 = vld [vmem:[%s8005_s1 + $0x60] sm:$0xff]   ;;  %v5946_v31 = vld [vmem:[%s8005_s1 + $0x58] sm:$0xff]   ;;  %v4771_v41 = vcombine.low %v6164_v19, %v6169_v20  ;;  %v4773_v44 = vcombine.low %v6174_v21, %v26_v23 }
   0xa   :  { %1361 = vmatpush1.bf16.msra.mxu0 %v5926_v5  ;;  %v5943_v28 = vld [vmem:[%s8005_s1 + $0xe8] sm:$0xff]   ;;  %v5945_v30 = vld [vmem:[%s8005_s1 + $0xe0] sm:$0xff]   ;;  %v5947_v32 = vld [vmem:[%s8005_s1 + $0xd8] sm:$0xff]  }
   0xb   :  { %1530 = vmatpush1.bf16.msra.mxu1 %v5927_v6  ;;  %1362 = vmatprep.subr.bf16.mxu0 %v6058_v0  ;;  %v5948_v33 = vld [vmem:[%s8005_s1 + $0x50] sm:$0xff]   ;;  %v5950_v35 = vld [vmem:[%s8005_s1 + $0x48] sm:$0xff]   ;;  %v5952_v37 = vld [vmem:[%s8005_s1 + $0x40] sm:$0xff]  }
   0xc   :  { %1531 = vmatprep.subr.bf16.mxu1 %v6058_v0  ;;  %1388 = vmatprep.mubr.bf16.mxu0 %v4772_v22  ;;  %v5949_v34 = vld [vmem:[%s8005_s1 + $0xd0] sm:$0xff]   ;;  %v5951_v36 = vld [vmem:[%s8005_s1 + $0xc8] sm:$0xff]   ;;  %v5953_v38 = vld [vmem:[%s8005_s1 + $0xc0] sm:$0xff]  }
   0xd   :  { %1557 = vmatprep.mubr.bf16.mxu1 %v4774_v25  ;;  %v29_v39 = vld [vmem:[%s8006_s0 + $0x40] sm:$0xff]  ;;  %v30_v42 = vld [vmem:[%s8006_s0 + $0x48] sm:$0xff]  ;;  %v5954_v45 = vld [vmem:[%s8005_s1 + $0x138] sm:$0xff]  }
   0xe   :  { %1363 = vmatpush1.bf16.msra.mxu0 %v5928_v7  ;;  %v33_v40 = vld [vmem:[%s8006_s0 + $0x60] sm:$0xff]  ;;  %v34_v43 = vld [vmem:[%s8006_s0 + $0x68] sm:$0xff]  ;;  %v5955_v46 = vld [vmem:[%s8005_s1 + $0x1b8] sm:$0xff]  }
   0xf   :  { %1532 = vmatpush1.bf16.msra.mxu1 %v5929_v8  ;;  %1364 = vmatprep.subr.bf16.mxu0 %v6058_v0  ;;  %v4780_v47 = vcombine.high %v29_v39, %v33_v40  ;;  %v4782_v48 = vcombine.high %v30_v42, %v34_v43  ;;  %v5956_v49 = vld [vmem:[%s8005_s1 + $0x130] sm:$0xff]   ;;  %v37_v51 = vld [vmem:[%s8006_s0 + $0x80] sm:$0xff]  ;;  %v38_v53 = vld [vmem:[%s8006_s0 + $0x88] sm:$0xff]  ;;  %v4779_v55 = vcombine.low %v29_v39, %v33_v40 }
  0x10   :  { %1533 = vmatprep.subr.bf16.mxu1 %v6058_v0  ;;  %v5957_v50 = vld [vmem:[%s8005_s1 + $0x1b0] sm:$0xff]   ;;  %v41_v52 = vld [vmem:[%s8006_s0 + $0xa0] sm:$0xff]  ;;  %v42_v54 = vld [vmem:[%s8006_s0 + $0xa8] sm:$0xff]  ;;  %v4781_v56 = vcombine.low %v30_v42, %v34_v43 }
  0x11   :  { %v4788_v57 = vcombine.high %v37_v51, %v41_v52  ;;  %v4790_v58 = vcombine.high %v38_v53, %v42_v54  ;;  %v5958_v59 = vld [vmem:[%s8005_s1 + $0x128] sm:$0xff]   ;;  %v45_v61 = vld [vmem:[%s8006_s0 + $0xc0] sm:$0xff]  ;;  %v4787_v4 = vcombine.low %v37_v51, %v41_v52  ;;  %v4789_v5 = vcombine.low %v38_v53, %v42_v54  ;;  %v5962_v8 = vld [vmem:[%s8005_s1 + $0x118] sm:$0xff]  }
  0x12   :  { %1365 = vmatpush1.bf16.msra.mxu0 %v5930_v9  ;;  %v5959_v60 = vld [vmem:[%s8005_s1 + $0x1a8] sm:$0xff]   ;;  %v49_v62 = vld [vmem:[%s8006_s0 + $0xe0] sm:$0xff]  ;;  %v5963_v9 = vld [vmem:[%s8005_s1 + $0x198] sm:$0xff]  }
  0x13   :  { %1534 = vmatpush1.bf16.msra.mxu1 %v5931_v10  ;;  %1366 = vmatprep.subr.bf16.mxu0 %v6058_v0  ;;  %v46_v63 = vld [vmem:[%s8006_s0 + $0xc8] sm:$0xff]  ;;  %v5960_v1 = vld [vmem:[%s8005_s1 + $0x120] sm:$0xff]   ;;  %v4796_v6 = vcombine.high %v45_v61, %v49_v62  ;;  %v5973_v39 = vld [vmem:[%s8005_s1 + $0x1f0] sm:$0xff]  }
  0x14   :  { %1535 = vmatprep.subr.bf16.mxu1 %v6058_v0  ;;  %v50_v2 = vld [vmem:[%s8006_s0 + $0xe8] sm:$0xff]  ;;  %v5961_v3 = vld [vmem:[%s8005_s1 + $0x1a0] sm:$0xff]  }
  0x15   :  { %v4798_v7 = vcombine.high %v46_v63, %v50_v2  ;;  %v53_v10 = vld [vmem:[%s8006_s0 + $0x100] sm:$0xff]  ;;  %v5966_v20 = vld [vmem:[%s8005_s1 + $0x108] sm:$0xff]  }
  0x16   :  { %1367 = vmatpush1.bf16.msra.mxu0 %v5932_v11  ;;  %v57_v11 = vld [vmem:[%s8006_s0 + $0x120] sm:$0xff]  ;;  %v5967_v21 = vld [vmem:[%s8005_s1 + $0x188] sm:$0xff]  }
  0x17   :  { %1536 = vmatpush1.bf16.msra.mxu1 %v5933_v12  ;;  %1368 = vmatprep.subr.bf16.mxu0 %v6058_v0  ;;  %v54_v12 = vld [vmem:[%s8006_s0 + $0x108] sm:$0xff]  ;;  %v61_v22 = vld [vmem:[%s8006_s0 + $0x140] sm:$0xff] }
  0x18   :  { %1537 = vmatprep.subr.bf16.mxu1 %v6058_v0  ;;  %v65_v23 = vld [vmem:[%s8006_s0 + $0x160] sm:$0xff]  ;;  %v62_v25 = vld [vmem:[%s8006_s0 + $0x148] sm:$0xff] }
  0x19   :  { %v4811_v40 = vcombine.low %v61_v22, %v65_v23  ;;  %v5977_v51 = vld [vmem:[%s8005_s1 + $0x1e0] sm:$0xff]  }
  0x1a   :  { %1369 = vmatpush1.bf16.msra.mxu0 %v5934_v13  ;;  %v5964_v13 = vld [vmem:[%s8005_s1 + $0x110] sm:$0xff]  }
  0x1b   :  { %1538 = vmatpush1.bf16.msra.mxu1 %v5935_v14  ;;  %1370 = vmatprep.subr.bf16.mxu0 %v6058_v0  ;;  %v58_v14 = vld [vmem:[%s8006_s0 + $0x128] sm:$0xff] }
  0x1c   :  { %1539 = vmatprep.subr.bf16.mxu1 %v6058_v0  ;;  %v4806_v19 = vcombine.high %v54_v12, %v58_v14 }
  0x1e   :  { %1371 = vmatpush1.bf16.msra.mxu0 %v5936_v15  ;;  %v5965_v15 = vld [vmem:[%s8005_s1 + $0x190] sm:$0xff]  }
  0x1f   :  { %1540 = vmatpush1.bf16.msra.mxu1 %v5937_v16  ;;  %1372 = vmatprep.subr.bf16.mxu0 %v6058_v0  ;;  %v4795_v16 = vcombine.low %v45_v61, %v49_v62  ;;  %v86_v61 = vld [vmem:[%s8006_s0 + $0x208] sm:$0xff] }
  0x20   :  { %1541 = vmatprep.subr.bf16.mxu1 %v6058_v0  ;;  %v90_v62 = vld [vmem:[%s8006_s0 + $0x228] sm:$0xff] }
  0x22   :  { %1373 = vmatpush2.bf16.msra.mxu0 %v5938_v17  ;;  %v4797_v17 = vcombine.low %v46_v63, %v50_v2  ;;  %v5981_v63 = vld [vmem:[%s8005_s1 + $0x1d0] sm:$0xff]  }
  0x23   :  { %1542 = vmatpush2.bf16.msra.mxu1 %v5939_v18  ;;  %1374 = vmatprep.subr.bf16.mxu0 %v6058_v0  ;;  %v4804_v18 = vcombine.high %v53_v10, %v57_v11 }
  0x24   :  { %1543 = vmatprep.subr.bf16.mxu1 %v6058_v0 }
  0x26   :  { %1375 = vmatpush2.bf16.msra.mxu0 %v5940_v24  ;;  %v5968_v24 = vld [vmem:[%s8005_s1 + $0x100] sm:$0xff]  }
  0x27   :  { %1544 = vmatpush2.bf16.msra.mxu1 %v5941_v26  ;;  %1376 = vmatprep.subr.bf16.mxu0 %v6058_v0  ;;  %v66_v26 = vld [vmem:[%s8006_s0 + $0x168] sm:$0xff] }
  0x28   :  { %1545 = vmatprep.subr.bf16.mxu1 %v6058_v0 }
  0x2a   :  { %1377 = vmatpush2.bf16.msra.mxu0 %v5942_v27  ;;  %v5969_v27 = vld [vmem:[%s8005_s1 + $0x180] sm:$0xff]  }
  0x2b   :  { %1546 = vmatpush2.bf16.msra.mxu1 %v5943_v28  ;;  %1378 = vmatprep.subr.bf16.mxu0 %v6058_v0  ;;  %v4803_v28 = vcombine.low %v53_v10, %v57_v11  ;;  %v94_v10 = vld [vmem:[%s8006_s0 + $0x248] sm:$0xff] }
  0x2c   :  { %1547 = vmatprep.subr.bf16.mxu1 %v6058_v0  ;;  %v98_v11 = vld [vmem:[%s8006_s0 + $0x268] sm:$0xff] }
  0x2e   :  { %1379 = vmatpush2.bf16.msra.mxu0 %v5944_v29  ;;  %v4805_v29 = vcombine.low %v54_v12, %v58_v14  ;;  %v5985_v12 = vld [vmem:[%s8005_s1 + $0x1c0] sm:$0xff]   ;;  %v4837_v14 = vcombine.low %v86_v61, %v90_v62 }
  0x2f   :  { %1548 = vmatpush2.bf16.msra.mxu1 %v5945_v30  ;;  %1380 = vmatprep.subr.bf16.mxu0 %v6058_v0  ;;  %v4812_v30 = vcombine.high %v61_v22, %v65_v23 }
  0x30   :  { %1549 = vmatprep.subr.bf16.mxu1 %v6058_v0 }
  0x32   :  { %1381 = vmatpush2.bf16.msra.mxu0 %v5946_v31  ;;  %v4814_v31 = vcombine.high %v62_v25, %v66_v26 }
  0x33   :  { %1550 = vmatpush2.bf16.msra.mxu1 %v5947_v32  ;;  %1382 = vmatprep.subr.bf16.mxu0 %v6058_v0  ;;  %v5970_v32 = vld [vmem:[%s8005_s1 + $0x178] sm:$0xff]  }
  0x34   :  { %1551 = vmatprep.subr.bf16.mxu1 %v6058_v0 }
  0x36   :  { %1383 = vmatpush2.bf16.msra.mxu0 %v5948_v33  ;;  %v5971_v33 = vld [vmem:[%s8005_s1 + $0x1f8] sm:$0xff]  }
  0x37   :  { %1552 = vmatpush2.bf16.msra.mxu1 %v5949_v34  ;;  %1384 = vmatprep.subr.bf16.mxu0 %v6058_v0  ;;  %v69_v34 = vld [vmem:[%s8006_s0 + $0x180] sm:$0xff] }
  0x38   :  { %1553 = vmatprep.subr.bf16.mxu1 %v6058_v0 }
  0x3a   :  { %1385 = vmatpush2.bf16.msra.mxu0 %v5950_v35  ;;  %v73_v35 = vld [vmem:[%s8006_s0 + $0x1a0] sm:$0xff] }
  0x3b   :  { %1554 = vmatpush2.bf16.msra.mxu1 %v5951_v36  ;;  %1386 = vmatprep.subr.bf16.mxu0 %v6058_v0  ;;  %v5972_v36 = vld [vmem:[%s8005_s1 + $0x170] sm:$0xff]   ;;  %v4820_v42 = vcombine.high %v69_v34, %v73_v35  ;;  %v4819_v52 = vcombine.low %v69_v34, %v73_v35  ;;  %v118_v34 = vld [vmem:[%s8006_s0 + $0x308] sm:$0xff] }
  0x3c   :  { %1555 = vmatprep.subr.bf16.mxu1 %v6058_v0  ;;  %v122_v35 = vld [vmem:[%s8006_s0 + $0x328] sm:$0xff] }
  0x3e   :  { %1387 = vmatpush2.bf16.msra.mxu0 %v5952_v37  ;;  %v70_v37 = vld [vmem:[%s8006_s0 + $0x188] sm:$0xff] }
  0x3f   :  { %1556 = vmatpush2.bf16.msra.mxu1 %v5953_v38  ;;  %1694 = vmatprep.subr.bf16.mxu0 %v6058_v0  ;;  %v74_v38 = vld [vmem:[%s8006_s0 + $0x1a8] sm:$0xff] }
  0x40   :  { %1863 = vmatprep.subr.bf16.mxu1 %v6058_v0  ;;  %v4822_v43 = vcombine.high %v70_v37, %v74_v38  ;;  %v4821_v53 = vcombine.low %v70_v37, %v74_v38 }
  0x41   :  { %1389 = vmatmul.mubr.bf16.vlgmr.msra.gmra.mxu0 %v4771_v41  ;;  %v4813_v41 = vcombine.low %v62_v25, %v66_v26  ;;  %v113_v25 = vld [vmem:[%s8006_s0 + $0x2e0] sm:$0xff]  ;;  %v110_v26 = vld [vmem:[%s8006_s0 + $0x2c8] sm:$0xff] }
  0x42   :  { %1558 = vmatmul.mubr.bf16.vlgmr.msra.gmra.mxu1 %v4773_v44  ;;  %1695 = vmatpush1.bf16.msra.mxu0 %v5954_v45  ;;  %v5974_v44 = vld [vmem:[%s8005_s1 + $0x168] sm:$0xff]  }
  0x43   :  { %1864 = vmatpush1.bf16.msra.mxu1 %v5955_v46  ;;  %1396 = vmatprep.mubr.bf16.mxu0 %v4780_v47  ;;  %v5975_v45 = vld [vmem:[%s8005_s1 + $0x1e8] sm:$0xff]   ;;  %v77_v46 = vld [vmem:[%s8006_s0 + $0x1c0] sm:$0xff] }
  0x44   :  { %1565 = vmatprep.mubr.bf16.mxu1 %v4782_v48  ;;  %1696 = vmatprep.subr.bf16.mxu0 %v6058_v0  ;;  %v81_v47 = vld [vmem:[%s8006_s0 + $0x1e0] sm:$0xff] }
  0x45   :  { %1865 = vmatprep.subr.bf16.mxu1 %v6058_v0  ;;  %v5976_v48 = vld [vmem:[%s8005_s1 + $0x160] sm:$0xff]   ;;  %v4828_v54 = vcombine.high %v77_v46, %v81_v47 }
  0x46   :  { %1697 = vmatpush1.bf16.msra.mxu0 %v5956_v49  ;;  %v78_v49 = vld [vmem:[%s8006_s0 + $0x1c8] sm:$0xff] }
  0x47   :  { %1866 = vmatpush1.bf16.msra.mxu1 %v5957_v50  ;;  %1698 = vmatprep.subr.bf16.mxu0 %v6058_v0  ;;  %v82_v50 = vld [vmem:[%s8006_s0 + $0x1e8] sm:$0xff] }
  0x48   :  { %1867 = vmatprep.subr.bf16.mxu1 %v6058_v0  ;;  %v4829_v2 = vcombine.low %v78_v49, %v82_v50 }
  0x49   :  { %1397 = vmatmul.mubr.bf16.gmra.mxu0 %v4779_v55  ;;  %v4830_v55 = vcombine.high %v78_v49, %v82_v50  ;;  %v137_v49 = vld [vmem:[%s8006_s0 + $0x3a0] sm:$0xff]  ;;  %v134_v50 = vld [vmem:[%s8006_s0 + $0x388] sm:$0xff] }
  0x4a   :  { %1566 = vmatmul.mubr.bf16.gmra.mxu1 %v4781_v56  ;;  %1404 = vmatprep.mubr.bf16.mxu0 %v4788_v57  ;;  %v5978_v56 = vld [vmem:[%s8005_s1 + $0x158] sm:$0xff]  }
  0x4b   :  { %1573 = vmatprep.mubr.bf16.mxu1 %v4790_v58  ;;  %1699 = vmatpush1.bf16.msra.mxu0 %v5958_v59  ;;  %v5979_v57 = vld [vmem:[%s8005_s1 + $0x1d8] sm:$0xff]   ;;  %v85_v58 = vld [vmem:[%s8006_s0 + $0x200] sm:$0xff] }
  0x4c   :  { %1868 = vmatpush1.bf16.msra.mxu1 %v5959_v60  ;;  %1700 = vmatprep.subr.bf16.mxu0 %v6058_v0  ;;  %v89_v59 = vld [vmem:[%s8006_s0 + $0x220] sm:$0xff]  ;;  %v5980_v60 = vld [vmem:[%s8005_s1 + $0x150] sm:$0xff]  }
  0x4d   :  { %1869 = vmatprep.subr.bf16.mxu1 %v6058_v0 }
  0x4f   :  { %1701 = vmatpush1.bf16.msra.mxu0 %v5960_v1  ;;  %v4827_v1 = vcombine.low %v77_v46, %v81_v47 }
  0x50   :  { %1870 = vmatpush1.bf16.msra.mxu1 %v5961_v3  ;;  %1702 = vmatprep.subr.bf16.mxu0 %v6058_v0  ;;  %v4836_v3 = vcombine.high %v85_v58, %v89_v59 }
  0x51   :  { %1405 = vmatmul.mubr.bf16.gmra.mxu0 %v4787_v4  ;;  %1871 = vmatprep.subr.bf16.mxu1 %v6058_v0  ;;  %v4838_v4 = vcombine.high %v86_v61, %v90_v62 }
  0x52   :  { %1574 = vmatmul.mubr.bf16.gmra.mxu1 %v4789_v5  ;;  %1412 = vmatprep.mubr.bf16.mxu0 %v4796_v6  ;;  %v5982_v5 = vld [vmem:[%s8005_s1 + $0x148] sm:$0xff]  }
  0x53   :  { %1581 = vmatprep.mubr.bf16.mxu1 %v4798_v7  ;;  %1703 = vmatpush1.bf16.msra.mxu0 %v5962_v8  ;;  %v5983_v6 = vld [vmem:[%s8005_s1 + $0x1c8] sm:$0xff]   ;;  %v93_v7 = vld [vmem:[%s8006_s0 + $0x240] sm:$0xff] }
  0x54   :  { %1872 = vmatpush1.bf16.msra.mxu1 %v5963_v9  ;;  %1704 = vmatprep.subr.bf16.mxu0 %v6058_v0  ;;  %v97_v8 = vld [vmem:[%s8006_s0 + $0x260] sm:$0xff] }
  0x55   :  { %1873 = vmatprep.subr.bf16.mxu1 %v6058_v0  ;;  %v5984_v9 = vld [vmem:[%s8005_s1 + $0x140] sm:$0xff]  }
  0x57   :  { %1705 = vmatpush1.bf16.msra.mxu0 %v5964_v13  ;;  %v4835_v13 = vcombine.low %v85_v58, %v89_v59  ;;  %v142_v58 = vld [vmem:[%s8006_s0 + $0x3c8] sm:$0xff] }
  0x58   :  { %1874 = vmatpush1.bf16.msra.mxu1 %v5965_v15  ;;  %1706 = vmatprep.subr.bf16.mxu0 %v6058_v0  ;;  %v4844_v15 = vcombine.high %v93_v7, %v97_v8  ;;  %v146_v59 = vld [vmem:[%s8006_s0 + $0x3e8] sm:$0xff] }
  0x59   :  { %1413 = vmatmul.mubr.bf16.gmra.mxu0 %v4795_v16  ;;  %1875 = vmatprep.subr.bf16.mxu1 %v6058_v0  ;;  %v4846_v16 = vcombine.high %v94_v10, %v98_v11 }
  0x5a   :  { %1582 = vmatmul.mubr.bf16.gmra.mxu1 %v4797_v17  ;;  %1420 = vmatprep.mubr.bf16.mxu0 %v4804_v18  ;;  %v101_v17 = vld [vmem:[%s8006_s0 + $0x280] sm:$0xff] }
  0x5b   :  { %1589 = vmatprep.mubr.bf16.mxu1 %v4806_v19  ;;  %1707 = vmatpush1.bf16.msra.mxu0 %v5966_v20  ;;  %v105_v18 = vld [vmem:[%s8006_s0 + $0x2a0] sm:$0xff]  ;;  %v106_v19 = vld [vmem:[%s8006_s0 + $0x2a8] sm:$0xff]  ;;  %v4843_v20 = vcombine.low %v93_v7, %v97_v8 }
  0x5c   :  { %1876 = vmatpush1.bf16.msra.mxu1 %v5967_v21  ;;  %1708 = vmatprep.subr.bf16.mxu0 %v6058_v0  ;;  %v4845_v21 = vcombine.low %v94_v10, %v98_v11  ;;  %v4852_v22 = vcombine.high %v101_v17, %v105_v18  ;;  %v27_v10 = vld [vmem:[%s8006_s0 + $0x30] sm:$0xff]  ;;  %v24_v11 = vld [vmem:[%s8006_s0 + $0x18] sm:$0xff] }
  0x5d   :  { %1877 = vmatprep.subr.bf16.mxu1 %v6058_v0 }
  0x5f   :  { %1709 = vmatpush1.bf16.msra.mxu0 %v5968_v24  ;;  %v109_v24 = vld [vmem:[%s8006_s0 + $0x2c0] sm:$0xff] }
  0x60   :  { %1878 = vmatpush1.bf16.msra.mxu1 %v5969_v27  ;;  %1710 = vmatprep.subr.bf16.mxu0 %v6058_v0  ;;  %v114_v27 = vld [vmem:[%s8006_s0 + $0x2e8] sm:$0xff] }
  0x61   :  { %1421 = vmatmul.mubr.bf16.gmra.mxu0 %v4803_v28  ;;  %1879 = vmatprep.subr.bf16.mxu1 %v6058_v0  ;;  %v4851_v28 = vcombine.low %v101_v17, %v105_v18  ;;  %v4861_v37 = vcombine.low %v110_v26, %v114_v27  ;;  %v31_v17 = vld [vmem:[%s8006_s0 + $0x50] sm:$0xff] }
  0x62   :  { %1590 = vmatmul.mubr.bf16.gmra.mxu1 %v4805_v29  ;;  %1428 = vmatprep.mubr.bf16.mxu0 %v4812_v30  ;;  %v4860_v30 = vcombine.high %v109_v24, %v113_v25  ;;  %v35_v18 = vld [vmem:[%s8006_s0 + $0x70] sm:$0xff] }
  0x63   :  { %1597 = vmatprep.mubr.bf16.mxu1 %v4814_v31  ;;  %1711 = vmatpush2.bf16.msra.mxu0 %v5970_v32  ;;  %v4862_v31 = vcombine.high %v110_v26, %v114_v27  ;;  %v117_v32 = vld [vmem:[%s8006_s0 + $0x300] sm:$0xff]  ;;  %v40_v26 = vld [vmem:[%s8006_s0 + $0x98] sm:$0xff] }
  0x64   :  { %1880 = vmatpush2.bf16.msra.mxu1 %v5971_v33  ;;  %1712 = vmatprep.subr.bf16.mxu0 %v6058_v0  ;;  %v121_v33 = vld [vmem:[%s8006_s0 + $0x320] sm:$0xff]  ;;  %v44_v27 = vld [vmem:[%s8006_s0 + $0xb8] sm:$0xff] }
  0x65   :  { %1881 = vmatprep.subr.bf16.mxu1 %v6058_v0  ;;  %v4868_v38 = vcombine.high %v117_v32, %v121_v33 }
  0x67   :  { %1713 = vmatpush2.bf16.msra.mxu0 %v5972_v36  ;;  %v4859_v36 = vcombine.low %v109_v24, %v113_v25  ;;  %v39_v24 = vld [vmem:[%s8006_s0 + $0x90] sm:$0xff] }
  0x68   :  { %1882 = vmatpush2.bf16.msra.mxu1 %v5973_v39  ;;  %1714 = vmatprep.subr.bf16.mxu0 %v6058_v0  ;;  %v4870_v39 = vcombine.high %v118_v34, %v122_v35  ;;  %v43_v25 = vld [vmem:[%s8006_s0 + $0xb0] sm:$0xff] }
  0x69   :  { %1429 = vmatmul.mubr.bf16.gmra.mxu0 %v4811_v40  ;;  %1883 = vmatprep.subr.bf16.mxu1 %v6058_v0  ;;  %v125_v40 = vld [vmem:[%s8006_s0 + $0x340] sm:$0xff] }
  0x6a   :  { %1598 = vmatmul.mubr.bf16.gmra.mxu1 %v4813_v41  ;;  %1436 = vmatprep.mubr.bf16.mxu0 %v4820_v42  ;;  %v129_v41 = vld [vmem:[%s8006_s0 + $0x360] sm:$0xff]  ;;  %v126_v42 = vld [vmem:[%s8006_s0 + $0x348] sm:$0xff] }
  0x6b   :  { %1605 = vmatprep.mubr.bf16.mxu1 %v4822_v43  ;;  %1715 = vmatpush2.bf16.msra.mxu0 %v5974_v44  ;;  %v130_v43 = vld [vmem:[%s8006_s0 + $0x368] sm:$0xff]  ;;  %v4867_v44 = vcombine.low %v117_v32, %v121_v33  ;;  %v4876_v46 = vcombine.high %v125_v40, %v129_v41  ;;  %v47_v32 = vld [vmem:[%s8006_s0 + $0xd0] sm:$0xff] }
  0x6c   :  { %1884 = vmatpush2.bf16.msra.mxu1 %v5975_v45  ;;  %1716 = vmatprep.subr.bf16.mxu0 %v6058_v0  ;;  %v4869_v45 = vcombine.low %v118_v34, %v122_v35  ;;  %v4878_v47 = vcombine.high %v126_v42, %v130_v43  ;;  %v51_v33 = vld [vmem:[%s8006_s0 + $0xf0] sm:$0xff]  ;;  %v48_v34 = vld [vmem:[%s8006_s0 + $0xd8] sm:$0xff] }
  0x6d   :  { %1885 = vmatprep.subr.bf16.mxu1 %v6058_v0  ;;  %v52_v35 = vld [vmem:[%s8006_s0 + $0xf8] sm:$0xff] }
  0x6f   :  { %1717 = vmatpush2.bf16.msra.mxu0 %v5976_v48  ;;  %v133_v48 = vld [vmem:[%s8006_s0 + $0x380] sm:$0xff] }
  0x70   :  { %1886 = vmatpush2.bf16.msra.mxu1 %v5977_v51  ;;  %1718 = vmatprep.subr.bf16.mxu0 %v6058_v0  ;;  %v138_v51 = vld [vmem:[%s8006_s0 + $0x3a8] sm:$0xff] }
  0x71   :  { %1437 = vmatmul.mubr.bf16.gmra.mxu0 %v4819_v52  ;;  %1887 = vmatprep.subr.bf16.mxu1 %v6058_v0  ;;  %v4875_v52 = vcombine.low %v125_v40, %v129_v41  ;;  %v4885_v61 = vcombine.low %v134_v50, %v138_v51  ;;  %v55_v40 = vld [vmem:[%s8006_s0 + $0x110] sm:$0xff] }
  0x72   :  { %1606 = vmatmul.mubr.bf16.gmra.mxu1 %v4821_v53  ;;  %1444 = vmatprep.mubr.bf16.mxu0 %v4828_v54  ;;  %v4877_v53 = vcombine.low %v126_v42, %v130_v43  ;;  %v4884_v54 = vcombine.high %v133_v48, %v137_v49  ;;  %v59_v41 = vld [vmem:[%s8006_s0 + $0x130] sm:$0xff]  ;;  %v56_v42 = vld [vmem:[%s8006_s0 + $0x118] sm:$0xff] }
  0x73   :  { %1613 = vmatprep.mubr.bf16.mxu1 %v4830_v55  ;;  %1719 = vmatpush2.bf16.msra.mxu0 %v5978_v56  ;;  %v4886_v55 = vcombine.high %v134_v50, %v138_v51  ;;  %v141_v56 = vld [vmem:[%s8006_s0 + $0x3c0] sm:$0xff]  ;;  %v60_v43 = vld [vmem:[%s8006_s0 + $0x138] sm:$0xff] }
  0x74   :  { %1888 = vmatpush2.bf16.msra.mxu1 %v5979_v57  ;;  %1720 = vmatprep.subr.bf16.mxu0 %v6058_v0  ;;  %v145_v57 = vld [vmem:[%s8006_s0 + $0x3e0] sm:$0xff]  ;;  %v64_v50 = vld [vmem:[%s8006_s0 + $0x158] sm:$0xff] }
  0x75   :  { %1889 = vmatprep.subr.bf16.mxu1 %v6058_v0  ;;  %v4892_v62 = vcombine.high %v141_v56, %v145_v57  ;;  %v68_v51 = vld [vmem:[%s8006_s0 + $0x178] sm:$0xff] }
  0x77   :  { %1721 = vmatpush2.bf16.msra.mxu0 %v5980_v60  ;;  %v4883_v60 = vcombine.low %v133_v48, %v137_v49  ;;  %v63_v48 = vld [vmem:[%s8006_s0 + $0x150] sm:$0xff] }
  0x78   :  { %1890 = vmatpush2.bf16.msra.mxu1 %v5981_v63  ;;  %1722 = vmatprep.subr.bf16.mxu0 %v6058_v0  ;;  %v4894_v63 = vcombine.high %v142_v58, %v146_v59  ;;  %v67_v49 = vld [vmem:[%s8006_s0 + $0x170] sm:$0xff] }
  0x79   :  { %1445 = vmatmul.mubr.bf16.gmra.mxu0 %v4827_v1  ;;  %1891 = vmatprep.subr.bf16.mxu1 %v6058_v0  ;;  %v149_v1 = vld [vmem:[%s8006_s0 + $0x400] sm:$0xff] }
  0x7a   :  { %1614 = vmatmul.mubr.bf16.gmra.mxu1 %v4829_v2  ;;  %1452 = vmatprep.mubr.bf16.mxu0 %v4836_v3  ;;  %v153_v2 = vld [vmem:[%s8006_s0 + $0x420] sm:$0xff]  ;;  %v150_v3 = vld [vmem:[%s8006_s0 + $0x408] sm:$0xff] }
  0x7b   :  { %1621 = vmatprep.mubr.bf16.mxu1 %v4838_v4  ;;  %1723 = vmatpush2.bf16.msra.mxu0 %v5982_v5  ;;  %v154_v4 = vld [vmem:[%s8006_s0 + $0x428] sm:$0xff]  ;;  %v4891_v5 = vcombine.low %v141_v56, %v145_v57  ;;  %v4900_v7 = vcombine.high %v149_v1, %v153_v2  ;;  %v71_v56 = vld [vmem:[%s8006_s0 + $0x190] sm:$0xff] }
  0x7c   :  { %1892 = vmatpush2.bf16.msra.mxu1 %v5983_v6  ;;  %1724 = vmatprep.subr.bf16.mxu0 %v6058_v0  ;;  %v4893_v6 = vcombine.low %v142_v58, %v146_v59  ;;  %v4902_v8 = vcombine.high %v150_v3, %v154_v4  ;;  %v75_v57 = vld [vmem:[%s8006_s0 + $0x1b0] sm:$0xff]  ;;  %v72_v58 = vld [vmem:[%s8006_s0 + $0x198] sm:$0xff] }
  0x7d   :  { %1893 = vmatprep.subr.bf16.mxu1 %v6058_v0  ;;  %v102_v0 = vld [vmem:[%s8006_s0 + $0x288] sm:$0xff]  ;;  %v76_v59 = vld [vmem:[%s8006_s0 + $0x1b8] sm:$0xff] }
  0x7e   :  { %v4854_v23 = vcombine.high %v102_v0, %v106_v19  ;;  %v4853_v29 = vcombine.low %v102_v0, %v106_v19  ;;  %v32_v0 = vld [vmem:[%s8006_s0 + $0x58] sm:$0xff] }
  0x7f   :  { %1725 = vmatpush2.bf16.msra.mxu0 %v5984_v9  ;;  %v23_v9 = vld [vmem:[%s8006_s0 + $0x10] sm:$0xff]  ;;  %v36_v19 = vld [vmem:[%s8006_s0 + $0x78] sm:$0xff] }
  0x80   :  { %1894 = vmatpush2.bf16.msra.mxu1 %v5985_v12  ;;  %v28_v12 = vld [vmem:[%s8006_s0 + $0x38] sm:$0xff] }
  0x81   :  { %1453 = vmatmul.mubr.bf16.gmra.mxu0 %v4835_v13  ;;  %v4899_v13 = vcombine.low %v149_v1, %v153_v2  ;;  %v4826_v1 = vcombine.high %v72_v58, %v76_v59  ;;  %v79_v2 = vld [vmem:[%s8006_s0 + $0x1d0] sm:$0xff] }
  0x82   :  { %1622 = vmatmul.mubr.bf16.gmra.mxu1 %v4837_v14  ;;  %1460 = vmatprep.mubr.bf16.mxu0 %v4844_v15  ;;  %v4901_v14 = vcombine.low %v150_v3, %v154_v4  ;;  %v4776_v15 = vcombine.high %v23_v9, %v27_v10  ;;  %v83_v3 = vld [vmem:[%s8006_s0 + $0x1f0] sm:$0xff]  ;;  %v80_v4 = vld [vmem:[%s8006_s0 + $0x1d8] sm:$0xff] }
  0x83   :  { %1629 = vmatprep.mubr.bf16.mxu1 %v4846_v16  ;;  %v4778_v16 = vcombine.high %v24_v11, %v28_v12 }
  0x89   :  { %1461 = vmatmul.mubr.bf16.gmra.mxu0 %v4843_v20  ;;  %v4775_v20 = vcombine.low %v23_v9, %v27_v10  ;;  %v87_v10 = vld [vmem:[%s8006_s0 + $0x210] sm:$0xff] }
  0x8a   :  { %1630 = vmatmul.mubr.bf16.gmra.mxu1 %v4845_v21  ;;  %1468 = vmatprep.mubr.bf16.mxu0 %v4852_v22  ;;  %v4777_v21 = vcombine.low %v24_v11, %v28_v12  ;;  %v4784_v22 = vcombine.high %v31_v17, %v35_v18  ;;  %v91_v11 = vld [vmem:[%s8006_s0 + $0x230] sm:$0xff]  ;;  %v88_v12 = vld [vmem:[%s8006_s0 + $0x218] sm:$0xff] }
  0x8b   :  { %1637 = vmatprep.mubr.bf16.mxu1 %v4854_v23  ;;  %v4786_v23 = vcombine.high %v32_v0, %v36_v19 }
  0x91   :  { %1469 = vmatmul.mubr.bf16.gmra.mxu0 %v4851_v28  ;;  %v4783_v28 = vcombine.low %v31_v17, %v35_v18  ;;  %v4840_v18 = vcombine.high %v87_v10, %v91_v11 }
  0x92   :  { %1638 = vmatmul.mubr.bf16.gmra.mxu1 %v4853_v29  ;;  %1476 = vmatprep.mubr.bf16.mxu0 %v4860_v30  ;;  %v4785_v29 = vcombine.low %v32_v0, %v36_v19  ;;  %v4792_v30 = vcombine.high %v39_v24, %v43_v25 }
  0x93   :  { %1645 = vmatprep.mubr.bf16.mxu1 %v4862_v31  ;;  %v4794_v31 = vcombine.high %v40_v26, %v44_v27 }
  0x99   :  { %1477 = vmatmul.mubr.bf16.gmra.mxu0 %v4859_v36  ;;  %v4791_v36 = vcombine.low %v39_v24, %v43_v25  ;;  %v96_v24 = vld [vmem:[%s8006_s0 + $0x258] sm:$0xff] }
  0x9a   :  { %1646 = vmatmul.mubr.bf16.gmra.mxu1 %v4861_v37  ;;  %1484 = vmatprep.mubr.bf16.mxu0 %v4868_v38  ;;  %v4793_v37 = vcombine.low %v40_v26, %v44_v27  ;;  %v4800_v38 = vcombine.high %v47_v32, %v51_v33  ;;  %v100_v25 = vld [vmem:[%s8006_s0 + $0x278] sm:$0xff] }
  0x9b   :  { %1653 = vmatprep.mubr.bf16.mxu1 %v4870_v39  ;;  %v4802_v39 = vcombine.high %v48_v34, %v52_v35 }
  0xa1   :  { %1485 = vmatmul.mubr.bf16.gmra.mxu0 %v4867_v44  ;;  %v4799_v44 = vcombine.low %v47_v32, %v51_v33 }
  0xa2   :  { %1654 = vmatmul.mubr.bf16.gmra.mxu1 %v4869_v45  ;;  %1492 = vmatprep.mubr.bf16.mxu0 %v4876_v46  ;;  %v4801_v45 = vcombine.low %v48_v34, %v52_v35  ;;  %v4808_v46 = vcombine.high %v55_v40, %v59_v41 }
  0xa3   :  { %1661 = vmatprep.mubr.bf16.mxu1 %v4878_v47  ;;  %v4810_v47 = vcombine.high %v56_v42, %v60_v43 }
  0xa9   :  { %1493 = vmatmul.mubr.bf16.gmra.mxu0 %v4875_v52  ;;  %v4807_v52 = vcombine.low %v55_v40, %v59_v41  ;;  %v103_v40 = vld [vmem:[%s8006_s0 + $0x290] sm:$0xff] }
  0xaa   :  { %1662 = vmatmul.mubr.bf16.gmra.mxu1 %v4877_v53  ;;  %1500 = vmatprep.mubr.bf16.mxu0 %v4884_v54  ;;  %v4809_v53 = vcombine.low %v56_v42, %v60_v43  ;;  %v4816_v54 = vcombine.high %v63_v48, %v67_v49  ;;  %v107_v41 = vld [vmem:[%s8006_s0 + $0x2b0] sm:$0xff] }
  0xab   :  { %1669 = vmatprep.mubr.bf16.mxu1 %v4886_v55  ;;  %v4818_v55 = vcombine.high %v64_v50, %v68_v51 }
  0xb1   :  { %1501 = vmatmul.mubr.bf16.gmra.mxu0 %v4883_v60  ;;  %v4815_v60 = vcombine.low %v63_v48, %v67_v49 }
  0xb2   :  { %1670 = vmatmul.mubr.bf16.gmra.mxu1 %v4885_v61  ;;  %1508 = vmatprep.mubr.bf16.mxu0 %v4892_v62  ;;  %v5986_v61 = vld [vmem:[%s8007_s3 + $0x78] sm:$0xff]   ;;  %v4817_v62 = vcombine.low %v64_v50, %v68_v51 }
  0xb3   :  { %1677 = vmatprep.mubr.bf16.mxu1 %v4894_v63  ;;  %v4824_v63 = vcombine.high %v71_v56, %v75_v57  ;;  %5905 = vmatprep.subr.bf16.mxu1 %v5986_v61 }
  0xb4   :  { %5509 = vmatprep.subr.bf16.mxu0 %v5986_v61 }
  0xb9   :  { %1509 = vmatmul.mubr.bf16.gmra.mxu0 %v4891_v5  ;;  %v84_v5 = vld [vmem:[%s8006_s0 + $0x1f8] sm:$0xff] }
  0xba   :  { %1678 = vmatmul.mubr.bf16.gmra.mxu1 %v4893_v6  ;;  %1516 = vmatprep.mubr.bf16.mxu0 %v4900_v7  ;;  %v4823_v6 = vcombine.low %v71_v56, %v75_v57  ;;  %v4825_v7 = vcombine.low %v72_v58, %v76_v59  ;;  %v4834_v9 = vcombine.high %v80_v4, %v84_v5 }
  0xbb   :  { %1685 = vmatprep.mubr.bf16.mxu1 %v4902_v8  ;;  %v4832_v8 = vcombine.high %v79_v2, %v83_v3  ;;  %v4833_v17 = vcombine.low %v80_v4, %v84_v5 }
  0xc1   :  { %1517 = vmatmul.mubr.bf16.gmra.mxu0 %v4899_v13  ;;  %v92_v13 = vld [vmem:[%s8006_s0 + $0x238] sm:$0xff] }
  0xc2   :  { %1686 = vmatmul.mubr.bf16.gmra.mxu1 %v4901_v14  ;;  %1726 = vmatprep.mubr.bf16.mxu0 %v4776_v15  ;;  %v5987_v14 = vld [vmem:[%s8007_s3 + $0x70] sm:$0xff]   ;;  %v6678_v15 = vld [vmem:[%s8008_s2] ss:$0 sm:$0xff]  ;;  %v4842_v0 = vcombine.high %v88_v12, %v92_v13  ;;  %v4841_v33 = vcombine.low %v88_v12, %v92_v13 }
  0xc3   :  { %1895 = vmatprep.mubr.bf16.mxu1 %v4778_v16  ;;  %v4831_v16 = vcombine.low %v79_v2, %v83_v3  ;;  %v6733_v2 = vld [vmem:[%s8006_s0 + $0x2d8] sm:$0xff] }
  0xc4   :  { %v116_v3 = vld [vmem:[%s8006_s0 + $0x2f8] sm:$0xff] }
  0xc9   :  { %1727 = vmatmul.mubr.bf16.vlgmr.msra.gmra.mxu0 %v4775_v20  ;;  %v95_v20 = vld [vmem:[%s8006_s0 + $0x250] sm:$0xff] }
  0xca   :  { %1896 = vmatmul.mubr.bf16.vlgmr.msra.gmra.mxu1 %v4777_v21  ;;  %1734 = vmatprep.mubr.bf16.mxu0 %v4784_v22  ;;  %v99_v21 = vld [vmem:[%s8006_s0 + $0x270] sm:$0xff] }
  0xcb   :  { %1903 = vmatprep.mubr.bf16.mxu1 %v4786_v23  ;;  %5913 = vmatpush3.bf16.msra.mxu1 %v5986_v61  ;;  %v4848_v34 = vcombine.high %v95_v20, %v99_v21  ;;  %v4847_v50 = vcombine.low %v95_v20, %v99_v21  ;;  %v6757_v20 = vld [vmem:[%s8006_s0 + $0x330] sm:$0xff]  ;;  %v5990_v21 = vld [vmem:[%s8007_s3 + $0x58] sm:$0xff]  }
  0xcc   :  { %5510 = vmatpush3.bf16.msra.mxu0 %v5986_v61  ;;  %5906 = vmatprep.subr.bf16.mxu1 %v5987_v14  ;;  %v6724_v61 = vld [vmem:[%s8006_s0 + $0x2f0] sm:$0xff] }
  0xcd   :  { %5511 = vmatprep.subr.bf16.mxu0 %v5987_v14 }
  0xcf   :  { %5914 = vmatpush3.bf16.msra.mxu1 %v5987_v14 }
  0xd0   :  { %5512 = vmatpush3.bf16.msra.mxu0 %v5987_v14 }
  0xd1   :  { %1735 = vmatmul.mubr.bf16.gmra.mxu0 %v4783_v28 }
  0xd2   :  { %1904 = vmatmul.mubr.bf16.gmra.mxu1 %v4785_v29  ;;  %1742 = vmatprep.mubr.bf16.mxu0 %v4792_v30  ;;  %v4839_v30 = vcombine.low %v87_v10, %v91_v11 }
  0xd3   :  { %1911 = vmatprep.mubr.bf16.mxu1 %v4794_v31 }
  0xd9   :  { %1743 = vmatmul.mubr.bf16.gmra.mxu0 %v4791_v36  ;;  %v4850_v36 = vcombine.high %v96_v24, %v100_v25 }
  0xda   :  { %1912 = vmatmul.mubr.bf16.gmra.mxu1 %v4793_v37  ;;  %1750 = vmatprep.mubr.bf16.mxu0 %v4800_v38 }
  0xdb   :  { %1919 = vmatprep.mubr.bf16.mxu1 %v4802_v39 }
  0xe1   :  { %1751 = vmatmul.mubr.bf16.gmra.mxu0 %v4799_v44  ;;  %v104_v44 = vld [vmem:[%s8006_s0 + $0x298] sm:$0xff] }
  0xe2   :  { %1920 = vmatmul.mubr.bf16.gmra.mxu1 %v4801_v45  ;;  %1758 = vmatprep.mubr.bf16.mxu0 %v4808_v46  ;;  %v108_v45 = vld [vmem:[%s8006_s0 + $0x2b8] sm:$0xff] }
  0xe3   :  { %1927 = vmatprep.mubr.bf16.mxu1 %v4810_v47  ;;  %v4858_v56 = vcombine.high %v104_v44, %v108_v45  ;;  %v4857_v12 = vcombine.low %v104_v44, %v108_v45 }
  0xe9   :  { %1759 = vmatmul.mubr.bf16.gmra.mxu0 %v4807_v52 }
  0xea   :  { %1928 = vmatmul.mubr.bf16.gmra.mxu1 %v4809_v53  ;;  %1766 = vmatprep.mubr.bf16.mxu0 %v4816_v54  ;;  %v4849_v53 = vcombine.low %v96_v24, %v100_v25  ;;  %v4856_v54 = vcombine.high %v103_v40, %v107_v41  ;;  %v6766_v24 = vld [vmem:[%s8006_s0 + $0x318] sm:$0xff] }
  0xeb   :  { %1935 = vmatprep.mubr.bf16.mxu1 %v4818_v55  ;;  %v124_v25 = vld [vmem:[%s8006_s0 + $0x338] sm:$0xff] }
  0xf1   :  { %1767 = vmatmul.mubr.bf16.gmra.mxu0 %v4815_v60  ;;  %v6719_v60 = vld [vmem:[%s8006_s0 + $0x2d0] sm:$0xff] }
  0xf2   :  { %1936 = vmatmul.mubr.bf16.gmra.mxu1 %v4817_v62  ;;  %1774 = vmatprep.mubr.bf16.mxu0 %v4824_v63  ;;  %v5988_v62 = vld [vmem:[%s8007_s3 + $0x68] sm:$0xff]   ;;  %v4864_v13 = vcombine.high %v6719_v60, %v6724_v61 }
  0xf3   :  { %1943 = vmatprep.mubr.bf16.mxu1 %v4826_v1  ;;  %5907 = vmatprep.subr.bf16.mxu1 %v5988_v62 }
  0xf4   :  { %5513 = vmatprep.subr.bf16.mxu0 %v5988_v62  ;;  %5915 = vmatpush3.bf16.msra.mxu1 %v5988_v62 }
  0xf5   :  { %5514 = vmatpush3.bf16.msra.mxu0 %v5988_v62 }
  0xf9   :  { %1775 = vmatmul.mubr.bf16.gmra.mxu0 %v4823_v6 }
  0xfa   :  { %1944 = vmatmul.mubr.bf16.gmra.mxu1 %v4825_v7  ;;  %1782 = vmatprep.mubr.bf16.mxu0 %v4832_v8  ;;  %v4855_v8 = vcombine.low %v103_v40, %v107_v41 }
  0xfb   :  { %1951 = vmatprep.mubr.bf16.mxu1 %v4834_v9  ;;  %v5989_v9 = vld [vmem:[%s8007_s3 + $0x60] sm:$0xff]  }
  0xfc   :  { %5515 = vmatprep.subr.bf16.mxu0 %v5989_v9  ;;  %5908 = vmatprep.subr.bf16.mxu1 %v5989_v9 }
  0xfd   :  { %5916 = vmatpush3.bf16.msra.mxu1 %v5989_v9  ;;  %5516 = vmatpush3.bf16.msra.mxu0 %v5989_v9  ;;  %v139_v9 = vld [vmem:[%s8006_s0 + $0x3b0] sm:$0xff] }
  0xfe   :  { %5517 = vmatprep.subr.bf16.mxu0 %v5990_v21  ;;  %5909 = vmatprep.subr.bf16.mxu1 %v5990_v21 }
 0x101   :  { %v1390_v19 = vpop.f32.mrf.mxu0  ;;  %1783 = vmatmul.mubr.bf16.gmra.mxu0 %v4831_v16  ;;  %v4866_v16 = vcombine.high %v6733_v2, %v116_v3  ;;  %5917 = vmatpush3.bf16.msra.mxu1 %v5990_v21 }
 0x102   :  { %v1391_v22 = vadd.f32 %v6678_v15, %v1390_v19  ;;  %v1559_v23 = vpop.f32.mrf.mxu1  ;;  %1952 = vmatmul.mubr.bf16.gmra.mxu1 %v4833_v17  ;;  %1790 = vmatprep.mubr.bf16.mxu0 %v4840_v18  ;;  %v6752_v19 = vld [vmem:[%s8006_s0 + $0x310] sm:$0xff] }
 0x103   :  { %v1392_v26 = vpop.f32.mrf.mxu0  ;;  %1959 = vmatprep.mubr.bf16.mxu1 %v4842_v0  ;;  %5518 = vmatpush3.bf16.msra.mxu0 %v5990_v21 }
 0x104   :  { %v6693_v27 = vadd.f32 %v1559_v23, %v1391_v22  ;;  %v1561_v28 = vpop.f32.mrf.mxu1 }
 0x105   :  { %v1393_v29 = vpop.f32.mrf.mxu0 }
 0x106   :  { %v1394_v31 = vadd.f32 %v6678_v15, %v1393_v29  ;;  %v1562_v32 = vpop.f32.mrf.mxu1 }
 0x107   :  { %v1395_v35 = vpop.f32.mrf.mxu0 }
 0x108   :  { %v6696_v37 = vadd.f32 %v1562_v32, %v1394_v31  ;;  %v1564_v38 = vpop.f32.mrf.mxu1  ;;  %v4863_v31 = vcombine.low %v6719_v60, %v6724_v61  ;;  %v5991_v32 = vld [vmem:[%s8007_s3 + $0x50] sm:$0xff]   ;;  %v4865_v35 = vcombine.low %v6733_v2, %v116_v3  ;;  %v4873_v60 = vcombine.low %v6766_v24, %v124_v25 }
 0x109   :  { %v1398_v39 = vpop.f32.mrf.mxu0  ;;  %1791 = vmatmul.mubr.bf16.gmra.mxu0 %v4839_v30  ;;  %5910 = vmatprep.subr.bf16.mxu1 %v5991_v32 }
 0x10a   :  { %v1399_v42 = vadd.f32 %v6678_v15, %v1398_v39  ;;  %v1567_v43 = vpop.f32.mrf.mxu1  ;;  %1960 = vmatmul.mubr.bf16.gmra.mxu1 %v4841_v33  ;;  %1798 = vmatprep.mubr.bf16.mxu0 %v4848_v34  ;;  %v4874_v39 = vcombine.high %v6766_v24, %v124_v25 }
 0x10b   :  { %v1400_v46 = vpop.f32.mrf.mxu0  ;;  %1967 = vmatprep.mubr.bf16.mxu1 %v4850_v36  ;;  %v4872_v36 = vcombine.high %v6752_v19, %v6757_v20  ;;  %5519 = vmatprep.subr.bf16.mxu0 %v5991_v32 }
 0x10c   :  { %v6711_v47 = vadd.f32 %v1567_v43, %v1399_v42  ;;  %v1569_v48 = vpop.f32.mrf.mxu1  ;;  %v5992_v43 = vld [vmem:[%s8007_s3 + $0x48] sm:$0xff]   ;;  %5918 = vmatpush3.bf16.msra.mxu1 %v5991_v32  ;;  %5520 = vmatpush3.bf16.msra.mxu0 %v5991_v32  ;;  %v147_v32 = vld [vmem:[%s8006_s0 + $0x3f0] sm:$0xff] }
 0x10d   :  { %v1401_v49 = vpop.f32.mrf.mxu0  ;;  %v127_v48 = vld [vmem:[%s8006_s0 + $0x350] sm:$0xff]  ;;  %5521 = vmatprep.subr.bf16.mxu0 %v5992_v43  ;;  %5911 = vmatprep.subr.bf16.mxu1 %v5992_v43 }
 0x10e   :  { %v1402_v51 = vadd.f32 %v6678_v15, %v1401_v49  ;;  %v1570_v52 = vpop.f32.mrf.mxu1  ;;  %v131_v49 = vld [vmem:[%s8006_s0 + $0x370] sm:$0xff] }
 0x10f   :  { %v1403_v55 = vpop.f32.mrf.mxu0  ;;  %v4880_v61 = vcombine.high %v127_v48, %v131_v49 }
 0x110   :  { %v6714_v57 = vadd.f32 %v1570_v52, %v1402_v51  ;;  %v1572_v58 = vpop.f32.mrf.mxu1  ;;  %v128_v52 = vld [vmem:[%s8006_s0 + $0x358] sm:$0xff]  ;;  %v4871_v55 = vcombine.low %v6752_v19, %v6757_v20  ;;  %5919 = vmatpush3.bf16.msra.mxu1 %v5992_v43  ;;  %5522 = vmatpush3.bf16.msra.mxu0 %v5992_v43 }
 0x111   :  { %v1406_v59 = vpop.f32.mrf.mxu0  ;;  %1799 = vmatmul.mubr.bf16.gmra.mxu0 %v4847_v50 }
 0x112   :  { %v1407_v63 = vadd.f32 %v6678_v15, %v1406_v59  ;;  %v1575_v1 = vpop.f32.mrf.mxu1  ;;  %1968 = vmatmul.mubr.bf16.gmra.mxu1 %v4849_v53  ;;  %1806 = vmatprep.mubr.bf16.mxu0 %v4856_v54  ;;  %v132_v53 = vld [vmem:[%s8006_s0 + $0x378] sm:$0xff] }
 0x113   :  { %v1408_v4 = vpop.f32.mrf.mxu0  ;;  %1975 = vmatprep.mubr.bf16.mxu1 %v4858_v56  ;;  %v5993_v56 = vld [vmem:[%s8007_s3 + $0x40] sm:$0xff]   ;;  %v4881_v19 = vcombine.low %v128_v52, %v132_v53 }
 0x114   :  { %v6738_v5 = vadd.f32 %v1575_v1, %v1407_v63  ;;  %v1577_v6 = vpop.f32.mrf.mxu1  ;;  %v4882_v63 = vcombine.high %v128_v52, %v132_v53  ;;  %5912 = vmatprep.subr.bf16.mxu1 %v5993_v56  ;;  %5523 = vmatprep.subr.bf16.mxu0 %v5993_v56 }
 0x115   :  { %v1409_v7 = vpop.f32.mrf.mxu0  ;;  %5920 = vmatpush3.bf16.msra.mxu1 %v5993_v56  ;;  %5524 = vmatpush3.bf16.msra.mxu0 %v5993_v56  ;;  %v155_v56 = vld [vmem:[%s8006_s0 + $0x430] sm:$0xff] }
 0x116   :  { %v1410_v10 = vadd.f32 %v6678_v15, %v1409_v7  ;;  %v1578_v11 = vpop.f32.mrf.mxu1 }
 0x117   :  { %v1411_v14 = vpop.f32.mrf.mxu0 }
 0x118   :  { %v6747_v17 = vadd.f32 %v1578_v11, %v1410_v10  ;;  %v1580_v18 = vpop.f32.mrf.mxu1 }
 0x119   :  { %v1414_v0 = vpop.f32.mrf.mxu0  ;;  %1807 = vmatmul.mubr.bf16.gmra.mxu0 %v4855_v8  ;;  %v135_v8 = vld [vmem:[%s8006_s0 + $0x390] sm:$0xff] }
 0x11a   :  { %v1415_v22 = vadd.f32 %v6678_v15, %v1414_v0  ;;  %v1583_v23 = vpop.f32.mrf.mxu1  ;;  %1976 = vmatmul.mubr.bf16.gmra.mxu1 %v4857_v12  ;;  %1814 = vmatprep.mubr.bf16.mxu0 %v4864_v13  ;;  %v136_v12 = vld [vmem:[%s8006_s0 + $0x398] sm:$0xff]  ;;  %v4888_v20 = vcombine.high %v135_v8, %v139_v9 }
 0x11b   :  { %v1416_v26 = vpop.f32.mrf.mxu0  ;;  %1983 = vmatprep.mubr.bf16.mxu1 %v4866_v16  ;;  %v140_v13 = vld [vmem:[%s8006_s0 + $0x3b8] sm:$0xff]  ;;  %v4879_v16 = vcombine.low %v127_v48, %v131_v49 }
 0x11c   :  { %v6771_v28 = vadd.f32 %v1583_v23, %v1415_v22  ;;  %v1585_v29 = vpop.f32.mrf.mxu1  ;;  %v4890_v22 = vcombine.high %v136_v12, %v140_v13  ;;  %v4889_v43 = vcombine.low %v136_v12, %v140_v13  ;;  %v6869_v13 = vld [vmem:[%s8007_s3 + $0xb8] sm:$0xff]  }
 0x11d   :  { %v1417_v30 = vpop.f32.mrf.mxu0  ;;  %5597 = vmatprep.subr.bf16.mxu0 %v6869_v13 }
 0x11e   :  { %v1418_v33 = vadd.f32 %v6678_v15, %v1417_v30  ;;  %v1586_v34 = vpop.f32.mrf.mxu1 }
 0x11f   :  { %v1419_v38 = vpop.f32.mrf.mxu0 }
 0x120   :  { %v6783_v40 = vadd.f32 %v1586_v34, %v1418_v33  ;;  %v1588_v41 = vpop.f32.mrf.mxu1 }
 0x121   :  { %v1422_v42 = vpop.f32.mrf.mxu0  ;;  %1815 = vmatmul.mubr.bf16.gmra.mxu0 %v4863_v31  ;;  %v143_v31 = vld [vmem:[%s8006_s0 + $0x3d0] sm:$0xff] }
 0x122   :  { %v1423_v44 = vadd.f32 %v6678_v15, %v1422_v42  ;;  %v1591_v45 = vpop.f32.mrf.mxu1  ;;  %1984 = vmatmul.mubr.bf16.gmra.mxu1 %v4865_v35  ;;  %1822 = vmatprep.mubr.bf16.mxu0 %v4872_v36  ;;  %v144_v35 = vld [vmem:[%s8006_s0 + $0x3d8] sm:$0xff] }
 0x123   :  { %v1424_v46 = vpop.f32.mrf.mxu0  ;;  %1991 = vmatprep.mubr.bf16.mxu1 %v4874_v39  ;;  %v148_v36 = vld [vmem:[%s8006_s0 + $0x3f8] sm:$0xff]  ;;  %v4887_v39 = vcombine.low %v135_v8, %v139_v9 }
 0x124   :  { %v6795_v50 = vadd.f32 %v1591_v45, %v1423_v44  ;;  %v1593_v51 = vpop.f32.mrf.mxu1  ;;  %v4896_v44 = vcombine.high %v143_v31, %v147_v32  ;;  %v4898_v46 = vcombine.high %v144_v35, %v148_v36 }
 0x125   :  { %v1425_v54 = vpop.f32.mrf.mxu0 }
 0x126   :  { %v1426_v58 = vadd.f32 %v6678_v15, %v1425_v54  ;;  %v1594_v59 = vpop.f32.mrf.mxu1 }
 0x127   :  { %v1427_v62 = vpop.f32.mrf.mxu0 }
 0x128   :  { %v6810_v1 = vadd.f32 %v1594_v59, %v1426_v58  ;;  %v1596_v2 = vpop.f32.mrf.mxu1 }
 0x129   :  { %v1430_v3 = vpop.f32.mrf.mxu0  ;;  %1823 = vmatmul.mubr.bf16.gmra.mxu0 %v4871_v55  ;;  %v151_v55 = vld [vmem:[%s8006_s0 + $0x410] sm:$0xff] }
 0x12a   :  { %v1431_v4 = vadd.f32 %v6678_v15, %v1430_v3  ;;  %v1599_v6 = vpop.f32.mrf.mxu1  ;;  %1992 = vmatmul.mubr.bf16.gmra.mxu1 %v4873_v60  ;;  %1830 = vmatprep.mubr.bf16.mxu0 %v4880_v61  ;;  %v152_v60 = vld [vmem:[%s8006_s0 + $0x418] sm:$0xff] }
 0x12b   :  { %v1432_v7 = vpop.f32.mrf.mxu0  ;;  %1999 = vmatprep.mubr.bf16.mxu1 %v4882_v63  ;;  %v156_v61 = vld [vmem:[%s8006_s0 + $0x438] sm:$0xff]  ;;  %v4895_v63 = vcombine.low %v143_v31, %v147_v32 }
 0x12c   :  { %v6819_v10 = vadd.f32 %v1599_v6, %v1431_v4  ;;  %v1601_v11 = vpop.f32.mrf.mxu1  ;;  %v4897_v4 = vcombine.low %v144_v35, %v148_v36  ;;  %v4904_v6 = vcombine.high %v151_v55, %v155_v56  ;;  %v4906_v8 = vcombine.high %v152_v60, %v156_v61 }
 0x12d   :  { %v1433_v14 = vpop.f32.mrf.mxu0 }
 0x12e   :  { %v1434_v18 = vadd.f32 %v6678_v15, %v1433_v14  ;;  %v1602_v0 = vpop.f32.mrf.mxu1 }
 0x12f   :  { %v1435_v21 = vpop.f32.mrf.mxu0 }
 0x130   :  { %v6828_v23 = vadd.f32 %v1602_v0, %v1434_v18  ;;  %v1604_v24 = vpop.f32.mrf.mxu1  ;;  %v4903_v21 = vcombine.low %v151_v55, %v155_v56 }
 0x131   :  { %v1438_v25 = vpop.f32.mrf.mxu0  ;;  %1831 = vmatmul.mubr.bf16.gmra.mxu0 %v4879_v16 }
 0x132   :  { %v1439_v26 = vadd.f32 %v6678_v15, %v1438_v25  ;;  %v1607_v29 = vpop.f32.mrf.mxu1  ;;  %2000 = vmatmul.mubr.bf16.gmra.mxu1 %v4881_v19  ;;  %1838 = vmatprep.mubr.bf16.mxu0 %v4888_v20  ;;  %v4905_v25 = vcombine.low %v152_v60, %v156_v61 }
 0x133   :  { %v1440_v30 = vpop.f32.mrf.mxu0  ;;  %2007 = vmatprep.mubr.bf16.mxu1 %v4890_v22 }
 0x134   :  { %v6837_v33 = vadd.f32 %v1607_v29, %v1439_v26  ;;  %v1609_v34 = vpop.f32.mrf.mxu1 }
 0x135   :  { %v1441_v38 = vpop.f32.mrf.mxu0 }
 0x136   :  { %v1442_v41 = vadd.f32 %v6678_v15, %v1441_v38  ;;  %v1610_v42 = vpop.f32.mrf.mxu1 }
 0x137   :  { %v1443_v45 = vpop.f32.mrf.mxu0 }
 0x138   :  { %v6846_v48 = vadd.f32 %v1610_v42, %v1442_v41  ;;  %v1612_v49 = vpop.f32.mrf.mxu1 }
 0x139   :  { %v1446_v51 = vpop.f32.mrf.mxu0  ;;  %1839 = vmatmul.mubr.bf16.gmra.mxu0 %v4887_v39 }
 0x13a   :  { %v1447_v52 = vadd.f32 %v6678_v15, %v1446_v51  ;;  %v1615_v53 = vpop.f32.mrf.mxu1  ;;  %2008 = vmatmul.mubr.bf16.gmra.mxu1 %v4889_v43  ;;  %1846 = vmatprep.mubr.bf16.mxu0 %v4896_v44 }
 0x13b   :  { %v1448_v54 = vpop.f32.mrf.mxu0  ;;  %2015 = vmatprep.mubr.bf16.mxu1 %v4898_v46 }
 0x13c   :  { %v6855_v58 = vadd.f32 %v1615_v53, %v1447_v52  ;;  %v1617_v59 = vpop.f32.mrf.mxu1 }
 0x13d   :  { %v1449_v62 = vpop.f32.mrf.mxu0 }
 0x13e   :  { %v1450_v2 = vadd.f32 %v6678_v15, %v1449_v62  ;;  %v1618_v3 = vpop.f32.mrf.mxu1 }
 0x13f   :  { %v1451_v7 = vpop.f32.mrf.mxu0 }
 0x140   :  { %v6864_v9 = vadd.f32 %v1618_v3, %v1450_v2  ;;  %v1620_v11 = vpop.f32.mrf.mxu1 }
 0x141   :  { %v1454_v12 = vpop.f32.mrf.mxu0  ;;  %1847 = vmatmul.mubr.bf16.gmra.mxu0 %v4895_v63 }
 0x142   :  { %v1455_v14 = vadd.f32 %v6678_v15, %v1454_v12  ;;  %v1623_v16 = vpop.f32.mrf.mxu1  ;;  %2016 = vmatmul.mubr.bf16.gmra.mxu1 %v4897_v4  ;;  %1854 = vmatprep.mubr.bf16.mxu0 %v4904_v6 }
 0x143   :  { %v1456_v18 = vpop.f32.mrf.mxu0  ;;  %2023 = vmatprep.mubr.bf16.mxu1 %v4906_v8 }
 0x144   :  { %v6873_v0 = vadd.f32 %v1623_v16, %v1455_v14  ;;  %v1625_v19 = vpop.f32.mrf.mxu1 }
 0x145   :  { %v1457_v20 = vpop.f32.mrf.mxu0 }
 0x146   :  { %v1458_v22 = vadd.f32 %v6678_v15, %v1457_v20  ;;  %v1626_v24 = vpop.f32.mrf.mxu1 }
 0x147   :  { %v1459_v26 = vpop.f32.mrf.mxu0 }
 0x148   :  { %v6876_v29 = vadd.f32 %v1626_v24, %v1458_v22  ;;  %v1628_v30 = vpop.f32.mrf.mxu1 }
 0x149   :  { %v1462_v31 = vpop.f32.mrf.mxu0  ;;  %1855 = vmatmul.mubr.bf16.gmra.mxu0 %v4903_v21 }
 0x14a   :  { %v1463_v32 = vadd.f32 %v6678_v15, %v1462_v31  ;;  %v1631_v34 = vpop.f32.mrf.mxu1  ;;  %2024 = vmatmul.mubr.bf16.gmra.mxu1 %v4905_v25 }
 0x14b   :  { %v1464_v35 = vpop.f32.mrf.mxu0 }
 0x14c   :  { %v6879_v36 = vadd.f32 %v1631_v34, %v1463_v32  ;;  %v1633_v38 = vpop.f32.mrf.mxu1 }
 0x14d   :  { %v1465_v39 = vpop.f32.mrf.mxu0 }
 0x14e   :  { %v1466_v41 = vadd.f32 %v6678_v15, %v1465_v39  ;;  %v1634_v42 = vpop.f32.mrf.mxu1 }
 0x14f   :  { %v1467_v43 = vpop.f32.mrf.mxu0 }
 0x150   :  { %v6882_v44 = vadd.f32 %v1634_v42, %v1466_v41  ;;  %v1636_v45 = vpop.f32.mrf.mxu1 }
 0x151   :  { %v1470_v46 = vpop.f32.mrf.mxu0 }
 0x152   :  { %v1471_v49 = vadd.f32 %v6678_v15, %v1470_v46  ;;  %v1639_v51 = vpop.f32.mrf.mxu1 }
 0x153   :  { %v1472_v52 = vpop.f32.mrf.mxu0 }
 0x154   :  { %v6885_v53 = vadd.f32 %v1639_v51, %v1471_v49  ;;  %v1641_v54 = vpop.f32.mrf.mxu1 }
 0x155   :  { %v1473_v55 = vpop.f32.mrf.mxu0 }
 0x156   :  { %v1474_v56 = vadd.f32 %v6678_v15, %v1473_v55  ;;  %v1642_v59 = vpop.f32.mrf.mxu1 }
 0x157   :  { %v1475_v60 = vpop.f32.mrf.mxu0 }
 0x158   :  { %v6888_v61 = vadd.f32 %v1642_v59, %v1474_v56  ;;  %v1644_v62 = vpop.f32.mrf.mxu1  ;;  %v6911_v59 = vld [vmem:[%s8007_s3 + $0x38] sm:$0xff]  }
 0x159   :  { %v1478_v63 = vpop.f32.mrf.mxu0  ;;  %5553 = vmatprep.subr.bf16.mxu1 %v6911_v59 }
 0x15a   :  { %v1479_v2 = vadd.f32 %v6678_v15, %v1478_v63  ;;  %v1647_v3 = vpop.f32.mrf.mxu1 }
 0x15b   :  { %v1480_v4 = vpop.f32.mrf.mxu0 }
 0x15c   :  { %v6891_v6 = vadd.f32 %v1647_v3, %v1479_v2  ;;  %v1649_v7 = vpop.f32.mrf.mxu1 }
 0x15d   :  { %v1481_v8 = vpop.f32.mrf.mxu0 }
 0x15e   :  { %v1482_v11 = vadd.f32 %v6678_v15, %v1481_v8  ;;  %v1650_v12 = vpop.f32.mrf.mxu1 }
 0x15f   :  { %v1483_v14 = vpop.f32.mrf.mxu0 }
 0x160   :  { %v6894_v16 = vadd.f32 %v1650_v12, %v1482_v11  ;;  %v1652_v18 = vpop.f32.mrf.mxu1 }
 0x161   :  { %v1486_v19 = vpop.f32.mrf.mxu0 }
 0x162   :  { %v1487_v20 = vadd.f32 %v6678_v15, %v1486_v19  ;;  %v1655_v21 = vpop.f32.mrf.mxu1 }
 0x163   :  { %v1488_v22 = vpop.f32.mrf.mxu0 }
 0x164   :  { %v6897_v24 = vadd.f32 %v1655_v21, %v1487_v20  ;;  %v1657_v25 = vpop.f32.mrf.mxu1 }
 0x165   :  { %v1489_v26 = vpop.f32.mrf.mxu0 }
 0x166   :  { %v1490_v30 = vadd.f32 %v6678_v15, %v1489_v26  ;;  %v1658_v31 = vpop.f32.mrf.mxu1 }
 0x167   :  { %v1491_v32 = vpop.f32.mrf.mxu0 }
 0x168   :  { %v6900_v34 = vadd.f32 %v1658_v31, %v1490_v30  ;;  %v1660_v35 = vpop.f32.mrf.mxu1 }
 0x169   :  { %v1494_v38 = vpop.f32.mrf.mxu0 }
 0x16a   :  { %v1495_v39 = vadd.f32 %v6678_v15, %v1494_v38  ;;  %v1663_v41 = vpop.f32.mrf.mxu1 }
 0x16b   :  { %v1496_v42 = vpop.f32.mrf.mxu0 }
 0x16c   :  { %v6903_v43 = vadd.f32 %v1663_v41, %v1495_v39  ;;  %v1665_v45 = vpop.f32.mrf.mxu1 }
 0x16d   :  { %v1497_v46 = vpop.f32.mrf.mxu0 }
 0x16e   :  { %v1498_v49 = vadd.f32 %v6678_v15, %v1497_v46  ;;  %v1666_v51 = vpop.f32.mrf.mxu1 }
 0x16f   :  { %v1499_v52 = vpop.f32.mrf.mxu0 }
 0x170   :  { %v6906_v54 = vadd.f32 %v1666_v51, %v1498_v49  ;;  %v1668_v55 = vpop.f32.mrf.mxu1 }
 0x171   :  { %v1502_v56 = vpop.f32.mrf.mxu0 }
 0x172   :  { %v1503_v60 = vadd.f32 %v6678_v15, %v1502_v56  ;;  %v1671_v62 = vpop.f32.mrf.mxu1 }
 0x173   :  { %v1504_v63 = vpop.f32.mrf.mxu0 }
 0x174   :  { %v6915_v2 = vadd.f32 %v1671_v62, %v1503_v60  ;;  %v1673_v3 = vpop.f32.mrf.mxu1 }
 0x175   :  { %v1505_v4 = vpop.f32.mrf.mxu0 }
 0x176   :  { %v1506_v7 = vadd.f32 %v6678_v15, %v1505_v4  ;;  %v1674_v8 = vpop.f32.mrf.mxu1 }
 0x177   :  { %v1507_v11 = vpop.f32.mrf.mxu0 }
 0x178   :  { %v6918_v12 = vadd.f32 %v1674_v8, %v1506_v7  ;;  %v1676_v14 = vpop.f32.mrf.mxu1 }
 0x179   :  { %v1510_v18 = vpop.f32.mrf.mxu0 }
 0x17a   :  { %v1511_v19 = vadd.f32 %v6678_v15, %v1510_v18  ;;  %v1679_v20 = vpop.f32.mrf.mxu1 }
 0x17b   :  { %v1512_v21 = vpop.f32.mrf.mxu0 }
 0x17c   :  { %v6921_v22 = vadd.f32 %v1679_v20, %v1511_v19  ;;  %v1681_v25 = vpop.f32.mrf.mxu1 }
 0x17d   :  { %v1513_v26 = vpop.f32.mrf.mxu0 }
 0x17e   :  { %v1514_v30 = vadd.f32 %v6678_v15, %v1513_v26  ;;  %v1682_v31 = vpop.f32.mrf.mxu1 }
 0x17f   :  { %v1515_v32 = vpop.f32.mrf.mxu0 }
 0x180   :  { %v6924_v35 = vadd.f32 %v1682_v31, %v1514_v30  ;;  %v1684_v38 = vpop.f32.mrf.mxu1 }
 0x181   :  { %v1518_v39 = vpop.f32.mrf.mxu0 }
 0x182   :  { %v1519_v41 = vadd.f32 %v6678_v15, %v1518_v39  ;;  %v1687_v42 = vpop.f32.mrf.mxu1 }
 0x183   :  { %v1520_v45 = vpop.f32.mrf.mxu0 }
 0x184   :  { %v6927_v46 = vadd.f32 %v1687_v42, %v1519_v41  ;;  %v1689_v49 = vpop.f32.mrf.mxu1 }
 0x185   :  { %v1521_v51 = vpop.f32.mrf.mxu0 }
 0x186   :  { %v1522_v52 = vadd.f32 %v6678_v15, %v1521_v51  ;;  %v1690_v55 = vpop.f32.mrf.mxu1 }
 0x187   :  { %v1523_v56 = vpop.f32.mrf.mxu0 }
 0x188   :  { %v6930_v60 = vadd.f32 %v1690_v55, %v1522_v52  ;;  %v1692_v62 = vpop.f32.mrf.mxu1 }
 0x189   :  { %v1728_v63 = vpop.f32.mrf.mxu0 }
 0x18a   :  { %v1729_v3 = vadd.f32 %v1728_v63, %v6693_v27  ;;  %v1897_v4 = vpop.f32.mrf.mxu1 }
 0x18b   :  { %v1730_v7 = vpop.f32.mrf.mxu0 }
 0x18c   :  { %v1898_v8 = vadd.f32 %v1897_v4, %v1729_v3  ;;  %v1899_v11 = vpop.f32.mrf.mxu1 }
 0x18d   :  { %v1731_v14 = vpop.f32.mrf.mxu0 }
 0x18e   :  { %v2032_v18 = vmax.f32 %v1898_v8, 0.0  ;;  %v1732_v19 = vadd.f32 %v1731_v14, %v6696_v37  ;;  %v1900_v20 = vpop.f32.mrf.mxu1 }
 0x18f   :  { %v1733_v21 = vpop.f32.mrf.mxu0 }
 0x190   :  { %2066 = vst [vmem:[#allocation2] sm:$0xff] %v2032_v18  ;;  %v1901_v15 = vadd.f32 %v1900_v20, %v1732_v19  ;;  %v1902_v25 = vpop.f32.mrf.mxu1 }
 0x191   :  { %v1736_v26 = vpop.f32.mrf.mxu0 }
 0x192   :  { %v2033_v30 = vmax.f32 %v1901_v15, 0.0  ;;  %v1737_v31 = vadd.f32 %v1736_v26, %v6711_v47  ;;  %v1905_v32 = vpop.f32.mrf.mxu1 }
 0x193   :  { %v1738_v38 = vpop.f32.mrf.mxu0 }
 0x194   :  { %2067 = vst [vmem:[#allocation2 + $0x8] sm:$0xff] %v2033_v30  ;;  %v1906_v27 = vadd.f32 %v1905_v32, %v1737_v31  ;;  %v1907_v39 = vpop.f32.mrf.mxu1  ;;  %v6935_v41 = vpack.c.bf16 %v2033_v30, %v2032_v18 }
 0x195   :  { %v1739_v42 = vpop.f32.mrf.mxu0 }
 0x196   :  { %v2034_v45 = vmax.f32 %v1906_v27, 0.0  ;;  %v1740_v37 = vadd.f32 %v1739_v42, %v6714_v57  ;;  %v1908_v49 = vpop.f32.mrf.mxu1 }
 0x197   :  { %v1741_v51 = vpop.f32.mrf.mxu0 }
 0x198   :  { %2068 = vst [vmem:[#allocation2 + $0x10] sm:$0xff] %v2034_v45  ;;  %v1909_v52 = vadd.f32 %v1908_v49, %v1740_v37  ;;  %v1910_v55 = vpop.f32.mrf.mxu1 }
 0x199   :  { %v1744_v56 = vpop.f32.mrf.mxu0 }
 0x19a   :  { %v2035_v62 = vmax.f32 %v1909_v52, 0.0  ;;  %v1745_v47 = vadd.f32 %v1744_v56, %v6738_v5  ;;  %v1913_v63 = vpop.f32.mrf.mxu1 }
 0x19b   :  { %v1746_v3 = vpop.f32.mrf.mxu0  ;;  %v2158_v20 = vld [vmem:[#allocation2 + $0x1] sm:$0xff] }
 0x19c   :  { %2069 = vst [vmem:[#allocation2 + $0x18] sm:$0xff] %v2035_v62  ;;  %v1914_v4 = vadd.f32 %v1913_v63, %v1745_v47  ;;  %v1915_v7 = vpop.f32.mrf.mxu1  ;;  %v6939_v8 = vpack.c.bf16 %v2035_v62, %v2034_v45  ;;  %v5995_v47 = vld [vmem:[%s8007_s3 + $0xb0] sm:$0xff]  }
 0x19d   :  { %v1747_v11 = vpop.f32.mrf.mxu0 }
 0x19e   :  { %v2036_v14 = vmax.f32 %v1914_v4, 0.0  ;;  %v1748_v57 = vadd.f32 %v1747_v11, %v6747_v17  ;;  %v1916_v18 = vpop.f32.mrf.mxu1 }
 0x19f   :  { %v1749_v19 = vpop.f32.mrf.mxu0  ;;  %v2159_v21 = vld [vmem:[#allocation2 + $0x9] sm:$0xff] }
 0x1a0   :  { %2070 = vst [vmem:[#allocation2 + $0x20] sm:$0xff] %v2036_v14  ;;  %v1917_v15 = vadd.f32 %v1916_v18, %v1748_v57  ;;  %v1918_v25 = vpop.f32.mrf.mxu1  ;;  %v2186_v26 = vpack.c.bf16 %v2159_v21, %v2158_v20  ;;  %v5996_v57 = vld [vmem:[%s8007_s3 + $0xa8] sm:$0xff]  }
 0x1a1   :  { %v1752_v5 = vpop.f32.mrf.mxu0 }
 0x1a2   :  { %v2037_v30 = vmax.f32 %v1917_v15, 0.0  ;;  %v1753_v31 = vadd.f32 %v1752_v5, %v6771_v28  ;;  %v1921_v32 = vpop.f32.mrf.mxu1  ;;  %5525 = vmatprep.mubr.bf16.mxu0 %v2186_v26 }
 0x1a3   :  { %v1754_v38 = vpop.f32.mrf.mxu0  ;;  %v2160_v52 = vld [vmem:[#allocation2 + $0x11] sm:$0xff] }
 0x1a4   :  { %2071 = vst [vmem:[#allocation2 + $0x28] sm:$0xff] %v2037_v30  ;;  %v1922_v27 = vadd.f32 %v1921_v32, %v1753_v31  ;;  %v1923_v39 = vpop.f32.mrf.mxu1  ;;  %v6943_v42 = vpack.c.bf16 %v2037_v30, %v2036_v14  ;;  %v5997_v31 = vld [vmem:[%s8007_s3 + $0xa0] sm:$0xff]  }
 0x1a5   :  { %v1755_v17 = vpop.f32.mrf.mxu0 }
 0x1a6   :  { %v2038_v45 = vmax.f32 %v1922_v27, 0.0  ;;  %v1756_v37 = vadd.f32 %v1755_v17, %v6783_v40  ;;  %v1924_v49 = vpop.f32.mrf.mxu1 }
 0x1a7   :  { %v1757_v51 = vpop.f32.mrf.mxu0  ;;  %v2161_v55 = vld [vmem:[#allocation2 + $0x19] sm:$0xff] }
 0x1a8   :  { %2072 = vst [vmem:[#allocation2 + $0x30] sm:$0xff] %v2038_v45  ;;  %v1925_v56 = vadd.f32 %v1924_v49, %v1756_v37  ;;  %v1926_v62 = vpop.f32.mrf.mxu1  ;;  %v2187_v28 = vpack.c.bf16 %v2161_v55, %v2160_v52  ;;  %v5998_v37 = vld [vmem:[%s8007_s3 + $0x98] sm:$0xff]  }
 0x1a9   :  { %v1760_v63 = vpop.f32.mrf.mxu0 }
 0x1aa   :  { %v2039_v3 = vmax.f32 %v1925_v56, 0.0  ;;  %v1761_v4 = vadd.f32 %v1760_v63, %v6795_v50  ;;  %v1929_v7 = vpop.f32.mrf.mxu1  ;;  %5526 = vmatmul.mubr.bf16.vlgmr.msra.gmra.mxu0 %v2187_v28 }
 0x1ab   :  { %v1762_v11 = vpop.f32.mrf.mxu0  ;;  %5598 = vmatpush3.bf16.msra.mxu0 %v6869_v13  ;;  %v2162_v25 = vld [vmem:[#allocation2 + $0x21] sm:$0xff] }
 0x1ac   :  { %2073 = vst [vmem:[#allocation2 + $0x38] sm:$0xff] %v2039_v3  ;;  %v1930_v40 = vadd.f32 %v1929_v7, %v1761_v4  ;;  %v1931_v14 = vpop.f32.mrf.mxu1  ;;  %5599 = vmatprep.subr.bf16.mxu0 %v5995_v47  ;;  %v6954_v18 = vpack.c.bf16 %v2039_v3, %v2038_v45  ;;  %v5999_v4 = vld [vmem:[%s8007_s3 + $0x90] sm:$0xff]  }
 0x1ad   :  { %v1763_v19 = vpop.f32.mrf.mxu0 }
 0x1ae   :  { %v2040_v20 = vmax.f32 %v1930_v40, 0.0  ;;  %v1764_v21 = vadd.f32 %v1763_v19, %v6810_v1  ;;  %v1932_v50 = vpop.f32.mrf.mxu1 }
 0x1af   :  { %v1765_v15 = vpop.f32.mrf.mxu0  ;;  %v2163_v26 = vld [vmem:[#allocation2 + $0x29] sm:$0xff]  ;;  %5600 = vmatpush3.bf16.msra.mxu0 %v5995_v47 }
 0x1b0   :  { %2074 = vst [vmem:[#allocation2 + $0x40] sm:$0xff] %v2040_v20  ;;  %v1933_v13 = vadd.f32 %v1932_v50, %v1764_v21  ;;  %v1934_v5 = vpop.f32.mrf.mxu1  ;;  %v2188_v30 = vpack.c.bf16 %v2163_v26, %v2162_v25  ;;  %5601 = vmatprep.subr.bf16.mxu0 %v5996_v57 }
 0x1b1   :  { %v1768_v32 = vpop.f32.mrf.mxu0 }
 0x1b2   :  { %v2041_v38 = vmax.f32 %v1933_v13, 0.0  ;;  %v1769_v27 = vadd.f32 %v1768_v32, %v6819_v10  ;;  %v1937_v39 = vpop.f32.mrf.mxu1  ;;  %5529 = vmatprep.mubr.bf16.mxu0 %v2188_v30 }
 0x1b3   :  { %v1770_v1 = vpop.f32.mrf.mxu0  ;;  %5602 = vmatpush3.bf16.msra.mxu0 %v5996_v57  ;;  %v2164_v62 = vld [vmem:[#allocation2 + $0x31] sm:$0xff] }
 0x1b4   :  { %2075 = vst [vmem:[#allocation2 + $0x48] sm:$0xff] %v2041_v38  ;;  %v1938_v17 = vadd.f32 %v1937_v39, %v1769_v27  ;;  %v1939_v45 = vpop.f32.mrf.mxu1  ;;  %5603 = vmatprep.subr.bf16.mxu0 %v5997_v31  ;;  %v6964_v49 = vpack.c.bf16 %v2041_v38, %v2040_v20  ;;  %v6000_v20 = vld [vmem:[%s8007_s3 + $0x88] sm:$0xff]   ;;  %v6001_v38 = vld [vmem:[%s8007_s3 + $0x80] sm:$0xff]  }
 0x1b5   :  { %v1771_v51 = vpop.f32.mrf.mxu0 }
 0x1b6   :  { %v2042_v52 = vmax.f32 %v1938_v17, 0.0  ;;  %v1772_v55 = vadd.f32 %v1771_v51, %v6828_v23  ;;  %v1940_v56 = vpop.f32.mrf.mxu1  ;;  %v6984_v51 = vld [vmem:[%s8007_s3 + $0x138] sm:$0xff]  }
 0x1b7   :  { %v1773_v10 = vpop.f32.mrf.mxu0  ;;  %v2165_v28 = vld [vmem:[#allocation2 + $0x39] sm:$0xff]  ;;  %5604 = vmatpush3.bf16.msra.mxu0 %v5997_v31 }
 0x1b8   :  { %2076 = vst [vmem:[#allocation2 + $0x50] sm:$0xff] %v2042_v52  ;;  %v1941_v47 = vadd.f32 %v1940_v56, %v1772_v55  ;;  %v1942_v63 = vpop.f32.mrf.mxu1  ;;  %v2189_v3 = vpack.c.bf16 %v2165_v28, %v2164_v62  ;;  %5605 = vmatprep.subr.bf16.mxu0 %v5998_v37 }
 0x1b9   :  { %v1776_v7 = vpop.f32.mrf.mxu0 }
 0x1ba   :  { %v2043_v11 = vmax.f32 %v1941_v47, 0.0  ;;  %v1777_v40 = vadd.f32 %v1776_v7, %v6837_v33  ;;  %v1945_v14 = vpop.f32.mrf.mxu1  ;;  %5530 = vmatmul.mubr.bf16.gmra.mxu0 %v2189_v3 }
 0x1bb   :  { %v1778_v23 = vpop.f32.mrf.mxu0  ;;  %5606 = vmatpush3.bf16.msra.mxu0 %v5998_v37  ;;  %v2166_v13 = vld [vmem:[#allocation2 + $0x41] sm:$0xff] }
 0x1bc   :  { %2077 = vst [vmem:[#allocation2 + $0x58] sm:$0xff] %v2043_v11  ;;  %v1946_v57 = vadd.f32 %v1945_v14, %v1777_v40  ;;  %v1947_v19 = vpop.f32.mrf.mxu1  ;;  %5607 = vmatprep.subr.bf16.mxu0 %v5999_v4  ;;  %v6974_v21 = vpack.c.bf16 %v2043_v11, %v2042_v52 }
 0x1bd   :  { %v1779_v50 = vpop.f32.mrf.mxu0 }
 0x1be   :  { %v2044_v15 = vmax.f32 %v1946_v57, 0.0  ;;  %v1780_v25 = vadd.f32 %v1779_v50, %v6846_v48  ;;  %v1948_v26 = vpop.f32.mrf.mxu1 }
 0x1bf   :  { %v1781_v33 = vpop.f32.mrf.mxu0  ;;  %v2167_v5 = vld [vmem:[#allocation2 + $0x49] sm:$0xff]  ;;  %5608 = vmatpush3.bf16.msra.mxu0 %v5999_v4 }
 0x1c0   :  { %2078 = vst [vmem:[#allocation2 + $0x60] sm:$0xff] %v2044_v15  ;;  %v1949_v30 = vadd.f32 %v1948_v26, %v1780_v25  ;;  %v1950_v31 = vpop.f32.mrf.mxu1  ;;  %v2190_v32 = vpack.c.bf16 %v2167_v5, %v2166_v13  ;;  %5609 = vmatprep.subr.bf16.mxu0 %v6000_v20 }
 0x1c1   :  { %v1784_v27 = vpop.f32.mrf.mxu0 }
 0x1c2   :  { %v2045_v39 = vmax.f32 %v1949_v30, 0.0  ;;  %v1785_v1 = vadd.f32 %v1784_v27, %v6855_v58  ;;  %v1953_v17 = vpop.f32.mrf.mxu1  ;;  %5533 = vmatprep.mubr.bf16.mxu0 %v2190_v32 }
 0x1c3   :  { %v1786_v48 = vpop.f32.mrf.mxu0  ;;  %5610 = vmatpush3.bf16.msra.mxu0 %v6000_v20  ;;  %v2168_v28 = vld [vmem:[#allocation2 + $0x51] sm:$0xff] }
 0x1c4   :  { %2079 = vst [vmem:[#allocation2 + $0x68] sm:$0xff] %v2045_v39  ;;  %v1954_v45 = vadd.f32 %v1953_v17, %v1785_v1  ;;  %v1955_v37 = vpop.f32.mrf.mxu1  ;;  %5611 = vmatprep.subr.bf16.mxu0 %v6001_v38  ;;  %v6986_v52 = vpack.c.bf16 %v2045_v39, %v2044_v15 }
 0x1c5   :  { %v1787_v55 = vpop.f32.mrf.mxu0 }
 0x1c6   :  { %v2046_v56 = vmax.f32 %v1954_v45, 0.0  ;;  %v1788_v10 = vadd.f32 %v1787_v55, %v6864_v9  ;;  %v1956_v58 = vpop.f32.mrf.mxu1 }
 0x1c7   :  { %v1789_v62 = vpop.f32.mrf.mxu0  ;;  %v2169_v47 = vld [vmem:[#allocation2 + $0x59] sm:$0xff]  ;;  %5612 = vmatpush3.bf16.msra.mxu0 %v6001_v38 }
 0x1c8   :  { %2080 = vst [vmem:[#allocation2 + $0x70] sm:$0xff] %v2046_v56  ;;  %v1957_v63 = vadd.f32 %v1956_v58, %v1788_v10  ;;  %v1958_v3 = vpop.f32.mrf.mxu1  ;;  %v2191_v4 = vpack.c.bf16 %v2169_v47, %v2168_v28  ;;  %5685 = vmatprep.subr.bf16.mxu0 %v6984_v51 }
 0x1c9   :  { %v1792_v7 = vpop.f32.mrf.mxu0 }
 0x1ca   :  { %v2047_v11 = vmax.f32 %v1957_v63, 0.0  ;;  %v1793_v40 = vadd.f32 %v1792_v7, %v6873_v0  ;;  %v1961_v14 = vpop.f32.mrf.mxu1  ;;  %5534 = vmatmul.mubr.bf16.gmra.mxu0 %v2191_v4  ;;  %v2603_v63 = vld [vmem:[#allocation2 + $0x2] sm:$0xff] }
 0x1cb   :  { %v1794_v23 = vpop.f32.mrf.mxu0  ;;  %v2170_v33 = vld [vmem:[#allocation2 + $0x61] sm:$0xff] }
 0x1cc   :  { %2081 = vst [vmem:[#allocation2 + $0x78] sm:$0xff] %v2047_v11  ;;  %v1962_v9 = vadd.f32 %v1961_v14, %v1793_v40  ;;  %v1963_v57 = vpop.f32.mrf.mxu1  ;;  %v6991_v19 = vpack.c.bf16 %v2047_v11, %v2046_v56  ;;  %v2604_v56 = vld [vmem:[#allocation2 + $0xa] sm:$0xff] }
 0x1cd   :  { %v1795_v20 = vpop.f32.mrf.mxu0  ;;  %v2631_v4 = vpack.c.bf16 %v2604_v56, %v2603_v63  ;;  %v6009_v56 = vld [vmem:[%s8007_s3 + $0x128] sm:$0xff]  }
 0x1ce   :  { %v2048_v50 = vmax.f32 %v1962_v9, 0.0  ;;  %v1796_v15 = vadd.f32 %v1795_v20, %v6876_v29  ;;  %v1964_v25 = vpop.f32.mrf.mxu1  ;;  %v2606_v20 = vld [vmem:[#allocation2 + $0x1a] sm:$0xff] }
 0x1cf   :  { %v1797_v26 = vpop.f32.mrf.mxu0  ;;  %v2171_v13 = vld [vmem:[#allocation2 + $0x69] sm:$0xff] }
 0x1d0   :  { %2082 = vst [vmem:[#allocation2 + $0x80] sm:$0xff] %v2048_v50  ;;  %v1965_v5 = vadd.f32 %v1964_v25, %v1796_v15  ;;  %v1966_v30 = vpop.f32.mrf.mxu1  ;;  %v2192_v0 = vpack.c.bf16 %v2171_v13, %v2170_v33  ;;  %v2608_v26 = vld [vmem:[#allocation2 + $0x2a] sm:$0xff] }
 0x1d1   :  { %v1800_v31 = vpop.f32.mrf.mxu0 }
 0x1d2   :  { %v2049_v32 = vmax.f32 %v1965_v5, 0.0  ;;  %v1801_v38 = vadd.f32 %v1800_v31, %v6879_v36  ;;  %v1969_v27 = vpop.f32.mrf.mxu1  ;;  %5537 = vmatprep.mubr.bf16.mxu0 %v2192_v0 }
 0x1d3   :  { %v1802_v39 = vpop.f32.mrf.mxu0  ;;  %v2172_v58 = vld [vmem:[#allocation2 + $0x71] sm:$0xff] }
 0x1d4   :  { %2083 = vst [vmem:[#allocation2 + $0x88] sm:$0xff] %v2049_v32  ;;  %v1970_v1 = vadd.f32 %v1969_v27, %v1801_v38  ;;  %v1971_v17 = vpop.f32.mrf.mxu1  ;;  %v6995_v48 = vpack.c.bf16 %v2049_v32, %v2048_v50  ;;  %v2607_v38 = vld [vmem:[#allocation2 + $0x22] sm:$0xff]  ;;  %v6007_v27 = vld [vmem:[%s8007_s3 + $0x130] sm:$0xff]  }
 0x1d5   :  { %v1803_v29 = vpop.f32.mrf.mxu0 }
 0x1d6   :  { %v2050_v45 = vmax.f32 %v1970_v1, 0.0  ;;  %v1804_v37 = vadd.f32 %v1803_v29, %v6882_v44  ;;  %v1972_v55 = vpop.f32.mrf.mxu1  ;;  %v2633_v1 = vpack.c.bf16 %v2608_v26, %v2607_v38  ;;  %v2616_v38 = vld [vmem:[#allocation2 + $0x6a] sm:$0xff] }
 0x1d7   :  { %v1805_v10 = vpop.f32.mrf.mxu0  ;;  %v2173_v62 = vld [vmem:[#allocation2 + $0x79] sm:$0xff] }
 0x1d8   :  { %2084 = vst [vmem:[#allocation2 + $0x90] sm:$0xff] %v2050_v45  ;;  %v1973_v28 = vadd.f32 %v1972_v55, %v1804_v37  ;;  %v1974_v36 = vpop.f32.mrf.mxu1  ;;  %v2193_v47 = vpack.c.bf16 %v2173_v62, %v2172_v58  ;;  %v2610_v62 = vld [vmem:[#allocation2 + $0x3a] sm:$0xff] }
 0x1d9   :  { %v1808_v3 = vpop.f32.mrf.mxu0 }
 0x1da   :  { %v2051_v7 = vmax.f32 %v1973_v28, 0.0  ;;  %v1809_v11 = vadd.f32 %v1808_v3, %v6885_v53  ;;  %v1977_v40 = vpop.f32.mrf.mxu1  ;;  %5538 = vmatmul.mubr.bf16.gmra.mxu0 %v2193_v47  ;;  %v2605_v53 = vld [vmem:[#allocation2 + $0x12] sm:$0xff]  ;;  %v2612_v47 = vld [vmem:[#allocation2 + $0x4a] sm:$0xff] }
 0x1db   :  { %v1810_v14 = vpop.f32.mrf.mxu0  ;;  %5613 = vmatprep.mubr.bf16.mxu0 %v2631_v4  ;;  %v2174_v13 = vld [vmem:[#allocation2 + $0x81] sm:$0xff]  ;;  %v2632_v32 = vpack.c.bf16 %v2606_v20, %v2605_v53  ;;  %v2609_v4 = vld [vmem:[#allocation2 + $0x32] sm:$0xff] }
 0x1dc   :  { %2085 = vst [vmem:[#allocation2 + $0x98] sm:$0xff] %v2051_v7  ;;  %v1978_v44 = vadd.f32 %v1977_v40, %v1809_v11  ;;  %v1979_v23 = vpop.f32.mrf.mxu1  ;;  %v6999_v9 = vpack.c.bf16 %v2051_v7, %v2050_v45  ;;  %v2634_v14 = vpack.c.bf16 %v2610_v62, %v2609_v4  ;;  %v6011_v20 = vld [vmem:[%s8007_s3 + $0x120] sm:$0xff]   ;;  %v6015_v62 = vld [vmem:[%s8007_s3 + $0x110] sm:$0xff]  }
 0x1dd   :  { %v1811_v57 = vpop.f32.mrf.mxu0  ;;  %v6003_v23 = vld [vmem:[%s8007_s3 + $0x30] sm:$0xff]  }
 0x1de   :  { %v2052_v50 = vmax.f32 %v1978_v44, 0.0  ;;  %v1812_v15 = vadd.f32 %v1811_v57, %v6888_v61  ;;  %v1980_v25 = vpop.f32.mrf.mxu1  ;;  %v2611_v44 = vld [vmem:[#allocation2 + $0x42] sm:$0xff] }
 0x1df   :  { %v1813_v33 = vpop.f32.mrf.mxu0  ;;  %v2175_v5 = vld [vmem:[#allocation2 + $0x89] sm:$0xff] }
 0x1e0   :  { %2086 = vst [vmem:[#allocation2 + $0xa0] sm:$0xff] %v2052_v50  ;;  %v1981_v30 = vadd.f32 %v1980_v25, %v1812_v15  ;;  %v1982_v0 = vpop.f32.mrf.mxu1  ;;  %v2194_v31 = vpack.c.bf16 %v2175_v5, %v2174_v13  ;;  %v6004_v5 = vld [vmem:[%s8007_s3 + $0x28] sm:$0xff]  }
 0x1e1   :  { %v1816_v39 = vpop.f32.mrf.mxu0  ;;  %v6013_v0 = vld [vmem:[%s8007_s3 + $0x118] sm:$0xff]  }
 0x1e2   :  { %v2053_v17 = vmax.f32 %v1981_v30, 0.0  ;;  %v1817_v61 = vadd.f32 %v1816_v39, %v6891_v6  ;;  %v1985_v29 = vpop.f32.mrf.mxu1  ;;  %5541 = vmatprep.mubr.bf16.mxu1 %v2194_v31  ;;  %5614 = vmatmul.mubr.bf16.vlgmr.msra.gmra.mxu0 %v2632_v32 }
 0x1e3   :  { %v1818_v45 = vpop.f32.mrf.mxu0  ;;  %5617 = vmatprep.mubr.bf16.mxu0 %v2633_v1  ;;  %5686 = vmatpush3.bf16.msra.mxu0 %v6984_v51  ;;  %v2176_v3 = vld [vmem:[#allocation2 + $0x91] sm:$0xff] }
 0x1e4   :  { %2087 = vst [vmem:[#allocation2 + $0xa8] sm:$0xff] %v2053_v17  ;;  %v1986_v37 = vadd.f32 %v1985_v29, %v1817_v61  ;;  %v1987_v55 = vpop.f32.mrf.mxu1  ;;  %5687 = vmatprep.subr.bf16.mxu0 %v6007_v27  ;;  %v7010_v10 = vpack.c.bf16 %v2053_v17, %v2052_v50  ;;  %v2613_v17 = vld [vmem:[#allocation2 + $0x52] sm:$0xff] }
 0x1e5   :  { %v1819_v58 = vpop.f32.mrf.mxu0  ;;  %v2615_v55 = vld [vmem:[#allocation2 + $0x62] sm:$0xff] }
 0x1e6   :  { %v2054_v6 = vmax.f32 %v1986_v37, 0.0  ;;  %v1820_v28 = vadd.f32 %v1819_v58, %v6894_v16  ;;  %v1988_v36 = vpop.f32.mrf.mxu1  ;;  %v2635_v16 = vpack.c.bf16 %v2612_v47, %v2611_v44  ;;  %v2637_v58 = vpack.c.bf16 %v2616_v38, %v2615_v55 }
 0x1e7   :  { %v1821_v63 = vpop.f32.mrf.mxu0  ;;  %v2177_v51 = vld [vmem:[#allocation2 + $0x99] sm:$0xff]  ;;  %5688 = vmatpush3.bf16.msra.mxu0 %v6007_v27 }
 0x1e8   :  { %2088 = vst [vmem:[#allocation2 + $0xb0] sm:$0xff] %v2054_v6  ;;  %v1989_v7 = vadd.f32 %v1988_v36, %v1820_v28  ;;  %v1990_v11 = vpop.f32.mrf.mxu1  ;;  %v2195_v40 = vpack.c.bf16 %v2177_v51, %v2176_v3  ;;  %5689 = vmatprep.subr.bf16.mxu0 %v6009_v56  ;;  %v6008_v51 = vld [vmem:[%s8007_s3 + $0x18] sm:$0xff]  }
 0x1e9   :  { %v1824_v57 = vpop.f32.mrf.mxu0  ;;  %v2618_v11 = vld [vmem:[#allocation2 + $0x7a] sm:$0xff] }
 0x1ea   :  { %v2055_v50 = vmax.f32 %v1989_v7, 0.0  ;;  %v1825_v15 = vadd.f32 %v1824_v57, %v6897_v24  ;;  %v1993_v25 = vpop.f32.mrf.mxu1  ;;  %5542 = vmatmul.mubr.bf16.vlgmr.msra.gmra.mxu1 %v2195_v40  ;;  %5618 = vmatmul.mubr.bf16.gmra.mxu0 %v2634_v14  ;;  %v2614_v24 = vld [vmem:[#allocation2 + $0x5a] sm:$0xff] }
 0x1eb   :  { %v1826_v26 = vpop.f32.mrf.mxu0  ;;  %5621 = vmatprep.mubr.bf16.mxu0 %v2635_v16  ;;  %5554 = vmatpush3.bf16.msra.mxu1 %v6911_v59  ;;  %v2178_v39 = vld [vmem:[#allocation2 + $0xa1] sm:$0xff]  ;;  %v2636_v37 = vpack.c.bf16 %v2614_v24, %v2613_v17 }
 0x1ec   :  { %2089 = vst [vmem:[#allocation2 + $0xb8] sm:$0xff] %v2055_v50  ;;  %v1994_v33 = vadd.f32 %v1993_v25, %v1825_v15  ;;  %v1995_v13 = vpop.f32.mrf.mxu1  ;;  %5555 = vmatprep.subr.bf16.mxu1 %v6003_v23  ;;  %5690 = vmatpush3.bf16.msra.mxu0 %v6009_v56  ;;  %v7024_v53 = vpack.c.bf16 %v2055_v50, %v2054_v6  ;;  %v6006_v56 = vld [vmem:[%s8007_s3 + $0x20] sm:$0xff]   ;;  %v2617_v50 = vld [vmem:[#allocation2 + $0x72] sm:$0xff] }
 0x1ed   :  { %v1827_v30 = vpop.f32.mrf.mxu0  ;;  %5691 = vmatprep.subr.bf16.mxu0 %v6011_v20  ;;  %v2619_v13 = vld [vmem:[#allocation2 + $0x82] sm:$0xff] }
 0x1ee   :  { %v2056_v31 = vmax.f32 %v1994_v33, 0.0  ;;  %v1828_v59 = vadd.f32 %v1827_v30, %v6900_v34  ;;  %v1996_v32 = vpop.f32.mrf.mxu1  ;;  %v2638_v33 = vpack.c.bf16 %v2618_v11, %v2617_v50  ;;  %v6018_v24 = vld [vmem:[%s8007_s3 + $0x100] sm:$0xff]  }
 0x1ef   :  { %v1829_v27 = vpop.f32.mrf.mxu0  ;;  %v2179_v1 = vld [vmem:[#allocation2 + $0xa9] sm:$0xff]  ;;  %5556 = vmatpush3.bf16.msra.mxu1 %v6003_v23 }
 0x1f0   :  { %2090 = vst [vmem:[#allocation2 + $0xc0] sm:$0xff] %v2056_v31  ;;  %v1997_v61 = vadd.f32 %v1996_v32, %v1828_v59  ;;  %v1998_v29 = vpop.f32.mrf.mxu1  ;;  %v2196_v45 = vpack.c.bf16 %v2179_v1, %v2178_v39  ;;  %5557 = vmatprep.subr.bf16.mxu1 %v6004_v5  ;;  %5692 = vmatpush3.bf16.msra.mxu0 %v6011_v20  ;;  %v2620_v23 = vld [vmem:[#allocation2 + $0x8a] sm:$0xff] }
 0x1f1   :  { %v1832_v34 = vpop.f32.mrf.mxu0  ;;  %5693 = vmatprep.subr.bf16.mxu0 %v6013_v0  ;;  %v2639_v30 = vpack.c.bf16 %v2620_v23, %v2619_v13  ;;  %v6012_v39 = vld [vmem:[%s8007_s3 + $0x8] sm:$0xff]   ;;  %v6016_v23 = vld [vmem:[%s8007_s3 + $0xf8] sm:$0xff]  }
 0x1f2   :  { %v2057_v6 = vmax.f32 %v1997_v61, 0.0  ;;  %v1833_v28 = vadd.f32 %v1832_v34, %v6903_v43  ;;  %v2001_v36 = vpop.f32.mrf.mxu1  ;;  %5545 = vmatprep.mubr.bf16.mxu1 %v2196_v45  ;;  %5622 = vmatmul.mubr.bf16.gmra.mxu0 %v2636_v37  ;;  %v6017_v43 = vld [vmem:[%s8007_s3 + $0x108] sm:$0xff]   ;;  %v2622_v61 = vld [vmem:[#allocation2 + $0x9a] sm:$0xff] }
 0x1f3   :  { %v1834_v47 = vpop.f32.mrf.mxu0  ;;  %5625 = vmatprep.mubr.bf16.mxu0 %v2637_v58  ;;  %5558 = vmatpush3.bf16.msra.mxu1 %v6004_v5  ;;  %v2180_v16 = vld [vmem:[#allocation2 + $0xb1] sm:$0xff] }
 0x1f4   :  { %2091 = vst [vmem:[#allocation2 + $0xc8] sm:$0xff] %v2057_v6  ;;  %v2002_v63 = vadd.f32 %v2001_v36, %v1833_v28  ;;  %v2003_v3 = vpop.f32.mrf.mxu1  ;;  %5559 = vmatprep.subr.bf16.mxu1 %v6006_v56  ;;  %5694 = vmatpush3.bf16.msra.mxu0 %v6013_v0  ;;  %v7040_v4 = vpack.c.bf16 %v2057_v6, %v2056_v31  ;;  %v6010_v5 = vld [vmem:[%s8007_s3 + $0x10] sm:$0xff]  }
 0x1f5   :  { %v1835_v7 = vpop.f32.mrf.mxu0  ;;  %5695 = vmatprep.subr.bf16.mxu0 %v6015_v62  ;;  %v2624_v55 = vld [vmem:[#allocation2 + $0xaa] sm:$0xff]  ;;  %v6014_v3 = vld [vmem:[%s8007_s3] sm:$0xff]   ;;  %v2625_v13 = vld [vmem:[#allocation2 + $0xb2] sm:$0xff] }
 0x1f6   :  { %v2058_v40 = vmax.f32 %v2002_v63, 0.0  ;;  %v1836_v14 = vadd.f32 %v1835_v7, %v6906_v54  ;;  %v2004_v44 = vpop.f32.mrf.mxu1  ;;  %v2623_v63 = vld [vmem:[#allocation2 + $0xa2] sm:$0xff] }
 0x1f7   :  { %v1837_v57 = vpop.f32.mrf.mxu0  ;;  %v2181_v20 = vld [vmem:[#allocation2 + $0xb9] sm:$0xff]  ;;  %5560 = vmatpush3.bf16.msra.mxu1 %v6006_v56 }
 0x1f8   :  { %2092 = vst [vmem:[#allocation2 + $0xd0] sm:$0xff] %v2058_v40  ;;  %v2005_v15 = vadd.f32 %v2004_v44, %v1836_v14  ;;  %v2006_v25 = vpop.f32.mrf.mxu1  ;;  %v2197_v26 = vpack.c.bf16 %v2181_v20, %v2180_v16  ;;  %5561 = vmatprep.subr.bf16.mxu1 %v6008_v51  ;;  %5696 = vmatpush3.bf16.msra.mxu0 %v6015_v62  ;;  %v2621_v62 = vld [vmem:[#allocation2 + $0x92] sm:$0xff]  ;;  %v2626_v16 = vld [vmem:[#allocation2 + $0xba] sm:$0xff] }
 0x1f9   :  { %v1840_v54 = vpop.f32.mrf.mxu0  ;;  %5697 = vmatprep.subr.bf16.mxu0 %v6017_v43  ;;  %v2640_v47 = vpack.c.bf16 %v2622_v61, %v2621_v62 }
 0x1fa   :  { %v2059_v0 = vmax.f32 %v2005_v15, 0.0  ;;  %v1841_v31 = vadd.f32 %v1840_v54, %v6915_v2  ;;  %v2009_v59 = vpop.f32.mrf.mxu1  ;;  %5546 = vmatmul.mubr.bf16.gmra.mxu1 %v2197_v26  ;;  %5626 = vmatmul.mubr.bf16.gmra.mxu0 %v2638_v33  ;;  %v7061_v2 = vld [vmem:[%s8007_s3 + $0x1b8] sm:$0xff]  }
 0x1fb   :  { %v1842_v32 = vpop.f32.mrf.mxu0  ;;  %5629 = vmatprep.mubr.bf16.mxu0 %v2639_v30  ;;  %5562 = vmatpush3.bf16.msra.mxu1 %v6008_v51  ;;  %v2182_v34 = vld [vmem:[#allocation2 + $0xc1] sm:$0xff]  ;;  %v2641_v51 = vpack.c.bf16 %v2624_v55, %v2623_v63  ;;  %v3166_v63 = vld [vmem:[#allocation2 + $0x2f] sm:$0xff] }
 0x1fc   :  { %2093 = vst [vmem:[#allocation2 + $0xd8] sm:$0xff] %v2059_v0  ;;  %v2010_v38 = vadd.f32 %v2009_v59, %v1841_v31  ;;  %v2011_v27 = vpop.f32.mrf.mxu1  ;;  %5563 = vmatprep.subr.bf16.mxu1 %v6010_v5  ;;  %5698 = vmatpush3.bf16.msra.mxu0 %v6017_v43  ;;  %v7056_v1 = vpack.c.bf16 %v2059_v0, %v2058_v40  ;;  %v2627_v0 = vld [vmem:[#allocation2 + $0xc2] sm:$0xff] }
 0x1fd   :  { %v1843_v17 = vpop.f32.mrf.mxu0  ;;  %5699 = vmatprep.subr.bf16.mxu0 %v6018_v24 }
 0x1fe   :  { %v2060_v29 = vmax.f32 %v2010_v38, 0.0  ;;  %v1844_v45 = vadd.f32 %v1843_v17, %v6918_v12  ;;  %v2012_v37 = vpop.f32.mrf.mxu1 }
 0x1ff   :  { %v1845_v56 = vpop.f32.mrf.mxu0  ;;  %v2183_v58 = vld [vmem:[#allocation2 + $0xc9] sm:$0xff]  ;;  %5564 = vmatpush3.bf16.msra.mxu1 %v6010_v5 }
 0x200   :  { %2094 = vst [vmem:[#allocation2 + $0xe0] sm:$0xff] %v2060_v29  ;;  %v2013_v6 = vadd.f32 %v2012_v37, %v1844_v45  ;;  %v2014_v28 = vpop.f32.mrf.mxu1  ;;  %v2198_v36 = vpack.c.bf16 %v2183_v58, %v2182_v34  ;;  %5565 = vmatprep.subr.bf16.mxu1 %v6012_v39  ;;  %5700 = vmatpush3.bf16.msra.mxu0 %v6018_v24  ;;  %v2628_v15 = vld [vmem:[#allocation2 + $0xca] sm:$0xff]  ;;  %v3164_v34 = vld [vmem:[#allocation2 + $0x1f] sm:$0xff] }
 0x201   :  { %v1848_v12 = vpop.f32.mrf.mxu0  ;;  %5773 = vmatprep.subr.bf16.mxu0 %v7061_v2  ;;  %v2642_v24 = vpack.c.bf16 %v2626_v16, %v2625_v13  ;;  %v2643_v59 = vpack.c.bf16 %v2628_v15, %v2627_v0  ;;  %v3163_v28 = vld [vmem:[#allocation2 + $0x17] sm:$0xff]  ;;  %v6028_v16 = vld [vmem:[%s8007_s3 + $0x1a0] sm:$0xff]  }
 0x202   :  { %v2061_v7 = vmax.f32 %v2013_v6, 0.0  ;;  %v1849_v11 = vadd.f32 %v1848_v12, %v6921_v22  ;;  %5549 = vmatprep.mubr.bf16.mxu1 %v2198_v36  ;;  %5630 = vmatmul.mubr.bf16.gmra.mxu0 %v2640_v47  ;;  %v2017_v43 = vpop.f32.mrf.mxu1  ;;  %v3191_v47 = vpack.c.bf16 %v3164_v34, %v3163_v28  ;;  %v3165_v12 = vld [vmem:[#allocation2 + $0x27] sm:$0xff]  ;;  %v3176_v15 = vld [vmem:[#allocation2 + $0x7f] sm:$0xff]  ;;  %v6031_v13 = vld [vmem:[%s8007_s3 + $0x190] sm:$0xff]  }
 0x203   :  { %v1850_v40 = vpop.f32.mrf.mxu0  ;;  %5633 = vmatprep.mubr.bf16.mxu0 %v2641_v51  ;;  %5566 = vmatpush3.bf16.msra.mxu1 %v6012_v39  ;;  %v2184_v26 = vld [vmem:[#allocation2 + $0xd1] sm:$0xff]  ;;  %v3192_v51 = vpack.c.bf16 %v3166_v63, %v3165_v12  ;;  %v3177_v0 = vld [vmem:[#allocation2 + $0x87] sm:$0xff] }
 0x204   :  { %2095 = vst [vmem:[#allocation2 + $0xe8] sm:$0xff] %v2061_v7  ;;  %v2018_v14 = vadd.f32 %v2017_v43, %v1849_v11  ;;  %v2019_v44 = vpop.f32.mrf.mxu1  ;;  %5567 = vmatprep.subr.bf16.mxu1 %v6014_v3  ;;  %v2629_v56 = vld [vmem:[#allocation2 + $0xd2] sm:$0xff]  ;;  %v6036_v12 = vld [vmem:[%s8007_s3 + $0x168] sm:$0xff]  }
 0x205   :  { %v1851_v57 = vpop.f32.mrf.mxu0  ;;  %v3167_v7 = vld [vmem:[#allocation2 + $0x37] sm:$0xff]  ;;  %v3170_v43 = vld [vmem:[#allocation2 + $0x4f] sm:$0xff]  ;;  %v3172_v44 = vld [vmem:[#allocation2 + $0x5f] sm:$0xff] }
 0x206   :  { %v2062_v20 = vmax.f32 %v2018_v14, 0.0  ;;  %v1852_v50 = vadd.f32 %v1851_v57, %v6924_v35  ;;  %v2020_v22 = vpop.f32.mrf.mxu1  ;;  %v6025_v11 = vld [vmem:[%s8007_s3 + $0x1b0] sm:$0xff]   ;;  %v6022_v40 = vld [vmem:[%s8007_s3 + $0xd8] sm:$0xff]   ;;  %v6026_v14 = vld [vmem:[%s8007_s3 + $0x1a8] sm:$0xff]  }
 0x207   :  { %v1853_v25 = vpop.f32.mrf.mxu0  ;;  %v2185_v33 = vld [vmem:[#allocation2 + $0xd9] sm:$0xff]  ;;  %5568 = vmatpush3.bf16.msra.mxu1 %v6014_v3  ;;  %v3723_v63 = vld [vmem:[#allocation2 + $0x2c] sm:$0xff] }
 0x208   :  { %2096 = vst [vmem:[#allocation2 + $0xf0] sm:$0xff] %v2062_v20  ;;  %v2021_v5 = vadd.f32 %v2020_v22, %v1852_v50  ;;  %v2022_v54 = vpop.f32.mrf.mxu1  ;;  %v2199_v30 = vpack.c.bf16 %v2185_v33, %v2184_v26  ;;  %5641 = vmatprep.subr.bf16.mxu1 %v6016_v23  ;;  %v2630_v29 = vld [vmem:[#allocation2 + $0xda] sm:$0xff]  ;;  %v3174_v20 = vld [vmem:[#allocation2 + $0x6f] sm:$0xff]  ;;  %v3173_v25 = vld [vmem:[#allocation2 + $0x67] sm:$0xff] }
 0x209   :  { %v1856_v31 = vpop.f32.mrf.mxu0  ;;  %v2644_v62 = vpack.c.bf16 %v2630_v29, %v2629_v56  ;;  %v3168_v3 = vld [vmem:[#allocation2 + $0x3f] sm:$0xff]  ;;  %v3171_v57 = vld [vmem:[#allocation2 + $0x57] sm:$0xff]  ;;  %v6027_v50 = vld [vmem:[%s8007_s3 + $0xc8] sm:$0xff]  }
 0x20a   :  { %v2063_v32 = vmax.f32 %v2021_v5, 0.0  ;;  %v1857_v38 = vadd.f32 %v1856_v31, %v6927_v46  ;;  %5550 = vmatmul.mubr.bf16.gmra.mxu1 %v2199_v30  ;;  %5634 = vmatmul.mubr.bf16.gmra.mxu0 %v2642_v24  ;;  %v2025_v35 = vpop.f32.mrf.mxu1  ;;  %v6029_v22 = vld [vmem:[%s8007_s3 + $0x198] sm:$0xff]   ;;  %v6030_v33 = vld [vmem:[%s8007_s3 + $0xc0] sm:$0xff]   ;;  %v3178_v5 = vld [vmem:[#allocation2 + $0x8f] sm:$0xff] }
 0x20b   :  { %v1858_v27 = vpop.f32.mrf.mxu0  ;;  %5569 = vmatprep.mubr.bf16.mxu1 %v6935_v41  ;;  %5637 = vmatprep.mubr.bf16.mxu0 %v2643_v59  ;;  %v6019_v41 = vld [vmem:[%s8007_s3 + $0xf0] sm:$0xff]   ;;  %v6032_v54 = vld [vmem:[%s8007_s3 + $0x178] sm:$0xff]   ;;  %v6033_v30 = vld [vmem:[%s8007_s3 + $0x188] sm:$0xff]  }
 0x20c   :  { %2097 = vst [vmem:[#allocation2 + $0xf8] sm:$0xff] %v2063_v32  ;;  %v2026_v39 = vadd.f32 %v2025_v35, %v1857_v38  ;;  %v2027_v17 = vpop.f32.mrf.mxu1  ;;  %v3175_v26 = vld [vmem:[#allocation2 + $0x77] sm:$0xff]  ;;  %v3180_v24 = vld [vmem:[#allocation2 + $0x9f] sm:$0xff]  ;;  %v3182_v32 = vld [vmem:[#allocation2 + $0xaf] sm:$0xff] }
 0x20d   :  { %v1859_v61 = vpop.f32.mrf.mxu0  ;;  %v3179_v31 = vld [vmem:[#allocation2 + $0x97] sm:$0xff]  ;;  %v6034_v59 = vld [vmem:[%s8007_s3 + $0x180] sm:$0xff]  }
 0x20e   :  { %v2064_v45 = vmax.f32 %v2026_v39, 0.0  ;;  %v1860_v37 = vadd.f32 %v1859_v61, %v6930_v60  ;;  %v2028_v55 = vpop.f32.mrf.mxu1  ;;  %v6020_v60 = vld [vmem:[%s8007_s3 + $0xe8] sm:$0xff]   ;;  %v7135_v38 = vld [vmem:[%s8007_s3 + $0x238] sm:$0xff]  }
 0x20f   :  { %v1861_v58 = vpop.f32.mrf.mxu0  ;;  %v3184_v35 = vld [vmem:[#allocation2 + $0xbf] sm:$0xff]  ;;  %v3181_v27 = vld [vmem:[#allocation2 + $0xa7] sm:$0xff]  ;;  %v3183_v17 = vld [vmem:[#allocation2 + $0xb7] sm:$0xff] }
 0x210   :  { %2098 = vst [vmem:[#allocation2 + $0x100] sm:$0xff] %v2064_v45  ;;  %v2029_v46 = vadd.f32 %v2028_v55, %v1860_v37  ;;  %v2030_v6 = vpop.f32.mrf.mxu1  ;;  %v3200_v39 = vpack.c.bf16 %v3182_v32, %v3181_v27  ;;  %v3201_v61 = vpack.c.bf16 %v3184_v35, %v3183_v17  ;;  %v3188_v29 = vld [vmem:[#allocation2 + $0xdf] sm:$0xff]  ;;  %v3185_v45 = vld [vmem:[#allocation2 + $0xc7] sm:$0xff]  ;;  %v2883_v55 = vld [vmem:[#allocation2 + $0x16] sm:$0xff] }
 0x211   :  { %v3187_v56 = vld [vmem:[#allocation2 + $0xd7] sm:$0xff]  ;;  %v7209_v35 = vld [vmem:[#allocation2 + $0x86] sm:$0xff] }
 0x212   :  { %v2065_v36 = vmax.f32 %v2029_v46, 0.0  ;;  %5570 = vmatmul.mubr.bf16.vlgmr.msra.gmra.mxu1 %v6939_v8  ;;  %5638 = vmatmul.mubr.bf16.gmra.mxu0 %v2644_v62  ;;  %v3193_v8 = vpack.c.bf16 %v3168_v3, %v3167_v7  ;;  %v3203_v58 = vpack.c.bf16 %v3188_v29, %v3187_v56  ;;  %v7141_v46 = vld [vmem:[#allocation2 + $0x2e] sm:$0xff]  ;;  %v7143_v62 = vld [vmem:[#allocation2 + $0x3e] sm:$0xff] }
 0x213   :  { %5573 = vmatprep.mubr.bf16.mxu1 %v6943_v42  ;;  %5642 = vmatpush3.bf16.msra.mxu1 %v6016_v23  ;;  %v6021_v42 = vld [vmem:[%s8007_s3 + $0xe0] sm:$0xff]   ;;  %v3724_v6 = vld [vmem:[#allocation2 + $0x34] sm:$0xff] }
 0x214   :  { %2099 = vst [vmem:[#allocation2 + $0x108] sm:$0xff] %v2065_v36  ;;  %5701 = vmatprep.mubr.bf16.mxu0 %v3191_v47  ;;  %5643 = vmatprep.subr.bf16.mxu1 %v6019_v41  ;;  %v7146_v47 = vld [vmem:[#allocation2 + $0x36] sm:$0xff]  ;;  %v3751_v3 = vpack.c.bf16 %v3724_v6, %v3723_v63  ;;  %v3726_v7 = vld [vmem:[#allocation2 + $0x44] sm:$0xff]  ;;  %v7223_v56 = vld [vmem:[#allocation2 + $0xae] sm:$0xff] }
 0x215   :  { %v7207_v32 = vld [vmem:[#allocation2 + $0x9e] sm:$0xff] }
 0x216   :  { %v3733_v27 = vld [vmem:[#allocation2 + $0x7c] sm:$0xff] }
 0x217   :  { %5644 = vmatpush3.bf16.msra.mxu1 %v6019_v41  ;;  %v3189_v41 = vld [vmem:[#allocation2 + $0xe7] sm:$0xff]  ;;  %v3737_v6 = vld [vmem:[#allocation2 + $0x9c] sm:$0xff] }
 0x218   :  { %5645 = vmatprep.subr.bf16.mxu1 %v6020_v60 }
 0x21a   :  { %5574 = vmatmul.mubr.bf16.gmra.mxu1 %v6954_v18  ;;  %5702 = vmatmul.mubr.bf16.vlgmr.msra.gmra.mxu0 %v3192_v51  ;;  %v3169_v18 = vld [vmem:[#allocation2 + $0x47] sm:$0xff] }
 0x21b   :  { %5577 = vmatprep.mubr.bf16.mxu1 %v6964_v49  ;;  %5705 = vmatprep.mubr.bf16.mxu0 %v3193_v8  ;;  %v3194_v23 = vpack.c.bf16 %v3170_v43, %v3169_v18  ;;  %v3195_v49 = vpack.c.bf16 %v3172_v44, %v3171_v57  ;;  %v7156_v51 = vld [vmem:[#allocation2 + $0x4e] sm:$0xff]  ;;  %v7158_v8 = vld [vmem:[#allocation2 + $0x5e] sm:$0xff]  ;;  %v7164_v44 = vld [vmem:[#allocation2 + $0x56] sm:$0xff] }
 0x21c   :  { %5646 = vmatpush3.bf16.msra.mxu1 %v6020_v60  ;;  %5774 = vmatpush3.bf16.msra.mxu0 %v7061_v2  ;;  %v6024_v2 = vld [vmem:[%s8007_s3 + $0xd0] sm:$0xff]   ;;  %v2913_v60 = vpack.c.bf16 %v7143_v62, %v7146_v47  ;;  %v3725_v43 = vld [vmem:[#allocation2 + $0x3c] sm:$0xff] }
 0x21d   :  { %5647 = vmatprep.subr.bf16.mxu1 %v6021_v42  ;;  %5775 = vmatprep.subr.bf16.mxu0 %v6025_v11  ;;  %v3727_v18 = vld [vmem:[#allocation2 + $0x4c] sm:$0xff] }
 0x220   :  { %5648 = vmatpush3.bf16.msra.mxu1 %v6021_v42  ;;  %5776 = vmatpush3.bf16.msra.mxu0 %v6025_v11  ;;  %v3728_v42 = vld [vmem:[#allocation2 + $0x54] sm:$0xff]  ;;  %v7160_v11 = vld [vmem:[#allocation2 + $0x46] sm:$0xff] }
 0x221   :  { %5649 = vmatprep.subr.bf16.mxu1 %v6022_v40  ;;  %5777 = vmatprep.subr.bf16.mxu0 %v6026_v14  ;;  %v3753_v57 = vpack.c.bf16 %v3728_v42, %v3727_v18  ;;  %v3742_v42 = vld [vmem:[#allocation2 + $0xc4] sm:$0xff]  ;;  %v3741_v18 = vld [vmem:[#allocation2 + $0xbc] sm:$0xff] }
 0x222   :  { %5578 = vmatmul.mubr.bf16.gmra.mxu1 %v6974_v21  ;;  %5706 = vmatmul.mubr.bf16.gmra.mxu0 %v3194_v23  ;;  %v3196_v21 = vpack.c.bf16 %v3174_v20, %v3173_v25  ;;  %v2915_v23 = vpack.c.bf16 %v7158_v8, %v7164_v44  ;;  %v7175_v20 = vld [vmem:[#allocation2 + $0x6e] sm:$0xff] }
 0x223   :  { %5581 = vmatprep.mubr.bf16.mxu1 %v6986_v52  ;;  %5709 = vmatprep.mubr.bf16.mxu0 %v3195_v49  ;;  %v3197_v52 = vpack.c.bf16 %v3176_v15, %v3175_v26  ;;  %v6037_v49 = vld [vmem:[%s8007_s3 + $0x160] sm:$0xff]   ;;  %v3732_v25 = vld [vmem:[#allocation2 + $0x74] sm:$0xff] }
 0x224   :  { %5650 = vmatpush3.bf16.msra.mxu1 %v6022_v40  ;;  %5778 = vmatpush3.bf16.msra.mxu0 %v6026_v14  ;;  %v2914_v40 = vpack.c.bf16 %v7156_v51, %v7160_v11  ;;  %v3752_v14 = vpack.c.bf16 %v3726_v7, %v3725_v43  ;;  %v7183_v15 = vld [vmem:[#allocation2 + $0x7e] sm:$0xff]  ;;  %v7247_v7 = vld [vmem:[#allocation2 + $0xce] sm:$0xff] }
 0x225   :  { %5651 = vmatprep.subr.bf16.mxu1 %v6024_v2  ;;  %5779 = vmatprep.subr.bf16.mxu0 %v6028_v16  ;;  %v3729_v26 = vld [vmem:[#allocation2 + $0x5c] sm:$0xff] }
 0x226   :  { %v7249_v43 = vld [vmem:[#allocation2 + $0xde] sm:$0xff] }
 0x228   :  { %5652 = vmatpush3.bf16.msra.mxu1 %v6024_v2  ;;  %5780 = vmatpush3.bf16.msra.mxu0 %v6028_v16  ;;  %v6041_v2 = vld [vmem:[%s8007_s3 + $0x230] sm:$0xff]   ;;  %v3730_v16 = vld [vmem:[#allocation2 + $0x64] sm:$0xff] }
 0x229   :  { %5653 = vmatprep.subr.bf16.mxu1 %v6027_v50  ;;  %5781 = vmatprep.subr.bf16.mxu0 %v6029_v22 }
 0x22a   :  { %5582 = vmatmul.mubr.bf16.gmra.mxu1 %v6991_v19  ;;  %5710 = vmatmul.mubr.bf16.gmra.mxu0 %v3196_v21  ;;  %v3198_v19 = vpack.c.bf16 %v3178_v5, %v3177_v0  ;;  %v7185_v21 = vld [vmem:[#allocation2 + $0x66] sm:$0xff] }
 0x22b   :  { %5585 = vmatprep.mubr.bf16.mxu1 %v6995_v48  ;;  %5713 = vmatprep.mubr.bf16.mxu0 %v3197_v52  ;;  %v3199_v48 = vpack.c.bf16 %v3180_v24, %v3179_v31  ;;  %v2916_v52 = vpack.c.bf16 %v7175_v20, %v7185_v21  ;;  %v3731_v5 = vld [vmem:[#allocation2 + $0x6c] sm:$0xff]  ;;  %v6044_v0 = vld [vmem:[%s8007_s3 + $0x220] sm:$0xff]  }
 0x22c   :  { %5654 = vmatpush3.bf16.msra.mxu1 %v6027_v50  ;;  %5782 = vmatpush3.bf16.msra.mxu0 %v6029_v22  ;;  %v6038_v50 = vld [vmem:[%s8007_s3 + $0x158] sm:$0xff]   ;;  %v6042_v22 = vld [vmem:[%s8007_s3 + $0x228] sm:$0xff]   ;;  %v6040_v24 = vld [vmem:[%s8007_s3 + $0x150] sm:$0xff]  }
 0x22d   :  { %5655 = vmatprep.subr.bf16.mxu1 %v6030_v33  ;;  %5783 = vmatprep.subr.bf16.mxu0 %v6031_v13  ;;  %v7199_v31 = vld [vmem:[#allocation2 + $0x8e] sm:$0xff] }
 0x230   :  { %5656 = vmatpush3.bf16.msra.mxu1 %v6030_v33  ;;  %5784 = vmatpush3.bf16.msra.mxu0 %v6031_v13  ;;  %v3754_v33 = vpack.c.bf16 %v3730_v16, %v3729_v26  ;;  %v7189_v13 = vld [vmem:[#allocation2 + $0x76] sm:$0xff]  ;;  %v3743_v16 = vld [vmem:[#allocation2 + $0xcc] sm:$0xff] }
 0x231   :  { %5729 = vmatprep.subr.bf16.mxu1 %v6032_v54  ;;  %5785 = vmatprep.subr.bf16.mxu0 %v6033_v30  ;;  %v7263_v26 = vld [vmem:[#allocation2 + $0xee] sm:$0xff] }
 0x232   :  { %5586 = vmatmul.mubr.bf16.gmra.mxu1 %v6999_v9  ;;  %5714 = vmatmul.mubr.bf16.gmra.mxu0 %v3198_v19  ;;  %v3186_v9 = vld [vmem:[#allocation2 + $0xcf] sm:$0xff]  ;;  %v3734_v19 = vld [vmem:[#allocation2 + $0x84] sm:$0xff] }
 0x233   :  { %5589 = vmatprep.mubr.bf16.mxu1 %v7010_v10  ;;  %5717 = vmatprep.mubr.bf16.mxu0 %v3199_v48  ;;  %v2884_v10 = vld [vmem:[#allocation2 + $0x1e] sm:$0xff]  ;;  %v3202_v37 = vpack.c.bf16 %v3186_v9, %v3185_v45  ;;  %v6043_v48 = vld [vmem:[%s8007_s3 + $0x148] sm:$0xff]   ;;  %v3756_v17 = vpack.c.bf16 %v3734_v19, %v3733_v27 }
 0x234   :  { %5786 = vmatpush3.bf16.msra.mxu0 %v6033_v30  ;;  %v2911_v34 = vpack.c.bf16 %v2884_v10, %v2883_v55  ;;  %v3755_v30 = vpack.c.bf16 %v3732_v25, %v3731_v5  ;;  %v3735_v9 = vld [vmem:[#allocation2 + $0x8c] sm:$0xff]  ;;  %v6046_v45 = vld [vmem:[%s8007_s3 + $0x140] sm:$0xff]   ;;  %v3748_v5 = vld [vmem:[#allocation2 + $0xf4] sm:$0xff] }
 0x235   :  { %5787 = vmatprep.subr.bf16.mxu0 %v6034_v59  ;;  %v3738_v55 = vld [vmem:[#allocation2 + $0xa4] sm:$0xff] }
 0x238   :  { %5788 = vmatpush3.bf16.msra.mxu0 %v6034_v59  ;;  %v6045_v59 = vld [vmem:[%s8007_s3 + $0x218] sm:$0xff]  }
 0x239   :  { %5861 = vmatprep.subr.bf16.mxu0 %v7135_v38 }
 0x23a   :  { %5590 = vmatmul.mubr.bf16.gmra.mxu1 %v7024_v53  ;;  %5718 = vmatmul.mubr.bf16.gmra.mxu0 %v3200_v39  ;;  %v3190_v53 = vld [vmem:[#allocation2 + $0xef] sm:$0xff]  ;;  %v2918_v39 = vpack.c.bf16 %v7199_v31, %v7209_v35 }
 0x23b   :  { %5593 = vmatprep.mubr.bf16.mxu1 %v7040_v4  ;;  %5721 = vmatprep.mubr.bf16.mxu0 %v3201_v61  ;;  %v2885_v4 = vld [vmem:[#allocation2 + $0x26] sm:$0xff]  ;;  %v3204_v36 = vpack.c.bf16 %v3190_v53, %v3189_v41  ;;  %v7213_v61 = vld [vmem:[#allocation2 + $0x96] sm:$0xff]  ;;  %v7233_v53 = vld [vmem:[#allocation2 + $0xbe] sm:$0xff] }
 0x23c   :  { %v2912_v28 = vpack.c.bf16 %v7141_v46, %v2885_v4  ;;  %v2919_v10 = vpack.c.bf16 %v7207_v32, %v7213_v61  ;;  %v3740_v4 = vld [vmem:[#allocation2 + $0xb4] sm:$0xff]  ;;  %v7235_v41 = vld [vmem:[#allocation2 + $0xa6] sm:$0xff] }
 0x242   :  { %5594 = vmatmul.mubr.bf16.gmra.mxu1 %v7056_v1  ;;  %5722 = vmatmul.mubr.bf16.gmra.mxu0 %v3202_v37  ;;  %v6035_v1 = vld [vmem:[%s8007_s3 + $0x170] sm:$0xff]  }
 0x243   :  { %5657 = vmatprep.mubr.bf16.mxu1 %v2911_v34  ;;  %5725 = vmatprep.mubr.bf16.mxu0 %v3203_v58  ;;  %v6047_v37 = vld [vmem:[%s8007_s3 + $0x210] sm:$0xff]   ;;  %v7228_v34 = vld [vmem:[%s8007_s3 + $0x1f8] sm:$0xff]   ;;  %v6049_v58 = vld [vmem:[%s8007_s3 + $0x208] sm:$0xff]  }
 0x24a   :  { %5658 = vmatmul.mubr.bf16.vlgmr.msra.gmra.mxu1 %v2912_v28  ;;  %5726 = vmatmul.mubr.bf16.gmra.mxu0 %v3204_v36  ;;  %v2920_v28 = vpack.c.bf16 %v7223_v56, %v7235_v41  ;;  %v3758_v36 = vpack.c.bf16 %v3738_v55, %v3737_v6  ;;  %v6051_v6 = vld [vmem:[%s8007_s3 + $0x1f0] sm:$0xff]  }
 0x24b   :  { %5661 = vmatprep.mubr.bf16.mxu1 %v2913_v60  ;;  %5730 = vmatpush3.bf16.msra.mxu1 %v6032_v54  ;;  %v2917_v54 = vpack.c.bf16 %v7183_v15, %v7189_v13  ;;  %v3739_v60 = vld [vmem:[#allocation2 + $0xac] sm:$0xff] }
 0x24c   :  { %5789 = vmatprep.mubr.bf16.mxu0 %v3751_v3  ;;  %5731 = vmatprep.subr.bf16.mxu1 %v6035_v1  ;;  %v3759_v3 = vpack.c.bf16 %v3740_v4, %v3739_v60  ;;  %v3447_v4 = vld [vmem:[#allocation2 + $0x38] sm:$0xff]  ;;  %v4311_v60 = vpack.c.bf16 %v7146_v47, %v7141_v46 }
 0x24d   :  { %v3451_v46 = vld [vmem:[#allocation2 + $0x58] sm:$0xff] }
 0x24f   :  { %5732 = vmatpush3.bf16.msra.mxu1 %v6035_v1  ;;  %v7239_v1 = vld [vmem:[#allocation2 + $0xb6] sm:$0xff] }
 0x250   :  { %5733 = vmatprep.subr.bf16.mxu1 %v6036_v12  ;;  %v2921_v63 = vpack.c.bf16 %v7233_v53, %v7239_v1 }
 0x252   :  { %5662 = vmatmul.mubr.bf16.gmra.mxu1 %v2914_v40  ;;  %5790 = vmatmul.mubr.bf16.vlgmr.msra.gmra.mxu0 %v3752_v14  ;;  %v3744_v40 = vld [vmem:[#allocation2 + $0xd4] sm:$0xff]  ;;  %v7251_v14 = vld [vmem:[#allocation2 + $0xc6] sm:$0xff] }
 0x253   :  { %5665 = vmatprep.mubr.bf16.mxu1 %v2915_v23  ;;  %5793 = vmatprep.mubr.bf16.mxu0 %v3753_v57  ;;  %v2922_v57 = vpack.c.bf16 %v7247_v7, %v7251_v14 }
 0x254   :  { %5734 = vmatpush3.bf16.msra.mxu1 %v6036_v12  ;;  %5862 = vmatpush3.bf16.msra.mxu0 %v7135_v38  ;;  %v3736_v38 = vld [vmem:[#allocation2 + $0x94] sm:$0xff]  ;;  %v6050_v12 = vld [vmem:[%s8007_s3 + $0x200] sm:$0xff]  }
 0x255   :  { %5735 = vmatprep.subr.bf16.mxu1 %v6037_v49  ;;  %5863 = vmatprep.subr.bf16.mxu0 %v6041_v2  ;;  %v3757_v29 = vpack.c.bf16 %v3736_v38, %v3735_v9  ;;  %v3750_v9 = vld [vmem:[#allocation2 + $0x104] sm:$0xff] }
 0x258   :  { %5736 = vmatpush3.bf16.msra.mxu1 %v6037_v49  ;;  %5864 = vmatpush3.bf16.msra.mxu0 %v6041_v2  ;;  %v3760_v49 = vpack.c.bf16 %v3742_v42, %v3741_v18  ;;  %v7257_v2 = vld [vmem:[#allocation2 + $0xd6] sm:$0xff]  ;;  %v3452_v42 = vld [vmem:[#allocation2 + $0x60] sm:$0xff] }
 0x259   :  { %5737 = vmatprep.subr.bf16.mxu1 %v6038_v50  ;;  %5865 = vmatprep.subr.bf16.mxu0 %v6042_v22  ;;  %v3475_v47 = vpack.c.bf16 %v3452_v42, %v3451_v46  ;;  %v3465_v46 = vld [vmem:[#allocation2 + $0xc8] sm:$0xff] }
 0x25a   :  { %5666 = vmatmul.mubr.bf16.gmra.mxu1 %v2916_v52  ;;  %5794 = vmatmul.mubr.bf16.gmra.mxu0 %v3754_v33  ;;  %v3746_v52 = vld [vmem:[#allocation2 + $0xe4] sm:$0xff] }
 0x25b   :  { %5669 = vmatprep.mubr.bf16.mxu1 %v2917_v54  ;;  %5797 = vmatprep.mubr.bf16.mxu0 %v3755_v30  ;;  %v3444_v33 = vld [vmem:[#allocation2 + $0x20] sm:$0xff] }
 0x25c   :  { %5738 = vmatpush3.bf16.msra.mxu1 %v6038_v50  ;;  %5866 = vmatpush3.bf16.msra.mxu0 %v6042_v22  ;;  %v2923_v50 = vpack.c.bf16 %v7249_v43, %v7257_v2  ;;  %v3761_v22 = vpack.c.bf16 %v3744_v40, %v3743_v16  ;;  %v7265_v54 = vld [vmem:[#allocation2 + $0xe6] sm:$0xff]  ;;  %v3745_v30 = vld [vmem:[#allocation2 + $0xdc] sm:$0xff] }
 0x25d   :  { %5739 = vmatprep.subr.bf16.mxu1 %v6040_v24  ;;  %5867 = vmatprep.subr.bf16.mxu0 %v6044_v0  ;;  %v3762_v19 = vpack.c.bf16 %v3746_v52, %v3745_v30  ;;  %v3449_v40 = vld [vmem:[#allocation2 + $0x48] sm:$0xff] }
 0x260   :  { %5740 = vmatpush3.bf16.msra.mxu1 %v6040_v24  ;;  %5868 = vmatpush3.bf16.msra.mxu0 %v6044_v0  ;;  %v2924_v0 = vpack.c.bf16 %v7263_v26, %v7265_v54 }
 0x261   :  { %5741 = vmatprep.subr.bf16.mxu1 %v6043_v48  ;;  %5869 = vmatprep.subr.bf16.mxu0 %v6045_v59 }
 0x262   :  { %5670 = vmatmul.mubr.bf16.gmra.mxu1 %v2918_v39  ;;  %5798 = vmatmul.mubr.bf16.gmra.mxu0 %v3756_v17  ;;  %v3446_v17 = vld [vmem:[#allocation2 + $0x30] sm:$0xff] }
 0x263   :  { %5673 = vmatprep.mubr.bf16.mxu1 %v2919_v10  ;;  %5801 = vmatprep.mubr.bf16.mxu0 %v3757_v29  ;;  %v3448_v29 = vld [vmem:[#allocation2 + $0x40] sm:$0xff] }
 0x264   :  { %5742 = vmatpush3.bf16.msra.mxu1 %v6043_v48  ;;  %5870 = vmatpush3.bf16.msra.mxu0 %v6045_v59  ;;  %v3443_v48 = vld [vmem:[#allocation2 + $0x18] sm:$0xff]  ;;  %v3747_v59 = vld [vmem:[#allocation2 + $0xec] sm:$0xff] }
 0x265   :  { %5743 = vmatprep.subr.bf16.mxu1 %v6046_v45  ;;  %5871 = vmatprep.subr.bf16.mxu0 %v6047_v37  ;;  %v3471_v38 = vpack.c.bf16 %v3444_v33, %v3443_v48  ;;  %v3763_v27 = vpack.c.bf16 %v3748_v5, %v3747_v59  ;;  %v4314_v33 = vpack.c.bf16 %v7185_v21, %v7158_v8  ;;  %v3455_v5 = vld [vmem:[#allocation2 + $0x78] sm:$0xff]  ;;  %v3458_v59 = vld [vmem:[#allocation2 + $0x90] sm:$0xff]  ;;  %v6056_v8 = vld [vmem:[%s8007_s3 + $0x1c8] sm:$0xff]  }
 0x266   :  { %v3460_v21 = vld [vmem:[#allocation2 + $0xa0] sm:$0xff] }
 0x268   :  { %5744 = vmatpush3.bf16.msra.mxu1 %v6046_v45  ;;  %5872 = vmatpush3.bf16.msra.mxu0 %v6047_v37  ;;  %v3445_v45 = vld [vmem:[#allocation2 + $0x28] sm:$0xff]  ;;  %v3749_v37 = vld [vmem:[#allocation2 + $0xfc] sm:$0xff] }
 0x269   :  { %5817 = vmatprep.subr.bf16.mxu1 %v7228_v34  ;;  %5873 = vmatprep.subr.bf16.mxu0 %v6049_v58  ;;  %v3472_v55 = vpack.c.bf16 %v3446_v17, %v3445_v45  ;;  %v3459_v17 = vld [vmem:[#allocation2 + $0x98] sm:$0xff]  ;;  %v6057_v45 = vld [vmem:[%s8007_s3 + $0x1c0] sm:$0xff]  }
 0x26a   :  { %5674 = vmatmul.mubr.bf16.gmra.mxu1 %v2920_v28  ;;  %5802 = vmatmul.mubr.bf16.gmra.mxu0 %v3758_v36  ;;  %v7253_v23 = vpop.f32.mrf.mxu0  ;;  %v3473_v28 = vpack.c.bf16 %v3448_v29, %v3447_v4  ;;  %v4317_v29 = vpack.c.bf16 %v7213_v61, %v7199_v31  ;;  %v3461_v31 = vld [vmem:[#allocation2 + $0xa8] sm:$0xff] }
 0x26b   :  { %5677 = vmatprep.mubr.bf16.mxu1 %v2921_v63  ;;  %5805 = vmatprep.mubr.bf16.mxu0 %v3759_v3  ;;  %v6052_v63 = vld [vmem:[%s8007_s3 + $0x1e8] sm:$0xff]   ;;  %v3450_v3 = vld [vmem:[#allocation2 + $0x50] sm:$0xff] }
 0x26c   :  { %5874 = vmatpush3.bf16.msra.mxu0 %v6049_v58  ;;  %v7261_v25 = vpop.f32.mrf.mxu0  ;;  %v3764_v58 = vpack.c.bf16 %v3750_v9, %v3749_v37  ;;  %v3474_v18 = vpack.c.bf16 %v3450_v3, %v3449_v40  ;;  %v3479_v9 = vpack.c.bf16 %v3460_v21, %v3459_v17  ;;  %v3466_v40 = vld [vmem:[#allocation2 + $0xd0] sm:$0xff]  ;;  %v4006_v21 = vld [vmem:[#allocation2 + $0x45] sm:$0xff] }
 0x26d   :  { %5875 = vmatprep.subr.bf16.mxu0 %v6050_v12  ;;  %v4309_v17 = vld [vmem:[#allocation2 + $0xfe] sm:$0xff] }
 0x26e   :  { %v7267_v24 = vpop.f32.mrf.mxu0 }
 0x270   :  { %5876 = vmatpush3.bf16.msra.mxu0 %v6050_v12  ;;  %v7271_v39 = vpop.f32.mrf.mxu0 }
 0x272   :  { %5678 = vmatmul.mubr.bf16.gmra.mxu1 %v2922_v57  ;;  %5806 = vmatmul.mubr.bf16.gmra.mxu0 %v3760_v49  ;;  %v4312_v57 = vpack.c.bf16 %v7160_v11, %v7143_v62  ;;  %v6053_v49 = vld [vmem:[%s8007_s3 + $0x1e0] sm:$0xff]   ;;  %v3454_v62 = vld [vmem:[#allocation2 + $0x70] sm:$0xff]  ;;  %v6054_v11 = vld [vmem:[%s8007_s3 + $0x1d8] sm:$0xff]  }
 0x273   :  { %5681 = vmatprep.mubr.bf16.mxu1 %v2923_v50  ;;  %5809 = vmatprep.mubr.bf16.mxu0 %v3761_v22 }
 0x27a   :  { %5682 = vmatmul.mubr.bf16.gmra.mxu1 %v2924_v0  ;;  %5810 = vmatmul.mubr.bf16.gmra.mxu0 %v3762_v19  ;;  %v7273_v10 = vpop.f32.mrf.mxu0  ;;  %v4315_v0 = vpack.c.bf16 %v7189_v13, %v7175_v20  ;;  %v6055_v19 = vld [vmem:[%s8007_s3 + $0x1d0] sm:$0xff]   ;;  %v3457_v20 = vld [vmem:[#allocation2 + $0x88] sm:$0xff] }
 0x27b   :  { %5745 = vmatprep.mubr.bf16.mxu1 %v3471_v38  ;;  %5813 = vmatprep.mubr.bf16.mxu0 %v3763_v27  ;;  %v3478_v38 = vpack.c.bf16 %v3458_v59, %v3457_v20  ;;  %v4316_v27 = vpack.c.bf16 %v7209_v35, %v7183_v15  ;;  %v3462_v15 = vld [vmem:[#allocation2 + $0xb0] sm:$0xff]  ;;  %v4310_v20 = vld [vmem:[#allocation2 + $0x106] sm:$0xff] }
 0x27c   :  { %v7278_v36 = vpop.f32.mrf.mxu0  ;;  %v3480_v4 = vpack.c.bf16 %v3462_v15, %v3461_v31 }
 0x27e   :  { %v7286_v12 = vpop.f32.mrf.mxu0 }
 0x280   :  { %v7295_v16 = vpop.f32.mrf.mxu0 }
 0x282   :  { %5746 = vmatmul.mubr.bf16.vlgmr.msra.gmra.mxu1 %v3472_v55  ;;  %5814 = vmatmul.mubr.bf16.gmra.mxu0 %v3764_v58  ;;  %v3464_v58 = vld [vmem:[#allocation2 + $0xc0] sm:$0xff] }
 0x283   :  { %5749 = vmatprep.mubr.bf16.mxu1 %v3473_v28  ;;  %5818 = vmatpush3.bf16.msra.mxu1 %v7228_v34  ;;  %v4313_v34 = vpack.c.bf16 %v7164_v44, %v7156_v51  ;;  %v3456_v51 = vld [vmem:[#allocation2 + $0x80] sm:$0xff]  ;;  %v3453_v44 = vld [vmem:[#allocation2 + $0x68] sm:$0xff]  ;;  %v3463_v28 = vld [vmem:[#allocation2 + $0xb8] sm:$0xff] }
 0x284   :  { %5877 = vmatprep.mubr.bf16.mxu0 %v4311_v60  ;;  %5819 = vmatprep.subr.bf16.mxu1 %v6051_v6  ;;  %v3476_v52 = vpack.c.bf16 %v3454_v62, %v3453_v44  ;;  %v3477_v30 = vpack.c.bf16 %v3456_v51, %v3455_v5  ;;  %v3481_v60 = vpack.c.bf16 %v3464_v58, %v3463_v28  ;;  %v4010_v28 = vld [vmem:[#allocation2 + $0x65] sm:$0xff] }
 0x287   :  { %5820 = vmatpush3.bf16.msra.mxu1 %v6051_v6  ;;  %v4318_v6 = vpack.c.bf16 %v7235_v41, %v7207_v32  ;;  %v3482_v41 = vpack.c.bf16 %v3466_v40, %v3465_v46  ;;  %v4009_v40 = vld [vmem:[#allocation2 + $0x5d] sm:$0xff] }
 0x288   :  { %5821 = vmatprep.subr.bf16.mxu1 %v6052_v63 }
 0x28a   :  { %5750 = vmatmul.mubr.bf16.gmra.mxu1 %v3474_v18  ;;  %5878 = vmatmul.mubr.bf16.vlgmr.msra.gmra.mxu0 %v4312_v57  ;;  %v7297_v50 = vpop.f32.mrf.mxu0  ;;  %v3468_v57 = vld [vmem:[#allocation2 + $0xe0] sm:$0xff] }
 0x28b   :  { %5753 = vmatprep.mubr.bf16.mxu1 %v3475_v47  ;;  %5881 = vmatprep.mubr.bf16.mxu0 %v4313_v34  ;;  %v4320_v47 = vpack.c.bf16 %v7251_v14, %v7233_v53  ;;  %v4321_v34 = vpack.c.bf16 %v7257_v2, %v7247_v7  ;;  %v4308_v53 = vld [vmem:[#allocation2 + $0xf6] sm:$0xff]  ;;  %v3469_v14 = vld [vmem:[#allocation2 + $0xe8] sm:$0xff]  ;;  %v4322_v7 = vpack.c.bf16 %v7265_v54, %v7249_v43 }
 0x28c   :  { %5822 = vmatpush3.bf16.msra.mxu1 %v6052_v63  ;;  %v7302_v22 = vpop.f32.mrf.mxu0  ;;  %v4319_v63 = vpack.c.bf16 %v7239_v1, %v7223_v56  ;;  %v3467_v56 = vld [vmem:[#allocation2 + $0xd8] sm:$0xff]  ;;  %v4003_v2 = vld [vmem:[#allocation2 + $0x2d] sm:$0xff] }
 0x28d   :  { %5823 = vmatprep.subr.bf16.mxu1 %v6053_v49  ;;  %v3483_v1 = vpack.c.bf16 %v3468_v57, %v3467_v56  ;;  %v4008_v43 = vld [vmem:[#allocation2 + $0x55] sm:$0xff]  ;;  %v4005_v54 = vld [vmem:[#allocation2 + $0x3d] sm:$0xff] }
 0x28e   :  { %v7311_v48 = vpop.f32.mrf.mxu0 }
 0x290   :  { %5824 = vmatpush3.bf16.msra.mxu1 %v6053_v49  ;;  %v7316_v13 = vpop.f32.mrf.mxu0 }
 0x291   :  { %5825 = vmatprep.subr.bf16.mxu1 %v6054_v11 }
 0x292   :  { %5754 = vmatmul.mubr.bf16.gmra.mxu1 %v3476_v52  ;;  %5882 = vmatmul.mubr.bf16.gmra.mxu0 %v4314_v33  ;;  %v4004_v52 = vld [vmem:[#allocation2 + $0x35] sm:$0xff] }
 0x293   :  { %5757 = vmatprep.mubr.bf16.mxu1 %v3477_v30  ;;  %5885 = vmatprep.mubr.bf16.mxu0 %v4315_v0  ;;  %v4031_v30 = vpack.c.bf16 %v4004_v52, %v4003_v2  ;;  %v4323_v0 = vpack.c.bf16 %v4308_v53, %v7263_v26  ;;  %v4014_v52 = vld [vmem:[#allocation2 + $0x85] sm:$0xff] }
 0x294   :  { %5826 = vmatpush3.bf16.msra.mxu1 %v6054_v11  ;;  %v3470_v11 = vld [vmem:[#allocation2 + $0xf0] sm:$0xff] }
 0x295   :  { %5827 = vmatprep.subr.bf16.mxu1 %v6055_v19  ;;  %v3484_v5 = vpack.c.bf16 %v3470_v11, %v3469_v14  ;;  %v4016_v14 = vld [vmem:[#allocation2 + $0x95] sm:$0xff] }
 0x298   :  { %5828 = vmatpush3.bf16.msra.mxu1 %v6055_v19 }
 0x299   :  { %5829 = vmatprep.subr.bf16.mxu1 %v6056_v8 }
 0x29a   :  { %v7325_v37 = vpop.f32.mrf.mxu0  ;;  %5758 = vmatmul.mubr.bf16.gmra.mxu1 %v3478_v38  ;;  %5886 = vmatmul.mubr.bf16.gmra.mxu0 %v4316_v27 }
 0x29b   :  { %5761 = vmatprep.mubr.bf16.mxu1 %v3479_v9  ;;  %5889 = vmatprep.mubr.bf16.mxu0 %v4317_v29  ;;  %v4032_v9 = vpack.c.bf16 %v4006_v21, %v4005_v54  ;;  %v4324_v29 = vpack.c.bf16 %v4310_v20, %v4309_v17 }
 0x29c   :  { %v7327_v55 = vpop.f32.mrf.mxu0  ;;  %5830 = vmatpush3.bf16.msra.mxu1 %v6056_v8 }
 0x29d   :  { %5831 = vmatprep.subr.bf16.mxu1 %v6057_v45 }
 0x29e   :  { %v7329_v35 = vpop.f32.mrf.mxu0 }
 0x2a0   :  { %v7331_v61 = vpop.f32.mrf.mxu0  ;;  %5832 = vmatpush3.bf16.msra.mxu1 %v6057_v45  ;;  %v4007_v45 = vld [vmem:[#allocation2 + $0x4d] sm:$0xff] }
 0x2a1   :  { %v4033_v15 = vpack.c.bf16 %v4008_v43, %v4007_v45 }
 0x2a2   :  { %v7337_v3 = vpop.f32.mrf.mxu0  ;;  %5762 = vmatmul.mubr.bf16.gmra.mxu1 %v3480_v4  ;;  %5890 = vmatmul.mubr.bf16.gmra.mxu0 %v4318_v6 }
 0x2a3   :  { %5765 = vmatprep.mubr.bf16.mxu1 %v3481_v60  ;;  %5893 = vmatprep.mubr.bf16.mxu0 %v4319_v63  ;;  %v4012_v63 = vld [vmem:[#allocation2 + $0x75] sm:$0xff] }
 0x2a4   :  { %v7339_v42 = vpop.f32.mrf.mxu0 }
 0x2a6   :  { %v7341_v18 = vpop.f32.mrf.mxu0 }
 0x2a8   :  { %v7343_v32 = vpop.f32.mrf.mxu0 }
 0x2aa   :  { %v7349_v49 = vpop.f32.mrf.mxu0  ;;  %5766 = vmatmul.mubr.bf16.gmra.mxu1 %v3482_v41  ;;  %5894 = vmatmul.mubr.bf16.gmra.mxu0 %v4320_v47  ;;  %v7353_v51 = vpop.f32.mrf.mxu1  ;;  %v4034_v41 = vpack.c.bf16 %v4010_v28, %v4009_v40  ;;  %v4011_v47 = vld [vmem:[#allocation2 + $0x6d] sm:$0xff]  ;;  %v4017_v28 = vld [vmem:[#allocation2 + $0x9d] sm:$0xff] }
 0x2ab   :  { %5769 = vmatprep.mubr.bf16.mxu1 %v3483_v1  ;;  %5897 = vmatprep.mubr.bf16.mxu0 %v4321_v34  ;;  %v4035_v56 = vpack.c.bf16 %v4012_v63, %v4011_v47  ;;  %v4019_v47 = vld [vmem:[#allocation2 + $0xad] sm:$0xff] }
 0x2ac   :  { %v7351_v62 = vpop.f32.mrf.mxu0  ;;  %v7362_v19 = vpop.f32.mrf.mxu1 }
 0x2ae   :  { %v7355_v44 = vpop.f32.mrf.mxu0  ;;  %v7368_v38 = vpop.f32.mrf.mxu1 }
 0x2b0   :  { %v7357_v33 = vpop.f32.mrf.mxu0  ;;  %v7374_v58 = vpop.f32.mrf.mxu1 }
 0x2b2   :  { %v7364_v59 = vpop.f32.mrf.mxu0  ;;  %5770 = vmatmul.mubr.bf16.gmra.mxu1 %v3484_v5  ;;  %5898 = vmatmul.mubr.bf16.gmra.mxu0 %v4322_v7  ;;  %v4013_v5 = vld [vmem:[#allocation2 + $0x7d] sm:$0xff] }
 0x2b3   :  { %5833 = vmatprep.mubr.bf16.mxu1 %v4031_v30  ;;  %5901 = vmatprep.mubr.bf16.mxu0 %v4323_v0  ;;  %v4036_v30 = vpack.c.bf16 %v4014_v52, %v4013_v5  ;;  %v4015_v0 = vld [vmem:[#allocation2 + $0x8d] sm:$0xff] }
 0x2b4   :  { %v7366_v8 = vpop.f32.mrf.mxu0  ;;  %v4037_v21 = vpack.c.bf16 %v4016_v14, %v4015_v0 }
 0x2b6   :  { %v7370_v27 = vpop.f32.mrf.mxu0 }
 0x2b8   :  { %v7372_v26 = vpop.f32.mrf.mxu0 }
 0x2ba   :  { %v7376_v31 = vpop.f32.mrf.mxu0  ;;  %5834 = vmatmul.mubr.bf16.vlgmr.msra.gmra.mxu1 %v4032_v9  ;;  %5902 = vmatmul.mubr.bf16.gmra.mxu0 %v4324_v29  ;;  %v7378_v4 = vpop.f32.mrf.mxu1  ;;  %v4018_v9 = vld [vmem:[#allocation2 + $0xa5] sm:$0xff] }
 0x2bb   :  { %5837 = vmatprep.mubr.bf16.mxu1 %v4033_v15  ;;  %v4020_v15 = vld [vmem:[#allocation2 + $0xb5] sm:$0xff] }
 0x2bc   :  { %v7380_v6 = vpop.f32.mrf.mxu0  ;;  %v7384_v57 = vpop.f32.mrf.mxu1 }
 0x2be   :  { %v7382_v60 = vpop.f32.mrf.mxu0  ;;  %v7390_v34 = vpop.f32.mrf.mxu1 }
 0x2c0   :  { %v7386_v46 = vpop.f32.mrf.mxu0  ;;  %v7396_v7 = vpop.f32.mrf.mxu1 }
 0x2c2   :  { %v7388_v1 = vpop.f32.mrf.mxu0  ;;  %5838 = vmatmul.mubr.bf16.gmra.mxu1 %v4034_v41  ;;  %v4038_v41 = vpack.c.bf16 %v4018_v9, %v4017_v28 }
 0x2c3   :  { %5841 = vmatprep.mubr.bf16.mxu1 %v4035_v56  ;;  %v4039_v56 = vpack.c.bf16 %v4020_v15, %v4019_v47  ;;  %v4024_v15 = vld [vmem:[#allocation2 + $0xd5] sm:$0xff]  ;;  %v4021_v47 = vld [vmem:[#allocation2 + $0xbd] sm:$0xff] }
 0x2c4   :  { %v7392_v11 = vpop.f32.mrf.mxu0 }
 0x2c6   :  { %v7394_v53 = vpop.f32.mrf.mxu0 }
 0x2c8   :  { %v7398_v2 = vpop.f32.mrf.mxu0 }
 0x2ca   :  { %v7400_v20 = vpop.f32.mrf.mxu1  ;;  %v7402_v43 = vpop.f32.mrf.mxu0  ;;  %5842 = vmatmul.mubr.bf16.gmra.mxu1 %v4036_v30 }
 0x2cb   :  { %5845 = vmatprep.mubr.bf16.mxu1 %v4037_v21 }
 0x2cc   :  { %v7404_v54 = vpop.f32.mrf.mxu1  ;;  %v7406_v17 = vpop.f32.mrf.mxu0 }
 0x2cd   :  { %8011 = vst [vmem:[#allocation3_spill] sm:$0xff] %v7404_v54 }
 0x2ce   :  { %v7408_v29 = vpop.f32.mrf.mxu1  ;;  %v7410_v45 = vpop.f32.mrf.mxu0 }
 0x2cf   :  { %8012 = vst [vmem:[#allocation4_spill] sm:$0xff] %v7408_v29  ;;  %v4022_v29 = vld [vmem:[#allocation2 + $0xc5] sm:$0xff] }
 0x2d0   :  { %v7412_v63 = vpop.f32.mrf.mxu1  ;;  %v7414_v40 = vpop.f32.mrf.mxu0 }
 0x2d1   :  { %8013 = vst [vmem:[#allocation5_spill] sm:$0xff] %v7412_v63 }
 0x2d2   :  { %v5571_v52 = vpop.f32.mrf.mxu1  ;;  %v7416_v14 = vpop.f32.mrf.mxu0  ;;  %5846 = vmatmul.mubr.bf16.gmra.mxu1 %v4038_v41 }
 0x2d3   :  { %v2501_v5 = vadd.f32 %v5571_v52, %v7253_v23  ;;  %5849 = vmatprep.mubr.bf16.mxu1 %v4039_v56  ;;  %v4040_v52 = vpack.c.bf16 %v4022_v29, %v4021_v47 }
 0x2d4   :  { %v2492_v30 = vpop.f32.mrf.mxu1  ;;  %v7419_v0 = vpop.f32.mrf.mxu0 }
 0x2d5   :  { %8014 = vst [vmem:[#allocation6_spill] sm:$0xff] %v7419_v0  ;;  %v2493_v21 = vadd.f32 %v2492_v30, %v7261_v25  ;;  %v7423_v63 = vadd.f32 %v7337_v3, %v2501_v5  ;;  %v4023_v0 = vld [vmem:[#allocation2 + $0xcd] sm:$0xff] }
 0x2d6   :  { %v5572_v54 = vpop.f32.mrf.mxu1  ;;  %v7425_v9 = vpop.f32.mrf.mxu0  ;;  %v4041_v30 = vpack.c.bf16 %v4024_v15, %v4023_v0 }
 0x2d7   :  { %8015 = vst [vmem:[#allocation7_spill] sm:$0xff] %v7423_v63  ;;  %v2504_v28 = vadd.f32 %v5572_v54, %v7267_v24  ;;  %v7429_v41 = vadd.f32 %v7339_v42, %v2493_v21 }
 0x2d8   :  { %v2495_v23 = vpop.f32.mrf.mxu1  ;;  %v7431_v56 = vpop.f32.mrf.mxu0 }
 0x2d9   :  { %v2496_v25 = vadd.f32 %v2495_v23, %v7271_v39  ;;  %v7435_v3 = vadd.f32 %v7341_v18, %v2504_v28  ;;  %v4026_v39 = vld [vmem:[#allocation2 + $0xe5] sm:$0xff]  ;;  %v4028_v28 = vld [vmem:[#allocation2 + $0xf5] sm:$0xff] }
 0x2da   :  { %v5575_v5 = vpop.f32.mrf.mxu1  ;;  %v7437_v63 = vpop.f32.mrf.mxu0  ;;  %5850 = vmatmul.mubr.bf16.gmra.mxu1 %v4040_v52 }
 0x2db   :  { %v2517_v24 = vadd.f32 %v5575_v5, %v7273_v10  ;;  %5853 = vmatprep.mubr.bf16.mxu1 %v4041_v30  ;;  %v7441_v42 = vadd.f32 %v7343_v32, %v2496_v25  ;;  %v4025_v10 = vld [vmem:[#allocation2 + $0xdd] sm:$0xff]  ;;  %v4027_v30 = vld [vmem:[#allocation2 + $0xed] sm:$0xff] }
 0x2dc   :  { %v2508_v54 = vpop.f32.mrf.mxu1  ;;  %v7443_v21 = vpop.f32.mrf.mxu0  ;;  %v4042_v25 = vpack.c.bf16 %v4026_v39, %v4025_v10  ;;  %v4043_v5 = vpack.c.bf16 %v4028_v28, %v4027_v30 }
 0x2dd   :  { %v2509_v29 = vadd.f32 %v2508_v54, %v7278_v36  ;;  %v7447_v0 = vadd.f32 %v7349_v49, %v2517_v24 }
 0x2de   :  { %v5576_v18 = vpop.f32.mrf.mxu1  ;;  %v7449_v15 = vpop.f32.mrf.mxu0 }
 0x2df   :  { %v2520_v47 = vadd.f32 %v5576_v18, %v7286_v12  ;;  %v7453_v23 = vadd.f32 %v7351_v62, %v2509_v29 }
 0x2e0   :  { %v2511_v32 = vpop.f32.mrf.mxu1  ;;  %v7455_v52 = vpop.f32.mrf.mxu0 }
 0x2e1   :  { %v2512_v36 = vadd.f32 %v2511_v32, %v7295_v16  ;;  %v7459_v49 = vadd.f32 %v7355_v44, %v2520_v47  ;;  %v4030_v16 = vld [vmem:[#allocation2 + $0x105] sm:$0xff]  ;;  %v4029_v32 = vld [vmem:[#allocation2 + $0xfd] sm:$0xff] }
 0x2e2   :  { %v5579_v24 = vpop.f32.mrf.mxu1  ;;  %v7461_v54 = vpop.f32.mrf.mxu0  ;;  %5854 = vmatmul.mubr.bf16.gmra.mxu1 %v4042_v25  ;;  %v4044_v30 = vpack.c.bf16 %v4030_v16, %v4029_v32 }
 0x2e3   :  { %v2533_v12 = vadd.f32 %v5579_v24, %v7297_v50  ;;  %5857 = vmatprep.mubr.bf16.mxu1 %v4043_v5  ;;  %v7465_v62 = vadd.f32 %v7357_v33, %v2512_v36 }
 0x2e4   :  { %v2524_v29 = vpop.f32.mrf.mxu1  ;;  %v7467_v18 = vpop.f32.mrf.mxu0 }
 0x2e5   :  { %v2525_v39 = vadd.f32 %v2524_v29, %v7302_v22  ;;  %v7471_v28 = vadd.f32 %v7364_v59, %v2533_v12 }
 0x2e6   :  { %v5580_v44 = vpop.f32.mrf.mxu1  ;;  %v7473_v47 = vpop.f32.mrf.mxu0 }
 0x2e7   :  { %v2536_v10 = vadd.f32 %v5580_v44, %v7311_v48  ;;  %v7477_v50 = vadd.f32 %v7366_v8, %v2525_v39 }
 0x2e8   :  { %v2527_v33 = vpop.f32.mrf.mxu1  ;;  %v7479_v25 = vpop.f32.mrf.mxu0 }
 0x2e9   :  { %v2528_v36 = vadd.f32 %v2527_v33, %v7316_v13  ;;  %v7483_v22 = vadd.f32 %v7370_v27, %v2536_v10 }
 0x2ea   :  { %v5583_v59 = vpop.f32.mrf.mxu1  ;;  %v7485_v5 = vpop.f32.mrf.mxu0  ;;  %5858 = vmatmul.mubr.bf16.gmra.mxu1 %v4044_v30 }
 0x2eb   :  { %v2549_v24 = vadd.f32 %v5583_v59, %v7325_v37  ;;  %v7489_v48 = vadd.f32 %v7372_v26, %v2528_v36 }
 0x2ec   :  { %v2540_v8 = vpop.f32.mrf.mxu1  ;;  %v7491_v12 = vpop.f32.mrf.mxu0 }
 0x2ed   :  { %v2541_v29 = vadd.f32 %v2540_v8, %v7327_v55  ;;  %v7495_v39 = vadd.f32 %v7376_v31, %v2549_v24 }
 0x2ee   :  { %v5584_v13 = vpop.f32.mrf.mxu1  ;;  %v7497_v27 = vpop.f32.mrf.mxu0 }
 0x2ef   :  { %v2552_v16 = vadd.f32 %v5584_v13, %v7329_v35  ;;  %v7501_v44 = vadd.f32 %v7380_v6, %v2541_v29 }
 0x2f0   :  { %v2543_v37 = vpop.f32.mrf.mxu1  ;;  %v7503_v10 = vpop.f32.mrf.mxu0 }
 0x2f1   :  { %v2544_v26 = vadd.f32 %v2543_v37, %v7331_v61  ;;  %v7507_v32 = vadd.f32 %v7382_v60, %v2552_v16 }
 0x2f2   :  { %v5587_v55 = vpop.f32.mrf.mxu1  ;;  %v7509_v33 = vpop.f32.mrf.mxu0 }
 0x2f3   :  { %v2565_v31 = vadd.f32 %v5587_v55, %v7353_v51  ;;  %v7513_v30 = vadd.f32 %v7386_v46, %v2544_v26 }
 0x2f4   :  { %v2556_v35 = vpop.f32.mrf.mxu1  ;;  %v7515_v36 = vpop.f32.mrf.mxu0 }
 0x2f5   :  { %v2557_v6 = vadd.f32 %v2556_v35, %v7362_v19  ;;  %v7519_v59 = vadd.f32 %v7388_v1, %v2565_v31 }
 0x2f6   :  { %v5588_v61 = vpop.f32.mrf.mxu1  ;;  %v7521_v24 = vpop.f32.mrf.mxu0 }
 0x2f7   :  { %v2568_v60 = vadd.f32 %v5588_v61, %v7368_v38  ;;  %v7525_v8 = vadd.f32 %v7392_v11, %v2557_v6 }
 0x2f8   :  { %v2559_v51 = vpop.f32.mrf.mxu1  ;;  %v7527_v29 = vpop.f32.mrf.mxu0 }
 0x2f9   :  { %v2560_v46 = vadd.f32 %v2559_v51, %v7374_v58  ;;  %v7531_v13 = vadd.f32 %v7394_v53, %v2568_v60 }
 0x2fa   :  { %v5591_v19 = vpop.f32.mrf.mxu1  ;;  %v7533_v16 = vpop.f32.mrf.mxu0 }
 0x2fb   :  { %v2581_v1 = vadd.f32 %v5591_v19, %v7378_v4  ;;  %v7537_v37 = vadd.f32 %v7398_v2, %v2560_v46 }
 0x2fc   :  { %v2572_v38 = vpop.f32.mrf.mxu1  ;;  %v7539_v26 = vpop.f32.mrf.mxu0 }
 0x2fd   :  { %v2573_v11 = vadd.f32 %v2572_v38, %v7384_v57  ;;  %v7543_v55 = vadd.f32 %v7402_v43, %v2581_v1 }
 0x2fe   :  { %v5592_v58 = vpop.f32.mrf.mxu1  ;;  %v7545_v31 = vpop.f32.mrf.mxu0 }
 0x2ff   :  { %v2584_v53 = vadd.f32 %v5592_v58, %v7390_v34  ;;  %v7549_v35 = vadd.f32 %v7406_v17, %v2573_v11  ;;  %v8016_v17 = vld [vmem:[#allocation3_spill] sm:$0xff]  ;;  %v8019_v58 = vld [vmem:[#allocation6_spill] sm:$0xff] }
 0x300   :  { %v2575_v4 = vpop.f32.mrf.mxu1  ;;  %v7551_v6 = vpop.f32.mrf.mxu0 }
 0x301   :  { %v2576_v2 = vadd.f32 %v2575_v4, %v7396_v7  ;;  %v7555_v61 = vadd.f32 %v7410_v45, %v2584_v53  ;;  %v8018_v45 = vld [vmem:[#allocation4_spill] sm:$0xff] }
 0x302   :  { %v5595_v57 = vpop.f32.mrf.mxu1  ;;  %v7557_v60 = vpop.f32.mrf.mxu0 }
 0x303   :  { %v2597_v43 = vadd.f32 %v5595_v57, %v7400_v20  ;;  %v7561_v51 = vadd.f32 %v7414_v40, %v2576_v2  ;;  %v8020_v40 = vld [vmem:[#allocation5_spill] sm:$0xff] }
 0x304   :  { %v2588_v34 = vpop.f32.mrf.mxu1  ;;  %v7563_v46 = vpop.f32.mrf.mxu0 }
 0x305   :  { %v2589_v19 = vadd.f32 %v2588_v34, %v8016_v17  ;;  %v7567_v1 = vadd.f32 %v7416_v14, %v2597_v43  ;;  %v8021_v14 = vld [vmem:[#allocation7_spill] sm:$0xff] }
 0x306   :  { %v5596_v7 = vpop.f32.mrf.mxu1  ;;  %v7569_v38 = vpop.f32.mrf.mxu0 }
 0x307   :  { %8017 = vst [vmem:[#allocation3_spill] sm:$0xff] %v7567_v1  ;;  %v2600_v11 = vadd.f32 %v5596_v7, %v8018_v45  ;;  %v7573_v53 = vadd.f32 %v8019_v58, %v2589_v19 }
 0x308   :  { %v2591_v20 = vpop.f32.mrf.mxu1  ;;  %v7575_v4 = vpop.f32.mrf.mxu0 }
 0x309   :  { %v2592_v2 = vadd.f32 %v2591_v20, %v8020_v40  ;;  %v7579_v57 = vadd.f32 %v7425_v9, %v2600_v11 }
 0x30a   :  { %v5659_v34 = vpop.f32.mrf.mxu1  ;;  %v7581_v17 = vpop.f32.mrf.mxu0 }
 0x30b   :  { %v3137_v43 = vadd.f32 %v5659_v34, %v8021_v14  ;;  %v7585_v1 = vadd.f32 %v7431_v56, %v2592_v2 }
 0x30c   :  { %v3024_v7 = vpop.f32.mrf.mxu1  ;;  %v7587_v45 = vpop.f32.mrf.mxu0 }
 0x30d   :  { %v3135_v19 = vadd.f32 %v3024_v7, %v7429_v41  ;;  %v7591_v58 = vadd.f32 %v7437_v63, %v3137_v43 }
 0x30e   :  { %v5660_v20 = vpop.f32.mrf.mxu1  ;;  %v7593_v40 = vpop.f32.mrf.mxu0 }
 0x30f   :  { %v3138_v9 = vadd.f32 %v5660_v20, %v7435_v3  ;;  %v7597_v11 = vadd.f32 %v7443_v21, %v3135_v19 }
 0x310   :  { %v3027_v34 = vpop.f32.mrf.mxu1  ;;  %v7599_v14 = vpop.f32.mrf.mxu0 }
 0x311   :  { %v3136_v56 = vadd.f32 %v3027_v34, %v7441_v42  ;;  %v7603_v2 = vadd.f32 %v7449_v15, %v3138_v9 }
 0x312   :  { %v5663_v41 = vpop.f32.mrf.mxu1  ;;  %v7605_v7 = vpop.f32.mrf.mxu0 }
 0x313   :  { %v3141_v63 = vadd.f32 %v5663_v41, %v7447_v0  ;;  %v7609_v43 = vadd.f32 %v7455_v52, %v3136_v56 }
 0x314   :  { %v3040_v3 = vpop.f32.mrf.mxu1  ;;  %v7611_v20 = vpop.f32.mrf.mxu0 }
 0x315   :  { %v3139_v21 = vadd.f32 %v3040_v3, %v7453_v23  ;;  %v7615_v19 = vadd.f32 %v7461_v54, %v3141_v63 }
 0x316   :  { %v5664_v42 = vpop.f32.mrf.mxu1  ;;  %v7617_v34 = vpop.f32.mrf.mxu0 }
 0x317   :  { %v3142_v15 = vadd.f32 %v5664_v42, %v7459_v49  ;;  %v7621_v9 = vadd.f32 %v7467_v18, %v3139_v21 }
 0x318   :  { %v3043_v0 = vpop.f32.mrf.mxu1  ;;  %v7623_v41 = vpop.f32.mrf.mxu0 }
 0x319   :  { %v3140_v52 = vadd.f32 %v3043_v0, %v7465_v62  ;;  %v7627_v56 = vadd.f32 %v7473_v47, %v3142_v15 }
 0x31a   :  { %v5667_v23 = vpop.f32.mrf.mxu1  ;;  %v7629_v3 = vpop.f32.mrf.mxu0 }
 0x31b   :  { %v3145_v54 = vadd.f32 %v5667_v23, %v7471_v28  ;;  %v7633_v63 = vadd.f32 %v7479_v25, %v3140_v52 }
 0x31c   :  { %v3056_v49 = vpop.f32.mrf.mxu1  ;;  %v7635_v42 = vpop.f32.mrf.mxu0 }
 0x31d   :  { %v3143_v18 = vadd.f32 %v3056_v49, %v7477_v50  ;;  %v7639_v21 = vadd.f32 %v7485_v5, %v3145_v54 }
 0x31e   :  { %v5668_v62 = vpop.f32.mrf.mxu1  ;;  %v7641_v0 = vpop.f32.mrf.mxu0 }
 0x31f   :  { %v3146_v47 = vadd.f32 %v5668_v62, %v7483_v22  ;;  %v7645_v15 = vadd.f32 %v7491_v12, %v3143_v18 }
 0x320   :  { %v3059_v28 = vpop.f32.mrf.mxu1  ;;  %v7647_v23 = vpop.f32.mrf.mxu0 }
 0x321   :  { %v3144_v25 = vadd.f32 %v3059_v28, %v7489_v48  ;;  %v7651_v52 = vadd.f32 %v7497_v27, %v3146_v47 }
 0x322   :  { %v5671_v50 = vpop.f32.mrf.mxu1  ;;  %v7653_v49 = vpop.f32.mrf.mxu0 }
 0x323   :  { %v3149_v5 = vadd.f32 %v5671_v50, %v7495_v39  ;;  %v7657_v54 = vadd.f32 %v7503_v10, %v3144_v25 }
 0x324   :  { %v3072_v22 = vpop.f32.mrf.mxu1  ;;  %v7659_v62 = vpop.f32.mrf.mxu0 }
 0x325   :  { %v3147_v12 = vadd.f32 %v3072_v22, %v7501_v44  ;;  %v7663_v18 = vadd.f32 %v7509_v33, %v3149_v5 }
 0x326   :  { %v5672_v48 = vpop.f32.mrf.mxu1  ;;  %v7665_v28 = vpop.f32.mrf.mxu0 }
 0x327   :  { %v3150_v27 = vadd.f32 %v5672_v48, %v7507_v32  ;;  %v7669_v47 = vadd.f32 %v7515_v36, %v3147_v12 }
 0x328   :  { %v3075_v39 = vpop.f32.mrf.mxu1  ;;  %v7671_v50 = vpop.f32.mrf.mxu0 }
 0x329   :  { %v3148_v10 = vadd.f32 %v3075_v39, %v7513_v30  ;;  %v7675_v25 = vadd.f32 %v7521_v24, %v3150_v27 }
 0x32a   :  { %v5675_v44 = vpop.f32.mrf.mxu1  ;;  %v7677_v22 = vpop.f32.mrf.mxu0 }
 0x32b   :  { %8022 = vst [vmem:[#allocation4_spill] sm:$0xff] %v7677_v22  ;;  %v3153_v33 = vadd.f32 %v5675_v44, %v7519_v59  ;;  %v7681_v5 = vadd.f32 %v7527_v29, %v3148_v10 }
 0x32c   :  { %v3088_v32 = vpop.f32.mrf.mxu1  ;;  %v7683_v48 = vpop.f32.mrf.mxu0 }
 0x32d   :  { %8023 = vst [vmem:[#allocation6_spill] sm:$0xff] %v7681_v5  ;;  %8024 = vst [vmem:[#allocation5_spill] sm:$0xff] %v7683_v48  ;;  %v3151_v36 = vadd.f32 %v3088_v32, %v7525_v8  ;;  %v7687_v12 = vadd.f32 %v7533_v16, %v3153_v33 }
 0x32e   :  { %v5676_v30 = vpop.f32.mrf.mxu1  ;;  %v7689_v39 = vpop.f32.mrf.mxu0 }
 0x32f   :  { %8025 = vst [vmem:[#allocation7_spill] sm:$0xff] %v7687_v12  ;;  %8026 = vst [vmem:[#allocation8_spill] sm:$0xff] %v7689_v39  ;;  %v3154_v24 = vadd.f32 %v5676_v30, %v7531_v13  ;;  %v7693_v27 = vadd.f32 %v7539_v26, %v3151_v36 }
 0x330   :  { %v3091_v59 = vpop.f32.mrf.mxu1  ;;  %v7695_v44 = vpop.f32.mrf.mxu0 }
 0x331   :  { %8027 = vst [vmem:[#allocation9_spill] sm:$0xff] %v7693_v27  ;;  %8028 = vst [vmem:[#allocation10_spill] sm:$0xff] %v7695_v44  ;;  %v3152_v29 = vadd.f32 %v3091_v59, %v7537_v37  ;;  %v7699_v10 = vadd.f32 %v7545_v31, %v3154_v24 }
 0x332   :  { %v5679_v8 = vpop.f32.mrf.mxu1  ;;  %v7701_v32 = vpop.f32.mrf.mxu0 }
 0x333   :  { %8029 = vst [vmem:[#allocation11_spill] sm:$0xff] %v7699_v10  ;;  %8030 = vst [vmem:[#allocation12_spill] sm:$0xff] %v7701_v32  ;;  %v3157_v16 = vadd.f32 %v5679_v8, %v7543_v55  ;;  %v7705_v33 = vadd.f32 %v7551_v6, %v3152_v29 }
 0x334   :  { %v3104_v13 = vpop.f32.mrf.mxu1  ;;  %v7707_v30 = vpop.f32.mrf.mxu0 }
 0x335   :  { %8031 = vst [vmem:[#allocation13_spill] sm:$0xff] %v7705_v33  ;;  %8032 = vst [vmem:[#allocation14_spill] sm:$0xff] %v7707_v30  ;;  %v3155_v26 = vadd.f32 %v3104_v13, %v7549_v35  ;;  %v7711_v36 = vadd.f32 %v7557_v60, %v3157_v16  ;;  %v8039_v60 = vld [vmem:[#allocation3_spill] sm:$0xff] }
 0x336   :  { %v5680_v37 = vpop.f32.mrf.mxu1  ;;  %v7713_v59 = vpop.f32.mrf.mxu0 }
 0x337   :  { %8033 = vst [vmem:[#allocation15_spill] sm:$0xff] %v7711_v36  ;;  %8034 = vst [vmem:[#allocation16_spill] sm:$0xff] %v7713_v59  ;;  %v3158_v31 = vadd.f32 %v5680_v37, %v7555_v61  ;;  %v7717_v24 = vadd.f32 %v7563_v46, %v3155_v26 }
 0x338   :  { %v3107_v55 = vpop.f32.mrf.mxu1  ;;  %v7719_v8 = vpop.f32.mrf.mxu0 }
 0x339   :  { %8035 = vst [vmem:[#allocation17_spill] sm:$0xff] %v7717_v24  ;;  %8036 = vst [vmem:[#allocation18_spill] sm:$0xff] %v7719_v8  ;;  %v3156_v6 = vadd.f32 %v3107_v55, %v7561_v51  ;;  %v7723_v29 = vadd.f32 %v7569_v38, %v3158_v31 }
 0x33a   :  { %v5683_v35 = vpop.f32.mrf.mxu1  ;;  %v7725_v13 = vpop.f32.mrf.mxu0 }
 0x33b   :  { %8037 = vst [vmem:[#allocation19_spill] sm:$0xff] %v7723_v29  ;;  %8038 = vst [vmem:[#allocation20_spill] sm:$0xff] %v7725_v13  ;;  %v3161_v16 = vadd.f32 %v5683_v35, %v8039_v60  ;;  %v7729_v59 = vadd.f32 %v7575_v4, %v3156_v6 }
 0x33c   :  { %v3120_v61 = vpop.f32.mrf.mxu1  ;;  %v7731_v37 = vpop.f32.mrf.mxu0 }
 0x33d   :  { %8040 = vst [vmem:[#allocation3_spill] sm:$0xff] %v7729_v59  ;;  %8041 = vst [vmem:[#allocation21_spill] sm:$0xff] %v7731_v37  ;;  %v3159_v46 = vadd.f32 %v3120_v61, %v7573_v53  ;;  %v7735_v26 = vadd.f32 %v7581_v17, %v3161_v16 }
 0x33e   :  { %v5684_v51 = vpop.f32.mrf.mxu1  ;;  %v7737_v55 = vpop.f32.mrf.mxu0 }
 0x33f   :  { %8042 = vst [vmem:[#allocation22_spill] sm:$0xff] %v7735_v26  ;;  %8043 = vst [vmem:[#allocation23_spill] sm:$0xff] %v7737_v55  ;;  %v3162_v38 = vadd.f32 %v5684_v51, %v7579_v57  ;;  %v7741_v31 = vadd.f32 %v7587_v45, %v3159_v46 }
 0x340   :  { %v3123_v35 = vpop.f32.mrf.mxu1  ;;  %v7743_v60 = vpop.f32.mrf.mxu0 }
 0x341   :  { %8044 = vst [vmem:[#allocation24_spill] sm:$0xff] %v7741_v31  ;;  %8045 = vst [vmem:[#allocation25_spill] sm:$0xff] %v7743_v60  ;;  %v3160_v4 = vadd.f32 %v3123_v35, %v7585_v1  ;;  %v7747_v6 = vadd.f32 %v7593_v40, %v3162_v38 }
 0x342   :  { %v5747_v53 = vpop.f32.mrf.mxu1  ;;  %v7749_v61 = vpop.f32.mrf.mxu0 }
 0x343   :  { %8046 = vst [vmem:[#allocation26_spill] sm:$0xff] %v7747_v6  ;;  %8047 = vst [vmem:[#allocation27_spill] sm:$0xff] %v7749_v61  ;;  %v7752_v17 = vadd.f32 %v7599_v14, %v3160_v4 }
 0x344   :  { %v3584_v16 = vpop.f32.mrf.mxu1  ;;  %v7754_v26 = vpop.f32.mrf.mxu0 }
 0x345   :  { %8048 = vst [vmem:[#allocation28_spill] sm:$0xff] %v7752_v17  ;;  %8049 = vst [vmem:[#allocation29_spill] sm:$0xff] %v7754_v26 }
 0x346   :  { %v5748_v57 = vpop.f32.mrf.mxu1  ;;  %v7756_v45 = vpop.f32.mrf.mxu0 }
 0x347   :  { %8050 = vst [vmem:[#allocation30_spill] sm:$0xff] %v7756_v45 }
 0x348   :  { %v3587_v46 = vpop.f32.mrf.mxu1  ;;  %v7758_v51 = vpop.f32.mrf.mxu0 }
 0x349   :  { %8051 = vst [vmem:[#allocation31_spill] sm:$0xff] %v7758_v51 }
 0x34a   :  { %v5751_v60 = vpop.f32.mrf.mxu1  ;;  %v5879_v1 = vpop.f32.mrf.mxu0 }
 0x34c   :  { %v3600_v35 = vpop.f32.mrf.mxu1  ;;  %v4424_v40 = vpop.f32.mrf.mxu0 }
 0x34e   :  { %v5752_v38 = vpop.f32.mrf.mxu1  ;;  %v5880_v6 = vpop.f32.mrf.mxu0 }
 0x350   :  { %v3603_v31 = vpop.f32.mrf.mxu1  ;;  %v7760_v61 = vpop.f32.mrf.mxu0 }
 0x352   :  { %v7762_v14 = vpop.f32.mrf.mxu1  ;;  %v7766_v26 = vpop.f32.mrf.mxu0 }
 0x354   :  { %v7764_v4 = vpop.f32.mrf.mxu1  ;;  %v7772_v51 = vpop.f32.mrf.mxu0 }
 0x356   :  { %v7768_v17 = vpop.f32.mrf.mxu1  ;;  %v7778_v37 = vpop.f32.mrf.mxu0 }
 0x358   :  { %v7770_v45 = vpop.f32.mrf.mxu1  ;;  %v7784_v8 = vpop.f32.mrf.mxu0 }
 0x35a   :  { %v7774_v55 = vpop.f32.mrf.mxu1  ;;  %v7790_v30 = vpop.f32.mrf.mxu0 }
 0x35c   :  { %v7776_v59 = vpop.f32.mrf.mxu1  ;;  %v7796_v32 = vpop.f32.mrf.mxu0 }
 0x35e   :  { %v7780_v13 = vpop.f32.mrf.mxu1  ;;  %v7802_v39 = vpop.f32.mrf.mxu0 }
 0x35f   :  { %8059 = vst [vmem:[#allocation39_spill] sm:$0xff] %v7802_v39 }
 0x360   :  { %v7782_v29 = vpop.f32.mrf.mxu1 }
 0x361   :  { %8052 = vst [vmem:[#allocation32_spill] sm:$0xff] %v7782_v29 }
 0x362   :  { %v7786_v24 = vpop.f32.mrf.mxu1 }
 0x363   :  { %8053 = vst [vmem:[#allocation33_spill] sm:$0xff] %v7786_v24  ;;  %v7808_v24 = vpop.f32.mrf.mxu0 }
 0x364   :  { %v7788_v36 = vpop.f32.mrf.mxu1  ;;  %8062 = vst [vmem:[#allocation42_spill] sm:$0xff] %v7808_v24 }
 0x365   :  { %8054 = vst [vmem:[#allocation34_spill] sm:$0xff] %v7788_v36 }
 0x366   :  { %v7792_v33 = vpop.f32.mrf.mxu1 }
 0x367   :  { %8055 = vst [vmem:[#allocation35_spill] sm:$0xff] %v7792_v33  ;;  %v7815_v33 = vpop.f32.mrf.mxu0 }
 0x368   :  { %v7794_v10 = vpop.f32.mrf.mxu1  ;;  %8065 = vst [vmem:[#allocation45_spill] sm:$0xff] %v7815_v33  ;;  %v3701_v33 = vadd.f32 %v5751_v60, %v7615_v19 }
 0x369   :  { %8056 = vst [vmem:[#allocation36_spill] sm:$0xff] %v7794_v10  ;;  %v3697_v10 = vadd.f32 %v5747_v53, %v7591_v58  ;;  %v7824_v22 = vpop.f32.mrf.mxu0 }
 0x36a   :  { %v7798_v44 = vpop.f32.mrf.mxu1 }
 0x36b   :  { %8057 = vst [vmem:[#allocation37_spill] sm:$0xff] %v7798_v44 }
 0x36c   :  { %v7800_v27 = vpop.f32.mrf.mxu1 }
 0x36d   :  { %8058 = vst [vmem:[#allocation38_spill] sm:$0xff] %v7800_v27  ;;  %v3695_v27 = vadd.f32 %v3584_v16, %v7597_v11  ;;  %v3699_v16 = vadd.f32 %v3600_v35, %v7621_v9  ;;  %v3702_v9 = vadd.f32 %v5752_v38, %v7627_v56 }
 0x36e   :  { %v7804_v12 = vpop.f32.mrf.mxu1 }
 0x36f   :  { %8060 = vst [vmem:[#allocation40_spill] sm:$0xff] %v7804_v12  ;;  %v3698_v12 = vadd.f32 %v5748_v57, %v7603_v2  ;;  %v3975_v58 = vadd.f32 %v7611_v20, %v3695_v27  ;;  %v7831_v2 = vpop.f32.mrf.mxu0 }
 0x370   :  { %v7806_v48 = vpop.f32.mrf.mxu1 }
 0x371   :  { %8061 = vst [vmem:[#allocation41_spill] sm:$0xff] %v7806_v48  ;;  %v3977_v48 = vadd.f32 %v7605_v7, %v3697_v10  ;;  %v3978_v11 = vadd.f32 %v7617_v34, %v3698_v12  ;;  %v7836_v7 = vld [vmem:[%s8009_s4] ss:$0 sm:$0xff]  ;;  %v3981_v34 = vadd.f32 %v7629_v3, %v3701_v33  ;;  %v3700_v12 = vadd.f32 %v3603_v31, %v7633_v63  ;;  %v7843_v60 = vpop.f32.mrf.mxu0 }
 0x372   :  { %v7810_v36 = vpop.f32.mrf.mxu1 }
 0x373   :  { %8063 = vst [vmem:[#allocation43_spill] sm:$0xff] %v7810_v36  ;;  %v3696_v36 = vadd.f32 %v3587_v46, %v7609_v43  ;;  %v3979_v46 = vadd.f32 %v7635_v42, %v3699_v16  ;;  %v7854_v42 = vpop.f32.mrf.mxu0  ;;  %v3980_v38 = vadd.f32 %v7647_v23, %v3700_v12 }
 0x374   :  { %v7812_v29 = vpop.f32.mrf.mxu1 }
 0x375   :  { %8064 = vst [vmem:[#allocation44_spill] sm:$0xff] %v7812_v29  ;;  %v3976_v20 = vadd.f32 %v7623_v41, %v3696_v36 }
 0x376   :  { %v7817_v5 = vpop.f32.mrf.mxu1 }
 0x377   :  { %8066 = vst [vmem:[#allocation46_spill] sm:$0xff] %v7817_v5 }
 0x378   :  { %v7820_v44 = vpop.f32.mrf.mxu1 }
 0x37a   :  { %v5835_v24 = vpop.f32.mrf.mxu1 }
 0x37b   :  { %v4257_v29 = vadd.f32 %v5835_v24, %v3977_v48 }
 0x37c   :  { %v4144_v53 = vpop.f32.mrf.mxu1 }
 0x37d   :  { %v4537_v5 = vadd.f32 %v5879_v1, %v4257_v29  ;;  %v4255_v39 = vadd.f32 %v4144_v53, %v3975_v58  ;;  %v3703_v1 = vadd.f32 %v7764_v4, %v7645_v15  ;;  %v7866_v4 = vpop.f32.mrf.mxu0 }
 0x37e   :  { %v5836_v43 = vpop.f32.mrf.mxu1 }
 0x37f   :  { %v4535_v48 = vadd.f32 %v4424_v40, %v4255_v39  ;;  %v4258_v10 = vadd.f32 %v5836_v43, %v3978_v11  ;;  %v4572_v19 = vadd.f32 %v7836_v7, %v4537_v5  ;;  %v3982_v40 = vadd.f32 %v7641_v0, %v3702_v9 }
 0x380   :  { %v4147_v27 = vpop.f32.mrf.mxu1  ;;  %v3706_v11 = vadd.f32 %v7768_v17, %v7651_v52 }
 0x381   :  { %v4538_v24 = vadd.f32 %v5880_v6, %v4258_v10  ;;  %v4256_v29 = vadd.f32 %v4147_v27, %v3976_v20  ;;  %v4570_v39 = vadd.f32 %v7836_v7, %v4535_v48  ;;  %v3705_v6 = vadd.f32 %v7762_v14, %v7639_v21 }
 0x382   :  { %v5839_v57 = vpop.f32.mrf.mxu1  ;;  %v4600_v33 = vmax.f32 %v4572_v19, 0.0  ;;  %v3983_v20 = vadd.f32 %v7659_v62, %v3703_v1  ;;  %v8071_v1 = vld [vmem:[#allocation5_spill] sm:$0xff] }
 0x383   :  { %v4573_v41 = vadd.f32 %v7836_v7, %v4538_v24  ;;  %v4536_v36 = vadd.f32 %v7760_v61, %v4256_v29  ;;  %v4261_v5 = vadd.f32 %v5839_v57, %v3981_v34  ;;  %v4598_v58 = vmax.f32 %v4570_v39, 0.0 }
 0x384   :  { %v4160_v3 = vpop.f32.mrf.mxu1  ;;  %v3985_v0 = vadd.f32 %v7653_v49, %v3705_v6  ;;  %v3704_v49 = vadd.f32 %v7770_v45, %v7657_v54  ;;  %v3709_v24 = vadd.f32 %v7774_v55, %v7663_v18  ;;  %v3707_v54 = vadd.f32 %v7776_v59, %v7669_v47  ;;  %v8067_v6 = vld [vmem:[#allocation39_spill] sm:$0xff] }
 0x385   :  { %v4601_v56 = vmax.f32 %v4573_v41, 0.0  ;;  %v4571_v63 = vadd.f32 %v7836_v7, %v4536_v36  ;;  %v4259_v31 = vadd.f32 %v4160_v3, %v3979_v46  ;;  %v4541_v35 = vadd.f32 %v7766_v26, %v4261_v5 }
 0x386   :  { %v5840_v61 = vpop.f32.mrf.mxu1 }
 0x387   :  { %v5236_v21 = vpack.c.bf16 %v4601_v56, %v4600_v33  ;;  %v4599_v14 = vmax.f32 %v4571_v63, 0.0  ;;  %v4539_v53 = vadd.f32 %v7772_v51, %v4259_v31  ;;  %v4262_v16 = vadd.f32 %v5840_v61, %v3982_v40  ;;  %v8068_v33 = vld [vmem:[#allocation4_spill] sm:$0xff]  ;;  %v8072_v40 = vld [vmem:[#allocation7_spill] sm:$0xff]  ;;  %v8073_v61 = vld [vmem:[#allocation33_spill] sm:$0xff] }
 0x388   :  { %v4163_v43 = vpop.f32.mrf.mxu1  ;;  %v4576_v23 = vadd.f32 %v7836_v7, %v4541_v35  ;;  %v3989_v56 = vadd.f32 %v8068_v33, %v3709_v24  ;;  %v3987_v35 = vadd.f32 %v8071_v1, %v3707_v54  ;;  %v8080_v54 = vld [vmem:[#allocation12_spill] sm:$0xff] }
 0x389   :  { %5298 = vst [vmem:[%s8010_s5 + $0x8] sm:$0xff] %v5236_v21   ;;  %v5231_v15 = vpack.c.bf16 %v4599_v14, %v4598_v58  ;;  %v4260_v26 = vadd.f32 %v4163_v43, %v3980_v38  ;;  %v4542_v48 = vadd.f32 %v7778_v37, %v4262_v16  ;;  %v4574_v52 = vadd.f32 %v7836_v7, %v4539_v53  ;;  %v8074_v21 = vld [vmem:[#allocation42_spill] sm:$0xff] }
 0x38a   :  { %v5843_v51 = vpop.f32.mrf.mxu1  ;;  %v3986_v37 = vadd.f32 %v7665_v28, %v3706_v11  ;;  %v4604_v12 = vmax.f32 %v4576_v23, 0.0  ;;  %v3710_v28 = vadd.f32 %v7780_v13, %v7675_v25  ;;  %v8069_v13 = vld [vmem:[#allocation6_spill] sm:$0xff]  ;;  %v3713_v38 = vadd.f32 %v8073_v61, %v8072_v40  ;;  %v8075_v11 = vld [vmem:[#allocation8_spill] sm:$0xff] }
 0x38b   :  { %5232 = vst [vmem:[%s8010_s5] sm:$0xff] %v5231_v15   ;;  %v4540_v17 = vadd.f32 %v7784_v8, %v4260_v26  ;;  %v4265_v10 = vadd.f32 %v5843_v51, %v3985_v0  ;;  %v4577_v27 = vadd.f32 %v7836_v7, %v4542_v48  ;;  %v7884_v8 = vpop.f32.mrf.mxu0  ;;  %v4602_v45 = vmax.f32 %v4574_v52, 0.0  ;;  %v8076_v26 = vld [vmem:[#allocation45_spill] sm:$0xff]  ;;  %v8078_v51 = vld [vmem:[#allocation34_spill] sm:$0xff] }
 0x38c   :  { %v4176_v19 = vpop.f32.mrf.mxu1  ;;  %v3990_v16 = vadd.f32 %v8075_v11, %v3710_v28  ;;  %v8077_v48 = vld [vmem:[#allocation9_spill] sm:$0xff]  ;;  %v8089_v40 = vld [vmem:[#allocation38_spill] sm:$0xff] }
 0x38d   :  { %v4575_v29 = vadd.f32 %v7836_v7, %v4540_v17  ;;  %v4545_v34 = vadd.f32 %v7790_v30, %v4265_v10  ;;  %v4263_v9 = vadd.f32 %v4176_v19, %v3983_v20  ;;  %v4605_v62 = vmax.f32 %v4577_v27, 0.0  ;;  %v7895_v47 = vpop.f32.mrf.mxu0  ;;  %v8083_v28 = vld [vmem:[#allocation13_spill] sm:$0xff] }
 0x38e   :  { %v5844_v57 = vpop.f32.mrf.mxu1  ;;  %v3984_v30 = vadd.f32 %v7671_v50, %v3704_v49  ;;  %v3711_v52 = vadd.f32 %v8078_v51, %v8077_v48 }
 0x38f   :  { %v4603_v46 = vmax.f32 %v4575_v29, 0.0  ;;  %v4266_v39 = vadd.f32 %v5844_v57, %v3986_v37  ;;  %v5246_v18 = vpack.c.bf16 %v4605_v62, %v4604_v12  ;;  %v4543_v55 = vadd.f32 %v7796_v32, %v4263_v9  ;;  %v8070_v32 = vld [vmem:[#allocation32_spill] sm:$0xff]  ;;  %v7915_v17 = vpop.f32.mrf.mxu0  ;;  %v8079_v37 = vld [vmem:[#allocation10_spill] sm:$0xff] }
 0x390   :  { %v4179_v41 = vpop.f32.mrf.mxu1  ;;  %v4580_v5 = vadd.f32 %v7836_v7, %v4545_v34  ;;  %v3708_v63 = vadd.f32 %v8070_v32, %v8069_v13 }
 0x391   :  { %v5241_v36 = vpack.c.bf16 %v4603_v46, %v4602_v45  ;;  %v4546_v3 = vadd.f32 %v8067_v6, %v4266_v39  ;;  %5300 = vst [vmem:[%s8010_s5 + $0x18] sm:$0xff] %v5246_v18   ;;  %v4264_v25 = vadd.f32 %v4179_v41, %v3984_v30  ;;  %v4578_v58 = vadd.f32 %v7836_v7, %v4543_v55  ;;  %v8081_v46 = vld [vmem:[#allocation11_spill] sm:$0xff]  ;;  %v8084_v18 = vld [vmem:[#allocation36_spill] sm:$0xff]  ;;  %v4504_v30 = vpop.f32.mrf.mxu0 }
 0x392   :  { %v5847_v59 = vpop.f32.mrf.mxu1  ;;  %v4608_v43 = vmax.f32 %v4580_v5, 0.0  ;;  %v3988_v24 = vadd.f32 %v8079_v37, %v3708_v63  ;;  %v3993_v45 = vadd.f32 %v8080_v54, %v3713_v38  ;;  %v8082_v39 = vld [vmem:[#allocation35_spill] sm:$0xff]  ;;  %v3712_v55 = vadd.f32 %v8084_v18, %v8083_v28  ;;  %v8085_v5 = vld [vmem:[#allocation14_spill] sm:$0xff] }
 0x393   :  { %5299 = vst [vmem:[%s8010_s5 + $0x10] sm:$0xff] %v5241_v36   ;;  %v4581_v50 = vadd.f32 %v7836_v7, %v4546_v3  ;;  %v4269_v31 = vadd.f32 %v5847_v59, %v3989_v56  ;;  %v4544_v14 = vadd.f32 %v8074_v21, %v4264_v25  ;;  %v4606_v29 = vmax.f32 %v4578_v58, 0.0  ;;  %v8086_v25 = vld [vmem:[#allocation15_spill] sm:$0xff]  ;;  %v8087_v59 = vld [vmem:[#allocation37_spill] sm:$0xff]  ;;  %v5900_v38 = vpop.f32.mrf.mxu0  ;;  %v8090_v58 = vld [vmem:[#allocation16_spill] sm:$0xff] }
 0x394   :  { %v4192_v53 = vpop.f32.mrf.mxu1  ;;  %v3991_v6 = vadd.f32 %v8085_v5, %v3711_v52  ;;  %v3717_v13 = vadd.f32 %v8087_v59, %v8086_v25  ;;  %v8100_v28 = vld [vmem:[#allocation43_spill] sm:$0xff] }
 0x395   :  { %v4609_v15 = vmax.f32 %v4581_v50, 0.0  ;;  %v4549_v0 = vadd.f32 %v8076_v26, %v4269_v31  ;;  %v4267_v23 = vadd.f32 %v4192_v53, %v3987_v35  ;;  %v4579_v10 = vadd.f32 %v7836_v7, %v4544_v14  ;;  %v8088_v35 = vld [vmem:[#allocation17_spill] sm:$0xff]  ;;  %v8091_v53 = vld [vmem:[#allocation18_spill] sm:$0xff] }
 0x396   :  { %v5848_v20 = vpop.f32.mrf.mxu1  ;;  %v3715_v61 = vadd.f32 %v8089_v40, %v8088_v35  ;;  %v3992_v11 = vadd.f32 %v8091_v53, %v3712_v55  ;;  %v8105_v35 = vld [vmem:[#allocation25_spill] sm:$0xff] }
 0x397   :  { %v5256_v49 = vpack.c.bf16 %v4609_v15, %v4608_v43  ;;  %v4547_v27 = vadd.f32 %v7824_v22, %v4267_v23  ;;  %v4270_v19 = vadd.f32 %v5848_v20, %v3990_v16  ;;  %v4607_v34 = vmax.f32 %v4579_v10, 0.0  ;;  %v8093_v23 = vld [vmem:[#allocation40_spill] sm:$0xff] }
 0x398   :  { %v4195_v9 = vpop.f32.mrf.mxu1  ;;  %v4584_v12 = vadd.f32 %v7836_v7, %v4549_v0  ;;  %v3714_v22 = vadd.f32 %v8082_v39, %v8081_v46  ;;  %v8092_v0 = vld [vmem:[#allocation19_spill] sm:$0xff]  ;;  %v8094_v20 = vld [vmem:[#allocation20_spill] sm:$0xff] }
 0x399   :  { %5302 = vst [vmem:[%s8010_s5 + $0x28] sm:$0xff] %v5256_v49   ;;  %v4550_v62 = vadd.f32 %v7831_v2, %v4270_v19  ;;  %v4268_v57 = vadd.f32 %v4195_v9, %v3988_v24  ;;  %v5251_v41 = vpack.c.bf16 %v4607_v34, %v4606_v29  ;;  %v4582_v3 = vadd.f32 %v7836_v7, %v4547_v27  ;;  %v4507_v27 = vpop.f32.mrf.mxu0  ;;  %v8095_v9 = vld [vmem:[#allocation21_spill] sm:$0xff]  ;;  %v8098_v39 = vld [vmem:[#allocation23_spill] sm:$0xff] }
 0x39a   :  { %v5851_v36 = vpop.f32.mrf.mxu1  ;;  %v4612_v63 = vmax.f32 %v4584_v12, 0.0  ;;  %v3994_v21 = vadd.f32 %v8090_v58, %v3714_v22  ;;  %v3718_v48 = vadd.f32 %v8093_v23, %v8092_v0  ;;  %v3997_v49 = vadd.f32 %v8094_v20, %v3717_v13  ;;  %v8099_v22 = vld [vmem:[#allocation22_spill] sm:$0xff] }
 0x39b   :  { %v4585_v33 = vadd.f32 %v7836_v7, %v4550_v62  ;;  %v4548_v2 = vadd.f32 %v7843_v60, %v4268_v57  ;;  %v4273_v56 = vadd.f32 %v5851_v36, %v3993_v45  ;;  %5301 = vst [vmem:[%s8010_s5 + $0x20] sm:$0xff] %v5251_v41   ;;  %v4610_v16 = vmax.f32 %v4582_v3, 0.0  ;;  %v8096_v62 = vld [vmem:[#allocation3_spill] sm:$0xff]  ;;  %v8097_v57 = vld [vmem:[#allocation41_spill] sm:$0xff] }
 0x39c   :  { %v4208_v32 = vpop.f32.mrf.mxu1  ;;  %v3995_v12 = vadd.f32 %v8095_v9, %v3715_v61  ;;  %v3716_v54 = vadd.f32 %v8097_v57, %v8096_v62  ;;  %v3721_v18 = vadd.f32 %v8100_v28, %v8099_v22  ;;  %v8110_v9 = vld [vmem:[#allocation31_spill] sm:$0xff] }
 0x39d   :  { %v4613_v50 = vmax.f32 %v4585_v33, 0.0  ;;  %v4583_v31 = vadd.f32 %v7836_v7, %v4548_v2  ;;  %v4271_v1 = vadd.f32 %v4208_v32, %v3991_v6  ;;  %v4553_v60 = vadd.f32 %v7854_v42, %v4273_v56  ;;  %v8101_v33 = vld [vmem:[#allocation24_spill] sm:$0xff]  ;;  %v8103_v32 = vld [vmem:[#allocation26_spill] sm:$0xff] }
 0x39e   :  { %v5852_v14 = vpop.f32.mrf.mxu1  ;;  %v8102_v2 = vld [vmem:[#allocation44_spill] sm:$0xff]  ;;  %v3996_v40 = vadd.f32 %v8105_v35, %v3716_v54 }
 0x39f   :  { %v5266_v43 = vpack.c.bf16 %v4613_v50, %v4612_v63  ;;  %v4611_v15 = vmax.f32 %v4583_v31, 0.0  ;;  %v4551_v26 = vadd.f32 %v7866_v4, %v4271_v1  ;;  %v4274_v51 = vadd.f32 %v5852_v14, %v3994_v21  ;;  %v8104_v63 = vld [vmem:[#allocation46_spill] sm:$0xff]  ;;  %v8106_v21 = vld [vmem:[#allocation27_spill] sm:$0xff] }
 0x3a0   :  { %v4211_v52 = vpop.f32.mrf.mxu1  ;;  %v4588_v19 = vadd.f32 %v7836_v7, %v4553_v60  ;;  %v3719_v56 = vadd.f32 %v8102_v2, %v8101_v33  ;;  %v3722_v50 = vadd.f32 %v8104_v63, %v8103_v32  ;;  %v4001_v14 = vadd.f32 %v8106_v21, %v3721_v18 }
 0x3a1   :  { %5304 = vst [vmem:[%s8010_s5 + $0x38] sm:$0xff] %v5266_v43   ;;  %v5261_v42 = vpack.c.bf16 %v4611_v15, %v4610_v16  ;;  %v4272_v10 = vadd.f32 %v4211_v52, %v3992_v11  ;;  %v4554_v37 = vadd.f32 %v7884_v8, %v4274_v51  ;;  %v4586_v4 = vadd.f32 %v7836_v7, %v4551_v26  ;;  %v8107_v43 = vld [vmem:[#allocation28_spill] sm:$0xff]  ;;  %v8109_v52 = vld [vmem:[#allocation30_spill] sm:$0xff] }
 0x3a2   :  { %v5855_v24 = vpop.f32.mrf.mxu1  ;;  %v3998_v8 = vadd.f32 %v8098_v39, %v3718_v48  ;;  %v4616_v5 = vmax.f32 %v4588_v19, 0.0  ;;  %v3720_v15 = vadd.f32 %v7820_v44, %v8107_v43 }
 0x3a3   :  { %5303 = vst [vmem:[%s8010_s5 + $0x30] sm:$0xff] %v5261_v42   ;;  %v4552_v29 = vadd.f32 %v7895_v47, %v4272_v10  ;;  %v4277_v34 = vadd.f32 %v5855_v24, %v3997_v49  ;;  %v4589_v45 = vadd.f32 %v7836_v7, %v4554_v37  ;;  %v5903_v47 = vpop.f32.mrf.mxu0  ;;  %v4614_v25 = vmax.f32 %v4586_v4, 0.0 }
 0x3a4   :  { %v4224_v46 = vpop.f32.mrf.mxu1  ;;  %v4002_v42 = vadd.f32 %v8109_v52, %v3722_v50 }
 0x3a5   :  { %v4587_v55 = vadd.f32 %v7836_v7, %v4552_v29  ;;  %v4557_v41 = vadd.f32 %v7915_v17, %v4277_v34  ;;  %v4275_v36 = vadd.f32 %v4224_v46, %v3995_v12  ;;  %v4617_v6 = vmax.f32 %v4589_v45, 0.0  ;;  %v4520_v53 = vpop.f32.mrf.mxu0 }
 0x3a6   :  { %v5856_v3 = vpop.f32.mrf.mxu1  ;;  %v4000_v12 = vadd.f32 %v8110_v9, %v3720_v15 }
 0x3a7   :  { %v4615_v59 = vmax.f32 %v4587_v55, 0.0  ;;  %v4278_v13 = vadd.f32 %v5856_v3, %v3998_v8  ;;  %v5276_v31 = vpack.c.bf16 %v4617_v6, %v4616_v5  ;;  %v4555_v1 = vadd.f32 %v4504_v30, %v4275_v36  ;;  %v5904_v44 = vpop.f32.mrf.mxu0 }
 0x3a8   :  { %v4227_v61 = vpop.f32.mrf.mxu1  ;;  %v4592_v60 = vadd.f32 %v7836_v7, %v4557_v41 }
 0x3a9   :  { %v5271_v17 = vpack.c.bf16 %v4615_v59, %v4614_v25  ;;  %v4558_v58 = vadd.f32 %v5900_v38, %v4278_v13  ;;  %5306 = vst [vmem:[%s8010_s5 + $0x48] sm:$0xff] %v5276_v31   ;;  %v4276_v11 = vadd.f32 %v4227_v61, %v3996_v40  ;;  %v8108_v38 = vld [vmem:[#allocation29_spill] sm:$0xff]  ;;  %v4590_v23 = vadd.f32 %v7836_v7, %v4555_v1  ;;  %v4523_v39 = vpop.f32.mrf.mxu0 }
 0x3aa   :  { %v5859_v16 = vpop.f32.mrf.mxu1  ;;  %v3999_v0 = vadd.f32 %v8108_v38, %v3719_v56  ;;  %v4620_v10 = vmax.f32 %v4592_v60, 0.0 }
 0x3ab   :  { %5305 = vst [vmem:[%s8010_s5 + $0x40] sm:$0xff] %v5271_v17   ;;  %v4593_v30 = vadd.f32 %v7836_v7, %v4558_v58  ;;  %v4281_v26 = vadd.f32 %v5859_v16, %v4001_v14  ;;  %v4556_v48 = vadd.f32 %v4507_v27, %v4276_v11  ;;  %v4618_v62 = vmax.f32 %v4590_v23, 0.0 }
 0x3ac   :  { %v4240_v51 = vpop.f32.mrf.mxu1 }
 0x3ad   :  { %v4621_v20 = vmax.f32 %v4593_v30, 0.0  ;;  %v4561_v49 = vadd.f32 %v5903_v47, %v4281_v26  ;;  %v4279_v19 = vadd.f32 %v4240_v51, %v3999_v0  ;;  %v4591_v37 = vadd.f32 %v7836_v7, %v4556_v48 }
 0x3ae   :  { %v5860_v24 = vpop.f32.mrf.mxu1 }
 0x3af   :  { %v5286_v4 = vpack.c.bf16 %v4621_v20, %v4620_v10  ;;  %v4559_v29 = vadd.f32 %v4520_v53, %v4279_v19  ;;  %v4282_v34 = vadd.f32 %v5860_v24, %v4002_v42  ;;  %v4619_v57 = vmax.f32 %v4591_v37, 0.0 }
 0x3b0   :  { %v4243_v54 = vpop.f32.mrf.mxu1  ;;  %v4596_v27 = vadd.f32 %v7836_v7, %v4561_v49 }
 0x3b1   :  { %5308 = vst [vmem:[%s8010_s5 + $0x58] sm:$0xff] %v5286_v4   ;;  %v4562_v45 = vadd.f32 %v5904_v44, %v4282_v34  ;;  %v4280_v46 = vadd.f32 %v4243_v54, %v4000_v12  ;;  %v5281_v8 = vpack.c.bf16 %v4619_v57, %v4618_v62  ;;  %v4594_v22 = vadd.f32 %v7836_v7, %v4559_v29 }
 0x3b2   :  { %v4624_v55 = vmax.f32 %v4596_v27, 0.0 }
 0x3b3   :  { %v4597_v28 = vadd.f32 %v7836_v7, %v4562_v45  ;;  %v4560_v18 = vadd.f32 %v4523_v39, %v4280_v46  ;;  %5307 = vst [vmem:[%s8010_s5 + $0x50] sm:$0xff] %v5281_v8   ;;  %v4622_v47 = vmax.f32 %v4594_v22, 0.0 }
 0x3b5   :  { %v4625_v41 = vmax.f32 %v4597_v28, 0.0  ;;  %v4595_v36 = vadd.f32 %v7836_v7, %v4560_v18 }
 0x3b7   :  { %v5296_v5 = vpack.c.bf16 %v4625_v41, %v4624_v55  ;;  %v4623_v6 = vmax.f32 %v4595_v36, 0.0 }
 0x3b9   :  { %5310 = vst [vmem:[%s8010_s5 + $0x68] sm:$0xff] %v5296_v5   ;;  %v5291_v3 = vpack.c.bf16 %v4623_v6, %v4622_v47 }
 0x3bb   :  { %5309 = vst [vmem:[%s8010_s5 + $0x60] sm:$0xff] %v5291_v3  }

// kernel: cnn_model_forward.7
= control target key start
LH: loop header
LB: loop body
LE: loop exit
PB: predicated region body
PF: predicated region fallthrough
CT: control target
= control target key end

     0   :  { %vm4133_vm0 = vmmov 0   ;;  %s5114_s1 = inlined_call_operand.vmem [shape: bf16[3840,128], index: 1, kind: input, shape index: {}]   ;;  %s5115_s0 = inlined_call_operand.vmem [shape: bf16[16,3840], index: 0, kind: input, shape index: {}]   ;;  %s5116_s3 = inlined_call_operand.vmem [shape: bf16[128,128], index: 3, kind: input, shape index: {}]   ;;  %s5117_s5 = inlined_call_operand.vmem [shape: bf16[128,128], index: 5, kind: input, shape index: {}]   ;;  %s5118_s2 = inlined_call_operand.vmem [shape: f32[1,128], index: 2, kind: input, shape index: {}]   ;;  %s5119_s7 = inlined_call_operand.vmem [shape: bf16[128,128], index: 7, kind: input, shape index: {}]   ;;  %s5120_s4 = inlined_call_operand.vmem [shape: f32[1,128], index: 4, kind: input, shape index: {}]   ;;  %s5121_s6 = inlined_call_operand.vmem [shape: f32[1,128], index: 6, kind: input, shape index: {}]   ;;  %s5122_s8 = inlined_call_operand.vmem [shape: f32[1,128], index: 8, kind: input, shape index: {}]   ;;  %s5123_s9 = inlined_call_operand.vmem [shape: f32[16,128], index: 9, kind: output, shape index: {}]  }
   0x1   :  { %v3823_v0 = vld [vmem:[%s5114_s1 + $0x78] sm:$0xff]   ;;  %v3827_v4 = vld [vmem:[%s5114_s1 + $0x70] sm:$0xff]   ;;  %v3831_v8 = vld [vmem:[%s5114_s1 + $0x68] sm:$0xff]  }
   0x2   :  { %v3824_v1 = vld [vmem:[%s5114_s1 + $0x38] sm:$0xff]   ;;  %3404 = vmatprep.subr.bf16.mxu0 %v3823_v0  ;;  %v3828_v5 = vld [vmem:[%s5114_s1 + $0x30] sm:$0xff]   ;;  %v3832_v9 = vld [vmem:[%s5114_s1 + $0x28] sm:$0xff]  }
   0x3   :  { %v3825_v2 = vld [vmem:[%s5114_s1 + $0xf8] sm:$0xff]   ;;  %3405 = vmatpush3.bf16.msra.mxu0 %v3824_v1  ;;  %v3829_v6 = vld [vmem:[%s5114_s1 + $0xf0] sm:$0xff]   ;;  %v3833_v10 = vld [vmem:[%s5114_s1 + $0xe8] sm:$0xff]  }
   0x4   :  { %v3826_v3 = vld [vmem:[%s5114_s1 + $0xb8] sm:$0xff]   ;;  %3426 = vmatprep.subr.bf16.mxu1 %v3825_v2  ;;  %3406 = vmatprep.subr.bf16.mxu0 %v3827_v4  ;;  %v3830_v7 = vld [vmem:[%s5114_s1 + $0xb0] sm:$0xff]   ;;  %v3834_v11 = vld [vmem:[%s5114_s1 + $0xa8] sm:$0xff]  }
   0x5   :  { %3427 = vmatpush3.bf16.msra.mxu1 %v3826_v3  ;;  %v3835_v12 = vld [vmem:[%s5114_s1 + $0x60] sm:$0xff]   ;;  %v3839_v16 = vld [vmem:[%s5114_s1 + $0x58] sm:$0xff]   ;;  %v3843_v20 = vld [vmem:[%s5114_s1 + $0x50] sm:$0xff]  }
   0x6   :  { %3428 = vmatprep.subr.bf16.mxu1 %v3829_v6  ;;  %v3836_v13 = vld [vmem:[%s5114_s1 + $0x20] sm:$0xff]   ;;  %v3840_v17 = vld [vmem:[%s5114_s1 + $0x18] sm:$0xff]   ;;  %v3844_v21 = vld [vmem:[%s5114_s1 + $0x10] sm:$0xff]  }
   0x7   :  { %3407 = vmatpush3.bf16.msra.mxu0 %v3828_v5  ;;  %v3837_v14 = vld [vmem:[%s5114_s1 + $0xe0] sm:$0xff]   ;;  %v3841_v18 = vld [vmem:[%s5114_s1 + $0xd8] sm:$0xff]   ;;  %v3845_v22 = vld [vmem:[%s5114_s1 + $0xd0] sm:$0xff]  }
   0x8   :  { %3408 = vmatprep.subr.bf16.mxu0 %v3831_v8  ;;  %v3838_v15 = vld [vmem:[%s5114_s1 + $0xa0] sm:$0xff]   ;;  %v3842_v19 = vld [vmem:[%s5114_s1 + $0x98] sm:$0xff]   ;;  %v3846_v23 = vld [vmem:[%s5114_s1 + $0x90] sm:$0xff]  }
   0x9   :  { %3429 = vmatpush3.bf16.msra.mxu1 %v3830_v7  ;;  %v3847_v24 = vld [vmem:[%s5114_s1 + $0x48] sm:$0xff]   ;;  %v3851_v28 = vld [vmem:[%s5114_s1 + $0x40] sm:$0xff]   ;;  %v3858_v34 = vld [vmem:[%s5114_s1 + $0x178] sm:$0xff]  }
   0xa   :  { %3430 = vmatprep.subr.bf16.mxu1 %v3833_v10  ;;  %v3848_v25 = vld [vmem:[%s5114_s1 + $0x8] sm:$0xff]   ;;  %v3852_v29 = vld [vmem:[%s5114_s1] sm:$0xff]   ;;  %v3862_v37 = vld [vmem:[%s5114_s1 + $0x138] sm:$0xff]  }
   0xb   :  { %3409 = vmatpush3.bf16.msra.mxu0 %v3832_v9  ;;  %v3849_v26 = vld [vmem:[%s5114_s1 + $0xc8] sm:$0xff]   ;;  %v3853_v30 = vld [vmem:[%s5114_s1 + $0xc0] sm:$0xff]   ;;  %v3863_v38 = vld [vmem:[%s5114_s1 + $0x1f8] sm:$0xff]  }
   0xc   :  { %3410 = vmatprep.subr.bf16.mxu0 %v3835_v12  ;;  %v3850_v27 = vld [vmem:[%s5114_s1 + $0x88] sm:$0xff]   ;;  %v3854_v31 = vld [vmem:[%s5115_s0] ss:$120 sps:$4 sm:$0xff]   ;;  %v3856_v32 = vld [vmem:[%s5115_s0 + $0x4] ss:$120 sps:$4 sm:$0xff]  }
   0xd   :  { %3431 = vmatpush3.bf16.msra.mxu1 %v3834_v11  ;;  %v3857_v33 = vld [vmem:[%s5114_s1 + $0x80] sm:$0xff]   ;;  %2172 = vmatprep.mubr.bf16.mxu0 %v3856_v32  ;;  %v3864_v39 = vld [vmem:[%s5114_s1 + $0x1b8] sm:$0xff]   ;;  %v3865_v40 = vld [vmem:[%s5114_s1 + $0x170] sm:$0xff]  }
   0xe   :  { %3432 = vmatprep.subr.bf16.mxu1 %v3837_v14  ;;  %v3859_v35 = vld [vmem:[%s5115_s0 + $0x8] ss:$120 sps:$4 sm:$0xff]   ;;  %v3861_v36 = vld [vmem:[%s5115_s0 + $0xc] ss:$120 sps:$4 sm:$0xff]   ;;  %v3866_v41 = vld [vmem:[%s5114_s1 + $0x130] sm:$0xff]  }
   0xf   :  { %3411 = vmatpush3.bf16.msra.mxu0 %v3836_v13  ;;  %2213 = vmatprep.mubr.bf16.mxu1 %v3861_v36  ;;  %v3867_v42 = vld [vmem:[%s5114_s1 + $0x1f0] sm:$0xff]   ;;  %v3869_v44 = vld [vmem:[%s5114_s1 + $0x168] sm:$0xff]   ;;  %v3873_v48 = vld [vmem:[%s5114_s1 + $0x160] sm:$0xff]  }
  0x10   :  { %3412 = vmatprep.subr.bf16.mxu0 %v3839_v16  ;;  %v3868_v43 = vld [vmem:[%s5114_s1 + $0x1b0] sm:$0xff]   ;;  %v3870_v45 = vld [vmem:[%s5114_s1 + $0x128] sm:$0xff]   ;;  %v3874_v49 = vld [vmem:[%s5114_s1 + $0x120] sm:$0xff]  }
  0x11   :  { %3433 = vmatpush3.bf16.msra.mxu1 %v3838_v15  ;;  %v3871_v46 = vld [vmem:[%s5114_s1 + $0x1e8] sm:$0xff]   ;;  %v3875_v50 = vld [vmem:[%s5114_s1 + $0x1e0] sm:$0xff]   ;;  %v3877_v52 = vld [vmem:[%s5114_s1 + $0x158] sm:$0xff]  }
  0x12   :  { %3434 = vmatprep.subr.bf16.mxu1 %v3841_v18  ;;  %v3872_v47 = vld [vmem:[%s5114_s1 + $0x1a8] sm:$0xff]   ;;  %v3876_v51 = vld [vmem:[%s5114_s1 + $0x1a0] sm:$0xff]   ;;  %v3878_v53 = vld [vmem:[%s5114_s1 + $0x118] sm:$0xff]  }
  0x13   :  { %3413 = vmatpush3.bf16.msra.mxu0 %v3840_v17  ;;  %v3879_v54 = vld [vmem:[%s5114_s1 + $0x1d8] sm:$0xff]   ;;  %v3881_v56 = vld [vmem:[%s5114_s1 + $0x150] sm:$0xff]   ;;  %v3885_v60 = vld [vmem:[%s5114_s1 + $0x148] sm:$0xff]  }
  0x14   :  { %3414 = vmatprep.subr.bf16.mxu0 %v3843_v20  ;;  %v3880_v55 = vld [vmem:[%s5114_s1 + $0x198] sm:$0xff]   ;;  %v3882_v57 = vld [vmem:[%s5114_s1 + $0x110] sm:$0xff]   ;;  %v3886_v61 = vld [vmem:[%s5114_s1 + $0x108] sm:$0xff]  }
  0x15   :  { %3435 = vmatpush3.bf16.msra.mxu1 %v3842_v19  ;;  %v3883_v58 = vld [vmem:[%s5114_s1 + $0x1d0] sm:$0xff]   ;;  %v3887_v62 = vld [vmem:[%s5114_s1 + $0x1c8] sm:$0xff]   ;;  %v3889_v0 = vld [vmem:[%s5114_s1 + $0x140] sm:$0xff]  }
  0x16   :  { %3436 = vmatprep.subr.bf16.mxu1 %v3845_v22  ;;  %v3884_v59 = vld [vmem:[%s5114_s1 + $0x190] sm:$0xff]   ;;  %v3888_v63 = vld [vmem:[%s5114_s1 + $0x188] sm:$0xff]   ;;  %v3890_v1 = vld [vmem:[%s5114_s1 + $0x100] sm:$0xff]  }
  0x17   :  { %3415 = vmatpush3.bf16.msra.mxu0 %v3844_v21  ;;  %v3891_v2 = vld [vmem:[%s5114_s1 + $0x1c0] sm:$0xff]   ;;  %v3892_v3 = vld [vmem:[%s5115_s0 + $0x10] ss:$120 sps:$4 sm:$0xff]   ;;  %v3894_v4 = vld [vmem:[%s5115_s0 + $0x14] ss:$120 sps:$4 sm:$0xff]  }
  0x18   :  { %3416 = vmatprep.subr.bf16.mxu0 %v3847_v24  ;;  %v3895_v5 = vld [vmem:[%s5114_s1 + $0x180] sm:$0xff]   ;;  %v3896_v6 = vld [vmem:[%s5114_s1 + $0x278] sm:$0xff]   ;;  %v3903_v12 = vld [vmem:[%s5114_s1 + $0x270] sm:$0xff]  }
  0x19   :  { %3437 = vmatpush3.bf16.msra.mxu1 %v3846_v23  ;;  %v3897_v7 = vld [vmem:[%s5115_s0 + $0x18] ss:$120 sps:$4 sm:$0xff]   ;;  %v3899_v8 = vld [vmem:[%s5115_s0 + $0x1c] ss:$120 sps:$4 sm:$0xff]   ;;  %v3907_v16 = vld [vmem:[%s5114_s1 + $0x268] sm:$0xff]  }
  0x1a   :  { %3438 = vmatprep.subr.bf16.mxu1 %v3849_v26  ;;  %v3900_v9 = vld [vmem:[%s5114_s1 + $0x238] sm:$0xff]   ;;  %v3904_v13 = vld [vmem:[%s5114_s1 + $0x230] sm:$0xff]   ;;  %v3908_v17 = vld [vmem:[%s5114_s1 + $0x228] sm:$0xff]  }
  0x1b   :  { %3417 = vmatpush3.bf16.msra.mxu0 %v3848_v25  ;;  %v3901_v10 = vld [vmem:[%s5114_s1 + $0x2f8] sm:$0xff]   ;;  %v3905_v14 = vld [vmem:[%s5114_s1 + $0x2f0] sm:$0xff]   ;;  %v3909_v18 = vld [vmem:[%s5114_s1 + $0x2e8] sm:$0xff]  }
  0x1c   :  { %3418 = vmatprep.subr.bf16.mxu0 %v3851_v28  ;;  %v3902_v11 = vld [vmem:[%s5114_s1 + $0x2b8] sm:$0xff]   ;;  %v3906_v15 = vld [vmem:[%s5114_s1 + $0x2b0] sm:$0xff]   ;;  %v3910_v19 = vld [vmem:[%s5114_s1 + $0x2a8] sm:$0xff]  }
  0x1d   :  { %3439 = vmatpush3.bf16.msra.mxu1 %v3850_v27  ;;  %v3911_v20 = vld [vmem:[%s5114_s1 + $0x260] sm:$0xff]   ;;  %v3915_v24 = vld [vmem:[%s5114_s1 + $0x258] sm:$0xff]   ;;  %v3919_v28 = vld [vmem:[%s5114_s1 + $0x250] sm:$0xff]  }
  0x1e   :  { %3440 = vmatprep.subr.bf16.mxu1 %v3853_v30  ;;  %v3912_v21 = vld [vmem:[%s5114_s1 + $0x220] sm:$0xff]   ;;  %v3916_v25 = vld [vmem:[%s5114_s1 + $0x218] sm:$0xff]   ;;  %v3921_v30 = vld [vmem:[%s5114_s1 + $0x2d0] sm:$0xff]  }
  0x1f   :  { %3419 = vmatpush3.bf16.msra.mxu0 %v3852_v29  ;;  %v3913_v22 = vld [vmem:[%s5114_s1 + $0x2e0] sm:$0xff]   ;;  %v3917_v26 = vld [vmem:[%s5114_s1 + $0x2d8] sm:$0xff]   ;;  %v3920_v29 = vld [vmem:[%s5114_s1 + $0x210] sm:$0xff]  }
  0x20   :  { %3448 = vmatprep.subr.bf16.mxu0 %v3858_v34  ;;  %v3914_v23 = vld [vmem:[%s5114_s1 + $0x2a0] sm:$0xff]   ;;  %v3918_v27 = vld [vmem:[%s5114_s1 + $0x298] sm:$0xff]   ;;  %v3923_v32 = vld [vmem:[%s5114_s1 + $0x248] sm:$0xff]  }
  0x21   :  { %3441 = vmatpush3.bf16.msra.mxu1 %v3857_v33  ;;  %v3924_v33 = vld [vmem:[%s5114_s1 + $0x208] sm:$0xff]   ;;  %v3927_v36 = vld [vmem:[%s5114_s1 + $0x240] sm:$0xff]  }
  0x22   :  { %2173 = vmatmul.mubr.bf16.vlgmr.msra.gmra.mxu0 %v3854_v31  ;;  %3470 = vmatprep.subr.bf16.mxu1 %v3863_v38  ;;  %v3922_v31 = vld [vmem:[%s5114_s1 + $0x290] sm:$0xff]   ;;  %v3925_v34 = vld [vmem:[%s5114_s1 + $0x2c8] sm:$0xff]   ;;  %v3929_v38 = vld [vmem:[%s5114_s1 + $0x2c0] sm:$0xff]  }
  0x23   :  { %3449 = vmatpush3.bf16.msra.mxu0 %v3862_v37  ;;  %2254 = vmatprep.mubr.bf16.mxu0 %v3894_v4  ;;  %v3928_v37 = vld [vmem:[%s5114_s1 + $0x200] sm:$0xff]   ;;  %v3961_v4 = vld [vmem:[%s5114_s1 + $0x348] sm:$0xff]  }
  0x24   :  { %2214 = vmatmul.mubr.bf16.vlgmr.msra.gmra.mxu1 %v3859_v35  ;;  %3450 = vmatprep.subr.bf16.mxu0 %v3865_v40  ;;  %v3926_v35 = vld [vmem:[%s5114_s1 + $0x288] sm:$0xff]   ;;  %v3932_v40 = vld [vmem:[%s5115_s0 + $0x24] ss:$120 sps:$4 sm:$0xff]  }
  0x25   :  { %3471 = vmatpush3.bf16.msra.mxu1 %v3864_v39  ;;  %2295 = vmatprep.mubr.bf16.mxu1 %v3899_v8  ;;  %v3930_v39 = vld [vmem:[%s5115_s0 + $0x20] ss:$120 sps:$4 sm:$0xff]  }
  0x26   :  { %3472 = vmatprep.subr.bf16.mxu1 %v3867_v42  ;;  %v3934_v42 = vld [vmem:[%s5114_s1 + $0x378] sm:$0xff]   ;;  %v3965_v8 = vld [vmem:[%s5114_s1 + $0x340] sm:$0xff]  }
  0x27   :  { %3451 = vmatpush3.bf16.msra.mxu0 %v3866_v41  ;;  %v3933_v41 = vld [vmem:[%s5114_s1 + $0x280] sm:$0xff]  }
  0x28   :  { %3452 = vmatprep.subr.bf16.mxu0 %v3869_v44  ;;  %v3937_v44 = vld [vmem:[%s5115_s0 + $0x2c] ss:$120 sps:$4 sm:$0xff]  }
  0x29   :  { %3473 = vmatpush3.bf16.msra.mxu1 %v3868_v43  ;;  %v3935_v43 = vld [vmem:[%s5115_s0 + $0x28] ss:$120 sps:$4 sm:$0xff]  }
  0x2a   :  { %3474 = vmatprep.subr.bf16.mxu1 %v3871_v46  ;;  %v3939_v46 = vld [vmem:[%s5114_s1 + $0x3f8] sm:$0xff]  }
  0x2b   :  { %3453 = vmatpush3.bf16.msra.mxu0 %v3870_v45  ;;  %v3938_v45 = vld [vmem:[%s5114_s1 + $0x338] sm:$0xff]  }
  0x2c   :  { %3454 = vmatprep.subr.bf16.mxu0 %v3873_v48  ;;  %v3941_v48 = vld [vmem:[%s5114_s1 + $0x370] sm:$0xff]  }
  0x2d   :  { %3475 = vmatpush3.bf16.msra.mxu1 %v3872_v47  ;;  %v3940_v47 = vld [vmem:[%s5114_s1 + $0x3b8] sm:$0xff]  }
  0x2e   :  { %3476 = vmatprep.subr.bf16.mxu1 %v3875_v50  ;;  %v3943_v50 = vld [vmem:[%s5114_s1 + $0x3f0] sm:$0xff]  }
  0x2f   :  { %3455 = vmatpush3.bf16.msra.mxu0 %v3874_v49  ;;  %v3942_v49 = vld [vmem:[%s5114_s1 + $0x330] sm:$0xff]  }
  0x30   :  { %3456 = vmatprep.subr.bf16.mxu0 %v3877_v52  ;;  %v3945_v52 = vld [vmem:[%s5114_s1 + $0x368] sm:$0xff]  }
  0x31   :  { %3477 = vmatpush3.bf16.msra.mxu1 %v3876_v51  ;;  %v3944_v51 = vld [vmem:[%s5114_s1 + $0x3b0] sm:$0xff]  }
  0x32   :  { %3478 = vmatprep.subr.bf16.mxu1 %v3879_v54  ;;  %v3947_v54 = vld [vmem:[%s5114_s1 + $0x3e8] sm:$0xff]  }
  0x33   :  { %3457 = vmatpush3.bf16.msra.mxu0 %v3878_v53  ;;  %v3946_v53 = vld [vmem:[%s5114_s1 + $0x328] sm:$0xff]  }
  0x34   :  { %3458 = vmatprep.subr.bf16.mxu0 %v3881_v56  ;;  %v3949_v56 = vld [vmem:[%s5114_s1 + $0x360] sm:$0xff]  }
  0x35   :  { %3479 = vmatpush3.bf16.msra.mxu1 %v3880_v55  ;;  %v3948_v55 = vld [vmem:[%s5114_s1 + $0x3a8] sm:$0xff]  }
  0x36   :  { %3480 = vmatprep.subr.bf16.mxu1 %v3883_v58  ;;  %v3951_v58 = vld [vmem:[%s5114_s1 + $0x3e0] sm:$0xff]  }
  0x37   :  { %3459 = vmatpush3.bf16.msra.mxu0 %v3882_v57  ;;  %v3950_v57 = vld [vmem:[%s5114_s1 + $0x320] sm:$0xff]  }
  0x38   :  { %3460 = vmatprep.subr.bf16.mxu0 %v3885_v60  ;;  %v3953_v60 = vld [vmem:[%s5114_s1 + $0x358] sm:$0xff]  }
  0x39   :  { %3481 = vmatpush3.bf16.msra.mxu1 %v3884_v59  ;;  %v3952_v59 = vld [vmem:[%s5114_s1 + $0x3a0] sm:$0xff]  }
  0x3a   :  { %3482 = vmatprep.subr.bf16.mxu1 %v3887_v62  ;;  %v3955_v62 = vld [vmem:[%s5114_s1 + $0x3d8] sm:$0xff]  }
  0x3b   :  { %3461 = vmatpush3.bf16.msra.mxu0 %v3886_v61  ;;  %v3954_v61 = vld [vmem:[%s5114_s1 + $0x318] sm:$0xff]  }
  0x3c   :  { %3462 = vmatprep.subr.bf16.mxu0 %v3889_v0  ;;  %v3957_v0 = vld [vmem:[%s5114_s1 + $0x350] sm:$0xff]  }
  0x3d   :  { %3483 = vmatpush3.bf16.msra.mxu1 %v3888_v63  ;;  %v3956_v63 = vld [vmem:[%s5114_s1 + $0x398] sm:$0xff]  }
  0x3e   :  { %3484 = vmatprep.subr.bf16.mxu1 %v3891_v2  ;;  %v3959_v2 = vld [vmem:[%s5114_s1 + $0x3d0] sm:$0xff]  }
  0x3f   :  { %3463 = vmatpush3.bf16.msra.mxu0 %v3890_v1  ;;  %v3958_v1 = vld [vmem:[%s5114_s1 + $0x310] sm:$0xff]  }
  0x40   :  { %3492 = vmatprep.subr.bf16.mxu0 %v3896_v6  ;;  %v3963_v6 = vld [vmem:[%s5114_s1 + $0x3c8] sm:$0xff]  }
  0x41   :  { %3485 = vmatpush3.bf16.msra.mxu1 %v3895_v5  ;;  %v3962_v5 = vld [vmem:[%s5114_s1 + $0x308] sm:$0xff]  }
  0x42   :  { %2255 = vmatmul.mubr.bf16.vlgmr.msra.gmra.mxu0 %v3892_v3  ;;  %3514 = vmatprep.subr.bf16.mxu1 %v3901_v10  ;;  %v3960_v3 = vld [vmem:[%s5114_s1 + $0x390] sm:$0xff]   ;;  %v3967_v10 = vld [vmem:[%s5114_s1 + $0x3c0] sm:$0xff]  }
  0x43   :  { %3493 = vmatpush3.bf16.msra.mxu0 %v3900_v9  ;;  %2336 = vmatprep.mubr.bf16.mxu0 %v3932_v40  ;;  %v3966_v9 = vld [vmem:[%s5114_s1 + $0x300] sm:$0xff]   ;;  %v3999_v40 = vld [vmem:[%s5114_s1 + $0x448] sm:$0xff]  }
  0x44   :  { %2296 = vmatmul.mubr.bf16.vlgmr.msra.gmra.mxu1 %v3897_v7  ;;  %3494 = vmatprep.subr.bf16.mxu0 %v3903_v12  ;;  %v3964_v7 = vld [vmem:[%s5114_s1 + $0x388] sm:$0xff]  }
  0x45   :  { %3515 = vmatpush3.bf16.msra.mxu1 %v3902_v11  ;;  %2377 = vmatprep.mubr.bf16.mxu1 %v3937_v44  ;;  %v3968_v11 = vld [vmem:[%s5115_s0 + $0x30] ss:$120 sps:$4 sm:$0xff]   ;;  %v3970_v12 = vld [vmem:[%s5115_s0 + $0x34] ss:$120 sps:$4 sm:$0xff]   ;;  %v4003_v44 = vld [vmem:[%s5114_s1 + $0x440] sm:$0xff]  }
  0x46   :  { %3516 = vmatprep.subr.bf16.mxu1 %v3905_v14  ;;  %v3972_v14 = vld [vmem:[%s5114_s1 + $0x478] sm:$0xff]  }
  0x47   :  { %3495 = vmatpush3.bf16.msra.mxu0 %v3904_v13  ;;  %v3971_v13 = vld [vmem:[%s5114_s1 + $0x380] sm:$0xff]  }
  0x48   :  { %3496 = vmatprep.subr.bf16.mxu0 %v3907_v16  ;;  %v3975_v16 = vld [vmem:[%s5115_s0 + $0x3c] ss:$120 sps:$4 sm:$0xff]  }
  0x49   :  { %3517 = vmatpush3.bf16.msra.mxu1 %v3906_v15  ;;  %v3973_v15 = vld [vmem:[%s5115_s0 + $0x38] ss:$120 sps:$4 sm:$0xff]  }
  0x4a   :  { %3518 = vmatprep.subr.bf16.mxu1 %v3909_v18  ;;  %v3977_v18 = vld [vmem:[%s5114_s1 + $0x4f8] sm:$0xff]  }
  0x4b   :  { %3497 = vmatpush3.bf16.msra.mxu0 %v3908_v17  ;;  %v3976_v17 = vld [vmem:[%s5114_s1 + $0x438] sm:$0xff]  }
  0x4c   :  { %3498 = vmatprep.subr.bf16.mxu0 %v3911_v20  ;;  %v3979_v20 = vld [vmem:[%s5114_s1 + $0x470] sm:$0xff]  }
  0x4d   :  { %3519 = vmatpush3.bf16.msra.mxu1 %v3910_v19  ;;  %v3978_v19 = vld [vmem:[%s5114_s1 + $0x4b8] sm:$0xff]  }
  0x4e   :  { %3520 = vmatprep.subr.bf16.mxu1 %v3913_v22  ;;  %v3981_v22 = vld [vmem:[%s5114_s1 + $0x4f0] sm:$0xff]  }
  0x4f   :  { %3499 = vmatpush3.bf16.msra.mxu0 %v3912_v21  ;;  %v3980_v21 = vld [vmem:[%s5114_s1 + $0x430] sm:$0xff]  }
  0x50   :  { %3500 = vmatprep.subr.bf16.mxu0 %v3915_v24  ;;  %v3983_v24 = vld [vmem:[%s5114_s1 + $0x468] sm:$0xff]  }
  0x51   :  { %3521 = vmatpush3.bf16.msra.mxu1 %v3914_v23  ;;  %v3982_v23 = vld [vmem:[%s5114_s1 + $0x4b0] sm:$0xff]  }
  0x52   :  { %3522 = vmatprep.subr.bf16.mxu1 %v3917_v26  ;;  %v3985_v26 = vld [vmem:[%s5114_s1 + $0x4e8] sm:$0xff]  }
  0x53   :  { %3501 = vmatpush3.bf16.msra.mxu0 %v3916_v25  ;;  %v3984_v25 = vld [vmem:[%s5114_s1 + $0x428] sm:$0xff]  }
  0x54   :  { %3502 = vmatprep.subr.bf16.mxu0 %v3919_v28  ;;  %v3987_v28 = vld [vmem:[%s5114_s1 + $0x460] sm:$0xff]  }
  0x55   :  { %3523 = vmatpush3.bf16.msra.mxu1 %v3918_v27  ;;  %v3986_v27 = vld [vmem:[%s5114_s1 + $0x4a8] sm:$0xff]  }
  0x56   :  { %3524 = vmatprep.subr.bf16.mxu1 %v3921_v30  ;;  %v3989_v30 = vld [vmem:[%s5114_s1 + $0x4e0] sm:$0xff]  }
  0x57   :  { %3503 = vmatpush3.bf16.msra.mxu0 %v3920_v29  ;;  %v3988_v29 = vld [vmem:[%s5114_s1 + $0x420] sm:$0xff]  }
  0x58   :  { %3504 = vmatprep.subr.bf16.mxu0 %v3923_v32  ;;  %v3991_v32 = vld [vmem:[%s5114_s1 + $0x458] sm:$0xff]  }
  0x59   :  { %3525 = vmatpush3.bf16.msra.mxu1 %v3922_v31  ;;  %v3990_v31 = vld [vmem:[%s5114_s1 + $0x4a0] sm:$0xff]  }
  0x5a   :  { %3526 = vmatprep.subr.bf16.mxu1 %v3925_v34  ;;  %v3993_v34 = vld [vmem:[%s5114_s1 + $0x4d8] sm:$0xff]  }
  0x5b   :  { %3505 = vmatpush3.bf16.msra.mxu0 %v3924_v33  ;;  %v3992_v33 = vld [vmem:[%s5114_s1 + $0x418] sm:$0xff]  }
  0x5c   :  { %3506 = vmatprep.subr.bf16.mxu0 %v3927_v36  ;;  %v3995_v36 = vld [vmem:[%s5114_s1 + $0x450] sm:$0xff]  }
  0x5d   :  { %3527 = vmatpush3.bf16.msra.mxu1 %v3926_v35  ;;  %v3994_v35 = vld [vmem:[%s5114_s1 + $0x498] sm:$0xff]  }
  0x5e   :  { %3528 = vmatprep.subr.bf16.mxu1 %v3929_v38  ;;  %v3997_v38 = vld [vmem:[%s5114_s1 + $0x4d0] sm:$0xff]  }
  0x5f   :  { %3507 = vmatpush3.bf16.msra.mxu0 %v3928_v37  ;;  %v3996_v37 = vld [vmem:[%s5114_s1 + $0x410] sm:$0xff]  }
  0x60   :  { %3536 = vmatprep.subr.bf16.mxu0 %v3934_v42  ;;  %v4001_v42 = vld [vmem:[%s5114_s1 + $0x4c8] sm:$0xff]  }
  0x61   :  { %3529 = vmatpush3.bf16.msra.mxu1 %v3933_v41  ;;  %v4000_v41 = vld [vmem:[%s5114_s1 + $0x408] sm:$0xff]  }
  0x62   :  { %2337 = vmatmul.mubr.bf16.vlgmr.msra.gmra.mxu0 %v3930_v39  ;;  %3558 = vmatprep.subr.bf16.mxu1 %v3939_v46  ;;  %v3998_v39 = vld [vmem:[%s5114_s1 + $0x490] sm:$0xff]   ;;  %v4005_v46 = vld [vmem:[%s5114_s1 + $0x4c0] sm:$0xff]  }
  0x63   :  { %3537 = vmatpush3.bf16.msra.mxu0 %v3938_v45  ;;  %2418 = vmatprep.mubr.bf16.mxu0 %v3970_v12  ;;  %v4004_v45 = vld [vmem:[%s5114_s1 + $0x400] sm:$0xff]   ;;  %v4037_v12 = vld [vmem:[%s5114_s1 + $0x548] sm:$0xff]  }
  0x64   :  { %2378 = vmatmul.mubr.bf16.vlgmr.msra.gmra.mxu1 %v3935_v43  ;;  %3538 = vmatprep.subr.bf16.mxu0 %v3941_v48  ;;  %v4002_v43 = vld [vmem:[%s5114_s1 + $0x488] sm:$0xff]   ;;  %v4008_v48 = vld [vmem:[%s5115_s0 + $0x44] ss:$120 sps:$4 sm:$0xff]  }
  0x65   :  { %3559 = vmatpush3.bf16.msra.mxu1 %v3940_v47  ;;  %2459 = vmatprep.mubr.bf16.mxu1 %v3975_v16  ;;  %v4006_v47 = vld [vmem:[%s5115_s0 + $0x40] ss:$120 sps:$4 sm:$0xff]  }
  0x66   :  { %3560 = vmatprep.subr.bf16.mxu1 %v3943_v50  ;;  %v4010_v50 = vld [vmem:[%s5114_s1 + $0x578] sm:$0xff]   ;;  %v4041_v16 = vld [vmem:[%s5114_s1 + $0x540] sm:$0xff]  }
  0x67   :  { %3539 = vmatpush3.bf16.msra.mxu0 %v3942_v49  ;;  %v4009_v49 = vld [vmem:[%s5114_s1 + $0x480] sm:$0xff]  }
  0x68   :  { %3540 = vmatprep.subr.bf16.mxu0 %v3945_v52  ;;  %v4013_v52 = vld [vmem:[%s5115_s0 + $0x4c] ss:$120 sps:$4 sm:$0xff]  }
  0x69   :  { %3561 = vmatpush3.bf16.msra.mxu1 %v3944_v51  ;;  %v4011_v51 = vld [vmem:[%s5115_s0 + $0x48] ss:$120 sps:$4 sm:$0xff]  }
  0x6a   :  { %3562 = vmatprep.subr.bf16.mxu1 %v3947_v54  ;;  %v4015_v54 = vld [vmem:[%s5114_s1 + $0x5f8] sm:$0xff]  }
  0x6b   :  { %3541 = vmatpush3.bf16.msra.mxu0 %v3946_v53  ;;  %v4014_v53 = vld [vmem:[%s5114_s1 + $0x538] sm:$0xff]  }
  0x6c   :  { %3542 = vmatprep.subr.bf16.mxu0 %v3949_v56  ;;  %v4017_v56 = vld [vmem:[%s5114_s1 + $0x570] sm:$0xff]  }
  0x6d   :  { %3563 = vmatpush3.bf16.msra.mxu1 %v3948_v55  ;;  %v4016_v55 = vld [vmem:[%s5114_s1 + $0x5b8] sm:$0xff]  }
  0x6e   :  { %3564 = vmatprep.subr.bf16.mxu1 %v3951_v58  ;;  %v4019_v58 = vld [vmem:[%s5114_s1 + $0x5f0] sm:$0xff]  }
  0x6f   :  { %3543 = vmatpush3.bf16.msra.mxu0 %v3950_v57  ;;  %v4018_v57 = vld [vmem:[%s5114_s1 + $0x530] sm:$0xff]  }
  0x70   :  { %3544 = vmatprep.subr.bf16.mxu0 %v3953_v60  ;;  %v4021_v60 = vld [vmem:[%s5114_s1 + $0x568] sm:$0xff]  }
  0x71   :  { %3565 = vmatpush3.bf16.msra.mxu1 %v3952_v59  ;;  %v4020_v59 = vld [vmem:[%s5114_s1 + $0x5b0] sm:$0xff]  }
  0x72   :  { %3566 = vmatprep.subr.bf16.mxu1 %v3955_v62  ;;  %v4023_v62 = vld [vmem:[%s5114_s1 + $0x5e8] sm:$0xff]  }
  0x73   :  { %3545 = vmatpush3.bf16.msra.mxu0 %v3954_v61  ;;  %v4022_v61 = vld [vmem:[%s5114_s1 + $0x528] sm:$0xff]  }
  0x74   :  { %3546 = vmatprep.subr.bf16.mxu0 %v3957_v0  ;;  %v4025_v0 = vld [vmem:[%s5114_s1 + $0x560] sm:$0xff]  }
  0x75   :  { %3567 = vmatpush3.bf16.msra.mxu1 %v3956_v63  ;;  %v4024_v63 = vld [vmem:[%s5114_s1 + $0x5a8] sm:$0xff]  }
  0x76   :  { %3568 = vmatprep.subr.bf16.mxu1 %v3959_v2  ;;  %v4027_v2 = vld [vmem:[%s5114_s1 + $0x5e0] sm:$0xff]  }
  0x77   :  { %3547 = vmatpush3.bf16.msra.mxu0 %v3958_v1  ;;  %v4026_v1 = vld [vmem:[%s5114_s1 + $0x520] sm:$0xff]  }
  0x78   :  { %3548 = vmatprep.subr.bf16.mxu0 %v3961_v4  ;;  %v4029_v4 = vld [vmem:[%s5114_s1 + $0x558] sm:$0xff]  }
  0x79   :  { %3569 = vmatpush3.bf16.msra.mxu1 %v3960_v3  ;;  %v4028_v3 = vld [vmem:[%s5114_s1 + $0x5a0] sm:$0xff]  }
  0x7a   :  { %3570 = vmatprep.subr.bf16.mxu1 %v3963_v6  ;;  %v4031_v6 = vld [vmem:[%s5114_s1 + $0x5d8] sm:$0xff]  }
  0x7b   :  { %3549 = vmatpush3.bf16.msra.mxu0 %v3962_v5  ;;  %v4030_v5 = vld [vmem:[%s5114_s1 + $0x518] sm:$0xff]  }
  0x7c   :  { %3550 = vmatprep.subr.bf16.mxu0 %v3965_v8  ;;  %v4033_v8 = vld [vmem:[%s5114_s1 + $0x550] sm:$0xff]  }
  0x7d   :  { %3571 = vmatpush3.bf16.msra.mxu1 %v3964_v7  ;;  %v4032_v7 = vld [vmem:[%s5114_s1 + $0x598] sm:$0xff]  }
  0x7e   :  { %3572 = vmatprep.subr.bf16.mxu1 %v3967_v10  ;;  %v4035_v10 = vld [vmem:[%s5114_s1 + $0x5d0] sm:$0xff]  }
  0x7f   :  { %3551 = vmatpush3.bf16.msra.mxu0 %v3966_v9  ;;  %v4034_v9 = vld [vmem:[%s5114_s1 + $0x510] sm:$0xff]  }
  0x80   :  { %3580 = vmatprep.subr.bf16.mxu0 %v3972_v14  ;;  %v4039_v14 = vld [vmem:[%s5114_s1 + $0x5c8] sm:$0xff]  }
  0x81   :  { %3573 = vmatpush3.bf16.msra.mxu1 %v3971_v13  ;;  %v4038_v13 = vld [vmem:[%s5114_s1 + $0x508] sm:$0xff]  }
  0x82   :  { %2419 = vmatmul.mubr.bf16.vlgmr.msra.gmra.mxu0 %v3968_v11  ;;  %3602 = vmatprep.subr.bf16.mxu1 %v3977_v18  ;;  %v4036_v11 = vld [vmem:[%s5114_s1 + $0x590] sm:$0xff]   ;;  %v4043_v18 = vld [vmem:[%s5114_s1 + $0x5c0] sm:$0xff]  }
  0x83   :  { %3581 = vmatpush3.bf16.msra.mxu0 %v3976_v17  ;;  %2500 = vmatprep.mubr.bf16.mxu0 %v4008_v48  ;;  %v4042_v17 = vld [vmem:[%s5114_s1 + $0x500] sm:$0xff]   ;;  %v4075_v48 = vld [vmem:[%s5114_s1 + $0x648] sm:$0xff]  }
  0x84   :  { %2460 = vmatmul.mubr.bf16.vlgmr.msra.gmra.mxu1 %v3973_v15  ;;  %3582 = vmatprep.subr.bf16.mxu0 %v3979_v20  ;;  %v4040_v15 = vld [vmem:[%s5114_s1 + $0x588] sm:$0xff]  }
  0x85   :  { %3603 = vmatpush3.bf16.msra.mxu1 %v3978_v19  ;;  %2541 = vmatprep.mubr.bf16.mxu1 %v4013_v52  ;;  %v4044_v19 = vld [vmem:[%s5115_s0 + $0x50] ss:$120 sps:$4 sm:$0xff]   ;;  %v4046_v20 = vld [vmem:[%s5115_s0 + $0x54] ss:$120 sps:$4 sm:$0xff]   ;;  %v4079_v52 = vld [vmem:[%s5114_s1 + $0x640] sm:$0xff]  }
  0x86   :  { %3604 = vmatprep.subr.bf16.mxu1 %v3981_v22  ;;  %v4048_v22 = vld [vmem:[%s5114_s1 + $0x678] sm:$0xff]  }
  0x87   :  { %3583 = vmatpush3.bf16.msra.mxu0 %v3980_v21  ;;  %v4047_v21 = vld [vmem:[%s5114_s1 + $0x580] sm:$0xff]  }
  0x88   :  { %3584 = vmatprep.subr.bf16.mxu0 %v3983_v24  ;;  %v4051_v24 = vld [vmem:[%s5115_s0 + $0x5c] ss:$120 sps:$4 sm:$0xff]  }
  0x89   :  { %3605 = vmatpush3.bf16.msra.mxu1 %v3982_v23  ;;  %v4049_v23 = vld [vmem:[%s5115_s0 + $0x58] ss:$120 sps:$4 sm:$0xff]  }
  0x8a   :  { %3606 = vmatprep.subr.bf16.mxu1 %v3985_v26  ;;  %v4053_v26 = vld [vmem:[%s5114_s1 + $0x6f8] sm:$0xff]  }
  0x8b   :  { %3585 = vmatpush3.bf16.msra.mxu0 %v3984_v25  ;;  %v4052_v25 = vld [vmem:[%s5114_s1 + $0x638] sm:$0xff]  }
  0x8c   :  { %3586 = vmatprep.subr.bf16.mxu0 %v3987_v28  ;;  %v4055_v28 = vld [vmem:[%s5114_s1 + $0x670] sm:$0xff]  }
  0x8d   :  { %3607 = vmatpush3.bf16.msra.mxu1 %v3986_v27  ;;  %v4054_v27 = vld [vmem:[%s5114_s1 + $0x6b8] sm:$0xff]  }
  0x8e   :  { %3608 = vmatprep.subr.bf16.mxu1 %v3989_v30  ;;  %v4057_v30 = vld [vmem:[%s5114_s1 + $0x6f0] sm:$0xff]  }
  0x8f   :  { %3587 = vmatpush3.bf16.msra.mxu0 %v3988_v29  ;;  %v4056_v29 = vld [vmem:[%s5114_s1 + $0x630] sm:$0xff]  }
  0x90   :  { %3588 = vmatprep.subr.bf16.mxu0 %v3991_v32  ;;  %v4059_v32 = vld [vmem:[%s5114_s1 + $0x668] sm:$0xff]  }
  0x91   :  { %3609 = vmatpush3.bf16.msra.mxu1 %v3990_v31  ;;  %v4058_v31 = vld [vmem:[%s5114_s1 + $0x6b0] sm:$0xff]  }
  0x92   :  { %3610 = vmatprep.subr.bf16.mxu1 %v3993_v34  ;;  %v4061_v34 = vld [vmem:[%s5114_s1 + $0x6e8] sm:$0xff]  }
  0x93   :  { %3589 = vmatpush3.bf16.msra.mxu0 %v3992_v33  ;;  %v4060_v33 = vld [vmem:[%s5114_s1 + $0x628] sm:$0xff]  }
  0x94   :  { %3590 = vmatprep.subr.bf16.mxu0 %v3995_v36  ;;  %v4063_v36 = vld [vmem:[%s5114_s1 + $0x660] sm:$0xff]  }
  0x95   :  { %3611 = vmatpush3.bf16.msra.mxu1 %v3994_v35  ;;  %v4062_v35 = vld [vmem:[%s5114_s1 + $0x6a8] sm:$0xff]  }
  0x96   :  { %3612 = vmatprep.subr.bf16.mxu1 %v3997_v38  ;;  %v4065_v38 = vld [vmem:[%s5114_s1 + $0x6e0] sm:$0xff]  }
  0x97   :  { %3591 = vmatpush3.bf16.msra.mxu0 %v3996_v37  ;;  %v4064_v37 = vld [vmem:[%s5114_s1 + $0x620] sm:$0xff]  }
  0x98   :  { %3592 = vmatprep.subr.bf16.mxu0 %v3999_v40  ;;  %v4067_v40 = vld [vmem:[%s5114_s1 + $0x658] sm:$0xff]  }
  0x99   :  { %3613 = vmatpush3.bf16.msra.mxu1 %v3998_v39  ;;  %v4066_v39 = vld [vmem:[%s5114_s1 + $0x6a0] sm:$0xff]  }
  0x9a   :  { %3614 = vmatprep.subr.bf16.mxu1 %v4001_v42  ;;  %v4069_v42 = vld [vmem:[%s5114_s1 + $0x6d8] sm:$0xff]  }
  0x9b   :  { %3593 = vmatpush3.bf16.msra.mxu0 %v4000_v41  ;;  %v4068_v41 = vld [vmem:[%s5114_s1 + $0x618] sm:$0xff]  }
  0x9c   :  { %3594 = vmatprep.subr.bf16.mxu0 %v4003_v44  ;;  %v4071_v44 = vld [vmem:[%s5114_s1 + $0x650] sm:$0xff]  }
  0x9d   :  { %3615 = vmatpush3.bf16.msra.mxu1 %v4002_v43  ;;  %v4070_v43 = vld [vmem:[%s5114_s1 + $0x698] sm:$0xff]  }
  0x9e   :  { %3616 = vmatprep.subr.bf16.mxu1 %v4005_v46  ;;  %v4073_v46 = vld [vmem:[%s5114_s1 + $0x6d0] sm:$0xff]  }
  0x9f   :  { %3595 = vmatpush3.bf16.msra.mxu0 %v4004_v45  ;;  %v4072_v45 = vld [vmem:[%s5114_s1 + $0x610] sm:$0xff]  }
  0xa0   :  { %3624 = vmatprep.subr.bf16.mxu0 %v4010_v50  ;;  %v4077_v50 = vld [vmem:[%s5114_s1 + $0x6c8] sm:$0xff]  }
  0xa1   :  { %3617 = vmatpush3.bf16.msra.mxu1 %v4009_v49  ;;  %v4076_v49 = vld [vmem:[%s5114_s1 + $0x608] sm:$0xff]  }
  0xa2   :  { %2501 = vmatmul.mubr.bf16.vlgmr.msra.gmra.mxu0 %v4006_v47  ;;  %3646 = vmatprep.subr.bf16.mxu1 %v4015_v54  ;;  %v4074_v47 = vld [vmem:[%s5114_s1 + $0x690] sm:$0xff]   ;;  %v4081_v54 = vld [vmem:[%s5114_s1 + $0x6c0] sm:$0xff]  }
  0xa3   :  { %3625 = vmatpush3.bf16.msra.mxu0 %v4014_v53  ;;  %2582 = vmatprep.mubr.bf16.mxu0 %v4046_v20  ;;  %v4080_v53 = vld [vmem:[%s5114_s1 + $0x600] sm:$0xff]   ;;  %v4113_v20 = vld [vmem:[%s5116_s3 + $0x10] sm:$0xff]  }
  0xa4   :  { %2542 = vmatmul.mubr.bf16.vlgmr.msra.gmra.mxu1 %v4011_v51  ;;  %3626 = vmatprep.subr.bf16.mxu0 %v4017_v56  ;;  %v4078_v51 = vld [vmem:[%s5114_s1 + $0x688] sm:$0xff]   ;;  %v4084_v56 = vld [vmem:[%s5115_s0 + $0x64] ss:$120 sps:$4 sm:$0xff]  }
  0xa5   :  { %3647 = vmatpush3.bf16.msra.mxu1 %v4016_v55  ;;  %2623 = vmatprep.mubr.bf16.mxu1 %v4051_v24  ;;  %v4082_v55 = vld [vmem:[%s5115_s0 + $0x60] ss:$120 sps:$4 sm:$0xff]   ;;  %v4117_v24 = vld [vmem:[%s5117_s5 + $0x30] sm:$0xff]  }
  0xa6   :  { %3648 = vmatprep.subr.bf16.mxu1 %v4019_v58  ;;  %v4086_v58 = vld [vmem:[%s5114_s1 + $0x778] sm:$0xff]  }
  0xa7   :  { %3627 = vmatpush3.bf16.msra.mxu0 %v4018_v57  ;;  %v4085_v57 = vld [vmem:[%s5114_s1 + $0x680] sm:$0xff]  }
  0xa8   :  { %3628 = vmatprep.subr.bf16.mxu0 %v4021_v60  ;;  %v4089_v60 = vld [vmem:[%s5115_s0 + $0x6c] ss:$120 sps:$4 sm:$0xff]  }
  0xa9   :  { %3649 = vmatpush3.bf16.msra.mxu1 %v4020_v59  ;;  %v4087_v59 = vld [vmem:[%s5115_s0 + $0x68] ss:$120 sps:$4 sm:$0xff]  }
  0xaa   :  { %3650 = vmatprep.subr.bf16.mxu1 %v4023_v62  ;;  %v4091_v62 = vld [vmem:[%s5114_s1 + $0x770] sm:$0xff]  }
  0xab   :  { %3629 = vmatpush3.bf16.msra.mxu0 %v4022_v61  ;;  %v4090_v61 = vld [vmem:[%s5114_s1 + $0x738] sm:$0xff]  }
  0xac   :  { %3630 = vmatprep.subr.bf16.mxu0 %v4025_v0  ;;  %v4093_v0 = vld [vmem:[%s5114_s1 + $0x768] sm:$0xff]  }
  0xad   :  { %3651 = vmatpush3.bf16.msra.mxu1 %v4024_v63  ;;  %v4092_v63 = vld [vmem:[%s5114_s1 + $0x730] sm:$0xff]  }
  0xae   :  { %3652 = vmatprep.subr.bf16.mxu1 %v4027_v2  ;;  %v4095_v2 = vld [vmem:[%s5114_s1 + $0x760] sm:$0xff]  }
  0xaf   :  { %3631 = vmatpush3.bf16.msra.mxu0 %v4026_v1  ;;  %v4094_v1 = vld [vmem:[%s5114_s1 + $0x728] sm:$0xff]  }
  0xb0   :  { %3632 = vmatprep.subr.bf16.mxu0 %v4029_v4  ;;  %v4097_v4 = vld [vmem:[%s5114_s1 + $0x758] sm:$0xff]  }
  0xb1   :  { %3653 = vmatpush3.bf16.msra.mxu1 %v4028_v3  ;;  %v4096_v3 = vld [vmem:[%s5114_s1 + $0x720] sm:$0xff]  }
  0xb2   :  { %3654 = vmatprep.subr.bf16.mxu1 %v4031_v6  ;;  %v4099_v6 = vld [vmem:[%s5114_s1 + $0x750] sm:$0xff]  }
  0xb3   :  { %3633 = vmatpush3.bf16.msra.mxu0 %v4030_v5  ;;  %v4098_v5 = vld [vmem:[%s5114_s1 + $0x718] sm:$0xff]  }
  0xb4   :  { %3634 = vmatprep.subr.bf16.mxu0 %v4033_v8  ;;  %v4100_v8 = vld [vmem:[%s5114_s1 + $0x710] sm:$0xff]  }
  0xb5   :  { %3655 = vmatpush3.bf16.msra.mxu1 %v4032_v7  ;;  %v4107_v7 = vld [vmem:[%s5115_s0 + $0x74] ss:$120 sps:$4 sm:$0xff]  }
  0xb6   :  { %3656 = vmatprep.subr.bf16.mxu1 %v4035_v10  ;;  %v4102_v10 = vld [vmem:[%s5114_s1 + $0x708] sm:$0xff]  }
  0xb7   :  { %3635 = vmatpush3.bf16.msra.mxu0 %v4034_v9  ;;  %v4101_v9 = vld [vmem:[%s5114_s1 + $0x748] sm:$0xff]  }
  0xb8   :  { %3636 = vmatprep.subr.bf16.mxu0 %v4037_v12  ;;  %v4104_v12 = vld [vmem:[%s5114_s1 + $0x700] sm:$0xff]  }
  0xb9   :  { %3657 = vmatpush3.bf16.msra.mxu1 %v4036_v11  ;;  %v4103_v11 = vld [vmem:[%s5114_s1 + $0x740] sm:$0xff]  }
  0xba   :  { %3658 = vmatprep.subr.bf16.mxu1 %v4039_v14  ;;  %v4132_v14 = vmov 0.0  }
  0xbb   :  { %3637 = vmatpush3.bf16.msra.mxu0 %v4038_v13  ;;  %v4105_v13 = vld [vmem:[%s5115_s0 + $0x70] ss:$120 sps:$4 sm:$0xff]  }
  0xbc   :  { %3638 = vmatprep.subr.bf16.mxu0 %v4041_v16  ;;  %v4109_v16 = vld [vmem:[%s5116_s3 + $0x30] sm:$0xff]  }
  0xbd   :  { %3659 = vmatpush3.bf16.msra.mxu1 %v4040_v15  ;;  %v4108_v15 = vld [vmem:[%s5116_s3 + $0x38] sm:$0xff]  }
  0xbe   :  { %3660 = vmatprep.subr.bf16.mxu1 %v4043_v18  ;;  %v4111_v18 = vld [vmem:[%s5116_s3 + $0x20] sm:$0xff]  }
  0xbf   :  { %3639 = vmatpush3.bf16.msra.mxu0 %v4042_v17  ;;  %v4110_v17 = vld [vmem:[%s5116_s3 + $0x28] sm:$0xff]  }
  0xc0   :  { %3668 = vmatprep.subr.bf16.mxu0 %v4048_v22  ;;  %v4115_v22 = vld [vmem:[%s5116_s3] sm:$0xff]  }
  0xc1   :  { %3661 = vmatpush3.bf16.msra.mxu1 %v4047_v21  ;;  %v4114_v21 = vld [vmem:[%s5116_s3 + $0x8] sm:$0xff]  }
  0xc2   :  { %2583 = vmatmul.mubr.bf16.vlgmr.msra.gmra.mxu0 %v4044_v19  ;;  %3690 = vmatprep.subr.bf16.mxu1 %v4053_v26  ;;  %v4112_v19 = vld [vmem:[%s5116_s3 + $0x18] sm:$0xff]   ;;  %v4119_v26 = vld [vmem:[%s5117_s5 + $0x20] sm:$0xff]  }
  0xc3   :  { %3669 = vmatpush3.bf16.msra.mxu0 %v4052_v25  ;;  %2664 = vmatprep.mubr.bf16.mxu0 %v4084_v56  ;;  %v4118_v25 = vld [vmem:[%s5117_s5 + $0x28] sm:$0xff]  }
  0xc4   :  { %2624 = vmatmul.mubr.bf16.vlgmr.msra.gmra.mxu1 %v4049_v23  ;;  %3670 = vmatprep.subr.bf16.mxu0 %v4055_v28  ;;  %v4116_v23 = vld [vmem:[%s5117_s5 + $0x38] sm:$0xff]  }
  0xc5   :  { %3691 = vmatpush3.bf16.msra.mxu1 %v4054_v27  ;;  %2705 = vmatprep.mubr.bf16.mxu1 %v4089_v60  ;;  %v4120_v28 = vld [vmem:[%s5117_s5 + $0x18] sm:$0xff]  }
  0xc6   :  { %3692 = vmatprep.subr.bf16.mxu1 %v4057_v30 }
  0xc7   :  { %3671 = vmatpush3.bf16.msra.mxu0 %v4056_v29 }
  0xc8   :  { %3672 = vmatprep.subr.bf16.mxu0 %v4059_v32 }
  0xc9   :  { %3693 = vmatpush3.bf16.msra.mxu1 %v4058_v31 }
  0xca   :  { %3694 = vmatprep.subr.bf16.mxu1 %v4061_v34 }
  0xcb   :  { %3673 = vmatpush3.bf16.msra.mxu0 %v4060_v33 }
  0xcc   :  { %3674 = vmatprep.subr.bf16.mxu0 %v4063_v36 }
  0xcd   :  { %3695 = vmatpush3.bf16.msra.mxu1 %v4062_v35 }
  0xce   :  { %3696 = vmatprep.subr.bf16.mxu1 %v4065_v38 }
  0xcf   :  { %3675 = vmatpush3.bf16.msra.mxu0 %v4064_v37 }
  0xd0   :  { %3676 = vmatprep.subr.bf16.mxu0 %v4067_v40 }
  0xd1   :  { %3697 = vmatpush3.bf16.msra.mxu1 %v4066_v39 }
  0xd2   :  { %3698 = vmatprep.subr.bf16.mxu1 %v4069_v42 }
  0xd3   :  { %3677 = vmatpush3.bf16.msra.mxu0 %v4068_v41 }
  0xd4   :  { %3678 = vmatprep.subr.bf16.mxu0 %v4071_v44 }
  0xd5   :  { %3699 = vmatpush3.bf16.msra.mxu1 %v4070_v43 }
  0xd6   :  { %3700 = vmatprep.subr.bf16.mxu1 %v4073_v46 }
  0xd7   :  { %3679 = vmatpush3.bf16.msra.mxu0 %v4072_v45 }
  0xd8   :  { %3680 = vmatprep.subr.bf16.mxu0 %v4075_v48 }
  0xd9   :  { %3701 = vmatpush3.bf16.msra.mxu1 %v4074_v47 }
  0xda   :  { %3702 = vmatprep.subr.bf16.mxu1 %v4077_v50 }
  0xdb   :  { %3681 = vmatpush3.bf16.msra.mxu0 %v4076_v49 }
  0xdc   :  { %3682 = vmatprep.subr.bf16.mxu0 %v4079_v52 }
  0xdd   :  { %3703 = vmatpush3.bf16.msra.mxu1 %v4078_v51 }
  0xde   :  { %3704 = vmatprep.subr.bf16.mxu1 %v4081_v54 }
  0xdf   :  { %3683 = vmatpush3.bf16.msra.mxu0 %v4080_v53 }
  0xe0   :  { %3712 = vmatprep.subr.bf16.mxu0 %v4086_v58 }
  0xe1   :  { %3705 = vmatpush3.bf16.msra.mxu1 %v4085_v57 }
  0xe2   :  { %2665 = vmatmul.mubr.bf16.vlgmr.msra.gmra.mxu0 %v4082_v55  ;;  %3761 = vmatprep.subr.bf16.mxu1 %v4132_v14  ;;  %v3420_v27 = vpop.f32.mrf.mxu0 }
  0xe3   :  { %3713 = vmatpush3.bf16.msra.mxu0 %v4090_v61  ;;  %2746 = vmatprep.mubr.bf16.mxu0 %v4107_v7 }
  0xe4   :  { %2706 = vmatmul.mubr.bf16.vlgmr.msra.gmra.mxu1 %v4087_v59  ;;  %3714 = vmatprep.subr.bf16.mxu0 %v4091_v62  ;;  %v3421_v29 = vpop.f32.mrf.mxu0  ;;  %v3442_v30 = vpop.f32.mrf.mxu1 }
  0xe5   :  { %3762 = vmatpush3.bf16.msra.mxu1 %v4108_v15  ;;  %3777 = vmatprep.mubr.msk.bf16.mxu1 %vm4133_vm0, %v4132_v14 }
  0xe6   :  { %3763 = vmatprep.subr.bf16.mxu1 %v4132_v14  ;;  %v3423_v31 = vpop.f32.mrf.mxu0  ;;  %v3443_v32 = vpop.f32.mrf.mxu1 }
  0xe7   :  { %3715 = vmatpush3.bf16.msra.mxu0 %v4092_v63  ;;  %v3422_v63 = vadd.f32 %v3421_v29, %v3420_v27 }
  0xe8   :  { %3716 = vmatprep.subr.bf16.mxu0 %v4093_v0  ;;  %v3424_v33 = vpop.f32.mrf.mxu0  ;;  %v3445_v34 = vpop.f32.mrf.mxu1  ;;  %v3106_v0 = vld [vmem:[%s5118_s2] ss:$0 sm:$0xff] }
  0xe9   :  { %3764 = vmatpush3.bf16.msra.mxu1 %v4109_v16 }
  0xea   :  { %3765 = vmatprep.subr.bf16.mxu1 %v4132_v14  ;;  %v3446_v36 = vpop.f32.mrf.mxu1 }
  0xeb   :  { %3717 = vmatpush3.bf16.msra.mxu0 %v4094_v1  ;;  %v3425_v1 = vadd.f32 %v3424_v33, %v3423_v31  ;;  %v3447_v7 = vadd.f32 %v3446_v36, %v3445_v34 }
  0xec   :  { %3718 = vmatprep.subr.bf16.mxu0 %v4095_v2 }
  0xed   :  { %3766 = vmatpush3.bf16.msra.mxu1 %v4110_v17 }
  0xee   :  { %3767 = vmatprep.subr.bf16.mxu1 %v4132_v14 }
  0xef   :  { %3719 = vmatpush3.bf16.msra.mxu0 %v4096_v3 }
  0xf0   :  { %3720 = vmatprep.subr.bf16.mxu0 %v4097_v4  ;;  %v2175_v4 = vadd.f32 %v3422_v63, %v3106_v0 }
  0xf1   :  { %3768 = vmatpush3.bf16.msra.mxu1 %v4111_v18 }
  0xf2   :  { %3769 = vmatprep.subr.bf16.mxu1 %v4132_v14 }
  0xf3   :  { %3721 = vmatpush3.bf16.msra.mxu0 %v4098_v5  ;;  %v3444_v5 = vadd.f32 %v3443_v32, %v3442_v30 }
  0xf4   :  { %3722 = vmatprep.subr.bf16.mxu0 %v4099_v6  ;;  %v2178_v6 = vadd.f32 %v3425_v1, %v3106_v0 }
  0xf5   :  { %3770 = vmatpush3.bf16.msra.mxu1 %v4112_v19 }
  0xf6   :  { %3771 = vmatprep.subr.bf16.mxu1 %v4132_v14  ;;  %v2219_v15 = vadd.f32 %v3447_v7, %v2178_v6 }
  0xf7   :  { %3723 = vmatpush3.bf16.msra.mxu0 %v4100_v8 }
  0xf8   :  { %3724 = vmatprep.subr.bf16.mxu0 %v4101_v9 }
  0xf9   :  { %3772 = vmatpush3.bf16.msra.mxu1 %v4113_v20 }
  0xfa   :  { %3773 = vmatprep.subr.bf16.mxu1 %v4132_v14 }
  0xfb   :  { %3725 = vmatpush3.bf16.msra.mxu0 %v4102_v10 }
  0xfc   :  { %3726 = vmatprep.subr.bf16.mxu0 %v4103_v11  ;;  %v2216_v11 = vadd.f32 %v3444_v5, %v2175_v4 }
  0xfd   :  { %3774 = vmatpush3.bf16.msra.mxu1 %v4114_v21 }
  0xfe   :  { %3775 = vmatprep.subr.bf16.mxu1 %v4132_v14 }
  0xff   :  { %3727 = vmatpush3.bf16.msra.mxu0 %v4104_v12 }
 0x100   :  { %3781 = vmatprep.subr.bf16.mxu0 %v4132_v14 }
 0x101   :  { %3776 = vmatpush3.bf16.msra.mxu1 %v4115_v22 }
 0x102   :  { %2747 = vmatmul.mubr.bf16.vlgmr.msra.gmra.mxu0 %v4105_v13  ;;  %3801 = vmatprep.subr.bf16.mxu1 %v4132_v14  ;;  %v3464_v35 = vpop.f32.mrf.mxu0 }
 0x103   :  { %3797 = vmatprep.mubr.msk.bf16.mxu0 %vm4133_vm0, %v4132_v14  ;;  %3782 = vmatpush3.bf16.msra.mxu0 %v4116_v23 }
 0x104   :  { %3783 = vmatprep.subr.bf16.mxu0 %v4132_v14  ;;  %v3465_v37 = vpop.f32.mrf.mxu0  ;;  %v3486_v38 = vpop.f32.mrf.mxu1 }
 0x105   :  { %v3466_v8 = vadd.f32 %v3465_v37, %v3464_v35 }
 0x106   :  { %v3467_v39 = vpop.f32.mrf.mxu0  ;;  %v3487_v40 = vpop.f32.mrf.mxu1 }
 0x107   :  { %3784 = vmatpush3.bf16.msra.mxu0 %v4117_v24  ;;  %v2257_v16 = vadd.f32 %v3466_v8, %v2216_v11  ;;  %v3488_v17 = vadd.f32 %v3487_v40, %v3486_v38 }
 0x108   :  { %3785 = vmatprep.subr.bf16.mxu0 %v4132_v14  ;;  %v3468_v41 = vpop.f32.mrf.mxu0  ;;  %v3489_v42 = vpop.f32.mrf.mxu1 }
 0x109   :  { %v3469_v12 = vadd.f32 %v3468_v41, %v3467_v39  ;;  %v2298_v24 = vadd.f32 %v3488_v17, %v2257_v16 }
 0x10a   :  { %v3490_v44 = vpop.f32.mrf.mxu1 }
 0x10b   :  { %3786 = vmatpush3.bf16.msra.mxu0 %v4118_v25  ;;  %v2260_v19 = vadd.f32 %v3469_v12, %v2219_v15  ;;  %v3491_v20 = vadd.f32 %v3490_v44, %v3489_v42 }
 0x10c   :  { %3787 = vmatprep.subr.bf16.mxu0 %v4132_v14 }
 0x10f   :  { %3788 = vmatpush3.bf16.msra.mxu0 %v4119_v26  ;;  %v2301_v26 = vadd.f32 %v3491_v20, %v2260_v19 }
 0x110   :  { %3789 = vmatprep.subr.bf16.mxu0 %v4132_v14 }
 0x113   :  { %3790 = vmatpush3.bf16.msra.mxu0 %v4120_v28 }
 0x114   :  { %3791 = vmatprep.subr.bf16.mxu0 %v4132_v14 }
 0x122   :  { %v3508_v43 = vpop.f32.mrf.mxu0 }
 0x124   :  { %v3509_v45 = vpop.f32.mrf.mxu0  ;;  %v3530_v46 = vpop.f32.mrf.mxu1 }
 0x125   :  { %v3510_v21 = vadd.f32 %v3509_v45, %v3508_v43 }
 0x126   :  { %v3511_v47 = vpop.f32.mrf.mxu0  ;;  %v3531_v48 = vpop.f32.mrf.mxu1 }
 0x127   :  { %v2339_v27 = vadd.f32 %v3510_v21, %v2298_v24  ;;  %v3532_v28 = vadd.f32 %v3531_v48, %v3530_v46 }
 0x128   :  { %v3512_v49 = vpop.f32.mrf.mxu0  ;;  %v3533_v50 = vpop.f32.mrf.mxu1 }
 0x129   :  { %v3513_v25 = vadd.f32 %v3512_v49, %v3511_v47  ;;  %v2380_v34 = vadd.f32 %v3532_v28, %v2339_v27  ;;  %v4122_v27 = vld [vmem:[%s5117_s5 + $0x8] sm:$0xff]   ;;  %v4123_v28 = vld [vmem:[%s5117_s5] sm:$0xff]  }
 0x12a   :  { %v3534_v52 = vpop.f32.mrf.mxu1 }
 0x12b   :  { %v2342_v31 = vadd.f32 %v3513_v25, %v2301_v26  ;;  %v3535_v32 = vadd.f32 %v3534_v52, %v3533_v50  ;;  %v4121_v26 = vld [vmem:[%s5117_s5 + $0x10] sm:$0xff]  }
 0x12c   :  { %3792 = vmatpush3.bf16.msra.mxu0 %v4121_v26 }
 0x12d   :  { %v2383_v38 = vadd.f32 %v3535_v32, %v2342_v31  ;;  %3793 = vmatprep.subr.bf16.mxu0 %v4132_v14  ;;  %v4126_v31 = vld [vmem:[%s5119_s7 + $0x28] sm:$0xff]   ;;  %v4127_v32 = vld [vmem:[%s5119_s7 + $0x20] sm:$0xff]  }
 0x130   :  { %3794 = vmatpush3.bf16.msra.mxu0 %v4122_v27 }
 0x131   :  { %3795 = vmatprep.subr.bf16.mxu0 %v4132_v14 }
 0x134   :  { %3796 = vmatpush3.bf16.msra.mxu0 %v4123_v28 }
 0x142   :  { %v3552_v51 = vpop.f32.mrf.mxu0 }
 0x144   :  { %v3553_v53 = vpop.f32.mrf.mxu0  ;;  %v3574_v54 = vpop.f32.mrf.mxu1 }
 0x145   :  { %v3554_v33 = vadd.f32 %v3553_v53, %v3552_v51 }
 0x146   :  { %v3555_v55 = vpop.f32.mrf.mxu0  ;;  %v3575_v56 = vpop.f32.mrf.mxu1 }
 0x147   :  { %v2421_v39 = vadd.f32 %v3554_v33, %v2380_v34  ;;  %v3576_v40 = vadd.f32 %v3575_v56, %v3574_v54  ;;  %v4128_v33 = vld [vmem:[%s5119_s7 + $0x18] sm:$0xff]   ;;  %v3377_v34 = vld [vmem:[%s5120_s4] ss:$0 sm:$0xff] }
 0x148   :  { %v3556_v57 = vpop.f32.mrf.mxu0  ;;  %v3577_v58 = vpop.f32.mrf.mxu1 }
 0x149   :  { %v3557_v35 = vadd.f32 %v3556_v57, %v3555_v55  ;;  %v2462_v47 = vadd.f32 %v3576_v40, %v2421_v39 }
 0x14a   :  { %v3578_v60 = vpop.f32.mrf.mxu1 }
 0x14b   :  { %v2424_v42 = vadd.f32 %v3557_v35, %v2383_v38  ;;  %v3579_v43 = vadd.f32 %v3578_v60, %v3577_v58 }
 0x14d   :  { %v2465_v63 = vadd.f32 %v3579_v43, %v2424_v42 }
 0x162   :  { %v3596_v59 = vpop.f32.mrf.mxu0 }
 0x164   :  { %v3597_v61 = vpop.f32.mrf.mxu0  ;;  %v3618_v62 = vpop.f32.mrf.mxu1 }
 0x165   :  { %v3598_v44 = vadd.f32 %v3597_v61, %v3596_v59 }
 0x166   :  { %v3599_v2 = vpop.f32.mrf.mxu0  ;;  %v3619_v3 = vpop.f32.mrf.mxu1 }
 0x167   :  { %v2503_v0 = vadd.f32 %v3598_v44, %v2462_v47  ;;  %v3620_v50 = vadd.f32 %v3619_v3, %v3618_v62  ;;  %v4129_v44 = vld [vmem:[%s5119_s7 + $0x10] sm:$0xff]   ;;  %v4131_v47 = vld [vmem:[%s5119_s7] sm:$0xff]  }
 0x168   :  { %v3600_v9 = vpop.f32.mrf.mxu0  ;;  %v3621_v10 = vpop.f32.mrf.mxu1 }
 0x169   :  { %v3601_v49 = vadd.f32 %v3600_v9, %v3599_v2  ;;  %v2544_v1 = vadd.f32 %v3620_v50, %v2503_v0 }
 0x16a   :  { %v3622_v18 = vpop.f32.mrf.mxu1 }
 0x16b   :  { %v2506_v51 = vadd.f32 %v3601_v49, %v2465_v63  ;;  %v3623_v52 = vadd.f32 %v3622_v18, %v3621_v10  ;;  %v3386_v49 = vld [vmem:[%s5121_s6] ss:$0 sm:$0xff] }
 0x16d   :  { %v2547_v54 = vadd.f32 %v3623_v52, %v2506_v51 }
 0x182   :  { %v3640_v13 = vpop.f32.mrf.mxu0 }
 0x184   :  { %v3641_v22 = vpop.f32.mrf.mxu0  ;;  %v3662_v23 = vpop.f32.mrf.mxu1 }
 0x185   :  { %v3642_v53 = vadd.f32 %v3641_v22, %v3640_v13 }
 0x186   :  { %v3643_v29 = vpop.f32.mrf.mxu0  ;;  %v3663_v30 = vpop.f32.mrf.mxu1 }
 0x187   :  { %v2585_v56 = vadd.f32 %v3642_v53, %v2544_v1  ;;  %v3664_v5 = vadd.f32 %v3663_v30, %v3662_v23  ;;  %v4125_v30 = vld [vmem:[%s5119_s7 + $0x30] sm:$0xff]  }
 0x188   :  { %v3644_v36 = vpop.f32.mrf.mxu0  ;;  %v3665_v37 = vpop.f32.mrf.mxu1 }
 0x189   :  { %v3645_v4 = vadd.f32 %v3644_v36, %v3643_v29  ;;  %v2626_v6 = vadd.f32 %v3664_v5, %v2585_v56  ;;  %v4124_v29 = vld [vmem:[%s5119_s7 + $0x38] sm:$0xff]  }
 0x18a   :  { %v3666_v45 = vpop.f32.mrf.mxu1 }
 0x18b   :  { %v2588_v60 = vadd.f32 %v3645_v4, %v2547_v54  ;;  %v3667_v61 = vadd.f32 %v3666_v45, %v3665_v37  ;;  %v4130_v45 = vld [vmem:[%s5119_s7 + $0x8] sm:$0xff]  }
 0x18d   :  { %v2629_v62 = vadd.f32 %v3667_v61, %v2588_v60 }
 0x1a2   :  { %v3684_v41 = vpop.f32.mrf.mxu0 }
 0x1a4   :  { %v3685_v46 = vpop.f32.mrf.mxu0  ;;  %v3706_v48 = vpop.f32.mrf.mxu1 }
 0x1a5   :  { %v3686_v2 = vadd.f32 %v3685_v46, %v3684_v41 }
 0x1a6   :  { %v3687_v55 = vpop.f32.mrf.mxu0  ;;  %v3707_v57 = vpop.f32.mrf.mxu1 }
 0x1a7   :  { %v2667_v3 = vadd.f32 %v3686_v2, %v2626_v6  ;;  %v3708_v10 = vadd.f32 %v3707_v57, %v3706_v48 }
 0x1a8   :  { %v3688_v58 = vpop.f32.mrf.mxu0  ;;  %v3709_v59 = vpop.f32.mrf.mxu1 }
 0x1a9   :  { %v3689_v7 = vadd.f32 %v3688_v58, %v3687_v55  ;;  %v2708_v17 = vadd.f32 %v3708_v10, %v2667_v3 }
 0x1aa   :  { %v3710_v8 = vpop.f32.mrf.mxu1 }
 0x1ab   :  { %v2670_v12 = vadd.f32 %v3689_v7, %v2629_v62  ;;  %v3711_v13 = vadd.f32 %v3710_v8, %v3709_v59 }
 0x1ad   :  { %v2711_v19 = vadd.f32 %v3711_v13, %v2670_v12 }
 0x1c2   :  { %v3728_v9 = vpop.f32.mrf.mxu0 }
 0x1c4   :  { %v3729_v11 = vpop.f32.mrf.mxu0 }
 0x1c5   :  { %v3730_v15 = vadd.f32 %v3729_v11, %v3728_v9 }
 0x1c6   :  { %v3731_v16 = vpop.f32.mrf.mxu0 }
 0x1c7   :  { %v2749_v20 = vadd.f32 %v3730_v15, %v2708_v17 }
 0x1c8   :  { %v3732_v18 = vpop.f32.mrf.mxu0 }
 0x1c9   :  { %v3733_v21 = vadd.f32 %v3732_v18, %v3731_v16  ;;  %v2755_v23 = vmax.f32 %v2749_v20, 0.0 }
 0x1cb   :  { %v2752_v22 = vadd.f32 %v3733_v21, %v2711_v19 }
 0x1cd   :  { %v2756_v24 = vmax.f32 %v2752_v22, 0.0 }
 0x1cf   :  { %v2757_v25 = vpack.c.bf16 %v2756_v24, %v2755_v23 }
 0x1d1   :  { %3778 = vmatmul.mubr.bf16.vlgmr.msra.gmra.mxu1 %v2757_v25 }
 0x1d2   :  { %3817 = vmatprep.mubr.msk.bf16.mxu1 %vm4133_vm0, %v4132_v14  ;;  %3802 = vmatpush3.bf16.msra.mxu1 %v4124_v29 }
 0x1d3   :  { %3803 = vmatprep.subr.bf16.mxu1 %v4132_v14 }
 0x1d6   :  { %3804 = vmatpush3.bf16.msra.mxu1 %v4125_v30 }
 0x1d7   :  { %3805 = vmatprep.subr.bf16.mxu1 %v4132_v14 }
 0x1da   :  { %3806 = vmatpush3.bf16.msra.mxu1 %v4126_v31 }
 0x1db   :  { %3807 = vmatprep.subr.bf16.mxu1 %v4132_v14 }
 0x1de   :  { %3808 = vmatpush3.bf16.msra.mxu1 %v4127_v32 }
 0x1df   :  { %3809 = vmatprep.subr.bf16.mxu1 %v4132_v14 }
 0x1e2   :  { %3810 = vmatpush3.bf16.msra.mxu1 %v4128_v33 }
 0x1e3   :  { %3811 = vmatprep.subr.bf16.mxu1 %v4132_v14 }
 0x1e6   :  { %3812 = vmatpush3.bf16.msra.mxu1 %v4129_v44 }
 0x1e7   :  { %3813 = vmatprep.subr.bf16.mxu1 %v4132_v14 }
 0x1ea   :  { %3814 = vmatpush3.bf16.msra.mxu1 %v4130_v45 }
 0x1eb   :  { %3815 = vmatprep.subr.bf16.mxu1 %v4132_v14  ;;  %v3395_v14 = vld [vmem:[%s5122_s8] ss:$0 sm:$0xff] }
 0x1ee   :  { %3816 = vmatpush3.bf16.msra.mxu1 %v4131_v47 }
 0x291   :  { %v2863_v35 = vpop.f32.mrf.mxu1 }
 0x292   :  { %v2864_v37 = vadd.f32 %v3377_v34, %v2863_v35 }
 0x293   :  { %v3779_v36 = vpop.f32.mrf.mxu1 }
 0x294   :  { %v2870_v41 = vmax.f32 %v2864_v37, 0.0 }
 0x295   :  { %v2866_v38 = vpop.f32.mrf.mxu1 }
 0x296   :  { %v2867_v39 = vadd.f32 %v3377_v34, %v2866_v38 }
 0x297   :  { %v3780_v40 = vpop.f32.mrf.mxu1 }
 0x298   :  { %v2871_v42 = vmax.f32 %v2867_v39, 0.0 }
 0x29a   :  { %v2872_v43 = vpack.c.bf16 %v2871_v42, %v2870_v41 }
 0x29c   :  { %3798 = vmatmul.mubr.bf16.vlgmr.msra.gmra.mxu0 %v2872_v43 }
 0x35c   :  { %v2978_v46 = vpop.f32.mrf.mxu0 }
 0x35d   :  { %v2979_v63 = vadd.f32 %v3386_v49, %v2978_v46 }
 0x35e   :  { %v3799_v48 = vpop.f32.mrf.mxu0 }
 0x35f   :  { %v2985_v52 = vmax.f32 %v2979_v63, 0.0 }
 0x360   :  { %v2981_v0 = vpop.f32.mrf.mxu0 }
 0x361   :  { %v2982_v50 = vadd.f32 %v3386_v49, %v2981_v0 }
 0x362   :  { %v3800_v51 = vpop.f32.mrf.mxu0 }
 0x363   :  { %v2986_v53 = vmax.f32 %v2982_v50, 0.0 }
 0x365   :  { %v2987_v55 = vpack.c.bf16 %v2986_v53, %v2985_v52 }
 0x367   :  { %3818 = vmatmul.mubr.bf16.vlgmr.msra.gmra.mxu1 %v2987_v55 }
 0x427   :  { %v3093_v57 = vpop.f32.mrf.mxu1 }
 0x428   :  { %v3094_v1 = vadd.f32 %v3395_v14, %v3093_v57 }
 0x429   :  { %v3819_v4 = vpop.f32.mrf.mxu1 }
 0x42a   :  { %3100 = vst [vmem:[%s5123_s9] sm:$0xff] %v3094_v1 }
 0x42b   :  { %v3096_v54 = vpop.f32.mrf.mxu1 }
 0x42c   :  { %v3097_v56 = vadd.f32 %v3395_v14, %v3096_v54 }
 0x42d   :  { %v3820_v5 = vpop.f32.mrf.mxu1 }
 0x42e   :  { %3101 = vst [vmem:[%s5123_s9 + $0x8] sm:$0xff] %v3097_v56 }

</bundles_post_ra>
